<compile_context>
chip_gen: v5e
topology: v5e:2x2
jax: 0.10.0
libtpu: 0.0.40
codegen_flags: <defaults>
</compile_context>

<pallas_src>
import functools

import jax
import jax.numpy as jnp
from jax import lax
from jax.experimental import pallas as pl
from jax.experimental.pallas import tpu as pltpu


# ---------------------------------------------------------------------------
# per-generation capacities
# ---------------------------------------------------------------------------
def _vmem_capacity_bytes():
    try:
        info = pltpu.get_tpu_info()
        v = getattr(info, "vmem_capacity_bytes", None)
        if v:
            return int(v)
    except Exception:
        pass
    return 64 * 1024 * 1024  # conservative fallback (v7x physical VMEM)


_VMEM = _vmem_capacity_bytes()
# v7x (64 MiB): ~35 MiB scoped; v5e/v6e (128 MiB): ~70 MiB scoped.
_VMEM_LIMIT = min(int(_VMEM * 0.55), 100 * 1024 * 1024)
_ROW_CAP = 2048 if _VMEM >= (100 << 20) else 512


def _cparams(semantics):
    return pltpu.CompilerParams(
        dimension_semantics=tuple(semantics),
        vmem_limit_bytes=_VMEM_LIMIT,
    )


def _pick_tile(m, per_row_bytes, fixed_bytes=0, cap=None):
    """Largest row tile dividing m whose double-buffered footprint fits VMEM."""
    cap = _ROW_CAP if cap is None else cap
    budget = max(int(_VMEM_LIMIT * 0.6) - fixed_bytes, 64 * 1024)
    for t in (4096, 2048, 1024, 512, 256, 128, 64, 32, 16, 8):
        if t > cap or m % t:
            continue
        if t * per_row_bytes <= budget:
            return t
    return m  # full-extent fallback (legal; only hit at toy / odd shapes)


def _pick_h_tile(H, Wp, C, in_bytes, out_bytes):
    """Largest H-strip dividing H whose dwconv working set fits VMEM."""
    budget = int(_VMEM_LIMIT * 0.5)
    best = 1
    for th in range(1, min(H, 64) + 1):
        if H % th:
            continue
        est = ((th + 2) * Wp * C * in_bytes * 2          # strip + halo, double buffered
               + th * Wp * C * (out_bytes + in_bytes) * 2  # output (+ residual)
               + (th + 2) * Wp * C * 4 * 10)             # f32 window + shifted tap copies
        if est <= budget:
            best = th
    return best


# ---------------------------------------------------------------------------
# exact (erf-based) GELU, as torch.nn.functional.gelu default.
# erf via Abramowitz–Stegun 7.1.26 (|err| < 1.5e-7); exp lowers to the EUP.
# ---------------------------------------------------------------------------
_A1, _A2, _A3, _A4, _A5 = 0.254829592, -0.284496736, 1.421413741, -1.453152027, 1.061405429
_PP = 0.3275911
_INV_SQRT2 = 0.7071067811865476


def _erf(x):
    sgn = jnp.where(x >= 0.0, 1.0, -1.0)
    a = jnp.abs(x)
    t = 1.0 / (1.0 + _PP * a)
    poly = ((((_A5 * t + _A4) * t + _A3) * t + _A2) * t + _A1) * t
    return sgn * (1.0 - poly * jnp.exp(-a * a))


def _gelu(x):
    return 0.5 * x * (1.0 + _erf(x * _INV_SQRT2))


# ---------------------------------------------------------------------------
# kernels
# ---------------------------------------------------------------------------
def _dense_kernel(*refs, fuse_ln, has_bias, has_res, activation):
    # refs: x, w, [ln_gamma, ln_beta], [bias], [residual], out
    idx = 0
    x_ref = refs[idx]; idx += 1
    w_ref = refs[idx]; idx += 1
    if fuse_ln:
        g_ref, be_ref = refs[idx], refs[idx + 1]; idx += 2
    if has_bias:
        b_ref = refs[idx]; idx += 1
    if has_res:
        r_ref = refs[idx]; idx += 1
    o_ref = refs[idx]

    x = x_ref[...].astype(jnp.float32)          # element-wise math in f32 (v5e safe)
    if fuse_ln:
        mu = jnp.mean(x, axis=-1, keepdims=True)
        xc = x - mu
        var = jnp.mean(xc * xc, axis=-1, keepdims=True)
        x = xc * lax.rsqrt(var + 1e-5) * g_ref[...] + be_ref[...]

    acc = jnp.dot(x.astype(jnp.bfloat16), w_ref[...].astype(jnp.bfloat16),
                  preferred_element_type=jnp.float32)
    if has_bias:
        acc = acc + b_ref[...].astype(jnp.float32)
    if activation == "gelu":
        acc = _gelu(acc)
    if has_res:
        acc = acc + r_ref[...].astype(jnp.float32)
    o_ref[...] = acc.astype(o_ref.dtype)


def _dwconv_kernel(*refs, th, W, gelu, has_res):
    # refs: strip (1, th, W+2, C), halo_row0 (1, 1, W+2, C), halo_row1 (1, 1, W+2, C),
    #       w (3, 3, C), [residual (1, th, W, C)], out (1, th, W, C)
    if has_res:
        a_ref, r1_ref, r2_ref, w_ref, res_ref, o_ref = refs
    else:
        a_ref, r1_ref, r2_ref, w_ref, o_ref = refs
    # (th+2, W+2, C) window assembled in VMEM from the strip + the two halo rows.
    win = jnp.concatenate([a_ref[0], r1_ref[0], r2_ref[0]], axis=0).astype(jnp.float32)
    w = w_ref[...].astype(jnp.float32)
    C = win.shape[-1]
    acc = jnp.zeros((th, W, C), jnp.float32)
    for dy in range(3):
        for dx in range(3):
            acc = acc + win[dy:dy + th, dx:dx + W, :] * w[dy, dx]
    if gelu:
        acc = _gelu(acc)
    if has_res:
        acc = acc + res_ref[0].astype(jnp.float32)
    o_ref[0] = acc.astype(o_ref.dtype)


def _attn_mix_kernel(rescale_ref, x_ref, y_ref, wq_ref, wk_ref, wp_ref, m_ref,
                     ssq_q, ssq_k, gram, *, heads, dh, batched):
    t = pl.program_id(1)

    @pl.when(t == 0)
    def _():
        ssq_q[...] = jnp.zeros_like(ssq_q)
        ssq_k[...] = jnp.zeros_like(ssq_k)
        gram[...] = jnp.zeros_like(gram)

    # to_q / to_k fused: one MXU push each per n-tile.
    q = jnp.dot(x_ref[0].astype(jnp.bfloat16), wq_ref[...].astype(jnp.bfloat16),
                preferred_element_type=jnp.float32)
    k = jnp.dot(y_ref[0].astype(jnp.bfloat16), wk_ref[...].astype(jnp.bfloat16),
                preferred_element_type=jnp.float32)
    # per (head, channel) column sum-of-squares over n, accumulated across tiles
    ssq_q[...] += jnp.sum(q * q, axis=0, keepdims=True)
    ssq_k[...] += jnp.sum(k * k, axis=0, keepdims=True)

    if batched:   # heads-batched gram, used when dh >= MXU tile
        q3 = q.astype(jnp.bfloat16).reshape(q.shape[0], heads, dh)
        k3 = k.astype(jnp.bfloat16).reshape(k.shape[0], heads, dh)
        gram[...] += jnp.einsum("nhi,nhj->hij", k3, q3,
                                preferred_element_type=jnp.float32)
    else:         # full gram; per-head attn matrices are its (dh, dh) diagonal blocks
        gram[...] += lax.dot_general(k.astype(jnp.bfloat16), q.astype(jnp.bfloat16),
                                     (((0,), (0,)), ((), ())),
                                     preferred_element_type=jnp.float32)

    @pl.when(t == pl.num_programs(1) - 1)
    def _():
        # F.normalize(p=2, dim=-1, eps=1e-12) on the (..., d, n) tensors of the torch
        # code == per-column L2 norm over n, applied post-hoc to the raw gram:
        # attn_pre = diag(1/|k|) . G . diag(1/|q|).
        inv_q = jnp.minimum(lax.rsqrt(ssq_q[...]), 1e12)                  # (1, inner)
        inv_k = jnp.transpose(jnp.minimum(lax.rsqrt(ssq_k[...]), 1e12))   # (inner, 1)
        wp = wp_ref[...]
        for h in range(heads):
            lo = h * dh
            g = gram[h] if batched else gram[lo:lo + dh, lo:lo + dh]
            a = g * inv_k[lo:lo + dh, :] * inv_q[:, lo:lo + dh] * rescale_ref[h]
            a = a - jnp.max(a, axis=-1, keepdims=True)
            e = jnp.exp(a)
            p = e * pl.reciprocal(jnp.sum(e, axis=-1, keepdims=True), approx=True)
            # Re-associate (attn @ V) @ Wproj == V @ (attn-mixed Wproj):
            # m_h[j, c] = sum_i p[i, j] * Wproj[lo + i, c]
            m_ref[0, lo:lo + dh, :] = lax.dot_general(
                p, wp[lo:lo + dh, :], (((0,), (0,)), ((), ())),
                preferred_element_type=jnp.float32)


def _attn_out_kernel(x_ref, y_ref, wv_ref, m_ref, bp_ref, o_ref, v_ref):
    # to_v fused; out = V @ m + bias + x residual; V also emitted for pos_emb.
    v = jnp.dot(y_ref[0].astype(jnp.bfloat16), wv_ref[...].astype(jnp.bfloat16),
                preferred_element_type=jnp.float32)
    out = jnp.dot(v.astype(jnp.bfloat16), m_ref[0].astype(jnp.bfloat16),
                  preferred_element_type=jnp.float32)
    out = out + bp_ref[...].astype(jnp.float32) + x_ref[0].astype(jnp.float32)
    o_ref[0] = out.astype(o_ref.dtype)
    v_ref[0] = v.astype(v_ref.dtype)


# ---------------------------------------------------------------------------
# pallas_call wrappers
# ---------------------------------------------------------------------------
def dense(x, w, *, bias=None, ln=None, residual=None, activation="none",
          out_dtype=jnp.float32):
    """y = act(LN?(x) @ w + bias?) + residual?   on (M, K) -> (M, N)."""
    M, K = x.shape
    N = w.shape[1]
    in_b = x.dtype.itemsize
    out_b = jnp.dtype(out_dtype).itemsize
    res_b = residual.dtype.itemsize if residual is not None else 0
    per_row = 2 * (K * in_b + N * out_b + N * res_b) + (K + N) * 4
    fixed = K * N * 4 * 2 + (K + N) * 4 * 4
    tm = _pick_tile(M, per_row, fixed)

    in_specs = [pl.BlockSpec((tm, K), lambda i: (i, 0)),
                pl.BlockSpec((K, N), lambda i: (0, 0))]
    args = [x, w]
    if ln is not None:
        gamma, beta = ln
        in_specs += [pl.BlockSpec((1, K), lambda i: (0, 0)),
                     pl.BlockSpec((1, K), lambda i: (0, 0))]
        args += [gamma.reshape(1, K), beta.reshape(1, K)]
    if bias is not None:
        in_specs.append(pl.BlockSpec((1, N), lambda i: (0, 0)))
        args.append(bias.reshape(1, N))
    if residual is not None:
        in_specs.append(pl.BlockSpec((tm, N), lambda i: (i, 0)))
        args.append(residual)
    kernel = functools.partial(_dense_kernel, fuse_ln=ln is not None,
                               has_bias=bias is not None,
                               has_res=residual is not None, activation=activation)
    return pl.pallas_call(
        kernel,
        grid=(M // tm,),
        in_specs=in_specs,
        out_specs=pl.BlockSpec((tm, N), lambda i: (i, 0)),
        out_shape=jax.ShapeDtypeStruct((M, N), out_dtype),
        compiler_params=_cparams(("parallel",)),
    )(*args)


def dwconv3x3(x, w, *, gelu=False, residual=None, out_dtype=jnp.float32):
    """Depthwise 3x3 conv, stride 1, pad 1.  x: (B, H, W, C); w: (3, 3, C)."""
    B, H, W, C = x.shape
    # TODO(synk): fuse the halo into the BlockSpecs to drop this HBM pad copy.
    xp = jnp.pad(x, ((0, 0), (1, 1), (1, 1), (0, 0)))
    Wp = W + 2
    th = _pick_h_tile(H, Wp, C, x.dtype.itemsize, jnp.dtype(out_dtype).itemsize)

    in_specs = [
        pl.BlockSpec((1, th, Wp, C), lambda b, t: (b, t, 0, 0)),            # row strip
        pl.BlockSpec((1, 1, Wp, C), lambda b, t: (b, (t + 1) * th, 0, 0)),  # halo row +0
        pl.BlockSpec((1, 1, Wp, C), lambda b, t: (b, (t + 1) * th + 1, 0, 0)),  # halo +1
        pl.BlockSpec((3, 3, C), lambda b, t: (0, 0, 0)),                    # weights
    ]
    args = [xp, xp, xp, w]
    if residual is not None:
        in_specs.append(pl.BlockSpec((1, th, W, C), lambda b, t: (b, t, 0, 0)))
        args.append(residual)
    kernel = functools.partial(_dwconv_kernel, th=th, W=W, gelu=gelu,
                               has_res=residual is not None)
    return pl.pallas_call(
        kernel,
        grid=(B, H // th),
        in_specs=in_specs,
        out_specs=pl.BlockSpec((1, th, W, C), lambda b, t: (b, t, 0, 0)),
        out_shape=jax.ShapeDtypeStruct((B, H, W, C), out_dtype),
        compiler_params=_cparams(("parallel", "parallel")),
    )(*args)


def attn_mix(x3, y3, wq, wk, wproj, rescale, heads, dim_head):
    """Pass 1: accumulate gram / norms over n-tiles; emit m = softmax-mixed Wproj."""
    B, n, C = x3.shape
    inner = heads * dim_head
    per_row = 2 * (C * x3.dtype.itemsize + C * y3.dtype.itemsize) + 2 * inner * 4
    fixed = (2 * C * inner + inner * C) * 4 * 2 + (inner * inner + 2 * inner) * 4
    tn = _pick_tile(n, per_row, fixed)
    batched = dim_head >= 128                      # heads-batched gram only for big heads
    gram_shape = (heads, dim_head, dim_head) if batched else (inner, inner)
    kernel = functools.partial(_attn_mix_kernel, heads=heads, dh=dim_head,
                               batched=batched)
    return pl.pallas_call(
        kernel,
        grid=(B, n // tn),
        in_specs=[
            pl.BlockSpec(memory_space=pltpu.MemorySpace.SMEM),       # rescale (heads,)
            pl.BlockSpec((1, tn, C), lambda b, t: (b, t, 0)),        # x (query source)
            pl.BlockSpec((1, tn, C), lambda b, t: (b, t, 0)),        # y (key source)
            pl.BlockSpec((C, inner), lambda b, t: (0, 0)),           # wq
            pl.BlockSpec((C, inner), lambda b, t: (0, 0)),           # wk
            pl.BlockSpec((inner, C), lambda b, t: (0, 0)),           # wproj
        ],
        out_specs=pl.BlockSpec((1, inner, C), lambda b, t: (b, 0, 0)),
        out_shape=jax.ShapeDtypeStruct((B, inner, C), jnp.float32),
        scratch_shapes=[pltpu.VMEM((1, inner), jnp.float32),
                        pltpu.VMEM((1, inner), jnp.float32),
                        pltpu.VMEM(gram_shape, jnp.float32)],
        compiler_params=_cparams(("parallel", "arbitrary")),
    )(rescale, x3, y3, wq, wk, wproj)


def attn_out(x3, y3, wv, m, bproj, heads, dim_head, *, out_dtype=jnp.bfloat16):
    """Pass 2: V = y @ wv, out = V @ m + bias + x residual; also emits V."""
    B, n, C = x3.shape
    inner = heads * dim_head
    per_row = 2 * (C * x3.dtype.itemsize + C * y3.dtype.itemsize
                   + C * jnp.dtype(out_dtype).itemsize + inner * 2) + (C + inner) * 4
    fixed = (C * inner + inner * C) * 4 * 2
    tn = _pick_tile(n, per_row, fixed)
    return pl.pallas_call(
        _attn_out_kernel,
        grid=(B, n // tn),
        in_specs=[
            pl.BlockSpec((1, tn, C), lambda b, t: (b, t, 0)),        # x (residual)
            pl.BlockSpec((1, tn, C), lambda b, t: (b, t, 0)),        # y (value source)
            pl.BlockSpec((C, inner), lambda b, t: (0, 0)),           # wv
            pl.BlockSpec((1, inner, C), lambda b, t: (b, 0, 0)),     # m (per batch)
            pl.BlockSpec((1, C), lambda b, t: (0, 0)),               # proj bias
        ],
        out_specs=(pl.BlockSpec((1, tn, C), lambda b, t: (b, t, 0)),
                   pl.BlockSpec((1, tn, inner), lambda b, t: (b, t, 0))),
        out_shape=(jax.ShapeDtypeStruct((B, n, C), out_dtype),
                   jax.ShapeDtypeStruct((B, n, inner), jnp.bfloat16)),
        compiler_params=_cparams(("parallel", "parallel")),
    )(x3, y3, wv, m, bproj.reshape(1, C))


# ---------------------------------------------------------------------------
# module forward
# ---------------------------------------------------------------------------
def cross_ms_msa_block(x, y3, p, heads, dim_head):
    """Returns Cross_MS_MSA(x, y) + x  (projection / bias / residual fused)."""
    B, H, W, C = x.shape
    n = H * W
    inner = heads * dim_head
    assert inner == C, "Cross_MS_MSA.pos_emb requires heads*dim_head == dim"

    x3 = x.reshape(B, n, C)
    m = attn_mix(x3, y3, p["wq"], p["wk"], p["wproj"], p["rescale"], heads, dim_head)
    oc, v = attn_out(x3, y3, p["wv"], m, p["bproj"], heads, dim_head)

    # pos_emb: depthwise 3x3 -> GELU -> depthwise 3x3, residual (out_c + x) fused
    v_img = v.reshape(B, H, W, inner)
    pe = dwconv3x3(v_img, p["pe_w1"], gelu=True, out_dtype=jnp.bfloat16)
    out = dwconv3x3(pe, p["pe_w2"], residual=oc.reshape(B, H, W, C),
                    out_dtype=jnp.float32)
    return out                                            # == attn(x, y) + x


def feedforward_block(x, ln_g, ln_b, p):
    """Returns FeedForward(LayerNorm(x)) + x  (LN, GELUs, residual fused)."""
    B, H, W, C = x.shape
    x2 = x.reshape(B * H * W, C)
    hidden = p["w1"].shape[1]
    h1 = dense(x2, p["w1"], ln=(ln_g, ln_b), activation="gelu",
               out_dtype=jnp.bfloat16)                               # LN + 1x1 + GELU
    h2 = dwconv3x3(h1.reshape(B, H, W, hidden), p["dw"], gelu=True,
                   out_dtype=jnp.bfloat16)                           # dw 3x3 + GELU
    out = dense(h2.reshape(B * H * W, hidden), p["w3"], residual=x2,
                out_dtype=jnp.float32)                               # 1x1 + "+ x"
    return out.reshape(B, H, W, C)


def cross_msab_forward(x_nchw, y_nchw, params, heads, dim_head):
    x = jnp.transpose(x_nchw, (0, 2, 3, 1)).astype(jnp.float32)      # NCHW -> NHWC
    y = jnp.transpose(y_nchw, (0, 2, 3, 1))
    B, H, W, C = x.shape
    y3 = y.reshape(B, H * W, C).astype(jnp.bfloat16)  # k/v source, constant across blocks
    for blk in params["blocks"]:
        x = cross_ms_msa_block(x, y3, blk["msa"], heads, dim_head)
        x = feedforward_block(x, blk["ln_g"], blk["ln_b"], blk["ff"])
    return jnp.transpose(x, (0, 3, 1, 2))                            # back to NCHW


# ---------------------------------------------------------------------------
# params
# ---------------------------------------------------------------------------
def init_cross_msab_params(key, dim, dim_head, heads, num_blocks):
    inner = dim_head * heads
    hidden = dim * 4
    keys = iter(jax.random.split(key, 16 * num_blocks + 4))

    def w(*shape, scale=0.1):
        return jax.random.normal(next(keys), shape, dtype=jnp.float32) * scale

    blocks = []
    for _ in range(num_blocks):
        blocks.append({
            "msa": {
                "wq": w(dim, inner),                       # nn.Linear weights stored (in, out)
                "wk": w(dim, inner),
                "wv": w(dim, inner),
                "rescale": jnp.ones((heads,), jnp.float32),
                "wproj": w(inner, dim), "bproj": w(dim),
                "pe_w1": w(3, 3, dim), "pe_w2": w(3, 3, dim),   # depthwise (ky, kx, C)
            },
            "ln_g": jnp.ones((dim,), jnp.float32),
            "ln_b": jnp.zeros((dim,), jnp.float32),
            "ff": {"w1": w(dim, hidden), "dw": w(3, 3, hidden), "w3": w(hidden, dim)},
        })
    return {"blocks": blocks}


# ---------------------------------------------------------------------------
# main
# ---------------------------------------------------------------------------
if __name__ == "__main__":
    dim, dim_head, heads, num_blocks = 8, 4, 2, 2   # dim_head * heads == dim (required)
    B, H, W = 2, 8, 8

    key = jax.random.PRNGKey(0)
    kp, kx, ky = jax.random.split(key, 3)
    params = init_cross_msab_params(kp, dim, dim_head, heads, num_blocks)

    x = jax.random.normal(kx, (B, dim, H, W), jnp.float32)   # NCHW, like PyTorch
    y = jax.random.normal(ky, (B, dim, H, W), jnp.float32)

    fwd = jax.jit(functools.partial(cross_msab_forward, heads=heads, dim_head=dim_head))
    out = fwd(x, y, params)
    jax.block_until_ready(out)
    assert out.shape == (B, dim, H, W) and out.dtype == jnp.float32
    print("KERNEL_OK")
</pallas_src>

<mosaic_0001>
module attributes {stable_mosaic.version = 11 : i64} {
  func.func @_attn_out_kernel(%arg0: i32, %arg1: i32, %arg2: memref<1x64x8xf32, #tpu.memory_space<vmem>>, %arg3: memref<1x64x8xbf16, #tpu.memory_space<vmem>>, %arg4: memref<8x8xf32, #tpu.memory_space<vmem>>, %arg5: memref<1x8x8xf32, #tpu.memory_space<vmem>>, %arg6: memref<1x8xf32, #tpu.memory_space<vmem>>, %arg7: memref<1x64x8xbf16, #tpu.memory_space<vmem>>, %arg8: memref<1x64x8xbf16, #tpu.memory_space<vmem>>) attributes {dimension_semantics = [#tpu.dimension_semantics<parallel>, #tpu.dimension_semantics<parallel>], iteration_bounds = array<i64: 2, 1>, scalar_prefetch = 0 : i64, scratch_operands = 0 : i64, tpu.core_type = #tpu.core_type<tc>, window_params = [{transform_indices = @transform_0, window_bounds = array<i64: 1, 64, 8>}, {transform_indices = @transform_1, window_bounds = array<i64: 1, 64, 8>}, {pipeline_mode = #tpu.pipeline_mode<synchronous>, transform_indices = @transform_2, window_bounds = array<i64: 8, 8>}, {transform_indices = @transform_3, window_bounds = array<i64: 1, 8, 8>}, {pipeline_mode = #tpu.pipeline_mode<synchronous>, transform_indices = @transform_4, window_bounds = array<i64: 1, 8>}, {transform_indices = @transform_5, window_bounds = array<i64: 1, 64, 8>}, {transform_indices = @transform_6, window_bounds = array<i64: 1, 64, 8>}]} {
    %c0 = arith.constant 0 : index
    %c0_0 = arith.constant 0 : index
    %c0_1 = arith.constant 0 : index
    %0 = vector.load %arg3[%c0, %c0_0, %c0_1] : memref<1x64x8xbf16, #tpu.memory_space<vmem>>, vector<1x64x8xbf16>
    %1 = vector.shape_cast %0 : vector<1x64x8xbf16> to vector<64x8xbf16>
    %c0_2 = arith.constant 0 : index
    %c0_3 = arith.constant 0 : index
    %2 = vector.load %arg4[%c0_2, %c0_3] : memref<8x8xf32, #tpu.memory_space<vmem>>, vector<8x8xf32>
    %3 = arith.truncf %2 : vector<8x8xf32> to vector<8x8xbf16>
    %cst = arith.constant dense<0.000000e+00> : vector<64x8xf32>
    %4 = tpu.matmul %1, %3, %cst {dimension_numbers = #tpu.dot_dimension_numbers<[1], [0], [0], [1], [0, 0, 1, 1], [], []>} : vector<64x8xbf16>, vector<8x8xbf16>, vector<64x8xf32> -> vector<64x8xf32>
    %5 = arith.truncf %4 : vector<64x8xf32> to vector<64x8xbf16>
    %c0_4 = arith.constant 0 : index
    %c0_5 = arith.constant 0 : index
    %c0_6 = arith.constant 0 : index
    %6 = vector.load %arg5[%c0_4, %c0_5, %c0_6] : memref<1x8x8xf32, #tpu.memory_space<vmem>>, vector<1x8x8xf32>
    %7 = vector.shape_cast %6 : vector<1x8x8xf32> to vector<8x8xf32>
    %8 = arith.truncf %7 : vector<8x8xf32> to vector<8x8xbf16>
    %cst_7 = arith.constant dense<0.000000e+00> : vector<64x8xf32>
    %9 = tpu.matmul %5, %8, %cst_7 {dimension_numbers = #tpu.dot_dimension_numbers<[1], [0], [0], [1], [0, 0, 1, 1], [], []>} : vector<64x8xbf16>, vector<8x8xbf16>, vector<64x8xf32> -> vector<64x8xf32>
    %c0_8 = arith.constant 0 : index
    %c0_9 = arith.constant 0 : index
    %10 = vector.load %arg6[%c0_8, %c0_9] : memref<1x8xf32, #tpu.memory_space<vmem>>, vector<1x8xf32>
    %11 = vector.broadcast %10 : vector<1x8xf32> to vector<64x8xf32>
    %12 = arith.addf %9, %11 : vector<64x8xf32>
    %c0_10 = arith.constant 0 : index
    %c0_11 = arith.constant 0 : index
    %c0_12 = arith.constant 0 : index
    %13 = vector.load %arg2[%c0_10, %c0_11, %c0_12] : memref<1x64x8xf32, #tpu.memory_space<vmem>>, vector<1x64x8xf32>
    %14 = vector.shape_cast %13 : vector<1x64x8xf32> to vector<64x8xf32>
    %15 = arith.addf %12, %14 : vector<64x8xf32>
    %16 = arith.truncf %15 : vector<64x8xf32> to vector<64x8xbf16>
    %c0_13 = arith.constant 0 : index
    %c0_14 = arith.constant 0 : index
    %c0_15 = arith.constant 0 : index
    %17 = vector.load %arg7[%c0_13, %c0_14, %c0_15] : memref<1x64x8xbf16, #tpu.memory_space<vmem>>, vector<1x64x8xbf16>
    %18 = vector.shape_cast %17 : vector<1x64x8xbf16> to vector<64x8xbf16>
    %19 = vector.shape_cast %16 : vector<64x8xbf16> to vector<1x64x8xbf16>
    tpu.vector_store %arg7[%c0_13, %c0_14, %c0_15], %19 {strides = array<i32>} : memref<1x64x8xbf16, #tpu.memory_space<vmem>>, vector<1x64x8xbf16>,
    %20 = arith.truncf %4 : vector<64x8xf32> to vector<64x8xbf16>
    %c0_16 = arith.constant 0 : index
    %c0_17 = arith.constant 0 : index
    %c0_18 = arith.constant 0 : index
    %21 = vector.load %arg8[%c0_16, %c0_17, %c0_18] : memref<1x64x8xbf16, #tpu.memory_space<vmem>>, vector<1x64x8xbf16>
    %22 = vector.shape_cast %21 : vector<1x64x8xbf16> to vector<64x8xbf16>
    %23 = vector.shape_cast %20 : vector<64x8xbf16> to vector<1x64x8xbf16>
    tpu.vector_store %arg8[%c0_16, %c0_17, %c0_18], %23 {strides = array<i32>} : memref<1x64x8xbf16, #tpu.memory_space<vmem>>, vector<1x64x8xbf16>,
    return
  }
  func.func @transform_0(%arg0: i32, %arg1: i32) -> (i32, i32, i32) {
    %c0_i32 = arith.constant 0 : i32
    %c0_i32_0 = arith.constant 0 : i32
    return %arg0, %arg1, %c0_i32 : i32, i32, i32
  }
  func.func @transform_1(%arg0: i32, %arg1: i32) -> (i32, i32, i32) {
    %c0_i32 = arith.constant 0 : i32
    %c0_i32_0 = arith.constant 0 : i32
    return %arg0, %arg1, %c0_i32 : i32, i32, i32
  }
  func.func @transform_2(%arg0: i32, %arg1: i32) -> (i32, i32) {
    %c0_i32 = arith.constant 0 : i32
    %c0_i32_0 = arith.constant 0 : i32
    %c0_i32_1 = arith.constant 0 : i32
    return %c0_i32, %c0_i32_0 : i32, i32
  }
  func.func @transform_3(%arg0: i32, %arg1: i32) -> (i32, i32, i32) {
    %c0_i32 = arith.constant 0 : i32
    %c0_i32_0 = arith.constant 0 : i32
    %c0_i32_1 = arith.constant 0 : i32
    return %arg0, %c0_i32, %c0_i32_0 : i32, i32, i32
  }
  func.func @transform_4(%arg0: i32, %arg1: i32) -> (i32, i32) {
    %c0_i32 = arith.constant 0 : i32
    %c0_i32_0 = arith.constant 0 : i32
    %c0_i32_1 = arith.constant 0 : i32
    return %c0_i32, %c0_i32_0 : i32, i32
  }
  func.func @transform_5(%arg0: i32, %arg1: i32) -> (i32, i32, i32) {
    %c0_i32 = arith.constant 0 : i32
    %c0_i32_0 = arith.constant 0 : i32
    return %arg0, %arg1, %c0_i32 : i32, i32, i32
  }
  func.func @transform_6(%arg0: i32, %arg1: i32) -> (i32, i32, i32) {
    %c0_i32 = arith.constant 0 : i32
    %c0_i32_0 = arith.constant 0 : i32
    return %arg0, %arg1, %c0_i32 : i32, i32, i32
  }
}

module attributes {stable_mosaic.version = 11 : i64} {
  func.func @_attn_mix_kernel(%arg0: i32, %arg1: i32, %arg2: memref<2xf32, #tpu.memory_space<smem>>, %arg3: memref<1x64x8xf32, #tpu.memory_space<vmem>>, %arg4: memref<1x64x8xbf16, #tpu.memory_space<vmem>>, %arg5: memref<8x8xf32, #tpu.memory_space<vmem>>, %arg6: memref<8x8xf32, #tpu.memory_space<vmem>>, %arg7: memref<8x8xf32, #tpu.memory_space<vmem>>, %arg8: memref<1x8x8xf32, #tpu.memory_space<vmem>>, %arg9: memref<1x8xf32, #tpu.memory_space<vmem>>, %arg10: memref<1x8xf32, #tpu.memory_space<vmem>>, %arg11: memref<8x8xf32, #tpu.memory_space<vmem>>) attributes {dimension_semantics = [#tpu.dimension_semantics<parallel>, #tpu.dimension_semantics<arbitrary>], iteration_bounds = array<i64: 2, 1>, scalar_prefetch = 0 : i64, scratch_operands = 3 : i64, tpu.core_type = #tpu.core_type<tc>, window_params = [{transform_indices = @transform_0, window_bounds = array<i64: 2>}, {transform_indices = @transform_1, window_bounds = array<i64: 1, 64, 8>}, {transform_indices = @transform_2, window_bounds = array<i64: 1, 64, 8>}, {pipeline_mode = #tpu.pipeline_mode<synchronous>, transform_indices = @transform_3, window_bounds = array<i64: 8, 8>}, {pipeline_mode = #tpu.pipeline_mode<synchronous>, transform_indices = @transform_4, window_bounds = array<i64: 8, 8>}, {pipeline_mode = #tpu.pipeline_mode<synchronous>, transform_indices = @transform_5, window_bounds = array<i64: 8, 8>}, {transform_indices = @transform_6, window_bounds = array<i64: 1, 8, 8>}]} {
    %c0_i32 = arith.constant 0 : i32
    %0 = arith.cmpi eq, %arg1, %c0_i32 : i32
    %1 = arith.extui %0 : i1 to i32
    %c0_i32_0 = arith.constant 0 : i32
    %2 = arith.cmpi ne, %1, %c0_i32_0 : i32
    scf.if %2 {
      %cst_28 = arith.constant 0.000000e+00 : f32
      %35 = vector.broadcast %cst_28 : f32 to vector<1x8xf32>
      %c0_29 = arith.constant 0 : index
      %c0_30 = arith.constant 0 : index
      %36 = vector.load %arg9[%c0_29, %c0_30] : memref<1x8xf32, #tpu.memory_space<vmem>>, vector<1x8xf32>
      tpu.vector_store %arg9[%c0_29, %c0_30], %35 {strides = array<i32>} : memref<1x8xf32, #tpu.memory_space<vmem>>, vector<1x8xf32>,
      %cst_31 = arith.constant 0.000000e+00 : f32
      %37 = vector.broadcast %cst_31 : f32 to vector<1x8xf32>
      %c0_32 = arith.constant 0 : index
      %c0_33 = arith.constant 0 : index
      %38 = vector.load %arg10[%c0_32, %c0_33] : memref<1x8xf32, #tpu.memory_space<vmem>>, vector<1x8xf32>
      tpu.vector_store %arg10[%c0_32, %c0_33], %37 {strides = array<i32>} : memref<1x8xf32, #tpu.memory_space<vmem>>, vector<1x8xf32>,
      %cst_34 = arith.constant 0.000000e+00 : f32
      %39 = vector.broadcast %cst_34 : f32 to vector<8x8xf32>
      %c0_35 = arith.constant 0 : index
      %c0_36 = arith.constant 0 : index
      %40 = vector.load %arg11[%c0_35, %c0_36] : memref<8x8xf32, #tpu.memory_space<vmem>>, vector<8x8xf32>
      tpu.vector_store %arg11[%c0_35, %c0_36], %39 {strides = array<i32>} : memref<8x8xf32, #tpu.memory_space<vmem>>, vector<8x8xf32>,
    } else {
    }
    %c0 = arith.constant 0 : index
    %c0_1 = arith.constant 0 : index
    %c0_2 = arith.constant 0 : index
    %3 = vector.load %arg3[%c0, %c0_1, %c0_2] : memref<1x64x8xf32, #tpu.memory_space<vmem>>, vector<1x64x8xf32>
    %4 = vector.shape_cast %3 : vector<1x64x8xf32> to vector<64x8xf32>
    %5 = arith.truncf %4 : vector<64x8xf32> to vector<64x8xbf16>
    %c0_3 = arith.constant 0 : index
    %c0_4 = arith.constant 0 : index
    %6 = vector.load %arg5[%c0_3, %c0_4] : memref<8x8xf32, #tpu.memory_space<vmem>>, vector<8x8xf32>
    %7 = arith.truncf %6 : vector<8x8xf32> to vector<8x8xbf16>
    %cst = arith.constant dense<0.000000e+00> : vector<64x8xf32>
    %8 = tpu.matmul %5, %7, %cst {dimension_numbers = #tpu.dot_dimension_numbers<[1], [0], [0], [1], [0, 0, 1, 1], [], []>} : vector<64x8xbf16>, vector<8x8xbf16>, vector<64x8xf32> -> vector<64x8xf32>
    %c0_5 = arith.constant 0 : index
    %c0_6 = arith.constant 0 : index
    %c0_7 = arith.constant 0 : index
    %9 = vector.load %arg4[%c0_5, %c0_6, %c0_7] : memref<1x64x8xbf16, #tpu.memory_space<vmem>>, vector<1x64x8xbf16>
    %10 = vector.shape_cast %9 : vector<1x64x8xbf16> to vector<64x8xbf16>
    %c0_8 = arith.constant 0 : index
    %c0_9 = arith.constant 0 : index
    %11 = vector.load %arg6[%c0_8, %c0_9] : memref<8x8xf32, #tpu.memory_space<vmem>>, vector<8x8xf32>
    %12 = arith.truncf %11 : vector<8x8xf32> to vector<8x8xbf16>
    %cst_10 = arith.constant dense<0.000000e+00> : vector<64x8xf32>
    %13 = tpu.matmul %10, %12, %cst_10 {dimension_numbers = #tpu.dot_dimension_numbers<[1], [0], [0], [1], [0, 0, 1, 1], [], []>} : vector<64x8xbf16>, vector<8x8xbf16>, vector<64x8xf32> -> vector<64x8xf32>
    %c0_11 = arith.constant 0 : index
    %c0_12 = arith.constant 0 : index
    %14 = vector.load %arg9[%c0_11, %c0_12] : memref<1x8xf32, #tpu.memory_space<vmem>>, vector<1x8xf32>
    %15 = arith.mulf %8, %8 : vector<64x8xf32>
    %cst_13 = arith.constant dense<0.000000e+00> : vector<8xf32>
    %16 = vector.multi_reduction <add>, %15, %cst_13 [0] : vector<64x8xf32> to vector<8xf32>
    %17 = vector.shape_cast %16 : vector<8xf32> to vector<1x8xf32>
    %18 = arith.addf %14, %17 : vector<1x8xf32>
    %c0_14 = arith.constant 0 : index
    %c0_15 = arith.constant 0 : index
    %19 = vector.load %arg9[%c0_14, %c0_15] : memref<1x8xf32, #tpu.memory_space<vmem>>, vector<1x8xf32>
    tpu.vector_store %arg9[%c0_14, %c0_15], %18 {strides = array<i32>} : memref<1x8xf32, #tpu.memory_space<vmem>>, vector<1x8xf32>,
    %c0_16 = arith.constant 0 : index
    %c0_17 = arith.constant 0 : index
    %20 = vector.load %arg10[%c0_16, %c0_17] : memref<1x8xf32, #tpu.memory_space<vmem>>, vector<1x8xf32>
    %21 = arith.mulf %13, %13 : vector<64x8xf32>
    %cst_18 = arith.constant dense<0.000000e+00> : vector<8xf32>
    %22 = vector.multi_reduction <add>, %21, %cst_18 [0] : vector<64x8xf32> to vector<8xf32>
    %23 = vector.shape_cast %22 : vector<8xf32> to vector<1x8xf32>
    %24 = arith.addf %20, %23 : vector<1x8xf32>
    %c0_19 = arith.constant 0 : index
    %c0_20 = arith.constant 0 : index
    %25 = vector.load %arg10[%c0_19, %c0_20] : memref<1x8xf32, #tpu.memory_space<vmem>>, vector<1x8xf32>
    tpu.vector_store %arg10[%c0_19, %c0_20], %24 {strides = array<i32>} : memref<1x8xf32, #tpu.memory_space<vmem>>, vector<1x8xf32>,
    %c0_21 = arith.constant 0 : index
    %c0_22 = arith.constant 0 : index
    %26 = vector.load %arg11[%c0_21, %c0_22] : memref<8x8xf32, #tpu.memory_space<vmem>>, vector<8x8xf32>
    %27 = arith.truncf %13 : vector<64x8xf32> to vector<64x8xbf16>
    %28 = arith.truncf %8 : vector<64x8xf32> to vector<64x8xbf16>
    %cst_23 = arith.constant dense<0.000000e+00> : vector<8x8xf32>
    %29 = tpu.matmul %27, %28, %cst_23 {dimension_numbers = #tpu.dot_dimension_numbers<[0], [0], [1], [1], [0, 1, 1, 1], [], []>} : vector<64x8xbf16>, vector<64x8xbf16>, vector<8x8xf32> -> vector<8x8xf32>
    %30 = arith.addf %26, %29 : vector<8x8xf32>
    %c0_24 = arith.constant 0 : index
    %c0_25 = arith.constant 0 : index
    %31 = vector.load %arg11[%c0_24, %c0_25] : memref<8x8xf32, #tpu.memory_space<vmem>>, vector<8x8xf32>
    tpu.vector_store %arg11[%c0_24, %c0_25], %30 {strides = array<i32>} : memref<8x8xf32, #tpu.memory_space<vmem>>, vector<8x8xf32>,
    %c0_i32_26 = arith.constant 0 : i32
    %32 = arith.cmpi eq, %arg1, %c0_i32_26 : i32
    %33 = arith.extui %32 : i1 to i32
    %c0_i32_27 = arith.constant 0 : i32
    %34 = arith.cmpi ne, %33, %c0_i32_27 : i32
    scf.if %34 {
      %c0_28 = arith.constant 0 : index
      %c0_29 = arith.constant 0 : index
      %35 = vector.load %arg9[%c0_28, %c0_29] : memref<1x8xf32, #tpu.memory_space<vmem>>, vector<1x8xf32>
      %36 = math.rsqrt %35 : vector<1x8xf32>
      %cst_30 = arith.constant 9.99999995E+11 : f32
      %37 = vector.broadcast %cst_30 : f32 to vector<1x8xf32>
      %38 = arith.minimumf %36, %37 : vector<1x8xf32>
      %c0_31 = arith.constant 0 : index
      %c0_32 = arith.constant 0 : index
      %39 = vector.load %arg10[%c0_31, %c0_32] : memref<1x8xf32, #tpu.memory_space<vmem>>, vector<1x8xf32>
      %40 = math.rsqrt %39 : vector<1x8xf32>
      %cst_33 = arith.constant 9.99999995E+11 : f32
      %41 = vector.broadcast %cst_33 : f32 to vector<1x8xf32>
      %42 = arith.minimumf %40, %41 : vector<1x8xf32>
      %43 = tpu.transpose %42, [1, 0] : vector<1x8xf32> -> vector<8x1xf32>
      %c0_34 = arith.constant 0 : index
      %c0_35 = arith.constant 0 : index
      %44 = vector.load %arg7[%c0_34, %c0_35] : memref<8x8xf32, #tpu.memory_space<vmem>>, vector<8x8xf32>
      %c0_36 = arith.constant 0 : index
      %c0_37 = arith.constant 0 : index
      %45 = vector.load %arg11[%c0_36, %c0_37] : memref<8x8xf32, #tpu.memory_space<vmem>>, vector<4x4xf32>
      %46 = vector.extract_strided_slice %43 {offsets = [0, 0], sizes = [4, 1], strides = [1, 1]} : vector<8x1xf32> to vector<4x1xf32>
      %47 = vector.broadcast %46 : vector<4x1xf32> to vector<4x4xf32>
      %48 = arith.mulf %45, %47 : vector<4x4xf32>
      %49 = vector.extract_strided_slice %38 {offsets = [0, 0], sizes = [1, 4], strides = [1, 1]} : vector<1x8xf32> to vector<1x4xf32>
      %50 = vector.broadcast %49 : vector<1x4xf32> to vector<4x4xf32>
      %51 = arith.mulf %48, %50 : vector<4x4xf32>
      %c0_38 = arith.constant 0 : index
      %52 = memref.load %arg2[%c0_38] : memref<2xf32, #tpu.memory_space<smem>>
      %53 = vector.broadcast %52 : f32 to vector<4x4xf32>
      %54 = arith.mulf %51, %53 : vector<4x4xf32>
      %cst_39 = arith.constant dense<0xFF800000> : vector<4xf32>
      %55 = vector.multi_reduction <maximumf>, %54, %cst_39 [1] : vector<4x4xf32> to vector<4xf32>
      %56 = vector.shape_cast %55 : vector<4xf32> to vector<4x1xf32>
      %57 = vector.broadcast %56 : vector<4x1xf32> to vector<4x4xf32>
      %58 = arith.subf %54, %57 : vector<4x4xf32>
      %59 = math.exp %58 : vector<4x4xf32>
      %cst_40 = arith.constant dense<0.000000e+00> : vector<4xf32>
      %60 = vector.multi_reduction <add>, %59, %cst_40 [1] : vector<4x4xf32> to vector<4xf32>
      %61 = vector.shape_cast %60 : vector<4xf32> to vector<4x1xf32>
      %62 = tpu.reciprocal %61 {approx = true} : vector<4x1xf32> -> vector<4x1xf32>
      %63 = vector.broadcast %62 : vector<4x1xf32> to vector<4x4xf32>
      %64 = arith.mulf %59, %63 : vector<4x4xf32>
      %65 = vector.extract_strided_slice %44 {offsets = [0, 0], sizes = [4, 8], strides = [1, 1]} : vector<8x8xf32> to vector<4x8xf32>
      %cst_41 = arith.constant dense<0.000000e+00> : vector<4x8xf32>
      %66 = tpu.matmul %64, %65, %cst_41 {dimension_numbers = #tpu.dot_dimension_numbers<[0], [0], [1], [1], [0, 1, 1, 1], [], []>} : vector<4x4xf32>, vector<4x8xf32>, vector<4x8xf32> -> vector<4x8xf32>
      %c0_42 = arith.constant 0 : index
      %c0_43 = arith.constant 0 : index
      %c0_44 = arith.constant 0 : index
      %67 = vector.load %arg8[%c0_42, %c0_43, %c0_44] : memref<1x8x8xf32, #tpu.memory_space<vmem>>, vector<1x4x8xf32>
      %68 = vector.shape_cast %67 : vector<1x4x8xf32> to vector<4x8xf32>
      %69 = vector.shape_cast %66 : vector<4x8xf32> to vector<1x4x8xf32>
      tpu.vector_store %arg8[%c0_42, %c0_43, %c0_44], %69 {strides = array<i32>} : memref<1x8x8xf32, #tpu.memory_space<vmem>>, vector<1x4x8xf32>,
      %c4 = arith.constant 4 : index
      %c4_45 = arith.constant 4 : index
      %70 = vector.load %arg11[%c4, %c4_45] : memref<8x8xf32, #tpu.memory_space<vmem>>, vector<4x4xf32>
      %71 = vector.extract_strided_slice %43 {offsets = [4, 0], sizes = [4, 1], strides = [1, 1]} : vector<8x1xf32> to vector<4x1xf32>
      %72 = vector.broadcast %71 : vector<4x1xf32> to vector<4x4xf32>
      %73 = arith.mulf %70, %72 : vector<4x4xf32>
      %74 = vector.extract_strided_slice %38 {offsets = [0, 4], sizes = [1, 4], strides = [1, 1]} : vector<1x8xf32> to vector<1x4xf32>
      %75 = vector.broadcast %74 : vector<1x4xf32> to vector<4x4xf32>
      %76 = arith.mulf %73, %75 : vector<4x4xf32>
      %c1 = arith.constant 1 : index
      %77 = memref.load %arg2[%c1] : memref<2xf32, #tpu.memory_space<smem>>
      %78 = vector.broadcast %77 : f32 to vector<4x4xf32>
      %79 = arith.mulf %76, %78 : vector<4x4xf32>
      %cst_46 = arith.constant dense<0xFF800000> : vector<4xf32>
      %80 = vector.multi_reduction <maximumf>, %79, %cst_46 [1] : vector<4x4xf32> to vector<4xf32>
      %81 = vector.shape_cast %80 : vector<4xf32> to vector<4x1xf32>
      %82 = vector.broadcast %81 : vector<4x1xf32> to vector<4x4xf32>
      %83 = arith.subf %79, %82 : vector<4x4xf32>
      %84 = math.exp %83 : vector<4x4xf32>
      %cst_47 = arith.constant dense<0.000000e+00> : vector<4xf32>
      %85 = vector.multi_reduction <add>, %84, %cst_47 [1] : vector<4x4xf32> to vector<4xf32>
      %86 = vector.shape_cast %85 : vector<4xf32> to vector<4x1xf32>
      %87 = tpu.reciprocal %86 {approx = true} : vector<4x1xf32> -> vector<4x1xf32>
      %88 = vector.broadcast %87 : vector<4x1xf32> to vector<4x4xf32>
      %89 = arith.mulf %84, %88 : vector<4x4xf32>
      %90 = vector.extract_strided_slice %44 {offsets = [4, 0], sizes = [4, 8], strides = [1, 1]} : vector<8x8xf32> to vector<4x8xf32>
      %cst_48 = arith.constant dense<0.000000e+00> : vector<4x8xf32>
      %91 = tpu.matmul %89, %90, %cst_48 {dimension_numbers = #tpu.dot_dimension_numbers<[0], [0], [1], [1], [0, 1, 1, 1], [], []>} : vector<4x4xf32>, vector<4x8xf32>, vector<4x8xf32> -> vector<4x8xf32>
      %c0_49 = arith.constant 0 : index
      %c4_50 = arith.constant 4 : index
      %c0_51 = arith.constant 0 : index
      %92 = vector.load %arg8[%c0_49, %c4_50, %c0_51] : memref<1x8x8xf32, #tpu.memory_space<vmem>>, vector<1x4x8xf32>
      %93 = vector.shape_cast %92 : vector<1x4x8xf32> to vector<4x8xf32>
      %94 = vector.shape_cast %91 : vector<4x8xf32> to vector<1x4x8xf32>
      tpu.vector_store %arg8[%c0_49, %c4_50, %c0_51], %94 {strides = array<i32>} : memref<1x8x8xf32, #tpu.memory_space<vmem>>, vector<1x4x8xf32>,
    } else {
    }
    return
  }
  func.func @transform_0(%arg0: i32, %arg1: i32) -> i32 {
    %c0_i32 = arith.constant 0 : i32
    %c0_i32_0 = arith.constant 0 : i32
    return %c0_i32 : i32
  }
  func.func @transform_1(%arg0: i32, %arg1: i32) -> (i32, i32, i32) {
    %c0_i32 = arith.constant 0 : i32
    %c0_i32_0 = arith.constant 0 : i32
    return %arg0, %arg1, %c0_i32 : i32, i32, i32
  }
  func.func @transform_2(%arg0: i32, %arg1: i32) -> (i32, i32, i32) {
    %c0_i32 = arith.constant 0 : i32
    %c0_i32_0 = arith.constant 0 : i32
    return %arg0, %arg1, %c0_i32 : i32, i32, i32
  }
  func.func @transform_3(%arg0: i32, %arg1: i32) -> (i32, i32) {
    %c0_i32 = arith.constant 0 : i32
    %c0_i32_0 = arith.constant 0 : i32
    %c0_i32_1 = arith.constant 0 : i32
    return %c0_i32, %c0_i32_0 : i32, i32
  }
  func.func @transform_4(%arg0: i32, %arg1: i32) -> (i32, i32) {
    %c0_i32 = arith.constant 0 : i32
    %c0_i32_0 = arith.constant 0 : i32
    %c0_i32_1 = arith.constant 0 : i32
    return %c0_i32, %c0_i32_0 : i32, i32
  }
  func.func @transform_5(%arg0: i32, %arg1: i32) -> (i32, i32) {
    %c0_i32 = arith.constant 0 : i32
    %c0_i32_0 = arith.constant 0 : i32
    %c0_i32_1 = arith.constant 0 : i32
    return %c0_i32, %c0_i32_0 : i32, i32
  }
  func.func @transform_6(%arg0: i32, %arg1: i32) -> (i32, i32, i32) {
    %c0_i32 = arith.constant 0 : i32
    %c0_i32_0 = arith.constant 0 : i32
    %c0_i32_1 = arith.constant 0 : i32
    return %arg0, %c0_i32, %c0_i32_0 : i32, i32, i32
  }
}

module attributes {stable_mosaic.version = 11 : i64} {
  func.func @_dwconv_kernel(%arg0: i32, %arg1: i32, %arg2: memref<1x8x10x8xbf16, #tpu.memory_space<vmem>>, %arg3: memref<1x1x10x8xbf16, #tpu.memory_space<vmem>>, %arg4: memref<1x1x10x8xbf16, #tpu.memory_space<vmem>>, %arg5: memref<3x3x8xf32, #tpu.memory_space<vmem>>, %arg6: memref<1x8x8x8xbf16, #tpu.memory_space<vmem>>) attributes {dimension_semantics = [#tpu.dimension_semantics<parallel>, #tpu.dimension_semantics<parallel>], iteration_bounds = array<i64: 2, 1>, scalar_prefetch = 0 : i64, scratch_operands = 0 : i64, tpu.core_type = #tpu.core_type<tc>, window_params = [{transform_indices = @transform_0, window_bounds = array<i64: 1, 8, 10, 8>}, {transform_indices = @transform_1, window_bounds = array<i64: 1, 1, 10, 8>}, {transform_indices = @transform_2, window_bounds = array<i64: 1, 1, 10, 8>}, {pipeline_mode = #tpu.pipeline_mode<synchronous>, transform_indices = @transform_3, window_bounds = array<i64: 3, 3, 8>}, {transform_indices = @transform_4, window_bounds = array<i64: 1, 8, 8, 8>}]} {
    %c0 = arith.constant 0 : index
    %c0_0 = arith.constant 0 : index
    %c0_1 = arith.constant 0 : index
    %c0_2 = arith.constant 0 : index
    %0 = vector.load %arg2[%c0, %c0_0, %c0_1, %c0_2] : memref<1x8x10x8xbf16, #tpu.memory_space<vmem>>, vector<1x8x10x8xbf16>
    %1 = vector.shape_cast %0 : vector<1x8x10x8xbf16> to vector<8x10x8xbf16>
    %c0_3 = arith.constant 0 : index
    %c0_4 = arith.constant 0 : index
    %c0_5 = arith.constant 0 : index
    %c0_6 = arith.constant 0 : index
    %2 = vector.load %arg3[%c0_3, %c0_4, %c0_5, %c0_6] : memref<1x1x10x8xbf16, #tpu.memory_space<vmem>>, vector<1x1x10x8xbf16>
    %3 = vector.shape_cast %2 : vector<1x1x10x8xbf16> to vector<1x10x8xbf16>
    %c0_7 = arith.constant 0 : index
    %c0_8 = arith.constant 0 : index
    %c0_9 = arith.constant 0 : index
    %c0_10 = arith.constant 0 : index
    %4 = vector.load %arg4[%c0_7, %c0_8, %c0_9, %c0_10] : memref<1x1x10x8xbf16, #tpu.memory_space<vmem>>, vector<1x1x10x8xbf16>
    %5 = vector.shape_cast %4 : vector<1x1x10x8xbf16> to vector<1x10x8xbf16>
    %6 = tpu.concatenate %1, %3, %5 in 0 : vector<8x10x8xbf16>, vector<1x10x8xbf16>, vector<1x10x8xbf16> -> vector<10x10x8xbf16>
    %7 = arith.extf %6 : vector<10x10x8xbf16> to vector<10x10x8xf32>
    %c0_11 = arith.constant 0 : index
    %c0_12 = arith.constant 0 : index
    %c0_13 = arith.constant 0 : index
    %8 = vector.load %arg5[%c0_11, %c0_12, %c0_13] : memref<3x3x8xf32, #tpu.memory_space<vmem>>, vector<3x3x8xf32>
    %cst = arith.constant 0.000000e+00 : f32
    %9 = vector.broadcast %cst : f32 to vector<8x8x8xf32>
    %10 = vector.extract_strided_slice %7 {offsets = [0, 0, 0], sizes = [8, 8, 8], strides = [1, 1, 1]} : vector<10x10x8xf32> to vector<8x8x8xf32>
    %11 = vector.extract_strided_slice %8 {offsets = [0, 0, 0], sizes = [1, 1, 8], strides = [1, 1, 1]} : vector<3x3x8xf32> to vector<1x1x8xf32>
    %12 = vector.shape_cast %11 : vector<1x1x8xf32> to vector<8xf32>
    %13 = vector.shape_cast %12 : vector<8xf32> to vector<1x1x8xf32>
    %14 = vector.broadcast %13 : vector<1x1x8xf32> to vector<8x8x8xf32>
    %15 = arith.mulf %10, %14 : vector<8x8x8xf32>
    %16 = arith.addf %9, %15 : vector<8x8x8xf32>
    %17 = vector.extract_strided_slice %7 {offsets = [0, 1, 0], sizes = [8, 8, 8], strides = [1, 1, 1]} : vector<10x10x8xf32> to vector<8x8x8xf32>
    %18 = vector.extract_strided_slice %8 {offsets = [0, 1, 0], sizes = [1, 1, 8], strides = [1, 1, 1]} : vector<3x3x8xf32> to vector<1x1x8xf32>
    %19 = vector.shape_cast %18 : vector<1x1x8xf32> to vector<8xf32>
    %20 = vector.shape_cast %19 : vector<8xf32> to vector<1x1x8xf32>
    %21 = vector.broadcast %20 : vector<1x1x8xf32> to vector<8x8x8xf32>
    %22 = arith.mulf %17, %21 : vector<8x8x8xf32>
    %23 = arith.addf %16, %22 : vector<8x8x8xf32>
    %24 = vector.extract_strided_slice %7 {offsets = [0, 2, 0], sizes = [8, 8, 8], strides = [1, 1, 1]} : vector<10x10x8xf32> to vector<8x8x8xf32>
    %25 = vector.extract_strided_slice %8 {offsets = [0, 2, 0], sizes = [1, 1, 8], strides = [1, 1, 1]} : vector<3x3x8xf32> to vector<1x1x8xf32>
    %26 = vector.shape_cast %25 : vector<1x1x8xf32> to vector<8xf32>
    %27 = vector.shape_cast %26 : vector<8xf32> to vector<1x1x8xf32>
    %28 = vector.broadcast %27 : vector<1x1x8xf32> to vector<8x8x8xf32>
    %29 = arith.mulf %24, %28 : vector<8x8x8xf32>
    %30 = arith.addf %23, %29 : vector<8x8x8xf32>
    %31 = vector.extract_strided_slice %7 {offsets = [1, 0, 0], sizes = [8, 8, 8], strides = [1, 1, 1]} : vector<10x10x8xf32> to vector<8x8x8xf32>
    %32 = vector.extract_strided_slice %8 {offsets = [1, 0, 0], sizes = [1, 1, 8], strides = [1, 1, 1]} : vector<3x3x8xf32> to vector<1x1x8xf32>
    %33 = vector.shape_cast %32 : vector<1x1x8xf32> to vector<8xf32>
    %34 = vector.shape_cast %33 : vector<8xf32> to vector<1x1x8xf32>
    %35 = vector.broadcast %34 : vector<1x1x8xf32> to vector<8x8x8xf32>
    %36 = arith.mulf %31, %35 : vector<8x8x8xf32>
    %37 = arith.addf %30, %36 : vector<8x8x8xf32>
    %38 = vector.extract_strided_slice %7 {offsets = [1, 1, 0], sizes = [8, 8, 8], strides = [1, 1, 1]} : vector<10x10x8xf32> to vector<8x8x8xf32>
    %39 = vector.extract_strided_slice %8 {offsets = [1, 1, 0], sizes = [1, 1, 8], strides = [1, 1, 1]} : vector<3x3x8xf32> to vector<1x1x8xf32>
    %40 = vector.shape_cast %39 : vector<1x1x8xf32> to vector<8xf32>
    %41 = vector.shape_cast %40 : vector<8xf32> to vector<1x1x8xf32>
    %42 = vector.broadcast %41 : vector<1x1x8xf32> to vector<8x8x8xf32>
    %43 = arith.mulf %38, %42 : vector<8x8x8xf32>
    %44 = arith.addf %37, %43 : vector<8x8x8xf32>
    %45 = vector.extract_strided_slice %7 {offsets = [1, 2, 0], sizes = [8, 8, 8], strides = [1, 1, 1]} : vector<10x10x8xf32> to vector<8x8x8xf32>
    %46 = vector.extract_strided_slice %8 {offsets = [1, 2, 0], sizes = [1, 1, 8], strides = [1, 1, 1]} : vector<3x3x8xf32> to vector<1x1x8xf32>
    %47 = vector.shape_cast %46 : vector<1x1x8xf32> to vector<8xf32>
    %48 = vector.shape_cast %47 : vector<8xf32> to vector<1x1x8xf32>
    %49 = vector.broadcast %48 : vector<1x1x8xf32> to vector<8x8x8xf32>
    %50 = arith.mulf %45, %49 : vector<8x8x8xf32>
    %51 = arith.addf %44, %50 : vector<8x8x8xf32>
    %52 = vector.extract_strided_slice %7 {offsets = [2, 0, 0], sizes = [8, 8, 8], strides = [1, 1, 1]} : vector<10x10x8xf32> to vector<8x8x8xf32>
    %53 = vector.extract_strided_slice %8 {offsets = [2, 0, 0], sizes = [1, 1, 8], strides = [1, 1, 1]} : vector<3x3x8xf32> to vector<1x1x8xf32>
    %54 = vector.shape_cast %53 : vector<1x1x8xf32> to vector<8xf32>
    %55 = vector.shape_cast %54 : vector<8xf32> to vector<1x1x8xf32>
    %56 = vector.broadcast %55 : vector<1x1x8xf32> to vector<8x8x8xf32>
    %57 = arith.mulf %52, %56 : vector<8x8x8xf32>
    %58 = arith.addf %51, %57 : vector<8x8x8xf32>
    %59 = vector.extract_strided_slice %7 {offsets = [2, 1, 0], sizes = [8, 8, 8], strides = [1, 1, 1]} : vector<10x10x8xf32> to vector<8x8x8xf32>
    %60 = vector.extract_strided_slice %8 {offsets = [2, 1, 0], sizes = [1, 1, 8], strides = [1, 1, 1]} : vector<3x3x8xf32> to vector<1x1x8xf32>
    %61 = vector.shape_cast %60 : vector<1x1x8xf32> to vector<8xf32>
    %62 = vector.shape_cast %61 : vector<8xf32> to vector<1x1x8xf32>
    %63 = vector.broadcast %62 : vector<1x1x8xf32> to vector<8x8x8xf32>
    %64 = arith.mulf %59, %63 : vector<8x8x8xf32>
    %65 = arith.addf %58, %64 : vector<8x8x8xf32>
    %66 = vector.extract_strided_slice %7 {offsets = [2, 2, 0], sizes = [8, 8, 8], strides = [1, 1, 1]} : vector<10x10x8xf32> to vector<8x8x8xf32>
    %67 = vector.extract_strided_slice %8 {offsets = [2, 2, 0], sizes = [1, 1, 8], strides = [1, 1, 1]} : vector<3x3x8xf32> to vector<1x1x8xf32>
    %68 = vector.shape_cast %67 : vector<1x1x8xf32> to vector<8xf32>
    %69 = vector.shape_cast %68 : vector<8xf32> to vector<1x1x8xf32>
    %70 = vector.broadcast %69 : vector<1x1x8xf32> to vector<8x8x8xf32>
    %71 = arith.mulf %66, %70 : vector<8x8x8xf32>
    %72 = arith.addf %65, %71 : vector<8x8x8xf32>
    %cst_14 = arith.constant 5.000000e-01 : f32
    %73 = vector.broadcast %cst_14 : f32 to vector<8x8x8xf32>
    %74 = arith.mulf %73, %72 : vector<8x8x8xf32>
    %cst_15 = arith.constant 0.707106769 : f32
    %75 = vector.broadcast %cst_15 : f32 to vector<8x8x8xf32>
    %76 = arith.mulf %72, %75 : vector<8x8x8xf32>
    %cst_16 = arith.constant 0.000000e+00 : f32
    %77 = vector.broadcast %cst_16 : f32 to vector<8x8x8xf32>
    %78 = arith.cmpf oge, %76, %77 : vector<8x8x8xf32>
    %cst_17 = arith.constant 1.000000e+00 : f32
    %cst_18 = arith.constant -1.000000e+00 : f32
    %79 = vector.broadcast %cst_17 : f32 to vector<8x8x8xf32>
    %80 = vector.broadcast %cst_18 : f32 to vector<8x8x8xf32>
    %81 = arith.select %78, %79, %80 : vector<8x8x8xi1>, vector<8x8x8xf32>
    %82 = math.absf %76 : vector<8x8x8xf32>
    %cst_19 = arith.constant 0.327591091 : f32
    %83 = vector.broadcast %cst_19 : f32 to vector<8x8x8xf32>
    %84 = arith.mulf %83, %82 : vector<8x8x8xf32>
    %cst_20 = arith.constant 1.000000e+00 : f32
    %85 = vector.broadcast %cst_20 : f32 to vector<8x8x8xf32>
    %86 = arith.addf %85, %84 : vector<8x8x8xf32>
    %cst_21 = arith.constant 1.000000e+00 : f32
    %87 = vector.broadcast %cst_21 : f32 to vector<8x8x8xf32>
    %88 = arith.divf %87, %86 : vector<8x8x8xf32>
    %cst_22 = arith.constant 1.06140542 : f32
    %89 = vector.broadcast %cst_22 : f32 to vector<8x8x8xf32>
    %90 = arith.mulf %89, %88 : vector<8x8x8xf32>
    %cst_23 = arith.constant -1.45315206 : f32
    %91 = vector.broadcast %cst_23 : f32 to vector<8x8x8xf32>
    %92 = arith.addf %90, %91 : vector<8x8x8xf32>
    %93 = arith.mulf %92, %88 : vector<8x8x8xf32>
    %cst_24 = arith.constant 1.42141378 : f32
    %94 = vector.broadcast %cst_24 : f32 to vector<8x8x8xf32>
    %95 = arith.addf %93, %94 : vector<8x8x8xf32>
    %96 = arith.mulf %95, %88 : vector<8x8x8xf32>
    %cst_25 = arith.constant -0.284496725 : f32
    %97 = vector.broadcast %cst_25 : f32 to vector<8x8x8xf32>
    %98 = arith.addf %96, %97 : vector<8x8x8xf32>
    %99 = arith.mulf %98, %88 : vector<8x8x8xf32>
    %cst_26 = arith.constant 0.254829586 : f32
    %100 = vector.broadcast %cst_26 : f32 to vector<8x8x8xf32>
    %101 = arith.addf %99, %100 : vector<8x8x8xf32>
    %102 = arith.mulf %101, %88 : vector<8x8x8xf32>
    %cst_27 = arith.constant 0.000000e+00 : f32
    %103 = vector.broadcast %cst_27 : f32 to vector<8x8x8xf32>
    %104 = arith.subf %103, %82 : vector<8x8x8xf32>
    %105 = arith.mulf %104, %82 : vector<8x8x8xf32>
    %106 = math.exp %105 : vector<8x8x8xf32>
    %107 = arith.mulf %102, %106 : vector<8x8x8xf32>
    %cst_28 = arith.constant 1.000000e+00 : f32
    %108 = vector.broadcast %cst_28 : f32 to vector<8x8x8xf32>
    %109 = arith.subf %108, %107 : vector<8x8x8xf32>
    %110 = arith.mulf %81, %109 : vector<8x8x8xf32>
    %cst_29 = arith.constant 1.000000e+00 : f32
    %111 = vector.broadcast %cst_29 : f32 to vector<8x8x8xf32>
    %112 = arith.addf %111, %110 : vector<8x8x8xf32>
    %113 = arith.mulf %74, %112 : vector<8x8x8xf32>
    %114 = arith.truncf %113 : vector<8x8x8xf32> to vector<8x8x8xbf16>
    %c0_30 = arith.constant 0 : index
    %c0_31 = arith.constant 0 : index
    %c0_32 = arith.constant 0 : index
    %c0_33 = arith.constant 0 : index
    %115 = vector.load %arg6[%c0_30, %c0_31, %c0_32, %c0_33] : memref<1x8x8x8xbf16, #tpu.memory_space<vmem>>, vector<1x8x8x8xbf16>
    %116 = vector.shape_cast %115 : vector<1x8x8x8xbf16> to vector<8x8x8xbf16>
    %117 = vector.shape_cast %114 : vector<8x8x8xbf16> to vector<1x8x8x8xbf16>
    tpu.vector_store %arg6[%c0_30, %c0_31, %c0_32, %c0_33], %117 {strides = array<i32>} : memref<1x8x8x8xbf16, #tpu.memory_space<vmem>>, vector<1x8x8x8xbf16>,
    return
  }
  func.func @transform_0(%arg0: i32, %arg1: i32) -> (i32, i32, i32, i32) {
    %c0_i32 = arith.constant 0 : i32
    %c0_i32_0 = arith.constant 0 : i32
    %c0_i32_1 = arith.constant 0 : i32
    return %arg0, %arg1, %c0_i32, %c0_i32_0 : i32, i32, i32, i32
  }
  func.func @transform_1(%arg0: i32, %arg1: i32) -> (i32, i32, i32, i32) {
    %c1_i32 = arith.constant 1 : i32
    %0 = arith.addi %arg1, %c1_i32 : i32
    %c8_i32 = arith.constant 8 : i32
    %1 = arith.muli %0, %c8_i32 : i32
    %c0_i32 = arith.constant 0 : i32
    %c0_i32_0 = arith.constant 0 : i32
    %c0_i32_1 = arith.constant 0 : i32
    return %arg0, %1, %c0_i32, %c0_i32_0 : i32, i32, i32, i32
  }
  func.func @transform_2(%arg0: i32, %arg1: i32) -> (i32, i32, i32, i32) {
    %c1_i32 = arith.constant 1 : i32
    %0 = arith.addi %arg1, %c1_i32 : i32
    %c8_i32 = arith.constant 8 : i32
    %1 = arith.muli %0, %c8_i32 : i32
    %c1_i32_0 = arith.constant 1 : i32
    %2 = arith.addi %1, %c1_i32_0 : i32
    %c0_i32 = arith.constant 0 : i32
    %c0_i32_1 = arith.constant 0 : i32
    %c0_i32_2 = arith.constant 0 : i32
    return %arg0, %2, %c0_i32, %c0_i32_1 : i32, i32, i32, i32
  }
  func.func @transform_3(%arg0: i32, %arg1: i32) -> (i32, i32, i32) {
    %c0_i32 = arith.constant 0 : i32
    %c0_i32_0 = arith.constant 0 : i32
    %c0_i32_1 = arith.constant 0 : i32
    %c0_i32_2 = arith.constant 0 : i32
    return %c0_i32, %c0_i32_0, %c0_i32_1 : i32, i32, i32
  }
  func.func @transform_4(%arg0: i32, %arg1: i32) -> (i32, i32, i32, i32) {
    %c0_i32 = arith.constant 0 : i32
    %c0_i32_0 = arith.constant 0 : i32
    %c0_i32_1 = arith.constant 0 : i32
    return %arg0, %arg1, %c0_i32, %c0_i32_0 : i32, i32, i32, i32
  }
}

module attributes {stable_mosaic.version = 11 : i64} {
  func.func @_dwconv_kernel(%arg0: i32, %arg1: i32, %arg2: memref<1x8x10x8xbf16, #tpu.memory_space<vmem>>, %arg3: memref<1x1x10x8xbf16, #tpu.memory_space<vmem>>, %arg4: memref<1x1x10x8xbf16, #tpu.memory_space<vmem>>, %arg5: memref<3x3x8xf32, #tpu.memory_space<vmem>>, %arg6: memref<1x8x8x8xbf16, #tpu.memory_space<vmem>>, %arg7: memref<1x8x8x8xf32, #tpu.memory_space<vmem>>) attributes {dimension_semantics = [#tpu.dimension_semantics<parallel>, #tpu.dimension_semantics<parallel>], iteration_bounds = array<i64: 2, 1>, scalar_prefetch = 0 : i64, scratch_operands = 0 : i64, tpu.core_type = #tpu.core_type<tc>, window_params = [{transform_indices = @transform_0, window_bounds = array<i64: 1, 8, 10, 8>}, {transform_indices = @transform_1, window_bounds = array<i64: 1, 1, 10, 8>}, {transform_indices = @transform_2, window_bounds = array<i64: 1, 1, 10, 8>}, {pipeline_mode = #tpu.pipeline_mode<synchronous>, transform_indices = @transform_3, window_bounds = array<i64: 3, 3, 8>}, {transform_indices = @transform_4, window_bounds = array<i64: 1, 8, 8, 8>}, {transform_indices = @transform_5, window_bounds = array<i64: 1, 8, 8, 8>}]} {
    %c0 = arith.constant 0 : index
    %c0_0 = arith.constant 0 : index
    %c0_1 = arith.constant 0 : index
    %c0_2 = arith.constant 0 : index
    %0 = vector.load %arg2[%c0, %c0_0, %c0_1, %c0_2] : memref<1x8x10x8xbf16, #tpu.memory_space<vmem>>, vector<1x8x10x8xbf16>
    %1 = vector.shape_cast %0 : vector<1x8x10x8xbf16> to vector<8x10x8xbf16>
    %c0_3 = arith.constant 0 : index
    %c0_4 = arith.constant 0 : index
    %c0_5 = arith.constant 0 : index
    %c0_6 = arith.constant 0 : index
    %2 = vector.load %arg3[%c0_3, %c0_4, %c0_5, %c0_6] : memref<1x1x10x8xbf16, #tpu.memory_space<vmem>>, vector<1x1x10x8xbf16>
    %3 = vector.shape_cast %2 : vector<1x1x10x8xbf16> to vector<1x10x8xbf16>
    %c0_7 = arith.constant 0 : index
    %c0_8 = arith.constant 0 : index
    %c0_9 = arith.constant 0 : index
    %c0_10 = arith.constant 0 : index
    %4 = vector.load %arg4[%c0_7, %c0_8, %c0_9, %c0_10] : memref<1x1x10x8xbf16, #tpu.memory_space<vmem>>, vector<1x1x10x8xbf16>
    %5 = vector.shape_cast %4 : vector<1x1x10x8xbf16> to vector<1x10x8xbf16>
    %6 = tpu.concatenate %1, %3, %5 in 0 : vector<8x10x8xbf16>, vector<1x10x8xbf16>, vector<1x10x8xbf16> -> vector<10x10x8xbf16>
    %7 = arith.extf %6 : vector<10x10x8xbf16> to vector<10x10x8xf32>
    %c0_11 = arith.constant 0 : index
    %c0_12 = arith.constant 0 : index
    %c0_13 = arith.constant 0 : index
    %8 = vector.load %arg5[%c0_11, %c0_12, %c0_13] : memref<3x3x8xf32, #tpu.memory_space<vmem>>, vector<3x3x8xf32>
    %cst = arith.constant 0.000000e+00 : f32
    %9 = vector.broadcast %cst : f32 to vector<8x8x8xf32>
    %10 = vector.extract_strided_slice %7 {offsets = [0, 0, 0], sizes = [8, 8, 8], strides = [1, 1, 1]} : vector<10x10x8xf32> to vector<8x8x8xf32>
    %11 = vector.extract_strided_slice %8 {offsets = [0, 0, 0], sizes = [1, 1, 8], strides = [1, 1, 1]} : vector<3x3x8xf32> to vector<1x1x8xf32>
    %12 = vector.shape_cast %11 : vector<1x1x8xf32> to vector<8xf32>
    %13 = vector.shape_cast %12 : vector<8xf32> to vector<1x1x8xf32>
    %14 = vector.broadcast %13 : vector<1x1x8xf32> to vector<8x8x8xf32>
    %15 = arith.mulf %10, %14 : vector<8x8x8xf32>
    %16 = arith.addf %9, %15 : vector<8x8x8xf32>
    %17 = vector.extract_strided_slice %7 {offsets = [0, 1, 0], sizes = [8, 8, 8], strides = [1, 1, 1]} : vector<10x10x8xf32> to vector<8x8x8xf32>
    %18 = vector.extract_strided_slice %8 {offsets = [0, 1, 0], sizes = [1, 1, 8], strides = [1, 1, 1]} : vector<3x3x8xf32> to vector<1x1x8xf32>
    %19 = vector.shape_cast %18 : vector<1x1x8xf32> to vector<8xf32>
    %20 = vector.shape_cast %19 : vector<8xf32> to vector<1x1x8xf32>
    %21 = vector.broadcast %20 : vector<1x1x8xf32> to vector<8x8x8xf32>
    %22 = arith.mulf %17, %21 : vector<8x8x8xf32>
    %23 = arith.addf %16, %22 : vector<8x8x8xf32>
    %24 = vector.extract_strided_slice %7 {offsets = [0, 2, 0], sizes = [8, 8, 8], strides = [1, 1, 1]} : vector<10x10x8xf32> to vector<8x8x8xf32>
    %25 = vector.extract_strided_slice %8 {offsets = [0, 2, 0], sizes = [1, 1, 8], strides = [1, 1, 1]} : vector<3x3x8xf32> to vector<1x1x8xf32>
    %26 = vector.shape_cast %25 : vector<1x1x8xf32> to vector<8xf32>
    %27 = vector.shape_cast %26 : vector<8xf32> to vector<1x1x8xf32>
    %28 = vector.broadcast %27 : vector<1x1x8xf32> to vector<8x8x8xf32>
    %29 = arith.mulf %24, %28 : vector<8x8x8xf32>
    %30 = arith.addf %23, %29 : vector<8x8x8xf32>
    %31 = vector.extract_strided_slice %7 {offsets = [1, 0, 0], sizes = [8, 8, 8], strides = [1, 1, 1]} : vector<10x10x8xf32> to vector<8x8x8xf32>
    %32 = vector.extract_strided_slice %8 {offsets = [1, 0, 0], sizes = [1, 1, 8], strides = [1, 1, 1]} : vector<3x3x8xf32> to vector<1x1x8xf32>
    %33 = vector.shape_cast %32 : vector<1x1x8xf32> to vector<8xf32>
    %34 = vector.shape_cast %33 : vector<8xf32> to vector<1x1x8xf32>
    %35 = vector.broadcast %34 : vector<1x1x8xf32> to vector<8x8x8xf32>
    %36 = arith.mulf %31, %35 : vector<8x8x8xf32>
    %37 = arith.addf %30, %36 : vector<8x8x8xf32>
    %38 = vector.extract_strided_slice %7 {offsets = [1, 1, 0], sizes = [8, 8, 8], strides = [1, 1, 1]} : vector<10x10x8xf32> to vector<8x8x8xf32>
    %39 = vector.extract_strided_slice %8 {offsets = [1, 1, 0], sizes = [1, 1, 8], strides = [1, 1, 1]} : vector<3x3x8xf32> to vector<1x1x8xf32>
    %40 = vector.shape_cast %39 : vector<1x1x8xf32> to vector<8xf32>
    %41 = vector.shape_cast %40 : vector<8xf32> to vector<1x1x8xf32>
    %42 = vector.broadcast %41 : vector<1x1x8xf32> to vector<8x8x8xf32>
    %43 = arith.mulf %38, %42 : vector<8x8x8xf32>
    %44 = arith.addf %37, %43 : vector<8x8x8xf32>
    %45 = vector.extract_strided_slice %7 {offsets = [1, 2, 0], sizes = [8, 8, 8], strides = [1, 1, 1]} : vector<10x10x8xf32> to vector<8x8x8xf32>
    %46 = vector.extract_strided_slice %8 {offsets = [1, 2, 0], sizes = [1, 1, 8], strides = [1, 1, 1]} : vector<3x3x8xf32> to vector<1x1x8xf32>
    %47 = vector.shape_cast %46 : vector<1x1x8xf32> to vector<8xf32>
    %48 = vector.shape_cast %47 : vector<8xf32> to vector<1x1x8xf32>
    %49 = vector.broadcast %48 : vector<1x1x8xf32> to vector<8x8x8xf32>
    %50 = arith.mulf %45, %49 : vector<8x8x8xf32>
    %51 = arith.addf %44, %50 : vector<8x8x8xf32>
    %52 = vector.extract_strided_slice %7 {offsets = [2, 0, 0], sizes = [8, 8, 8], strides = [1, 1, 1]} : vector<10x10x8xf32> to vector<8x8x8xf32>
    %53 = vector.extract_strided_slice %8 {offsets = [2, 0, 0], sizes = [1, 1, 8], strides = [1, 1, 1]} : vector<3x3x8xf32> to vector<1x1x8xf32>
    %54 = vector.shape_cast %53 : vector<1x1x8xf32> to vector<8xf32>
    %55 = vector.shape_cast %54 : vector<8xf32> to vector<1x1x8xf32>
    %56 = vector.broadcast %55 : vector<1x1x8xf32> to vector<8x8x8xf32>
    %57 = arith.mulf %52, %56 : vector<8x8x8xf32>
    %58 = arith.addf %51, %57 : vector<8x8x8xf32>
    %59 = vector.extract_strided_slice %7 {offsets = [2, 1, 0], sizes = [8, 8, 8], strides = [1, 1, 1]} : vector<10x10x8xf32> to vector<8x8x8xf32>
    %60 = vector.extract_strided_slice %8 {offsets = [2, 1, 0], sizes = [1, 1, 8], strides = [1, 1, 1]} : vector<3x3x8xf32> to vector<1x1x8xf32>
    %61 = vector.shape_cast %60 : vector<1x1x8xf32> to vector<8xf32>
    %62 = vector.shape_cast %61 : vector<8xf32> to vector<1x1x8xf32>
    %63 = vector.broadcast %62 : vector<1x1x8xf32> to vector<8x8x8xf32>
    %64 = arith.mulf %59, %63 : vector<8x8x8xf32>
    %65 = arith.addf %58, %64 : vector<8x8x8xf32>
    %66 = vector.extract_strided_slice %7 {offsets = [2, 2, 0], sizes = [8, 8, 8], strides = [1, 1, 1]} : vector<10x10x8xf32> to vector<8x8x8xf32>
    %67 = vector.extract_strided_slice %8 {offsets = [2, 2, 0], sizes = [1, 1, 8], strides = [1, 1, 1]} : vector<3x3x8xf32> to vector<1x1x8xf32>
    %68 = vector.shape_cast %67 : vector<1x1x8xf32> to vector<8xf32>
    %69 = vector.shape_cast %68 : vector<8xf32> to vector<1x1x8xf32>
    %70 = vector.broadcast %69 : vector<1x1x8xf32> to vector<8x8x8xf32>
    %71 = arith.mulf %66, %70 : vector<8x8x8xf32>
    %72 = arith.addf %65, %71 : vector<8x8x8xf32>
    %c0_14 = arith.constant 0 : index
    %c0_15 = arith.constant 0 : index
    %c0_16 = arith.constant 0 : index
    %c0_17 = arith.constant 0 : index
    %73 = vector.load %arg6[%c0_14, %c0_15, %c0_16, %c0_17] : memref<1x8x8x8xbf16, #tpu.memory_space<vmem>>, vector<1x8x8x8xbf16>
    %74 = vector.shape_cast %73 : vector<1x8x8x8xbf16> to vector<8x8x8xbf16>
    %75 = arith.extf %74 : vector<8x8x8xbf16> to vector<8x8x8xf32>
    %76 = arith.addf %72, %75 : vector<8x8x8xf32>
    %c0_18 = arith.constant 0 : index
    %c0_19 = arith.constant 0 : index
    %c0_20 = arith.constant 0 : index
    %c0_21 = arith.constant 0 : index
    %77 = vector.load %arg7[%c0_18, %c0_19, %c0_20, %c0_21] : memref<1x8x8x8xf32, #tpu.memory_space<vmem>>, vector<1x8x8x8xf32>
    %78 = vector.shape_cast %77 : vector<1x8x8x8xf32> to vector<8x8x8xf32>
    %79 = vector.shape_cast %76 : vector<8x8x8xf32> to vector<1x8x8x8xf32>
    tpu.vector_store %arg7[%c0_18, %c0_19, %c0_20, %c0_21], %79 {strides = array<i32>} : memref<1x8x8x8xf32, #tpu.memory_space<vmem>>, vector<1x8x8x8xf32>,
    return
  }
  func.func @transform_0(%arg0: i32, %arg1: i32) -> (i32, i32, i32, i32) {
    %c0_i32 = arith.constant 0 : i32
    %c0_i32_0 = arith.constant 0 : i32
    %c0_i32_1 = arith.constant 0 : i32
    return %arg0, %arg1, %c0_i32, %c0_i32_0 : i32, i32, i32, i32
  }
  func.func @transform_1(%arg0: i32, %arg1: i32) -> (i32, i32, i32, i32) {
    %c1_i32 = arith.constant 1 : i32
    %0 = arith.addi %arg1, %c1_i32 : i32
    %c8_i32 = arith.constant 8 : i32
    %1 = arith.muli %0, %c8_i32 : i32
    %c0_i32 = arith.constant 0 : i32
    %c0_i32_0 = arith.constant 0 : i32
    %c0_i32_1 = arith.constant 0 : i32
    return %arg0, %1, %c0_i32, %c0_i32_0 : i32, i32, i32, i32
  }
  func.func @transform_2(%arg0: i32, %arg1: i32) -> (i32, i32, i32, i32) {
    %c1_i32 = arith.constant 1 : i32
    %0 = arith.addi %arg1, %c1_i32 : i32
    %c8_i32 = arith.constant 8 : i32
    %1 = arith.muli %0, %c8_i32 : i32
    %c1_i32_0 = arith.constant 1 : i32
    %2 = arith.addi %1, %c1_i32_0 : i32
    %c0_i32 = arith.constant 0 : i32
    %c0_i32_1 = arith.constant 0 : i32
    %c0_i32_2 = arith.constant 0 : i32
    return %arg0, %2, %c0_i32, %c0_i32_1 : i32, i32, i32, i32
  }
  func.func @transform_3(%arg0: i32, %arg1: i32) -> (i32, i32, i32) {
    %c0_i32 = arith.constant 0 : i32
    %c0_i32_0 = arith.constant 0 : i32
    %c0_i32_1 = arith.constant 0 : i32
    %c0_i32_2 = arith.constant 0 : i32
    return %c0_i32, %c0_i32_0, %c0_i32_1 : i32, i32, i32
  }
  func.func @transform_4(%arg0: i32, %arg1: i32) -> (i32, i32, i32, i32) {
    %c0_i32 = arith.constant 0 : i32
    %c0_i32_0 = arith.constant 0 : i32
    %c0_i32_1 = arith.constant 0 : i32
    return %arg0, %arg1, %c0_i32, %c0_i32_0 : i32, i32, i32, i32
  }
  func.func @transform_5(%arg0: i32, %arg1: i32) -> (i32, i32, i32, i32) {
    %c0_i32 = arith.constant 0 : i32
    %c0_i32_0 = arith.constant 0 : i32
    %c0_i32_1 = arith.constant 0 : i32
    return %arg0, %arg1, %c0_i32, %c0_i32_0 : i32, i32, i32, i32
  }
}

module attributes {stable_mosaic.version = 11 : i64} {
  func.func @_dwconv_kernel(%arg0: i32, %arg1: i32, %arg2: memref<1x8x10x32xbf16, #tpu.memory_space<vmem>>, %arg3: memref<1x1x10x32xbf16, #tpu.memory_space<vmem>>, %arg4: memref<1x1x10x32xbf16, #tpu.memory_space<vmem>>, %arg5: memref<3x3x32xf32, #tpu.memory_space<vmem>>, %arg6: memref<1x8x8x32xbf16, #tpu.memory_space<vmem>>) attributes {dimension_semantics = [#tpu.dimension_semantics<parallel>, #tpu.dimension_semantics<parallel>], iteration_bounds = array<i64: 2, 1>, scalar_prefetch = 0 : i64, scratch_operands = 0 : i64, tpu.core_type = #tpu.core_type<tc>, window_params = [{transform_indices = @transform_0, window_bounds = array<i64: 1, 8, 10, 32>}, {transform_indices = @transform_1, window_bounds = array<i64: 1, 1, 10, 32>}, {transform_indices = @transform_2, window_bounds = array<i64: 1, 1, 10, 32>}, {pipeline_mode = #tpu.pipeline_mode<synchronous>, transform_indices = @transform_3, window_bounds = array<i64: 3, 3, 32>}, {transform_indices = @transform_4, window_bounds = array<i64: 1, 8, 8, 32>}]} {
    %c0 = arith.constant 0 : index
    %c0_0 = arith.constant 0 : index
    %c0_1 = arith.constant 0 : index
    %c0_2 = arith.constant 0 : index
    %0 = vector.load %arg2[%c0, %c0_0, %c0_1, %c0_2] : memref<1x8x10x32xbf16, #tpu.memory_space<vmem>>, vector<1x8x10x32xbf16>
    %1 = vector.shape_cast %0 : vector<1x8x10x32xbf16> to vector<8x10x32xbf16>
    %c0_3 = arith.constant 0 : index
    %c0_4 = arith.constant 0 : index
    %c0_5 = arith.constant 0 : index
    %c0_6 = arith.constant 0 : index
    %2 = vector.load %arg3[%c0_3, %c0_4, %c0_5, %c0_6] : memref<1x1x10x32xbf16, #tpu.memory_space<vmem>>, vector<1x1x10x32xbf16>
    %3 = vector.shape_cast %2 : vector<1x1x10x32xbf16> to vector<1x10x32xbf16>
    %c0_7 = arith.constant 0 : index
    %c0_8 = arith.constant 0 : index
    %c0_9 = arith.constant 0 : index
    %c0_10 = arith.constant 0 : index
    %4 = vector.load %arg4[%c0_7, %c0_8, %c0_9, %c0_10] : memref<1x1x10x32xbf16, #tpu.memory_space<vmem>>, vector<1x1x10x32xbf16>
    %5 = vector.shape_cast %4 : vector<1x1x10x32xbf16> to vector<1x10x32xbf16>
    %6 = tpu.concatenate %1, %3, %5 in 0 : vector<8x10x32xbf16>, vector<1x10x32xbf16>, vector<1x10x32xbf16> -> vector<10x10x32xbf16>
    %7 = arith.extf %6 : vector<10x10x32xbf16> to vector<10x10x32xf32>
    %c0_11 = arith.constant 0 : index
    %c0_12 = arith.constant 0 : index
    %c0_13 = arith.constant 0 : index
    %8 = vector.load %arg5[%c0_11, %c0_12, %c0_13] : memref<3x3x32xf32, #tpu.memory_space<vmem>>, vector<3x3x32xf32>
    %cst = arith.constant 0.000000e+00 : f32
    %9 = vector.broadcast %cst : f32 to vector<8x8x32xf32>
    %10 = vector.extract_strided_slice %7 {offsets = [0, 0, 0], sizes = [8, 8, 32], strides = [1, 1, 1]} : vector<10x10x32xf32> to vector<8x8x32xf32>
    %11 = vector.extract_strided_slice %8 {offsets = [0, 0, 0], sizes = [1, 1, 32], strides = [1, 1, 1]} : vector<3x3x32xf32> to vector<1x1x32xf32>
    %12 = vector.shape_cast %11 : vector<1x1x32xf32> to vector<32xf32>
    %13 = vector.shape_cast %12 : vector<32xf32> to vector<1x1x32xf32>
    %14 = vector.broadcast %13 : vector<1x1x32xf32> to vector<8x8x32xf32>
    %15 = arith.mulf %10, %14 : vector<8x8x32xf32>
    %16 = arith.addf %9, %15 : vector<8x8x32xf32>
    %17 = vector.extract_strided_slice %7 {offsets = [0, 1, 0], sizes = [8, 8, 32], strides = [1, 1, 1]} : vector<10x10x32xf32> to vector<8x8x32xf32>
    %18 = vector.extract_strided_slice %8 {offsets = [0, 1, 0], sizes = [1, 1, 32], strides = [1, 1, 1]} : vector<3x3x32xf32> to vector<1x1x32xf32>
    %19 = vector.shape_cast %18 : vector<1x1x32xf32> to vector<32xf32>
    %20 = vector.shape_cast %19 : vector<32xf32> to vector<1x1x32xf32>
    %21 = vector.broadcast %20 : vector<1x1x32xf32> to vector<8x8x32xf32>
    %22 = arith.mulf %17, %21 : vector<8x8x32xf32>
    %23 = arith.addf %16, %22 : vector<8x8x32xf32>
    %24 = vector.extract_strided_slice %7 {offsets = [0, 2, 0], sizes = [8, 8, 32], strides = [1, 1, 1]} : vector<10x10x32xf32> to vector<8x8x32xf32>
    %25 = vector.extract_strided_slice %8 {offsets = [0, 2, 0], sizes = [1, 1, 32], strides = [1, 1, 1]} : vector<3x3x32xf32> to vector<1x1x32xf32>
    %26 = vector.shape_cast %25 : vector<1x1x32xf32> to vector<32xf32>
    %27 = vector.shape_cast %26 : vector<32xf32> to vector<1x1x32xf32>
    %28 = vector.broadcast %27 : vector<1x1x32xf32> to vector<8x8x32xf32>
    %29 = arith.mulf %24, %28 : vector<8x8x32xf32>
    %30 = arith.addf %23, %29 : vector<8x8x32xf32>
    %31 = vector.extract_strided_slice %7 {offsets = [1, 0, 0], sizes = [8, 8, 32], strides = [1, 1, 1]} : vector<10x10x32xf32> to vector<8x8x32xf32>
    %32 = vector.extract_strided_slice %8 {offsets = [1, 0, 0], sizes = [1, 1, 32], strides = [1, 1, 1]} : vector<3x3x32xf32> to vector<1x1x32xf32>
    %33 = vector.shape_cast %32 : vector<1x1x32xf32> to vector<32xf32>
    %34 = vector.shape_cast %33 : vector<32xf32> to vector<1x1x32xf32>
    %35 = vector.broadcast %34 : vector<1x1x32xf32> to vector<8x8x32xf32>
    %36 = arith.mulf %31, %35 : vector<8x8x32xf32>
    %37 = arith.addf %30, %36 : vector<8x8x32xf32>
    %38 = vector.extract_strided_slice %7 {offsets = [1, 1, 0], sizes = [8, 8, 32], strides = [1, 1, 1]} : vector<10x10x32xf32> to vector<8x8x32xf32>
    %39 = vector.extract_strided_slice %8 {offsets = [1, 1, 0], sizes = [1, 1, 32], strides = [1, 1, 1]} : vector<3x3x32xf32> to vector<1x1x32xf32>
    %40 = vector.shape_cast %39 : vector<1x1x32xf32> to vector<32xf32>
    %41 = vector.shape_cast %40 : vector<32xf32> to vector<1x1x32xf32>
    %42 = vector.broadcast %41 : vector<1x1x32xf32> to vector<8x8x32xf32>
    %43 = arith.mulf %38, %42 : vector<8x8x32xf32>
    %44 = arith.addf %37, %43 : vector<8x8x32xf32>
    %45 = vector.extract_strided_slice %7 {offsets = [1, 2, 0], sizes = [8, 8, 32], strides = [1, 1, 1]} : vector<10x10x32xf32> to vector<8x8x32xf32>
    %46 = vector.extract_strided_slice %8 {offsets = [1, 2, 0], sizes = [1, 1, 32], strides = [1, 1, 1]} : vector<3x3x32xf32> to vector<1x1x32xf32>
    %47 = vector.shape_cast %46 : vector<1x1x32xf32> to vector<32xf32>
    %48 = vector.shape_cast %47 : vector<32xf32> to vector<1x1x32xf32>
    %49 = vector.broadcast %48 : vector<1x1x32xf32> to vector<8x8x32xf32>
    %50 = arith.mulf %45, %49 : vector<8x8x32xf32>
    %51 = arith.addf %44, %50 : vector<8x8x32xf32>
    %52 = vector.extract_strided_slice %7 {offsets = [2, 0, 0], sizes = [8, 8, 32], strides = [1, 1, 1]} : vector<10x10x32xf32> to vector<8x8x32xf32>
    %53 = vector.extract_strided_slice %8 {offsets = [2, 0, 0], sizes = [1, 1, 32], strides = [1, 1, 1]} : vector<3x3x32xf32> to vector<1x1x32xf32>
    %54 = vector.shape_cast %53 : vector<1x1x32xf32> to vector<32xf32>
    %55 = vector.shape_cast %54 : vector<32xf32> to vector<1x1x32xf32>
    %56 = vector.broadcast %55 : vector<1x1x32xf32> to vector<8x8x32xf32>
    %57 = arith.mulf %52, %56 : vector<8x8x32xf32>
    %58 = arith.addf %51, %57 : vector<8x8x32xf32>
    %59 = vector.extract_strided_slice %7 {offsets = [2, 1, 0], sizes = [8, 8, 32], strides = [1, 1, 1]} : vector<10x10x32xf32> to vector<8x8x32xf32>
    %60 = vector.extract_strided_slice %8 {offsets = [2, 1, 0], sizes = [1, 1, 32], strides = [1, 1, 1]} : vector<3x3x32xf32> to vector<1x1x32xf32>
    %61 = vector.shape_cast %60 : vector<1x1x32xf32> to vector<32xf32>
    %62 = vector.shape_cast %61 : vector<32xf32> to vector<1x1x32xf32>
    %63 = vector.broadcast %62 : vector<1x1x32xf32> to vector<8x8x32xf32>
    %64 = arith.mulf %59, %63 : vector<8x8x32xf32>
    %65 = arith.addf %58, %64 : vector<8x8x32xf32>
    %66 = vector.extract_strided_slice %7 {offsets = [2, 2, 0], sizes = [8, 8, 32], strides = [1, 1, 1]} : vector<10x10x32xf32> to vector<8x8x32xf32>
    %67 = vector.extract_strided_slice %8 {offsets = [2, 2, 0], sizes = [1, 1, 32], strides = [1, 1, 1]} : vector<3x3x32xf32> to vector<1x1x32xf32>
    %68 = vector.shape_cast %67 : vector<1x1x32xf32> to vector<32xf32>
    %69 = vector.shape_cast %68 : vector<32xf32> to vector<1x1x32xf32>
    %70 = vector.broadcast %69 : vector<1x1x32xf32> to vector<8x8x32xf32>
    %71 = arith.mulf %66, %70 : vector<8x8x32xf32>
    %72 = arith.addf %65, %71 : vector<8x8x32xf32>
    %cst_14 = arith.constant 5.000000e-01 : f32
    %73 = vector.broadcast %cst_14 : f32 to vector<8x8x32xf32>
    %74 = arith.mulf %73, %72 : vector<8x8x32xf32>
    %cst_15 = arith.constant 0.707106769 : f32
    %75 = vector.broadcast %cst_15 : f32 to vector<8x8x32xf32>
    %76 = arith.mulf %72, %75 : vector<8x8x32xf32>
    %cst_16 = arith.constant 0.000000e+00 : f32
    %77 = vector.broadcast %cst_16 : f32 to vector<8x8x32xf32>
    %78 = arith.cmpf oge, %76, %77 : vector<8x8x32xf32>
    %cst_17 = arith.constant 1.000000e+00 : f32
    %cst_18 = arith.constant -1.000000e+00 : f32
    %79 = vector.broadcast %cst_17 : f32 to vector<8x8x32xf32>
    %80 = vector.broadcast %cst_18 : f32 to vector<8x8x32xf32>
    %81 = arith.select %78, %79, %80 : vector<8x8x32xi1>, vector<8x8x32xf32>
    %82 = math.absf %76 : vector<8x8x32xf32>
    %cst_19 = arith.constant 0.327591091 : f32
    %83 = vector.broadcast %cst_19 : f32 to vector<8x8x32xf32>
    %84 = arith.mulf %83, %82 : vector<8x8x32xf32>
    %cst_20 = arith.constant 1.000000e+00 : f32
    %85 = vector.broadcast %cst_20 : f32 to vector<8x8x32xf32>
    %86 = arith.addf %85, %84 : vector<8x8x32xf32>
    %cst_21 = arith.constant 1.000000e+00 : f32
    %87 = vector.broadcast %cst_21 : f32 to vector<8x8x32xf32>
    %88 = arith.divf %87, %86 : vector<8x8x32xf32>
    %cst_22 = arith.constant 1.06140542 : f32
    %89 = vector.broadcast %cst_22 : f32 to vector<8x8x32xf32>
    %90 = arith.mulf %89, %88 : vector<8x8x32xf32>
    %cst_23 = arith.constant -1.45315206 : f32
    %91 = vector.broadcast %cst_23 : f32 to vector<8x8x32xf32>
    %92 = arith.addf %90, %91 : vector<8x8x32xf32>
    %93 = arith.mulf %92, %88 : vector<8x8x32xf32>
    %cst_24 = arith.constant 1.42141378 : f32
    %94 = vector.broadcast %cst_24 : f32 to vector<8x8x32xf32>
    %95 = arith.addf %93, %94 : vector<8x8x32xf32>
    %96 = arith.mulf %95, %88 : vector<8x8x32xf32>
    %cst_25 = arith.constant -0.284496725 : f32
    %97 = vector.broadcast %cst_25 : f32 to vector<8x8x32xf32>
    %98 = arith.addf %96, %97 : vector<8x8x32xf32>
    %99 = arith.mulf %98, %88 : vector<8x8x32xf32>
    %cst_26 = arith.constant 0.254829586 : f32
    %100 = vector.broadcast %cst_26 : f32 to vector<8x8x32xf32>
    %101 = arith.addf %99, %100 : vector<8x8x32xf32>
    %102 = arith.mulf %101, %88 : vector<8x8x32xf32>
    %cst_27 = arith.constant 0.000000e+00 : f32
    %103 = vector.broadcast %cst_27 : f32 to vector<8x8x32xf32>
    %104 = arith.subf %103, %82 : vector<8x8x32xf32>
    %105 = arith.mulf %104, %82 : vector<8x8x32xf32>
    %106 = math.exp %105 : vector<8x8x32xf32>
    %107 = arith.mulf %102, %106 : vector<8x8x32xf32>
    %cst_28 = arith.constant 1.000000e+00 : f32
    %108 = vector.broadcast %cst_28 : f32 to vector<8x8x32xf32>
    %109 = arith.subf %108, %107 : vector<8x8x32xf32>
    %110 = arith.mulf %81, %109 : vector<8x8x32xf32>
    %cst_29 = arith.constant 1.000000e+00 : f32
    %111 = vector.broadcast %cst_29 : f32 to vector<8x8x32xf32>
    %112 = arith.addf %111, %110 : vector<8x8x32xf32>
    %113 = arith.mulf %74, %112 : vector<8x8x32xf32>
    %114 = arith.truncf %113 : vector<8x8x32xf32> to vector<8x8x32xbf16>
    %c0_30 = arith.constant 0 : index
    %c0_31 = arith.constant 0 : index
    %c0_32 = arith.constant 0 : index
    %c0_33 = arith.constant 0 : index
    %115 = vector.load %arg6[%c0_30, %c0_31, %c0_32, %c0_33] : memref<1x8x8x32xbf16, #tpu.memory_space<vmem>>, vector<1x8x8x32xbf16>
    %116 = vector.shape_cast %115 : vector<1x8x8x32xbf16> to vector<8x8x32xbf16>
    %117 = vector.shape_cast %114 : vector<8x8x32xbf16> to vector<1x8x8x32xbf16>
    tpu.vector_store %arg6[%c0_30, %c0_31, %c0_32, %c0_33], %117 {strides = array<i32>} : memref<1x8x8x32xbf16, #tpu.memory_space<vmem>>, vector<1x8x8x32xbf16>,
    return
  }
  func.func @transform_0(%arg0: i32, %arg1: i32) -> (i32, i32, i32, i32) {
    %c0_i32 = arith.constant 0 : i32
    %c0_i32_0 = arith.constant 0 : i32
    %c0_i32_1 = arith.constant 0 : i32
    return %arg0, %arg1, %c0_i32, %c0_i32_0 : i32, i32, i32, i32
  }
  func.func @transform_1(%arg0: i32, %arg1: i32) -> (i32, i32, i32, i32) {
    %c1_i32 = arith.constant 1 : i32
    %0 = arith.addi %arg1, %c1_i32 : i32
    %c8_i32 = arith.constant 8 : i32
    %1 = arith.muli %0, %c8_i32 : i32
    %c0_i32 = arith.constant 0 : i32
    %c0_i32_0 = arith.constant 0 : i32
    %c0_i32_1 = arith.constant 0 : i32
    return %arg0, %1, %c0_i32, %c0_i32_0 : i32, i32, i32, i32
  }
  func.func @transform_2(%arg0: i32, %arg1: i32) -> (i32, i32, i32, i32) {
    %c1_i32 = arith.constant 1 : i32
    %0 = arith.addi %arg1, %c1_i32 : i32
    %c8_i32 = arith.constant 8 : i32
    %1 = arith.muli %0, %c8_i32 : i32
    %c1_i32_0 = arith.constant 1 : i32
    %2 = arith.addi %1, %c1_i32_0 : i32
    %c0_i32 = arith.constant 0 : i32
    %c0_i32_1 = arith.constant 0 : i32
    %c0_i32_2 = arith.constant 0 : i32
    return %arg0, %2, %c0_i32, %c0_i32_1 : i32, i32, i32, i32
  }
  func.func @transform_3(%arg0: i32, %arg1: i32) -> (i32, i32, i32) {
    %c0_i32 = arith.constant 0 : i32
    %c0_i32_0 = arith.constant 0 : i32
    %c0_i32_1 = arith.constant 0 : i32
    %c0_i32_2 = arith.constant 0 : i32
    return %c0_i32, %c0_i32_0, %c0_i32_1 : i32, i32, i32
  }
  func.func @transform_4(%arg0: i32, %arg1: i32) -> (i32, i32, i32, i32) {
    %c0_i32 = arith.constant 0 : i32
    %c0_i32_0 = arith.constant 0 : i32
    %c0_i32_1 = arith.constant 0 : i32
    return %arg0, %arg1, %c0_i32, %c0_i32_0 : i32, i32, i32, i32
  }
}

module attributes {stable_mosaic.version = 11 : i64} {
  func.func @_dense_kernel(%arg0: i32, %arg1: memref<128x8xf32, #tpu.memory_space<vmem>>, %arg2: memref<8x32xf32, #tpu.memory_space<vmem>>, %arg3: memref<1x8xf32, #tpu.memory_space<vmem>>, %arg4: memref<1x8xf32, #tpu.memory_space<vmem>>, %arg5: memref<128x32xbf16, #tpu.memory_space<vmem>>) attributes {dimension_semantics = [#tpu.dimension_semantics<parallel>], iteration_bounds = array<i64: 1>, scalar_prefetch = 0 : i64, scratch_operands = 0 : i64, tpu.core_type = #tpu.core_type<tc>, window_params = [{transform_indices = @transform_0, window_bounds = array<i64: 128, 8>}, {pipeline_mode = #tpu.pipeline_mode<synchronous>, transform_indices = @transform_1, window_bounds = array<i64: 8, 32>}, {pipeline_mode = #tpu.pipeline_mode<synchronous>, transform_indices = @transform_2, window_bounds = array<i64: 1, 8>}, {pipeline_mode = #tpu.pipeline_mode<synchronous>, transform_indices = @transform_3, window_bounds = array<i64: 1, 8>}, {transform_indices = @transform_4, window_bounds = array<i64: 128, 32>}]} {
    %c0 = arith.constant 0 : index
    %c0_0 = arith.constant 0 : index
    %0 = vector.load %arg1[%c0, %c0_0] : memref<128x8xf32, #tpu.memory_space<vmem>>, vector<128x8xf32>
    %cst = arith.constant dense<0.000000e+00> : vector<128xf32>
    %1 = vector.multi_reduction <add>, %0, %cst [1] : vector<128x8xf32> to vector<128xf32>
    %2 = vector.shape_cast %1 : vector<128xf32> to vector<128x1xf32>
    %cst_1 = arith.constant 8.000000e+00 : f32
    %3 = vector.broadcast %cst_1 : f32 to vector<128x1xf32>
    %4 = arith.divf %2, %3 : vector<128x1xf32>
    %5 = vector.broadcast %4 : vector<128x1xf32> to vector<128x8xf32>
    %6 = arith.subf %0, %5 : vector<128x8xf32>
    %7 = arith.mulf %6, %6 : vector<128x8xf32>
    %cst_2 = arith.constant dense<0.000000e+00> : vector<128xf32>
    %8 = vector.multi_reduction <add>, %7, %cst_2 [1] : vector<128x8xf32> to vector<128xf32>
    %9 = vector.shape_cast %8 : vector<128xf32> to vector<128x1xf32>
    %cst_3 = arith.constant 8.000000e+00 : f32
    %10 = vector.broadcast %cst_3 : f32 to vector<128x1xf32>
    %11 = arith.divf %9, %10 : vector<128x1xf32>
    %cst_4 = arith.constant 9.99999974E-6 : f32
    %12 = vector.broadcast %cst_4 : f32 to vector<128x1xf32>
    %13 = arith.addf %11, %12 : vector<128x1xf32>
    %14 = math.rsqrt %13 : vector<128x1xf32>
    %15 = vector.broadcast %14 : vector<128x1xf32> to vector<128x8xf32>
    %16 = arith.mulf %6, %15 : vector<128x8xf32>
    %c0_5 = arith.constant 0 : index
    %c0_6 = arith.constant 0 : index
    %17 = vector.load %arg3[%c0_5, %c0_6] : memref<1x8xf32, #tpu.memory_space<vmem>>, vector<1x8xf32>
    %18 = vector.broadcast %17 : vector<1x8xf32> to vector<128x8xf32>
    %19 = arith.mulf %16, %18 : vector<128x8xf32>
    %c0_7 = arith.constant 0 : index
    %c0_8 = arith.constant 0 : index
    %20 = vector.load %arg4[%c0_7, %c0_8] : memref<1x8xf32, #tpu.memory_space<vmem>>, vector<1x8xf32>
    %21 = vector.broadcast %20 : vector<1x8xf32> to vector<128x8xf32>
    %22 = arith.addf %19, %21 : vector<128x8xf32>
    %23 = arith.truncf %22 : vector<128x8xf32> to vector<128x8xbf16>
    %c0_9 = arith.constant 0 : index
    %c0_10 = arith.constant 0 : index
    %24 = vector.load %arg2[%c0_9, %c0_10] : memref<8x32xf32, #tpu.memory_space<vmem>>, vector<8x32xf32>
    %25 = arith.truncf %24 : vector<8x32xf32> to vector<8x32xbf16>
    %cst_11 = arith.constant dense<0.000000e+00> : vector<128x32xf32>
    %26 = tpu.matmul %23, %25, %cst_11 {dimension_numbers = #tpu.dot_dimension_numbers<[1], [0], [0], [1], [0, 0, 1, 1], [], []>} : vector<128x8xbf16>, vector<8x32xbf16>, vector<128x32xf32> -> vector<128x32xf32>
    %cst_12 = arith.constant 5.000000e-01 : f32
    %27 = vector.broadcast %cst_12 : f32 to vector<128x32xf32>
    %28 = arith.mulf %27, %26 : vector<128x32xf32>
    %cst_13 = arith.constant 0.707106769 : f32
    %29 = vector.broadcast %cst_13 : f32 to vector<128x32xf32>
    %30 = arith.mulf %26, %29 : vector<128x32xf32>
    %cst_14 = arith.constant 0.000000e+00 : f32
    %31 = vector.broadcast %cst_14 : f32 to vector<128x32xf32>
    %32 = arith.cmpf oge, %30, %31 : vector<128x32xf32>
    %cst_15 = arith.constant 1.000000e+00 : f32
    %cst_16 = arith.constant -1.000000e+00 : f32
    %33 = vector.broadcast %cst_15 : f32 to vector<128x32xf32>
    %34 = vector.broadcast %cst_16 : f32 to vector<128x32xf32>
    %35 = arith.select %32, %33, %34 : vector<128x32xi1>, vector<128x32xf32>
    %36 = math.absf %30 : vector<128x32xf32>
    %cst_17 = arith.constant 0.327591091 : f32
    %37 = vector.broadcast %cst_17 : f32 to vector<128x32xf32>
    %38 = arith.mulf %37, %36 : vector<128x32xf32>
    %cst_18 = arith.constant 1.000000e+00 : f32
    %39 = vector.broadcast %cst_18 : f32 to vector<128x32xf32>
    %40 = arith.addf %39, %38 : vector<128x32xf32>
    %cst_19 = arith.constant 1.000000e+00 : f32
    %41 = vector.broadcast %cst_19 : f32 to vector<128x32xf32>
    %42 = arith.divf %41, %40 : vector<128x32xf32>
    %cst_20 = arith.constant 1.06140542 : f32
    %43 = vector.broadcast %cst_20 : f32 to vector<128x32xf32>
    %44 = arith.mulf %43, %42 : vector<128x32xf32>
    %cst_21 = arith.constant -1.45315206 : f32
    %45 = vector.broadcast %cst_21 : f32 to vector<128x32xf32>
    %46 = arith.addf %44, %45 : vector<128x32xf32>
    %47 = arith.mulf %46, %42 : vector<128x32xf32>
    %cst_22 = arith.constant 1.42141378 : f32
    %48 = vector.broadcast %cst_22 : f32 to vector<128x32xf32>
    %49 = arith.addf %47, %48 : vector<128x32xf32>
    %50 = arith.mulf %49, %42 : vector<128x32xf32>
    %cst_23 = arith.constant -0.284496725 : f32
    %51 = vector.broadcast %cst_23 : f32 to vector<128x32xf32>
    %52 = arith.addf %50, %51 : vector<128x32xf32>
    %53 = arith.mulf %52, %42 : vector<128x32xf32>
    %cst_24 = arith.constant 0.254829586 : f32
    %54 = vector.broadcast %cst_24 : f32 to vector<128x32xf32>
    %55 = arith.addf %53, %54 : vector<128x32xf32>
    %56 = arith.mulf %55, %42 : vector<128x32xf32>
    %cst_25 = arith.constant 0.000000e+00 : f32
    %57 = vector.broadcast %cst_25 : f32 to vector<128x32xf32>
    %58 = arith.subf %57, %36 : vector<128x32xf32>
    %59 = arith.mulf %58, %36 : vector<128x32xf32>
    %60 = math.exp %59 : vector<128x32xf32>
    %61 = arith.mulf %56, %60 : vector<128x32xf32>
    %cst_26 = arith.constant 1.000000e+00 : f32
    %62 = vector.broadcast %cst_26 : f32 to vector<128x32xf32>
    %63 = arith.subf %62, %61 : vector<128x32xf32>
    %64 = arith.mulf %35, %63 : vector<128x32xf32>
    %cst_27 = arith.constant 1.000000e+00 : f32
    %65 = vector.broadcast %cst_27 : f32 to vector<128x32xf32>
    %66 = arith.addf %65, %64 : vector<128x32xf32>
    %67 = arith.mulf %28, %66 : vector<128x32xf32>
    %68 = arith.truncf %67 : vector<128x32xf32> to vector<128x32xbf16>
    %c0_28 = arith.constant 0 : index
    %c0_29 = arith.constant 0 : index
    %69 = vector.load %arg5[%c0_28, %c0_29] : memref<128x32xbf16, #tpu.memory_space<vmem>>, vector<128x32xbf16>
    tpu.vector_store %arg5[%c0_28, %c0_29], %68 {strides = array<i32>} : memref<128x32xbf16, #tpu.memory_space<vmem>>, vector<128x32xbf16>,
    return
  }
  func.func @transform_0(%arg0: i32) -> (i32, i32) {
    %c0_i32 = arith.constant 0 : i32
    %c0_i32_0 = arith.constant 0 : i32
    return %arg0, %c0_i32 : i32, i32
  }
  func.func @transform_1(%arg0: i32) -> (i32, i32) {
    %c0_i32 = arith.constant 0 : i32
    %c0_i32_0 = arith.constant 0 : i32
    %c0_i32_1 = arith.constant 0 : i32
    return %c0_i32, %c0_i32_0 : i32, i32
  }
  func.func @transform_2(%arg0: i32) -> (i32, i32) {
    %c0_i32 = arith.constant 0 : i32
    %c0_i32_0 = arith.constant 0 : i32
    %c0_i32_1 = arith.constant 0 : i32
    return %c0_i32, %c0_i32_0 : i32, i32
  }
  func.func @transform_3(%arg0: i32) -> (i32, i32) {
    %c0_i32 = arith.constant 0 : i32
    %c0_i32_0 = arith.constant 0 : i32
    %c0_i32_1 = arith.constant 0 : i32
    return %c0_i32, %c0_i32_0 : i32, i32
  }
  func.func @transform_4(%arg0: i32) -> (i32, i32) {
    %c0_i32 = arith.constant 0 : i32
    %c0_i32_0 = arith.constant 0 : i32
    return %arg0, %c0_i32 : i32, i32
  }
}

module attributes {stable_mosaic.version = 11 : i64} {
  func.func @_dense_kernel(%arg0: i32, %arg1: memref<128x32xbf16, #tpu.memory_space<vmem>>, %arg2: memref<32x8xf32, #tpu.memory_space<vmem>>, %arg3: memref<128x8xf32, #tpu.memory_space<vmem>>, %arg4: memref<128x8xf32, #tpu.memory_space<vmem>>) attributes {dimension_semantics = [#tpu.dimension_semantics<parallel>], iteration_bounds = array<i64: 1>, scalar_prefetch = 0 : i64, scratch_operands = 0 : i64, tpu.core_type = #tpu.core_type<tc>, window_params = [{transform_indices = @transform_0, window_bounds = array<i64: 128, 32>}, {pipeline_mode = #tpu.pipeline_mode<synchronous>, transform_indices = @transform_1, window_bounds = array<i64: 32, 8>}, {transform_indices = @transform_2, window_bounds = array<i64: 128, 8>}, {transform_indices = @transform_3, window_bounds = array<i64: 128, 8>}]} {
    %c0 = arith.constant 0 : index
    %c0_0 = arith.constant 0 : index
    %0 = vector.load %arg1[%c0, %c0_0] : memref<128x32xbf16, #tpu.memory_space<vmem>>, vector<128x32xbf16>
    %1 = arith.extf %0 : vector<128x32xbf16> to vector<128x32xf32>
    %2 = arith.truncf %1 : vector<128x32xf32> to vector<128x32xbf16>
    %c0_1 = arith.constant 0 : index
    %c0_2 = arith.constant 0 : index
    %3 = vector.load %arg2[%c0_1, %c0_2] : memref<32x8xf32, #tpu.memory_space<vmem>>, vector<32x8xf32>
    %4 = arith.truncf %3 : vector<32x8xf32> to vector<32x8xbf16>
    %cst = arith.constant dense<0.000000e+00> : vector<128x8xf32>
    %5 = tpu.matmul %2, %4, %cst {dimension_numbers = #tpu.dot_dimension_numbers<[1], [0], [0], [1], [0, 0, 1, 1], [], []>} : vector<128x32xbf16>, vector<32x8xbf16>, vector<128x8xf32> -> vector<128x8xf32>
    %c0_3 = arith.constant 0 : index
    %c0_4 = arith.constant 0 : index
    %6 = vector.load %arg3[%c0_3, %c0_4] : memref<128x8xf32, #tpu.memory_space<vmem>>, vector<128x8xf32>
    %7 = arith.addf %5, %6 : vector<128x8xf32>
    %c0_5 = arith.constant 0 : index
    %c0_6 = arith.constant 0 : index
    %8 = vector.load %arg4[%c0_5, %c0_6] : memref<128x8xf32, #tpu.memory_space<vmem>>, vector<128x8xf32>
    tpu.vector_store %arg4[%c0_5, %c0_6], %7 {strides = array<i32>} : memref<128x8xf32, #tpu.memory_space<vmem>>, vector<128x8xf32>,
    return
  }
  func.func @transform_0(%arg0: i32) -> (i32, i32) {
    %c0_i32 = arith.constant 0 : i32
    %c0_i32_0 = arith.constant 0 : i32
    return %arg0, %c0_i32 : i32, i32
  }
  func.func @transform_1(%arg0: i32) -> (i32, i32) {
    %c0_i32 = arith.constant 0 : i32
    %c0_i32_0 = arith.constant 0 : i32
    %c0_i32_1 = arith.constant 0 : i32
    return %c0_i32, %c0_i32_0 : i32, i32
  }
  func.func @transform_2(%arg0: i32) -> (i32, i32) {
    %c0_i32 = arith.constant 0 : i32
    %c0_i32_0 = arith.constant 0 : i32
    return %arg0, %c0_i32 : i32, i32
  }
  func.func @transform_3(%arg0: i32) -> (i32, i32) {
    %c0_i32 = arith.constant 0 : i32
    %c0_i32_0 = arith.constant 0 : i32
    return %arg0, %c0_i32 : i32, i32
  }
}

</mosaic_0001>

<bundles_post_ra>
// kernel: cross_msab_forward.15
= control target key start
LH: loop header
LB: loop body
LE: loop exit
PB: predicated region body
PF: predicated region fallthrough
CT: control target
= control target key end

     0   :  { %s865_s21 = smov 0   ;;  %s867_s22 = smov 0   ;;  %s979_s0 = inlined_call_operand.vmem [shape: f32[2,64,8], index: 0, kind: input, shape index: {}]   ;;  %s980_s1 = inlined_call_operand.vmem [shape: bf16[2,64,8], index: 1, kind: input, shape index: {}]   ;;  %s981_s2 = inlined_call_operand.vmem [shape: f32[8,8], index: 2, kind: input, shape index: {}]   ;;  %s982_s3 = inlined_call_operand.vmem [shape: f32[2,8,8], index: 3, kind: input, shape index: {}]   ;;  %s983_s4 = inlined_call_operand.vmem [shape: f32[1,8], index: 4, kind: input, shape index: {}]   ;;  %s984_s5 = inlined_call_operand.vmem [shape: bf16[2,64,8], index: 5, kind: output, shape index: {0}]   ;;  %s985_s6 = inlined_call_operand.vmem [shape: bf16[2,64,8], index: 6, kind: output, shape index: {1}]  }
   0x1   :  { %s869_s23 = smov 0  }
   0x2 LB: > { %s29_s24 = sadd.s32 1, %s824_s22  ;;  %p735_p0 = scmp.ge.s32.totalorder %s828_s23, 1  ;;  %s828_s23 = sphi %s869_s23, %s17_s23   ;;  %s824_s22 = sphi %s867_s22, %s987_s22   ;;  %s820_s21 = sphi %s865_s21, %s986_s21  }
   0x3   : > { %p31_p1 = scmp.ge.s32.totalorder %s29_s24, 2  ;;  %p264_p2 = scmp.lt.s32.totalorder %s828_s23, 3 }
   0x5   : > { %s989_s24 = smov (%p31_p1, %s29_s24), 0  ;;  %p265_p3 = pnand %p735_p0, %p264_p2 }
   0x6   : > { %p325_p4 = scmp.lt.s32.totalorder (!%p265_p3), %s820_s21, 1 }
   0x7   : > { %268 = sbr.rel (%p265_p3) target bundleno = 328 (0x148), region = 40 }
   0xc   : > { %v377_v0 = vld [vmem:[%s981_s2] sm:$0xff]  ;;  %vm412_vm0 = vcmask 1043456   ;;  %s991_s21 = smov (!%p325_p4, %s820_s21), 1  ;;  %vm399_vm1 = vcmask 64512   ;;  %vm547_vm2 = vcmask 60416  }
   0xd   : > { %v378_v1 = vpack.c.bf16 %v377_v0, %v377_v0  ;;  %s890_s27 = sshll.u32 %s991_s21, 5  ;;  %s740_s7 = sshll.u32 %s991_s21, 3  ;;  %v805_v38 = vld [vmem:[%s983_s4] ss:$0 sm:$0xff] }
   0xe   : > { %s342_s30 = scalar_lea.vmem %s980_s1, %s890_s27  ;;  %s347_s10 = scalar_lea.vmem %s982_s3, %s740_s7 }
   0xf   : > { %v414_v2 = vsel %vm412_vm0, %v378_v1, 0  ;;  %v775_v3 = vld [vmem:[%s342_s30] sm:$0xff]  ;;  %v777_v4 = vld [vmem:[%s342_s30 + $0x10] sm:$0xff]  ;;  %v776_v5 = vld [vmem:[%s342_s30 + $0x8] sm:$0xff]  ;;  %s909_s13 = scalar_lea.vmem %s985_s6, %s890_s27  ;;  %s771_s14 = sshll.u32 %s991_s21, 6 }
  0x10   : > { %423 = vmatpush.bf16.msra.mxu0 %v414_v2  ;;  %779 = vmatpush.bf16.msra.mxu2 %v414_v2  ;;  %v778_v6 = vld [vmem:[%s342_s30 + $0x18] sm:$0xff]  ;;  %v453_v7 = vld [vmem:[%s347_s10] sm:$0xff]  ;;  %s935_s17 = scalar_lea.vmem %s979_s0, %s771_s14  ;;  %s945_s21 = scalar_lea.vmem %s984_s5, %s890_s27 }
  0x11   : > { %v454_v8 = vpack.c.bf16 %v453_v7, %v453_v7  ;;  %v523_v40 = vld [vmem:[%s935_s17] sm:$0xff]  ;;  %v524_v45 = vld [vmem:[%s935_s17 + $0x8] sm:$0xff]  ;;  %v525_v54 = vld [vmem:[%s935_s17 + $0x10] sm:$0xff] }
  0x12   : > { %v527_v49 = vld [vmem:[%s935_s17 + $0x20] sm:$0xff]  ;;  %v528_v59 = vld [vmem:[%s935_s17 + $0x28] sm:$0xff]  ;;  %v526_v0 = vld [vmem:[%s935_s17 + $0x18] sm:$0xff] }
  0x13   : > { %761 = vmatmul.msk.bf16.vlgmr.msra.gmra.mxu0 %vm399_vm1, %v775_v3  ;;  %763 = vmatmul.msk.bf16.vlgmr.msra.gmra.mxu2 %vm399_vm1, %v777_v4  ;;  %v492_v9 = vsel %vm412_vm0, %v454_v8, 0 }
  0x14   : > { %501 = vmatpush.bf16.msra.mxu1 %v492_v9  ;;  %780 = vmatpush.bf16.msra.mxu3 %v492_v9 }
  0x23   : > { %762 = vmatmul.msk.bf16.gmra.mxu0 %vm399_vm1, %v776_v5  ;;  %764 = vmatmul.msk.bf16.gmra.mxu2 %vm399_vm1, %v778_v6  ;;  %v529_v5 = vld [vmem:[%s935_s17 + $0x30] sm:$0xff] }
  0x90   : > { %v425_v10 = vpop.f32.mrf.mxu0 }
  0x91   : > { %v445_v11 = vpack.c.bf16 %v425_v10, %v425_v10 }
  0x93   : > { %556 = vst.msk [vmem:[%s909_s13] sm:$0xf] %vm547_vm2, %v445_v11  ;;  %v467_v15 = vunpack.c.l.b16 %v445_v11  ;;  %v530_v11 = vld [vmem:[%s935_s17 + $0x38] sm:$0xff] }
  0x96   : > { %v435_v12 = vpop.f32.mrf.mxu2 }
  0x97   : > { %v449_v13 = vpack.c.bf16 %v435_v12, %v435_v12 }
  0x98   : > { %v427_v14 = vpop.f32.mrf.mxu0 }
  0x99   : > { %560 = vst.msk [vmem:[%s909_s13 + $0x10] sm:$0xf] %vm547_vm2, %v449_v13  ;;  %v446_v16 = vpack.c.bf16 %v427_v14, %v427_v14  ;;  %v471_v22 = vunpack.c.l.b16 %v449_v13 }
  0x9b   : > { %v468_v17 = vunpack.c.l.b16 %v446_v16  ;;  %557 = vst.msk [vmem:[%s909_s13 + $0x4] sm:$0xf] %vm547_vm2, %v446_v16 }
  0x9d   : > { %v475_v18 = vpack.c.b16 %v468_v17, %v467_v15 }
  0x9e   : > { %v437_v19 = vpop.f32.mrf.mxu2 }
  0x9f   : > { %v450_v20 = vpack.c.bf16 %v437_v19, %v437_v19  ;;  %765 = vmatmul.msk.bf16.vlgmr.msra.gmra.mxu1 %vm399_vm1, %v475_v18 }
  0xa0   : > { %v430_v21 = vpop.f32.mrf.mxu0 }
  0xa1   : > { %v472_v23 = vunpack.c.l.b16 %v450_v20  ;;  %561 = vst.msk [vmem:[%s909_s13 + $0x14] sm:$0xf] %vm547_vm2, %v450_v20  ;;  %v447_v24 = vpack.c.bf16 %v430_v21, %v430_v21 }
  0xa3   : > { %558 = vst.msk [vmem:[%s909_s13 + $0x8] sm:$0xf] %vm547_vm2, %v447_v24  ;;  %v477_v25 = vpack.c.b16 %v472_v23, %v471_v22  ;;  %v469_v29 = vunpack.c.l.b16 %v447_v24 }
  0xa5   : > { %767 = vmatmul.msk.bf16.vlgmr.msra.gmra.mxu3 %vm399_vm1, %v477_v25 }
  0xa6   : > { %v440_v26 = vpop.f32.mrf.mxu2 }
  0xa7   : > { %v451_v27 = vpack.c.bf16 %v440_v26, %v440_v26 }
  0xa8   : > { %v432_v28 = vpop.f32.mrf.mxu0 }
  0xa9   : > { %562 = vst.msk [vmem:[%s909_s13 + $0x18] sm:$0xf] %vm547_vm2, %v451_v27  ;;  %v448_v30 = vpack.c.bf16 %v432_v28, %v432_v28  ;;  %v473_v35 = vunpack.c.l.b16 %v451_v27 }
  0xab   : > { %v470_v31 = vunpack.c.l.b16 %v448_v30  ;;  %559 = vst.msk [vmem:[%s909_s13 + $0xc] sm:$0xf] %vm547_vm2, %v448_v30 }
  0xad   : > { %v476_v32 = vpack.c.b16 %v470_v31, %v469_v29 }
  0xae   : > { %v442_v33 = vpop.f32.mrf.mxu2 }
  0xaf   : > { %v452_v34 = vpack.c.bf16 %v442_v33, %v442_v33  ;;  %766 = vmatmul.msk.bf16.gmra.mxu1 %vm399_vm1, %v476_v32 }
  0xb1   : > { %v474_v36 = vunpack.c.l.b16 %v452_v34  ;;  %563 = vst.msk [vmem:[%s909_s13 + $0x1c] sm:$0xf] %vm547_vm2, %v452_v34 }
  0xb3   : > { %v478_v37 = vpack.c.b16 %v474_v36, %v473_v35 }
  0xb5   : > { %768 = vmatmul.msk.bf16.gmra.mxu3 %vm399_vm1, %v478_v37 }
 0x11c   : > { %v503_v39 = vpop.f32.mrf.mxu1 }
 0x11d   : > { %v504_v41 = vadd.f32 %v805_v38, %v503_v39 }
 0x11f   : > { %v531_v42 = vadd.f32 %v523_v40, %v504_v41 }
 0x121   : > { %v539_v43 = vpack.c.bf16 %v531_v42, %v531_v42 }
 0x123   : > { %548 = vst.msk [vmem:[%s945_s21] sm:$0xf] %vm547_vm2, %v539_v43 }
 0x124   : > { %v505_v44 = vpop.f32.mrf.mxu1 }
 0x125   : > { %v506_v46 = vadd.f32 %v805_v38, %v505_v44 }
 0x127   : > { %v532_v47 = vadd.f32 %v524_v45, %v506_v46 }
 0x128   : > { %v513_v48 = vpop.f32.mrf.mxu3 }
 0x129   : > { %v540_v50 = vpack.c.bf16 %v532_v47, %v532_v47  ;;  %v514_v51 = vadd.f32 %v805_v38, %v513_v48 }
 0x12b   : > { %549 = vst.msk [vmem:[%s945_s21 + $0x4] sm:$0xf] %vm547_vm2, %v540_v50  ;;  %v535_v52 = vadd.f32 %v527_v49, %v514_v51 }
 0x12c   : > { %v508_v53 = vpop.f32.mrf.mxu1 }
 0x12d   : > { %v543_v55 = vpack.c.bf16 %v535_v52, %v535_v52  ;;  %v509_v56 = vadd.f32 %v805_v38, %v508_v53 }
 0x12f   : > { %552 = vst.msk [vmem:[%s945_s21 + $0x10] sm:$0xf] %vm547_vm2, %v543_v55  ;;  %v533_v57 = vadd.f32 %v525_v54, %v509_v56 }
 0x130   : > { %v515_v58 = vpop.f32.mrf.mxu3 }
 0x131   : > { %v541_v60 = vpack.c.bf16 %v533_v57, %v533_v57  ;;  %v516_v61 = vadd.f32 %v805_v38, %v515_v58 }
 0x133   : > { %550 = vst.msk [vmem:[%s945_s21 + $0x8] sm:$0xf] %vm547_vm2, %v541_v60  ;;  %v536_v62 = vadd.f32 %v528_v59, %v516_v61 }
 0x134   : > { %v510_v63 = vpop.f32.mrf.mxu1 }
 0x135   : > { %v544_v1 = vpack.c.bf16 %v536_v62, %v536_v62  ;;  %v511_v2 = vadd.f32 %v805_v38, %v510_v63 }
 0x137   : > { %553 = vst.msk [vmem:[%s945_s21 + $0x14] sm:$0xf] %vm547_vm2, %v544_v1  ;;  %v534_v3 = vadd.f32 %v526_v0, %v511_v2 }
 0x138   : > { %v518_v4 = vpop.f32.mrf.mxu3 }
 0x139   : > { %v542_v6 = vpack.c.bf16 %v534_v3, %v534_v3  ;;  %v519_v7 = vadd.f32 %v805_v38, %v518_v4 }
 0x13b   : > { %551 = vst.msk [vmem:[%s945_s21 + $0xc] sm:$0xf] %vm547_vm2, %v542_v6  ;;  %v537_v8 = vadd.f32 %v529_v5, %v519_v7 }
 0x13d   : > { %v545_v9 = vpack.c.bf16 %v537_v8, %v537_v8 }
 0x13f   : > { %554 = vst.msk [vmem:[%s945_s21 + $0x18] sm:$0xf] %vm547_vm2, %v545_v9 }
 0x140   : > { %v520_v10 = vpop.f32.mrf.mxu3 }
 0x141   : > { %v521_v12 = vadd.f32 %v805_v38, %v520_v10 }
 0x143   : > { %v538_v13 = vadd.f32 %v530_v11, %v521_v12 }
 0x145   : > { %v546_v14 = vpack.c.bf16 %v538_v13, %v538_v13 }
 0x147   : > { %555 = vst.msk [vmem:[%s945_s21 + $0x1c] sm:$0xf] %vm547_vm2, %v546_v14 }
 0x148 PF: > { %s17_s23 = sadd.s32 1, %s828_s23   ;;  %s986_s21 = smov %s824_s22 }
 0x149   : > { %p14_p5 = scmp.ge.s32.totalorder %s17_s23, 4   ;;  %s987_s22 = smov %s989_s24 }
 0x14b   :  { %16 = sbr.rel (!%p14_p5) target bundleno = 2 (0x2), region = 88 }

// kernel: cross_msab_forward.14
= control target key start
LH: loop header
LB: loop body
LE: loop exit
PB: predicated region body
PF: predicated region fallthrough
CT: control target
= control target key end

     0   :  { %11 = vsyncpa [#allocation6], 0  ;;  %s1099_s21 = smov 0   ;;  %s1101_s22 = smov 0   ;;  %s1187_s0 = inlined_call_operand.vmem [shape: f32[2], index: 0, kind: input, shape index: {}]   ;;  %s1188_s1 = inlined_call_operand.vmem [shape: f32[2,64,8], index: 1, kind: input, shape index: {}]   ;;  %s1189_s2 = inlined_call_operand.vmem [shape: bf16[2,64,8], index: 2, kind: input, shape index: {}]   ;;  %s1190_s3 = inlined_call_operand.vmem [shape: f32[8,8], index: 3, kind: input, shape index: {}]   ;;  %s1191_s4 = inlined_call_operand.vmem [shape: f32[8,8], index: 4, kind: input, shape index: {}]   ;;  %s1192_s5 = inlined_call_operand.vmem [shape: f32[8,8], index: 5, kind: input, shape index: {}]   ;;  %s1193_s6 = inlined_call_operand.vmem [shape: f32[2,8,8], index: 6, kind: output, shape index: {}]  }
   0x1   :  { %s1103_s23 = smov 0  }
   0x2 LB: > { %s913_s24 = sadd.s32 4294967295, %s1058_s23   ;;  %s29_s25 = sadd.s32 1, %s1054_s22  ;;  %s1058_s23 = sphi %s1103_s23, %s17_s23   ;;  %s1054_s22 = sphi %s1101_s22, %s1195_s22   ;;  %s1050_s21 = sphi %s1099_s21, %s1194_s21  }
   0x3   : > { %p31_p0 = scmp.ge.s32.totalorder %s29_s25, 2  ;;  %p915_p1 = scmp.ge.s32.totalorder %s1058_s23, 1 }
   0x4   : > { %p200_p2 = scmp.lt.s32.totalorder %s1058_s23, 3  ;;  %p973_p4 = scmp.eq.s32.totalorder %s913_s24, 0 }
   0x5   : > { %s1197_s25 = smov (%p31_p0, %s29_s25), 0  ;;  %s212_s28 = sshll.u32 %s1187_s0, 4  ;;  %s213_s28 = int_to_ptr.vmem [resolvable:$true] %s212_s28 }
   0x6   : > { %p201_p3 = pnand %p915_p1, %p200_p2  ;;  %s1060_s29 = smov [#allocation5]  }
   0x8   : > { %p969_p5 = pneg %p201_p3  ;;  %260 = sbr.rel (%p201_p3) target bundleno = 1256 (0x4e8), region = 44 }
   0xa   : > { %p970_p6 = pnand %p973_p4, %p969_p5 }
   0xc   : > { %972 = dma.vmem_to_smem (!%p970_p6), %s213_s28, 16, %s1060_s29, [#allocation6]  }
   0xd   : > { %1045 = dma.done.wait (%p973_p4), [#allocation6], 16  }
   0xe   : > { %1047 = vsyncadd (%p973_p4), [#allocation6], 4294967280 }
   0xf   : > { %267 = sfence }
  0x10   : > { %vm365_vm0 = vcmask 1043456   ;;  %v406_v0 = vld [vmem:[%s1191_s4] sm:$0xff]  ;;  %p305_p7 = scmp.lt.s32.totalorder %s1050_s21, 1  ;;  %vm336_vm1 = vcmask 64512   ;;  %vm333_vm2 = vcmask 57344   ;;  %v1061_v23 = vmov 0.0  }
  0x11   : > { %v407_v1 = vpack.c.bf16 %v406_v0, %v406_v0  ;;  %v350_v5 = vld [vmem:[%s1190_s3] sm:$0xff]  ;;  %335 = vst.msk [vmem:[#allocation3] sm:$0x1] %vm333_vm2, %v1061_v23  ;;  %vm562_vm6 = vcmask 523264   ;;  %s952_s18 = sld [smem:[#allocation5 + $0x1]]  ;;  %vm736_vm10 = vcmask 60448  }
  0x12   : > { %s1199_s21 = smov (!%p305_p7, %s1050_s21), 1  ;;  %v351_v8 = vpack.c.bf16 %v350_v5, %v350_v5  ;;  %334 = vst.msk [vmem:[#allocation2] sm:$0x1] %vm333_vm2, %v1061_v23  ;;  %s1063_s19 = smov 124   ;;  %vm655_vm11 = vcmask 27648   ;;  %vm699_vm12 = vcmask 31744  }
  0x13   : > { %v441_v2 = vsel %vm365_vm0, %v407_v1, 0  ;;  %s958_s8 = sshll.u32 %s1199_s21, 5  ;;  %s957_s9 = sshll.u32 %s1199_s21, 6  ;;  %337 = vst.msk [vmem:[#allocation4] sm:$0xff] %vm336_vm1, %v1061_v23  ;;  %vm726_vm13 = vcmask 60416  }
  0x14   : > { %450 = vmatpush.bf16.msra.mxu1 %v441_v2  ;;  %964 = vmatpush.bf16.msra.mxu2 %v441_v2  ;;  %s322_s12 = scalar_lea.vmem %s1189_s2, %s958_s8  ;;  %s312_s15 = scalar_lea.vmem %s1188_s1, %s957_s9  ;;  %v367_v9 = vsel %vm365_vm0, %v351_v8, 0 }
  0x15   : > { %v959_v3 = vld [vmem:[%s322_s12] sm:$0xff]  ;;  %v962_v4 = vld [vmem:[%s322_s12 + $0x18] sm:$0xff]  ;;  %v339_v7 = vld [vmem:[%s312_s15 + $0x8] sm:$0xff]  ;;  %376 = vmatpush.bf16.msra.mxu0 %v367_v9  ;;  %963 = vmatpush.bf16.msra.mxu3 %v367_v9  ;;  %s652_s20 = sld [smem:[#allocation5]]  ;;  %s924_s27 = sshll.u32 %s1199_s21, 3 }
  0x16   : > { %v338_v6 = vld [vmem:[%s312_s15] sm:$0xff]  ;;  %v960_v11 = vld [vmem:[%s322_s12 + $0x8] sm:$0xff]  ;;  %v961_v12 = vld [vmem:[%s322_s12 + $0x10] sm:$0xff]  ;;  %s327_s30 = scalar_lea.vmem %s1193_s6, %s924_s27 }
  0x17   : > { %945 = vmatmul.msk.bf16.vlgmr.msra.gmra.mxu1 %vm336_vm1, %v959_v3  ;;  %948 = vmatmul.msk.bf16.vlgmr.msra.gmra.mxu2 %vm336_vm1, %v962_v4  ;;  %v346_v10 = vpack.c.bf16 %v339_v7, %v338_v6  ;;  %v340_v13 = vld [vmem:[%s312_s15 + $0x10] sm:$0xff]  ;;  %v341_v14 = vld [vmem:[%s312_s15 + $0x18] sm:$0xff]  ;;  %v342_v19 = vld [vmem:[%s312_s15 + $0x20] sm:$0xff] }
  0x18   : > { %v347_v15 = vpack.c.bf16 %v341_v14, %v340_v13  ;;  %v344_v16 = vld [vmem:[%s312_s15 + $0x30] sm:$0xff]  ;;  %v345_v17 = vld [vmem:[%s312_s15 + $0x38] sm:$0xff]  ;;  %v343_v20 = vld [vmem:[%s312_s15 + $0x28] sm:$0xff] }
  0x19   : > { %925 = vmatmul.msk.bf16.vlgmr.msra.gmra.mxu0 %vm336_vm1, %v346_v10  ;;  %v349_v18 = vpack.c.bf16 %v345_v17, %v344_v16  ;;  %v348_v21 = vpack.c.bf16 %v343_v20, %v342_v19  ;;  %v505_v63 = vld [vmem:[#allocation3] sm:$0x1] }
  0x1b   : > { %928 = vmatmul.msk.bf16.vlgmr.msra.gmra.mxu3 %vm336_vm1, %v349_v18 }
  0x27   : > { %946 = vmatmul.msk.bf16.gmra.mxu1 %vm336_vm1, %v960_v11 }
  0x29   : > { %926 = vmatmul.msk.bf16.gmra.mxu0 %vm336_vm1, %v347_v15 }
  0x37   : > { %947 = vmatmul.msk.bf16.gmra.mxu1 %vm336_vm1, %v961_v12 }
  0x39   : > { %927 = vmatmul.msk.bf16.gmra.mxu0 %vm336_vm1, %v348_v21 }
  0x94   : > { %v452_v22 = vpop.f32.mrf.mxu1 }
  0x95   : > { %v506_v31 = vmul.f32 %v452_v22, %v452_v22 }
  0x96   : > { %v378_v9 = vpop.f32.mrf.mxu0 }
  0x97   : > { %v514_v36 = vsel %vm336_vm1, %v506_v31, 0.0  ;;  %v473_v14 = vmul.f32 %v378_v9, %v378_v9 }
  0x99   : > { %v481_v17 = vsel %vm336_vm1, %v473_v14, 0.0 }
  0x9a   : > { %v467_v30 = vpop.f32.mrf.mxu2 }
  0x9b   : > { %v512_v46 = vmul.f32 %v467_v30, %v467_v30 }
  0x9c   : > { %v454_v24 = vpop.f32.mrf.mxu1 }
  0x9d   : > { %v538_v25 = vpack.c.bf16 %v454_v24, %v452_v22  ;;  %v507_v29 = vmul.f32 %v454_v24, %v454_v24  ;;  %v525_v53 = vsel %vm336_vm1, %v512_v46, 0.0 }
  0x9e   : > { %v380_v12 = vpop.f32.mrf.mxu0 }
  0x9f   : > { %546 = vxpose.xlu0.c.b16.start [1/4] (short) (narrow) %v538_v25, 16  ;;  %v515_v34 = vsel %vm336_vm1, %v507_v29, 0.0  ;;  %v474_v15 = vmul.f32 %v380_v12, %v380_v12 }
  0xa0   : > { %v516_v39 = vadd.f32 %v515_v34, %v514_v36 }
  0xa1   : > { %v482_v18 = vsel %vm336_vm1, %v474_v15, 0.0 }
  0xa2   : > { %v469_v44 = vpop.f32.mrf.mxu2  ;;  %v483_v20 = vadd.f32 %v482_v18, %v481_v17 }
  0xa3   : > { %v513_v50 = vmul.f32 %v469_v44, %v469_v44  ;;  %v541_v61 = vpack.c.bf16 %v469_v44, %v467_v30 }
  0xa4   : > { %v457_v26 = vpop.f32.mrf.mxu1 }
  0xa5   : > { %v508_v32 = vmul.f32 %v457_v26, %v457_v26  ;;  %v527_v55 = vsel %vm336_vm1, %v513_v50, 0.0 }
  0xa6   : > { %v383_v13 = vpop.f32.mrf.mxu0 }
  0xa7   : > { %v517_v37 = vsel %vm336_vm1, %v508_v32, 0.0  ;;  %v475_v19 = vmul.f32 %v383_v13, %v383_v13 }
  0xa8   : > { %v518_v41 = vadd.f32 %v517_v37, %v516_v39 }
  0xa9   : > { %v484_v21 = vsel %vm336_vm1, %v475_v19, 0.0 }
  0xaa   : > { %v485_v23 = vadd.f32 %v484_v21, %v483_v20 }
  0xac   : > { %v459_v27 = vpop.f32.mrf.mxu1 }
  0xad   : > { %v539_v28 = vpack.c.bf16 %v459_v27, %v457_v26  ;;  %v509_v35 = vmul.f32 %v459_v27, %v459_v27  ;;  %v393_v27 = vpop.f32.mrf.mxu3 }
  0xae   : > { %v385_v16 = vpop.f32.mrf.mxu0  ;;  %v479_v30 = vmul.f32 %v393_v27, %v393_v27 }
  0xaf   : > { %547 = vxpose.xlu0.c.b16.cont [2/4] (short) (narrow) %v539_v28, 16  ;;  %v519_v40 = vsel %vm336_vm1, %v509_v35, 0.0  ;;  %v476_v22 = vmul.f32 %v385_v16, %v385_v16  ;;  %v543_v44 = vpack.c.bf16 %v385_v16, %v383_v13 }
  0xb0   : > { %v520_v43 = vadd.f32 %v519_v40, %v518_v41  ;;  %v492_v35 = vsel %vm336_vm1, %v479_v30, 0.0 }
  0xb1   : > { %v486_v25 = vsel %vm336_vm1, %v476_v22, 0.0  ;;  %v653_v22 = vstv %s652_s20 }
  0xb2   : > { %v487_v28 = vadd.f32 %v486_v25, %v485_v23 }
  0xb4   : > { %v462_v33 = vpop.f32.mrf.mxu1 }
  0xb5   : > { %v510_v38 = vmul.f32 %v462_v33, %v462_v33  ;;  %v395_v34 = vpop.f32.mrf.mxu3 }
  0xb6   : > { %v388_v24 = vpop.f32.mrf.mxu0  ;;  %v480_v37 = vmul.f32 %v395_v34, %v395_v34 }
  0xb7   : > { %v521_v42 = vsel %vm336_vm1, %v510_v38, 0.0  ;;  %v477_v26 = vmul.f32 %v388_v24, %v388_v24  ;;  %v545_v38 = vpack.c.bf16 %v395_v34, %v393_v27 }
  0xb8   : > { %v522_v49 = vadd.f32 %v521_v42, %v520_v43  ;;  %v494_v41 = vsel %vm336_vm1, %v480_v37, 0.0 }
  0xb9   : > { %v488_v29 = vsel %vm336_vm1, %v477_v26, 0.0  ;;  %570 = vmatpush.bf16.msrb.mxu2 %v545_v38 }
  0xba   : > { %v489_v31 = vadd.f32 %v488_v29, %v487_v28 }
  0xbc   : > { %v464_v45 = vpop.f32.mrf.mxu1 }
  0xbd   : > { %v511_v47 = vmul.f32 %v464_v45, %v464_v45  ;;  %v540_v48 = vpack.c.bf16 %v464_v45, %v462_v33 }
  0xbe   : > { %v390_v32 = vpop.f32.mrf.mxu0 }
  0xbf   : > { %v523_v51 = vsel %vm336_vm1, %v511_v47, 0.0  ;;  %548 = vxpose.xlu0.c.b16.cont [3/4] (short) (narrow) %v540_v48, 16  ;;  %v478_v33 = vmul.f32 %v390_v32, %v390_v32  ;;  %v544_v40 = vpack.c.bf16 %v390_v32, %v388_v24  ;;  %v542_v47 = vpack.c.bf16 %v380_v12, %v378_v9 }
  0xc0   : > { %v524_v52 = vadd.f32 %v523_v51, %v522_v49  ;;  %v472_v51 = vld [vmem:[#allocation2] sm:$0x1] }
  0xc1   : > { %v490_v36 = vsel %vm336_vm1, %v478_v33, 0.0  ;;  %571 = vmatpush.bf16.msrb.mxu2 %v544_v40 }
  0xc2   : > { %v526_v54 = vadd.f32 %v525_v53, %v524_v52  ;;  %v491_v39 = vadd.f32 %v490_v36, %v489_v31 }
  0xc4   : > { %v528_v56 = vadd.f32 %v527_v55, %v526_v54  ;;  %v493_v42 = vadd.f32 %v492_v35, %v491_v39  ;;  %v1062_v54 = vmov 0   ;;  %v640_v35 = vld [vmem:[%s1192_s5] sm:$0xff] }
  0xc5   : > { %572 = vmatpush.bf16.msrb.mxu2 %v543_v44  ;;  %950 = vmatpush.msk.msrb.mxu3 %vm365_vm0, %v640_v35  ;;  %v788_v36 = vrot.slane %v640_v35, 4 }
  0xc6   : > { %v529_v57 = vrot.slane %v528_v56, 4  ;;  %v495_v43 = vadd.f32 %v494_v41, %v493_v42 }
  0xc7   : > { %953 = vmatpush.msk.msra.mxu3 %vm365_vm0, %v788_v36 }
  0xc8   : > { %v530_v58 = vadd.f32 %v529_v57, %v528_v56  ;;  %v496_v45 = vrot.slane %v495_v43, 4  ;;  %v537_v57 = vld [vmem:[#allocation4] sm:$0xff] }
  0xc9   : > { %573 = vmatpush.bf16.msrb.mxu2 %v542_v47 }
  0xca   : > { %v531_v59 = vrot.slane %v530_v58, 2  ;;  %v497_v46 = vadd.f32 %v496_v45, %v495_v43 }
  0xcc   : > { %v532_v60 = vadd.f32 %v531_v59, %v530_v58  ;;  %v498_v48 = vrot.slane %v497_v46, 2 }
  0xce   : > { %v533_v62 = vrot.slane %v532_v60, 1  ;;  %v499_v49 = vadd.f32 %v498_v48, %v497_v46 }
  0xcf   : > { %549 = vxpose.xlu0.c.b16.end [4/4] (short) (narrow) %v541_v61, 16 }
  0xd0   : > { %v534_v0 = vadd.f32 %v533_v62, %v532_v60  ;;  %v500_v50 = vrot.slane %v499_v49, 1 }
  0xd2   : > { %v535_v1 = vadd.f32 %v534_v0, %v505_v63  ;;  %v501_v52 = vadd.f32 %v500_v50, %v499_v49 }
  0xd4   : > { %536 = vst.msk [vmem:[#allocation3] sm:$0x1] %vm333_vm2, %v535_v1  ;;  %v502_v53 = vadd.f32 %v501_v52, %v472_v51 }
  0xd6   : > { %504 = vst.msk [vmem:[#allocation2] sm:$0x1] %vm333_vm2, %v502_v53 }
  0xdb   : > { %v596_v2 = vld [vmem:[#allocation3] sm:$0x1] }
  0xdc   : > { %1005 = vrsqrt.f32 %v596_v2  ;;  %vm603_vm4 = vweird.f32 %v596_v2 }
  0xdd   : > { %v584_v61 = vld [vmem:[#allocation2] sm:$0x1] }
  0xde   : > { %1007 = vrsqrt.f32 %v584_v61  ;;  %vm591_vm7 = vweird.f32 %v584_v61 }
  0xe2   : > { %v1006_v3 = vpop.eup %1005 }
  0xe3   : > { %v598_v4 = vmul.f32 %v1006_v3, %v596_v2  ;;  %vm604_vm3 = vweird.f32 %v1006_v3 }
  0xe4   : > { %vm605_vm5 = vmor %vm603_vm4, %vm604_vm3  ;;  %v1008_v62 = vpop.eup %1007 }
  0xe5   : > { %v599_v5 = vmul.f32 %v1006_v3, %v598_v4  ;;  %v586_v63 = vmul.f32 %v1008_v62, %v584_v61  ;;  %vm592_vm8 = vweird.f32 %v1008_v62 }
  0xe6   : > { %vm593_vm9 = vmor %vm591_vm7, %vm592_vm8 }
  0xe7   : > { %v600_v6 = vmul.f32 0.5, %v599_v5  ;;  %v587_v0 = vmul.f32 %v1008_v62, %v586_v63 }
  0xe9   : > { %v601_v7 = vsub.f32 1.5, %v600_v6  ;;  %v588_v1 = vmul.f32 0.5, %v587_v0 }
  0xeb   : > { %v602_v8 = vmul.f32 %v1006_v3, %v601_v7  ;;  %v589_v2 = vsub.f32 1.5, %v588_v1 }
  0xed   : > { %v606_v10 = vsel %vm605_vm5, %v1006_v3, %v602_v8  ;;  %v590_v3 = vmul.f32 %v1008_v62, %v589_v2 }
  0xee   : > { %v607_v11 = vmin.f32 %v606_v10, 1e+12 }
  0xef   : > { %v594_v4 = vsel %vm593_vm9, %v1008_v62, %v590_v3 }
  0xf0   : > { %608 = vxpose.xlu1.b32.start.end [1/1] (short) (narrow) %v607_v11, 8  ;;  %v595_v5 = vmin.f32 %v594_v4, 1e+12  ;;  %v734_v11 = vstv %s952_s18 }
  0xf2   : > { %v649_v9 = vperm.slane %v595_v5, 0 }
 0x136   : > { %1004 = vset.pattern.permute.xlu0 %v1062_v54 }
 0x143   : > { %1003 = vset.pattern.permute.xlu1 %v1062_v54 }
 0x14b   : > { %v554_v55 = vpop.trf.xlu0 }
 0x14c   : > { %949 = vmatmul.msk.bf16.vlgmr.msrb.gmra.mxu2 %vm562_vm6, %v554_v55 }
 0x194   : > { %v624_v56 = vpop.trf.xlu1 }
 0x195   : > { %644 = vperm.xlu1 %1003, %v624_v56  }
 0x1cf   : > { %v575_v58 = vpop.f32.mrf.mxu2 }
 0x1d0   : > { %v579_v59 = vadd.f32 %v575_v58, %v537_v57 }
 0x1d2   : > { %580 = vst.msk [vmem:[#allocation4] sm:$0xff] %vm336_vm1, %v579_v59 }
 0x1d7   : > { %v577_v60 = vpop.f32.mrf.mxu2 }
 0x1d9   : > { %v728_v7 = vld [vmem:[#allocation4 + $0x4] sm:$0xf]  ;;  %v641_v19 = vld [vmem:[#allocation4] sm:$0xf] }
 0x207   : > { %v645_v6 = vpop.permute.xlu1 %644 }
 0x208   : > { %v729_v8 = vrot.slane %v645_v6, 4  ;;  %v647_v20 = vmul.f32 %v645_v6, %v641_v19 }
 0x20a   : > { %v731_v10 = vmul.f32 %v729_v8, %v728_v7  ;;  %v651_v21 = vmul.f32 %v649_v9, %v647_v20 }
 0x20c   : > { %v732_v12 = vmul.f32 %v731_v10, %v649_v9  ;;  %v654_v23 = vmul.f32 %v653_v22, %v651_v21 }
 0x20e   : > { %v735_v13 = vmul.f32 %v734_v11, %v732_v12  ;;  %v656_v24 = vsel %vm655_vm11, %v654_v23, -inf }
 0x210   : > { %v737_v14 = vsel %vm736_vm10, %v735_v13, -inf }
 0x211   : > { %738 = vmax.xlane.f32.xlu2 %v737_v14 }
 0x284   : > { %v739_v15 = vpop.xlane.xlu2 %738 }
 0x285   : > { %v740_v16 = vsub.f32 %v735_v13, %v739_v15 }
 0x287   : > { %v741_v17 = vmul.f32 1.442695, %v740_v16 }
 0x289   : > { %1009 = vpow2.f32 %v741_v17 }
 0x28f   : > { %v1010_v18 = vpop.eup %1009 }
 0x290   : > { %744 = vrot.lane.b32.xlu2 %v1010_v18, %s1063_s19 }
 0x2b9   : > { %657 = vmax.xlane.f32.xlu2 %v656_v24 }
 0x2ea   : > { %v745_v25 = vpop.permute.xlu2 %744 }
 0x2eb   : > { %v747_v26 = vsel %vm655_vm11, %v745_v25, 0.0 }
 0x2ec   : > { %748 = vadd.xlane.f32.xlu0 %v747_v26 }
 0x32c   : > { %v658_v27 = vpop.xlane.xlu2 %657 }
 0x32d   : > { %v659_v28 = vsub.f32 %v654_v23, %v658_v27 }
 0x32f   : > { %v660_v29 = vmul.f32 1.442695, %v659_v28 }
 0x331   : > { %1011 = vpow2.f32 %v660_v29 }
 0x337   : > { %v1012_v30 = vpop.eup %1011 }
 0x338   : > { %v662_v31 = vsel %vm655_vm11, %v1012_v30, 0.0 }
 0x339   : > { %663 = vadd.xlane.f32.xlu2 %v662_v31 }
 0x35f   : > { %v749_v32 = vpop.xlane.xlu0 %748 }
 0x360   : > { %1013 = vrcp.f32 %v749_v32 }
 0x366   : > { %v1014_v33 = vpop.eup %1013 }
 0x367   : > { %v751_v34 = vmul.f32 %v1014_v33, %v1010_v18 }
 0x369   : > { %753 = vrot.lane.b32.xlu2 %v751_v34, %s1063_s19 }
 0x3ac   : > { %v664_v37 = vpop.xlane.xlu2 %663 }
 0x3ad   : > { %1015 = vrcp.f32 %v664_v37 }
 0x3b3   : > { %v1016_v38 = vpop.eup %1015 }
 0x3b4   : > { %v666_v39 = vmul.f32 %v1016_v38, %v1012_v30 }
 0x3b6   : > { %667 = vxpose.xlu1.b32.start.end [1/1] (short) (narrow) %v666_v39, 8 }
 0x3c3   : > { %v754_v40 = vpop.permute.xlu2 %753 }
 0x3c4   : > { %756 = vxpose.xlu2.b32.start.end [1/1] (short) (narrow) %v754_v40, 8 }
 0x45a   : > { %v683_v41 = vpop.trf.xlu1 }
 0x45b   : > { %951 = vmatmul.msk.f32.vlgmr.msrb.gmra.mxu3 %vm699_vm12, %v683_v41 }
 0x45d   : > { %v772_v42 = vpop.trf.xlu2 }
 0x463   : > { %954 = vmatmul.msk.f32.vlgmr.msra.gmra.mxu3 %vm699_vm12, %v772_v42 }
 0x4de   : > { %v723_v43 = vpop.f32.mrf.mxu3 }
 0x4df   : > { %727 = vst.msk [vmem:[%s327_s30] sm:$0xf] %vm726_vm13, %v723_v43 }
 0x4e6   : > { %v811_v44 = vpop.f32.mrf.mxu3 }
 0x4e7   : > { %814 = vst.msk [vmem:[%s327_s30 + $0x4] sm:$0xf] %vm726_vm13, %v811_v44 }
 0x4e8 PF: > { %s17_s23 = sadd.s32 1, %s1058_s23   ;;  %s1194_s21 = smov %s1054_s22 }
 0x4e9   : > { %p14_p8 = scmp.ge.s32.totalorder %s17_s23, 4   ;;  %s1195_s22 = smov %s1197_s25 }
 0x4eb   :  { %16 = sbr.rel (!%p14_p8) target bundleno = 2 (0x2), region = 90 }
 0x4f0   :  { %834 = vsyncpa [#allocation6], 1 }
 0x4f1   :  { %836 = vsyncpa [#allocation6 + $0x1], 1 }

// kernel: cross_msab_forward.16
= control target key start
LH: loop header
LB: loop body
LE: loop exit
PB: predicated region body
PF: predicated region fallthrough
CT: control target
= control target key end

     0   :  { %s1498_s15 = smov 0   ;;  %s1500_s16 = smov 0   ;;  %s2255_s0 = inlined_call_operand.vmem [shape: bf16[2,10,10,8], index: 0, kind: input, shape index: {}, may-alias: {0,1,2}]   ;;  %s2256_s1 = inlined_call_operand.vmem [shape: bf16[2,10,10,8], index: 1, kind: input, shape index: {}, may-alias: {0,1,2}]   ;;  %s2257_s2 = inlined_call_operand.vmem [shape: bf16[2,10,10,8], index: 2, kind: input, shape index: {}, may-alias: {0,1,2}]   ;;  %s2258_s3 = inlined_call_operand.vmem [shape: f32[3,3,8], index: 3, kind: input, shape index: {}]   ;;  %s2259_s4 = inlined_call_operand.vmem [shape: bf16[2,8,8,8], index: 4, kind: output, shape index: {}]  }
   0x1   :  { %s1502_s17 = smov 0  }
   0x2 LB: > { %s26_s18 = sadd.s32 1, %s1466_s16  ;;  %p1375_p0 = scmp.ge.s32.totalorder %s1470_s17, 1  ;;  %s1470_s17 = sphi %s1502_s17, %s14_s17   ;;  %s1466_s16 = sphi %s1500_s16, %s2289_s16   ;;  %s1462_s15 = sphi %s1498_s15, %s2288_s15  }
   0x3   : > { %p28_p1 = scmp.ge.s32.totalorder %s26_s18, 2  ;;  %p246_p2 = scmp.lt.s32.totalorder %s1470_s17, 3 }
   0x5   : > { %s2291_s18 = smov (%p28_p1, %s26_s18), 0  ;;  %p247_p3 = pnand %p1375_p0, %p246_p2 }
   0x6   : > { %p315_p4 = scmp.lt.s32.totalorder (!%p247_p3), %s1462_s15, 1 }
   0x7   : > { %250 = sbr.rel (%p247_p3) target bundleno = 191 (0xbf), region = 36 }
   0xc   : > { %s2293_s15 = smov (!%p315_p4, %s1462_s15), 1  ;;  %v408_v0 = vld [vmem:[%s2258_s3] sm:$0x7]  ;;  %v1527_v1 = vld [vmem:[%s2258_s3 + $0x4] sm:$0x7]  ;;  %vm461_vm0 = vcmask 1046528  }
   0xd   : > { %s1522_s21 = smul.u32 80, %s2293_s15  ;;  %v1534_v2 = vperm.slane %v408_v0, 0  ;;  %v428_v3 = vperm.slane %v408_v0, 1  ;;  %v1536_v4 = vperm.slane %v408_v0, 2  ;;  %v1541_v7 = vperm.slane %v1527_v1, 0  ;;  %s1387_s11 = sshll.u32 %s2293_s15, 5 }
   0xe   : > { %v1544_v8 = vperm.slane %v1527_v1, 1  ;;  %vm535_vm1 = vcmask 1045504   ;;  %s2221_s14 = scalar_lea.vmem %s2259_s4, %s1387_s11 }
   0xf   : > { %s323_s26 = scalar_lea.vmem %s2255_s0, %s1522_s21  ;;  %s1384_s27 = sadd.s32 64, %s1522_s21 }
  0x10   : > { %v368_v5 = vld [vmem:[%s323_s26] sm:$0xf]  ;;  %v1538_v6 = vld [vmem:[%s323_s26 + $0x4] sm:$0x1]  ;;  %v370_v9 = vld [vmem:[%s323_s26 + $0x8] sm:$0xf]  ;;  %s1549_s30 = scalar_lea.vmem %s2256_s1, %s1384_s27 }
  0x11   : > { %v371_v10 = vld [vmem:[%s323_s26 + $0xc] sm:$0x1]  ;;  %v372_v11 = vld [vmem:[%s323_s26 + $0x10] sm:$0xf]  ;;  %v373_v12 = vld [vmem:[%s323_s26 + $0x14] sm:$0x1]  ;;  %v1551_v18 = vunpack.c.l.bf16 %v368_v5  ;;  %v389_v19 = vunpack.c.l.bf16 %v1538_v6  ;;  %v1554_v23 = vunpack.c.l.bf16 %v370_v9 }
  0x12   : > { %v374_v13 = vld [vmem:[%s323_s26 + $0x18] sm:$0xf]  ;;  %v375_v14 = vld [vmem:[%s323_s26 + $0x1c] sm:$0x1]  ;;  %v376_v15 = vld [vmem:[%s323_s26 + $0x20] sm:$0xf]  ;;  %v1556_v24 = vunpack.c.l.bf16 %v371_v10  ;;  %v1558_v25 = vunpack.c.l.bf16 %v372_v11  ;;  %v1560_v26 = vunpack.c.l.bf16 %v373_v12 }
  0x13   : > { %v377_v16 = vld [vmem:[%s323_s26 + $0x24] sm:$0x1]  ;;  %v378_v17 = vld [vmem:[%s323_s26 + $0x28] sm:$0xf]  ;;  %v379_v20 = vld [vmem:[%s323_s26 + $0x2c] sm:$0x1]  ;;  %v1563_v30 = vunpack.c.l.bf16 %v374_v13  ;;  %v1565_v31 = vunpack.c.l.bf16 %v375_v14  ;;  %v1567_v32 = vunpack.c.l.bf16 %v376_v15  ;;  %v412_v33 = vmul.f32 %v1534_v2, %v1551_v18 }
  0x14   : > { %v380_v21 = vld [vmem:[%s323_s26 + $0x30] sm:$0xf]  ;;  %v381_v22 = vld [vmem:[%s323_s26 + $0x34] sm:$0x1]  ;;  %v382_v27 = vld [vmem:[%s323_s26 + $0x38] sm:$0xf]  ;;  %v1571_v34 = vunpack.c.l.bf16 %v377_v16  ;;  %v1573_v35 = vunpack.c.l.bf16 %v378_v17  ;;  %v1575_v36 = vunpack.c.l.bf16 %v379_v20  ;;  %v413_v37 = vmul.f32 %v1534_v2, %v1554_v23 }
  0x15   : > { %v383_v28 = vld [vmem:[%s323_s26 + $0x3c] sm:$0x1]  ;;  %v384_v29 = vld [vmem:[%s1549_s30] sm:$0xf]  ;;  %v1579_v38 = vunpack.c.l.bf16 %v380_v21  ;;  %v1581_v39 = vunpack.c.l.bf16 %v381_v22  ;;  %v1583_v40 = vunpack.c.l.bf16 %v382_v27  ;;  %v414_v41 = vmul.f32 %v1534_v2, %v1558_v25  ;;  %s1386_s5 = sadd.s32 72, %s1522_s21 }
  0x16   : > { %v1587_v42 = vunpack.c.l.bf16 %v383_v28  ;;  %v1589_v43 = vunpack.c.l.bf16 %v384_v29  ;;  %v415_v44 = vmul.f32 %v1534_v2, %v1563_v30  ;;  %v429_v45 = vmul.f32 %v428_v3, %v1551_v18  ;;  %s1716_s8 = scalar_lea.vmem %s2257_s2, %s1386_s5 }
  0x17   : > { %v430_v46 = vmul.f32 %v428_v3, %v389_v19  ;;  %v431_v47 = vmul.f32 %v428_v3, %v1554_v23  ;;  %v432_v48 = vmul.f32 %v428_v3, %v1556_v24  ;;  %v433_v49 = vmul.f32 %v428_v3, %v1558_v25 }
  0x18   : > { %v434_v50 = vmul.f32 %v428_v3, %v1560_v26  ;;  %v435_v51 = vmul.f32 %v428_v3, %v1563_v30  ;;  %v436_v52 = vmul.f32 %v428_v3, %v1565_v31  ;;  %v437_v53 = vmul.f32 %v428_v3, %v1567_v32 }
  0x19   : > { %v438_v54 = vmul.f32 %v428_v3, %v1571_v34  ;;  %v439_v55 = vmul.f32 %v428_v3, %v1573_v35  ;;  %v440_v56 = vmul.f32 %v428_v3, %v1575_v36  ;;  %v441_v57 = vmul.f32 %v428_v3, %v1579_v38 }
  0x1a   : > { %v442_v58 = vmul.f32 %v428_v3, %v1581_v39  ;;  %v443_v59 = vmul.f32 %v428_v3, %v1583_v40  ;;  %v444_v60 = vmul.f32 %v428_v3, %v1587_v42  ;;  %v462_v61 = vrot.slane %v429_v45, 1 }
  0x1b   : > { %v463_v62 = vrot.slane %v430_v46, 1  ;;  %v465_v63 = vrot.slane %v431_v47, 1  ;;  %v466_v0 = vrot.slane %v432_v48, 1  ;;  %v468_v5 = vrot.slane %v433_v49, 1 }
  0x1c   : > { %v469_v9 = vrot.slane %v434_v50, 1  ;;  %v471_v10 = vrot.slane %v435_v51, 1  ;;  %v472_v11 = vrot.slane %v436_v52, 1  ;;  %v474_v12 = vrot.slane %v437_v53, 1 }
  0x1d   : > { %v416_v13 = vmul.f32 %v1534_v2, %v1567_v32  ;;  %v464_v14 = vsel %vm461_vm0, %v462_v61, %v463_v62  ;;  %v475_v15 = vrot.slane %v438_v54, 1  ;;  %v477_v16 = vrot.slane %v439_v55, 1 }
  0x1e   : > { %v467_v17 = vsel %vm461_vm0, %v465_v63, %v466_v0  ;;  %v470_v3 = vsel %vm461_vm0, %v468_v5, %v469_v9  ;;  %v478_v20 = vrot.slane %v440_v56, 1  ;;  %v480_v21 = vrot.slane %v441_v57, 1 }
  0x1f   : > { %v473_v22 = vsel %vm461_vm0, %v471_v10, %v472_v11  ;;  %v481_v27 = vrot.slane %v442_v58, 1  ;;  %v483_v28 = vrot.slane %v443_v59, 1  ;;  %v484_v29 = vrot.slane %v444_v60, 1 }
  0x20   : > { %v417_v45 = vmul.f32 %v1534_v2, %v1573_v35  ;;  %v418_v46 = vmul.f32 %v1534_v2, %v1579_v38  ;;  %v419_v47 = vmul.f32 %v1534_v2, %v1583_v40  ;;  %v476_v48 = vsel %vm461_vm0, %v474_v12, %v475_v15 }
  0x21   : > { %v479_v49 = vsel %vm461_vm0, %v477_v16, %v478_v20  ;;  %v494_v50 = vadd.f32 %v464_v14, %v412_v33  ;;  %v495_v51 = vadd.f32 %v467_v17, %v413_v37  ;;  %v496_v52 = vadd.f32 %v470_v3, %v414_v41 }
  0x22   : > { %v482_v53 = vsel %vm461_vm0, %v480_v21, %v481_v27  ;;  %v485_v54 = vsel %vm461_vm0, %v483_v28, %v484_v29  ;;  %v497_v55 = vadd.f32 %v473_v22, %v415_v44  ;;  %v503_v56 = vmul.f32 %v1536_v4, %v1551_v18  ;;  %v385_v22 = vld [vmem:[%s1549_s30 + $0x4] sm:$0x1] }
  0x23   : > { %v504_v57 = vmul.f32 %v1536_v4, %v389_v19  ;;  %v505_v2 = vmul.f32 %v1536_v4, %v1554_v23  ;;  %v506_v33 = vmul.f32 %v1536_v4, %v1556_v24  ;;  %v507_v37 = vmul.f32 %v1536_v4, %v1558_v25 }
  0x24   : > { %v508_v41 = vmul.f32 %v1536_v4, %v1560_v26  ;;  %v509_v44 = vmul.f32 %v1536_v4, %v1563_v30  ;;  %v510_v6 = vmul.f32 %v1536_v4, %v1565_v31  ;;  %v511_v18 = vmul.f32 %v1536_v4, %v1567_v32 }
  0x25   : > { %v512_v19 = vmul.f32 %v1536_v4, %v1571_v34  ;;  %v513_v58 = vmul.f32 %v1536_v4, %v1573_v35  ;;  %v514_v59 = vmul.f32 %v1536_v4, %v1575_v36  ;;  %v515_v60 = vmul.f32 %v1536_v4, %v1579_v38 }
  0x26   : > { %v516_v61 = vmul.f32 %v1536_v4, %v1581_v39  ;;  %v517_v62 = vmul.f32 %v1536_v4, %v1583_v40  ;;  %v518_v63 = vmul.f32 %v1536_v4, %v1587_v42  ;;  %v536_v0 = vrot.slane %v503_v56, 2 }
  0x27   : > { %v537_v5 = vrot.slane %v504_v57, 2  ;;  %v539_v9 = vrot.slane %v505_v2, 2  ;;  %v540_v10 = vrot.slane %v506_v33, 2  ;;  %v542_v11 = vrot.slane %v507_v37, 2 }
  0x28   : > { %v543_v12 = vrot.slane %v508_v41, 2  ;;  %v545_v14 = vrot.slane %v509_v44, 2  ;;  %v546_v15 = vrot.slane %v510_v6, 2  ;;  %v548_v16 = vrot.slane %v511_v18, 2 }
  0x29   : > { %v498_v17 = vadd.f32 %v476_v48, %v416_v13  ;;  %v499_v3 = vadd.f32 %v479_v49, %v417_v45  ;;  %v549_v20 = vrot.slane %v512_v19, 2  ;;  %v551_v21 = vrot.slane %v513_v58, 2 }
  0x2a   : > { %v538_v27 = vsel %vm535_vm1, %v536_v0, %v537_v5  ;;  %v541_v28 = vsel %vm535_vm1, %v539_v9, %v540_v10  ;;  %v552_v29 = vrot.slane %v514_v59, 2  ;;  %v554_v4 = vrot.slane %v515_v60, 2 }
  0x2b   : > { %v544_v56 = vsel %vm535_vm1, %v542_v11, %v543_v12  ;;  %v555_v57 = vrot.slane %v516_v61, 2  ;;  %v557_v2 = vrot.slane %v517_v62, 2  ;;  %v558_v33 = vrot.slane %v518_v63, 2 }
  0x2c   : > { %v500_v37 = vadd.f32 %v482_v53, %v418_v46  ;;  %v501_v41 = vadd.f32 %v485_v54, %v419_v47  ;;  %v547_v44 = vsel %vm535_vm1, %v545_v14, %v546_v15  ;;  %v550_v13 = vsel %vm535_vm1, %v548_v16, %v549_v20 }
  0x2d   : > { %v1665_v45 = vunpack.c.l.bf16 %v385_v22  ;;  %v553_v48 = vsel %vm535_vm1, %v551_v21, %v552_v29  ;;  %v556_v49 = vsel %vm535_vm1, %v554_v4, %v555_v57  ;;  %v559_v6 = vsel %vm535_vm1, %v557_v2, %v558_v33 }
  0x2e   : > { %v568_v18 = vadd.f32 %v538_v27, %v494_v50  ;;  %v569_v19 = vadd.f32 %v541_v28, %v495_v51  ;;  %v570_v58 = vadd.f32 %v544_v56, %v496_v52  ;;  %v577_v59 = vmul.f32 %v1541_v7, %v1554_v23 }
  0x2f   : > { %v571_v46 = vadd.f32 %v547_v44, %v497_v55  ;;  %v572_v47 = vadd.f32 %v550_v13, %v498_v17  ;;  %v578_v53 = vmul.f32 %v1541_v7, %v1558_v25  ;;  %v579_v54 = vmul.f32 %v1541_v7, %v1563_v30 }
  0x30   : > { %v573_v60 = vadd.f32 %v553_v48, %v499_v3  ;;  %v574_v61 = vadd.f32 %v556_v49, %v500_v37  ;;  %v575_v62 = vadd.f32 %v559_v6, %v501_v41  ;;  %v580_v50 = vmul.f32 %v1541_v7, %v1567_v32  ;;  %v386_v49 = vld [vmem:[%s1716_s8] sm:$0xf] }
  0x31   : > { %v581_v51 = vmul.f32 %v1541_v7, %v1573_v35  ;;  %v582_v52 = vmul.f32 %v1541_v7, %v1579_v38  ;;  %v583_v55 = vmul.f32 %v1541_v7, %v1583_v40  ;;  %v584_v63 = vmul.f32 %v1541_v7, %v1589_v43 }
  0x32   : > { %v585_v0 = vadd.f32 %v577_v59, %v568_v18  ;;  %v586_v5 = vadd.f32 %v578_v53, %v569_v19  ;;  %v587_v9 = vadd.f32 %v579_v54, %v570_v58  ;;  %v594_v10 = vmul.f32 %v1544_v8, %v1554_v23 }
  0x33   : > { %v595_v11 = vmul.f32 %v1544_v8, %v1556_v24  ;;  %v596_v12 = vmul.f32 %v1544_v8, %v1558_v25  ;;  %v597_v14 = vmul.f32 %v1544_v8, %v1560_v26  ;;  %v598_v15 = vmul.f32 %v1544_v8, %v1563_v30 }
  0x34   : > { %v599_v7 = vmul.f32 %v1544_v8, %v1565_v31  ;;  %v600_v16 = vmul.f32 %v1544_v8, %v1567_v32  ;;  %v601_v17 = vmul.f32 %v1544_v8, %v1571_v34  ;;  %v602_v3 = vmul.f32 %v1544_v8, %v1573_v35 }
  0x35   : > { %v603_v20 = vmul.f32 %v1544_v8, %v1575_v36  ;;  %v604_v21 = vmul.f32 %v1544_v8, %v1579_v38  ;;  %v605_v22 = vmul.f32 %v1544_v8, %v1581_v39  ;;  %v606_v27 = vmul.f32 %v1544_v8, %v1583_v40 }
  0x36   : > { %v607_v28 = vmul.f32 %v1544_v8, %v1587_v42  ;;  %v608_v29 = vmul.f32 %v1544_v8, %v1589_v43  ;;  %v609_v4 = vmul.f32 %v1544_v8, %v1665_v45  ;;  %v626_v56 = vrot.slane %v594_v10, 1 }
  0x37   : > { %v627_v57 = vrot.slane %v595_v11, 1  ;;  %v629_v2 = vrot.slane %v596_v12, 1  ;;  %v630_v33 = vrot.slane %v597_v14, 1  ;;  %v632_v37 = vrot.slane %v598_v15, 1 }
  0x38   : > { %v633_v41 = vrot.slane %v599_v7, 1  ;;  %v635_v44 = vrot.slane %v600_v16, 1  ;;  %v636_v13 = vrot.slane %v601_v17, 1  ;;  %v638_v48 = vrot.slane %v602_v3, 1 }
  0x39   : > { %v588_v6 = vadd.f32 %v580_v50, %v571_v46  ;;  %v589_v18 = vadd.f32 %v581_v51, %v572_v47  ;;  %v639_v19 = vrot.slane %v603_v20, 1  ;;  %v641_v58 = vrot.slane %v604_v21, 1 }
  0x3a   : > { %v628_v59 = vsel %vm461_vm0, %v626_v56, %v627_v57  ;;  %v631_v53 = vsel %vm461_vm0, %v629_v2, %v630_v33  ;;  %v634_v8 = vsel %vm461_vm0, %v632_v37, %v633_v41  ;;  %v642_v54 = vrot.slane %v605_v22, 1  ;;  %v410_v33 = vld [vmem:[%s2258_s3 + $0x8] sm:$0x7] }
  0x3b   : > { %v644_v10 = vrot.slane %v606_v27, 1  ;;  %v645_v11 = vrot.slane %v607_v28, 1  ;;  %v647_v12 = vrot.slane %v608_v29, 1  ;;  %v648_v14 = vrot.slane %v609_v4, 1 }
  0x3c   : > { %v1728_v15 = vunpack.c.l.bf16 %v386_v49  ;;  %v637_v7 = vsel %vm461_vm0, %v635_v44, %v636_v13  ;;  %v640_v46 = vsel %vm461_vm0, %v638_v48, %v639_v19  ;;  %v590_v47 = vadd.f32 %v582_v52, %v573_v60 }
  0x3d   : > { %v591_v50 = vadd.f32 %v583_v55, %v574_v61  ;;  %v592_v51 = vadd.f32 %v584_v63, %v575_v62  ;;  %v643_v16 = vsel %vm461_vm0, %v641_v58, %v642_v54  ;;  %v658_v17 = vadd.f32 %v628_v59, %v585_v0 }
  0x3e   : > { %v659_v3 = vadd.f32 %v631_v53, %v586_v5  ;;  %v660_v20 = vadd.f32 %v634_v8, %v587_v9  ;;  %v666_v21 = vperm.slane %v1527_v1, 2  ;;  %v646_v22 = vsel %vm461_vm0, %v644_v10, %v645_v11  ;;  %v1756_v8 = vld [vmem:[%s1716_s8 + $0x4] sm:$0x1] }
  0x3f   : > { %v649_v27 = vsel %vm461_vm0, %v647_v12, %v648_v14  ;;  %v661_v28 = vadd.f32 %v637_v7, %v588_v6  ;;  %v662_v29 = vadd.f32 %v640_v46, %v589_v18  ;;  %v663_v19 = vadd.f32 %v643_v16, %v590_v47 }
  0x40   : > { %v667_v4 = vmul.f32 %v666_v21, %v1554_v23  ;;  %v668_v56 = vmul.f32 %v666_v21, %v1556_v24  ;;  %v669_v60 = vmul.f32 %v666_v21, %v1558_v25  ;;  %v670_v61 = vmul.f32 %v666_v21, %v1560_v26 }
  0x41   : > { %v671_v62 = vmul.f32 %v666_v21, %v1563_v30  ;;  %v672_v52 = vmul.f32 %v666_v21, %v1565_v31  ;;  %v673_v1 = vmul.f32 %v666_v21, %v1567_v32  ;;  %v674_v55 = vmul.f32 %v666_v21, %v1571_v34 }
  0x42   : > { %v675_v63 = vmul.f32 %v666_v21, %v1573_v35  ;;  %v676_v0 = vmul.f32 %v666_v21, %v1575_v36  ;;  %v677_v23 = vmul.f32 %v666_v21, %v1579_v38  ;;  %v678_v24 = vmul.f32 %v666_v21, %v1581_v39 }
  0x43   : > { %v679_v5 = vmul.f32 %v666_v21, %v1583_v40  ;;  %v680_v9 = vmul.f32 %v666_v21, %v1587_v42  ;;  %v681_v57 = vmul.f32 %v666_v21, %v1589_v43  ;;  %v682_v2 = vmul.f32 %v666_v21, %v1665_v45 }
  0x44   : > { %v699_v37 = vrot.slane %v667_v4, 2  ;;  %v700_v41 = vrot.slane %v668_v56, 2  ;;  %v702_v44 = vrot.slane %v669_v60, 2  ;;  %v703_v13 = vrot.slane %v670_v61, 2 }
  0x45   : > { %v705_v48 = vrot.slane %v671_v62, 2  ;;  %v706_v49 = vrot.slane %v672_v52, 2  ;;  %v708_v6 = vrot.slane %v673_v1, 2  ;;  %v709_v18 = vrot.slane %v674_v55, 2 }
  0x46   : > { %v664_v58 = vadd.f32 %v646_v22, %v591_v50  ;;  %v711_v59 = vrot.slane %v675_v63, 2  ;;  %v712_v53 = vrot.slane %v676_v0, 2  ;;  %v665_v54 = vadd.f32 %v649_v27, %v592_v51 }
  0x47   : > { %v714_v10 = vrot.slane %v677_v23, 2  ;;  %v715_v11 = vrot.slane %v678_v24, 2  ;;  %v739_v12 = vperm.slane %v410_v33, 0  ;;  %v701_v14 = vsel %vm535_vm1, %v699_v37, %v700_v41 }
  0x48   : > { %v717_v7 = vrot.slane %v679_v5, 2  ;;  %v718_v46 = vrot.slane %v680_v9, 2  ;;  %v720_v21 = vrot.slane %v681_v57, 2  ;;  %v704_v4 = vsel %vm535_vm1, %v702_v44, %v703_v13 }
  0x49   : > { %v707_v56 = vsel %vm535_vm1, %v705_v48, %v706_v49  ;;  %v710_v47 = vsel %vm535_vm1, %v708_v6, %v709_v18  ;;  %v721_v50 = vrot.slane %v682_v2, 2  ;;  %v407_v16 = vunpack.c.l.bf16 %v1756_v8 }
  0x4a   : > { %v713_v22 = vsel %vm535_vm1, %v711_v59, %v712_v53  ;;  %v716_v51 = vsel %vm535_vm1, %v714_v10, %v715_v11  ;;  %v719_v27 = vsel %vm535_vm1, %v717_v7, %v718_v46  ;;  %v731_v61 = vadd.f32 %v701_v14, %v658_v17 }
  0x4b   : > { %v722_v60 = vsel %vm535_vm1, %v720_v21, %v721_v50  ;;  %v740_v62 = vmul.f32 %v739_v12, %v1558_v25  ;;  %v756_v52 = vperm.slane %v410_v33, 1  ;;  %v732_v1 = vadd.f32 %v704_v4, %v659_v3 }
  0x4c   : > { %v733_v55 = vadd.f32 %v707_v56, %v660_v20  ;;  %v734_v63 = vadd.f32 %v710_v47, %v661_v28  ;;  %v1768_v0 = vperm.slane %v410_v33, 2  ;;  %v735_v23 = vadd.f32 %v713_v22, %v662_v29 }
  0x4d   : > { %v736_v24 = vadd.f32 %v716_v51, %v663_v19  ;;  %v737_v5 = vadd.f32 %v719_v27, %v664_v58  ;;  %v738_v9 = vadd.f32 %v722_v60, %v665_v54  ;;  %v741_v57 = vmul.f32 %v739_v12, %v1563_v30 }
  0x4e   : > { %v742_v2 = vmul.f32 %v739_v12, %v1567_v32  ;;  %v743_v37 = vmul.f32 %v739_v12, %v1573_v35  ;;  %v744_v17 = vmul.f32 %v739_v12, %v1579_v38  ;;  %v745_v41 = vmul.f32 %v739_v12, %v1583_v40 }
  0x4f   : > { %v746_v3 = vmul.f32 %v739_v12, %v1589_v43  ;;  %v747_v20 = vmul.f32 %v739_v12, %v1728_v15  ;;  %v748_v28 = vadd.f32 %v740_v62, %v731_v61  ;;  %v757_v29 = vmul.f32 %v756_v52, %v1558_v25 }
  0x50   : > { %v758_v33 = vmul.f32 %v756_v52, %v1560_v26  ;;  %v759_v44 = vmul.f32 %v756_v52, %v1563_v30  ;;  %v760_v13 = vmul.f32 %v756_v52, %v1565_v31  ;;  %v761_v48 = vmul.f32 %v756_v52, %v1567_v32 }
  0x51   : > { %v762_v49 = vmul.f32 %v756_v52, %v1571_v34  ;;  %v763_v6 = vmul.f32 %v756_v52, %v1573_v35  ;;  %v764_v18 = vmul.f32 %v756_v52, %v1575_v36  ;;  %v749_v19 = vadd.f32 %v741_v57, %v732_v1 }
  0x52   : > { %v750_v58 = vadd.f32 %v742_v2, %v733_v55  ;;  %v765_v59 = vmul.f32 %v756_v52, %v1579_v38  ;;  %v766_v53 = vmul.f32 %v756_v52, %v1581_v39  ;;  %v767_v54 = vmul.f32 %v756_v52, %v1583_v40 }
  0x53   : > { %v768_v10 = vmul.f32 %v756_v52, %v1587_v42  ;;  %v769_v11 = vmul.f32 %v756_v52, %v1589_v43  ;;  %v770_v12 = vmul.f32 %v756_v52, %v1665_v45  ;;  %v789_v14 = vrot.slane %v757_v29, 1 }
  0x54   : > { %v790_v7 = vrot.slane %v758_v33, 1  ;;  %v792_v46 = vrot.slane %v759_v44, 1  ;;  %v793_v21 = vrot.slane %v760_v13, 1  ;;  %v795_v4 = vrot.slane %v761_v48, 1 }
  0x55   : > { %v796_v56 = vrot.slane %v762_v49, 1  ;;  %v798_v47 = vrot.slane %v763_v6, 1  ;;  %v799_v50 = vrot.slane %v764_v18, 1  ;;  %v751_v22 = vadd.f32 %v743_v37, %v734_v63 }
  0x56   : > { %v771_v51 = vmul.f32 %v756_v52, %v1728_v15  ;;  %v801_v27 = vrot.slane %v765_v59, 1  ;;  %v802_v60 = vrot.slane %v766_v53, 1  ;;  %v752_v61 = vadd.f32 %v744_v17, %v735_v23 }
  0x57   : > { %v772_v62 = vmul.f32 %v756_v52, %v407_v16  ;;  %v804_v1 = vrot.slane %v767_v54, 1  ;;  %v805_v55 = vrot.slane %v768_v10, 1  ;;  %v791_v57 = vsel %vm461_vm0, %v789_v14, %v790_v7 }
  0x58   : > { %v794_v2 = vsel %vm461_vm0, %v792_v46, %v793_v21  ;;  %v807_v29 = vrot.slane %v769_v11, 1  ;;  %v808_v33 = vrot.slane %v770_v12, 1  ;;  %v753_v44 = vadd.f32 %v745_v41, %v736_v24 }
  0x59   : > { %v754_v13 = vadd.f32 %v746_v3, %v737_v5  ;;  %v797_v63 = vsel %vm461_vm0, %v795_v4, %v796_v56  ;;  %v800_v37 = vsel %vm461_vm0, %v798_v47, %v799_v50  ;;  %v755_v48 = vadd.f32 %v747_v20, %v738_v9 }
  0x5a   : > { %v803_v23 = vsel %vm461_vm0, %v801_v27, %v802_v60  ;;  %v806_v17 = vsel %vm461_vm0, %v804_v1, %v805_v55  ;;  %v810_v52 = vrot.slane %v771_v51, 1  ;;  %v809_v49 = vsel %vm461_vm0, %v807_v29, %v808_v33 }
  0x5b   : > { %v811_v6 = vrot.slane %v772_v62, 1  ;;  %v821_v18 = vadd.f32 %v791_v57, %v748_v28  ;;  %v822_v59 = vadd.f32 %v794_v2, %v749_v19  ;;  %v823_v53 = vadd.f32 %v797_v63, %v750_v58 }
  0x5c   : > { %v824_v54 = vadd.f32 %v800_v37, %v751_v22  ;;  %v830_v24 = vmul.f32 %v1768_v0, %v1558_v25  ;;  %v831_v5 = vmul.f32 %v1768_v0, %v1560_v26  ;;  %v832_v9 = vmul.f32 %v1768_v0, %v1563_v30 }
  0x5d   : > { %v833_v41 = vmul.f32 %v1768_v0, %v1565_v31  ;;  %v834_v3 = vmul.f32 %v1768_v0, %v1567_v32  ;;  %v835_v20 = vmul.f32 %v1768_v0, %v1571_v34  ;;  %v836_v28 = vmul.f32 %v1768_v0, %v1573_v35 }
  0x5e   : > { %v837_v25 = vmul.f32 %v1768_v0, %v1575_v36  ;;  %v838_v26 = vmul.f32 %v1768_v0, %v1579_v38  ;;  %v839_v30 = vmul.f32 %v1768_v0, %v1581_v39  ;;  %v840_v31 = vmul.f32 %v1768_v0, %v1583_v40 }
  0x5f   : > { %v841_v32 = vmul.f32 %v1768_v0, %v1587_v42  ;;  %v842_v34 = vmul.f32 %v1768_v0, %v1589_v43  ;;  %v843_v35 = vmul.f32 %v1768_v0, %v1665_v45  ;;  %v844_v36 = vmul.f32 %v1768_v0, %v1728_v15 }
  0x60   : > { %v845_v38 = vmul.f32 %v1768_v0, %v407_v16  ;;  %v862_v39 = vrot.slane %v830_v24, 2  ;;  %v863_v19 = vrot.slane %v831_v5, 2  ;;  %v865_v58 = vrot.slane %v832_v9, 2 }
  0x61   : > { %v866_v40 = vrot.slane %v833_v41, 2  ;;  %v868_v10 = vrot.slane %v834_v3, 2  ;;  %v869_v11 = vrot.slane %v835_v20, 2  ;;  %v871_v42 = vrot.slane %v836_v28, 2 }
  0x62   : > { %v872_v12 = vrot.slane %v837_v25, 2  ;;  %v874_v14 = vrot.slane %v838_v26, 2  ;;  %v875_v43 = vrot.slane %v839_v30, 2  ;;  %v812_v7 = vsel %vm461_vm0, %v810_v52, %v811_v6 }
  0x63   : > { %v825_v45 = vadd.f32 %v803_v23, %v752_v61  ;;  %v877_v46 = vrot.slane %v840_v31, 2  ;;  %v878_v21 = vrot.slane %v841_v32, 2  ;;  %v826_v15 = vadd.f32 %v806_v17, %v753_v44 }
  0x64   : > { %v880_v4 = vrot.slane %v842_v34, 2  ;;  %v881_v8 = vrot.slane %v843_v35, 2  ;;  %v883_v56 = vrot.slane %v844_v36, 2  ;;  %v827_v16 = vadd.f32 %v809_v49, %v754_v13 }
  0x65   : > { %v864_v0 = vsel %vm535_vm1, %v862_v39, %v863_v19  ;;  %v867_v47 = vsel %vm535_vm1, %v865_v58, %v866_v40  ;;  %v884_v50 = vrot.slane %v845_v38, 2  ;;  %v828_v22 = vadd.f32 %v812_v7, %v755_v48 }
  0x66   : > { %v870_v51 = vsel %vm535_vm1, %v868_v10, %v869_v11  ;;  %v873_v27 = vsel %vm535_vm1, %v871_v42, %v872_v12  ;;  %v876_v60 = vsel %vm535_vm1, %v874_v14, %v875_v43  ;;  %v879_v61 = vsel %vm535_vm1, %v877_v46, %v878_v21 }
  0x67   : > { %v882_v62 = vsel %vm535_vm1, %v880_v4, %v881_v8  ;;  %v885_v1 = vsel %vm535_vm1, %v883_v56, %v884_v50  ;;  %v1843_v55 = vadd.f32 %v864_v0, %v821_v18  ;;  %v1845_v57 = vadd.f32 %v867_v47, %v822_v59 }
  0x68   : > { %v1847_v2 = vadd.f32 %v870_v51, %v823_v53  ;;  %v1849_v29 = vadd.f32 %v873_v27, %v824_v54  ;;  %v1851_v33 = vadd.f32 %v876_v60, %v825_v45  ;;  %v1853_v44 = vadd.f32 %v879_v61, %v826_v15 }
  0x69   : > { %v1855_v13 = vadd.f32 %v882_v62, %v827_v16  ;;  %v1857_v63 = vadd.f32 %v885_v1, %v828_v22  ;;  %v1860_v37 = vmul.f32 0.70710677, %v1843_v55  ;;  %v1863_v48 = vmul.f32 0.70710677, %v1845_v57 }
  0x6a   : > { %v1866_v23 = vmul.f32 0.70710677, %v1847_v2  ;;  %v1869_v17 = vmul.f32 0.70710677, %v1849_v29  ;;  %v1872_v52 = vmul.f32 0.70710677, %v1851_v33 }
  0x6b   : > { %v1875_v49 = vmul.f32 0.70710677, %v1853_v44  ;;  %v1878_v6 = vmul.f32 0.70710677, %v1855_v13  ;;  %v1881_v18 = vmul.f32 0.70710677, %v1857_v63 }
  0x6c   : > { %v1884_v59 = vand.u32 2147483647, %v1860_v37  ;;  %v1887_v53 = vand.u32 2147483647, %v1863_v48  ;;  %v1890_v54 = vand.u32 2147483647, %v1866_v23 }
  0x6d   : > { %v1893_v24 = vand.u32 2147483647, %v1869_v17  ;;  %v1896_v5 = vand.u32 2147483647, %v1872_v52  ;;  %v1899_v9 = vand.u32 2147483647, %v1875_v49 }
  0x6e   : > { %v1902_v41 = vand.u32 2147483647, %v1878_v6  ;;  %v1905_v3 = vand.u32 2147483647, %v1881_v18  ;;  %v942_v20 = vmul.f32 0.3275911, %v1884_v59 }
  0x6f   : > { %v943_v28 = vmul.f32 0.3275911, %v1887_v53  ;;  %v944_v25 = vmul.f32 0.3275911, %v1890_v54  ;;  %v945_v26 = vmul.f32 0.3275911, %v1893_v24 }
  0x70   : > { %v946_v30 = vmul.f32 0.3275911, %v1896_v5  ;;  %v947_v31 = vmul.f32 0.3275911, %v1899_v9  ;;  %v950_v32 = vadd.f32 1.0, %v942_v20 }
  0x71   : > { %v1913_v34 = vadd.f32 1.0, %v943_v28  ;;  %v948_v35 = vmul.f32 0.3275911, %v1902_v41  ;;  %v949_v36 = vmul.f32 0.3275911, %v1905_v3  ;;  %v1917_v38 = vadd.f32 1.0, %v944_v25 }
  0x72   : > { %v1919_v39 = vadd.f32 1.0, %v945_v26  ;;  %1416 = vrcp.f32 %v950_v32  ;;  %v1922_v19 = vadd.f32 1.0, %v946_v30  ;;  %v1924_v58 = vadd.f32 1.0, %v947_v31 }
  0x73   : > { %1418 = vrcp.f32 %v1913_v34  ;;  %v969_v40 = vand.u32 2147483648, %v950_v32  ;;  %v1927_v10 = vadd.f32 1.0, %v948_v35  ;;  %v1929_v11 = vadd.f32 1.0, %v949_v36 }
  0x74   : > { %1420 = vrcp.f32 %v1917_v38  ;;  %v967_v42 = vand.u32 2147483647, %v950_v32  ;;  %v984_v12 = vand.u32 2147483648, %v1913_v34  ;;  %vm963_vm2 = vweird.f32 %v950_v32 }
  0x75   : > { %v982_v14 = vand.u32 2147483647, %v1913_v34  ;;  %v999_v43 = vand.u32 2147483648, %v1917_v38  ;;  %1422 = vrcp.f32 %v1919_v39  ;;  %vm978_vm3 = vweird.f32 %v1913_v34 }
  0x76   : > { %vm993_vm4 = vweird.f32 %v1917_v38  ;;  %v997_v7 = vand.u32 2147483647, %v1917_v38  ;;  %v1014_v45 = vand.u32 2147483648, %v1919_v39  ;;  %v1941_v21 = vor.u32 1.1754944e-38, %v969_v40 }
  0x77   : > { %v1012_v15 = vand.u32 2147483647, %v1919_v39  ;;  %1424 = vrcp.f32 %v1922_v19  ;;  %v1029_v4 = vand.u32 2147483648, %v1922_v19  ;;  %vm1949_vm5 = vcmp.eq.f32.partialorder %v967_v42, 8.507059e+37 }
  0x78   : > { %v1939_v46 = vpop.eup %1416  ;;  %v985_v0 = vor.u32 1.1754944e-38, %v984_v12  ;;  %vm1008_vm6 = vweird.f32 %v1919_v39  ;;  %v1027_v47 = vand.u32 2147483647, %v1922_v19  ;;  %vm1960_vm8 = vcmp.eq.f32.partialorder %v982_v14, 8.507059e+37 }
  0x79   : > { %v1946_v8 = vpop.eup %1418  ;;  %v959_v56 = vmul.f32 %v1939_v46, %v950_v32  ;;  %vm964_vm7 = vweird.f32 %v1939_v46  ;;  %v1000_v27 = vor.u32 1.1754944e-38, %v999_v43  ;;  %vm1023_vm9 = vweird.f32 %v1922_v19 }
  0x7a   : > { %v1955_v50 = vpop.eup %1420  ;;  %v974_v22 = vmul.f32 %v1946_v8, %v1913_v34  ;;  %vm1967_vm10 = vcmp.eq.f32.partialorder %v997_v7, 8.507059e+37  ;;  %v1015_v1 = vor.u32 1.1754944e-38, %v1014_v45  ;;  %1426 = vrcp.f32 %v1924_v58  ;;  %vm1988_vm15 = vmor %vm963_vm2, %vm964_vm7 }
  0x7b   : > { %v960_v60 = vsub.f32 1.0, %v959_v56  ;;  %v989_v61 = vmul.f32 %v1955_v50, %v1917_v38  ;;  %v1423_v20 = vpop.eup %1422  ;;  %vm979_vm11 = vweird.f32 %v1946_v8  ;;  %vm1973_vm12 = vcmp.eq.f32.partialorder %v1012_v15, 8.507059e+37 }
  0x7c   : > { %v975_v28 = vsub.f32 1.0, %v974_v22  ;;  %v1030_v26 = vor.u32 1.1754944e-38, %v1029_v4  ;;  %v1042_v30 = vand.u32 2147483647, %v1924_v58  ;;  %vm994_vm13 = vweird.f32 %v1955_v50  ;;  %vm2000_vm1 = vmor %vm978_vm3, %vm979_vm11 }
  0x7d   : > { %v961_v31 = vmul.f32 %v1939_v46, %v960_v60  ;;  %v990_v35 = vsub.f32 1.0, %v989_v61  ;;  %v1004_v36 = vmul.f32 %v1423_v20, %v1919_v39  ;;  %vm1981_vm14 = vcmp.eq.f32.partialorder %v1027_v47, 8.507059e+37  ;;  %v1425_v42 = vpop.eup %1424  ;;  %vm2011_vm2 = vmor %vm993_vm4, %vm994_vm13 }
  0x7e   : > { %v976_v14 = vmul.f32 %v1946_v8, %v975_v28  ;;  %vm1009_vm0 = vweird.f32 %v1423_v20  ;;  %v1044_v43 = vand.u32 2147483648, %v1924_v58  ;;  %1428 = vrcp.f32 %v1927_v10 }
  0x7f   : > { %v962_v7 = vadd.f32 %v1939_v46, %v961_v31  ;;  %v991_v32 = vmul.f32 %v1955_v50, %v990_v35  ;;  %v1005_v15 = vsub.f32 1.0, %v1004_v36  ;;  %v1019_v4 = vmul.f32 %v1425_v42, %v1922_v19  ;;  %vm2030_vm4 = vmor %vm1008_vm6, %vm1009_vm0 }
  0x80   : > { %v977_v56 = vadd.f32 %v1946_v8, %v976_v14  ;;  %vm1024_vm7 = vweird.f32 %v1425_v42  ;;  %vm1038_vm3 = vweird.f32 %v1924_v58  ;;  %vm2016_vm11 = vcmp.eq.f32.partialorder %v1042_v30, 8.507059e+37  ;;  %v1427_v22 = vpop.eup %1426 }
  0x81   : > { %v966_v60 = vsel %vm1988_vm15, %v1939_v46, %v962_v7  ;;  %v992_v61 = vadd.f32 %v1955_v50, %v991_v32  ;;  %v1006_v28 = vmul.f32 %v1423_v20, %v1005_v15  ;;  %v1020_v38 = vsub.f32 1.0, %v1019_v4  ;;  %vm2048_vm6 = vmor %vm1023_vm9, %vm1024_vm7 }
  0x82   : > { %v981_v31 = vsel %vm2000_vm1, %v1946_v8, %v977_v56  ;;  %v1034_v35 = vmul.f32 %v1427_v22, %v1924_v58  ;;  %v1045_v36 = vor.u32 1.1754944e-38, %v1044_v43  ;;  %v1057_v46 = vand.u32 2147483647, %v1927_v10 }
  0x83   : > { %v996_v12 = vsel %vm2011_vm2, %v1955_v50, %v992_v61  ;;  %v1007_v14 = vadd.f32 %v1423_v20, %v1006_v28  ;;  %v1021_v7 = vmul.f32 %v1425_v42, %v1020_v38  ;;  %vm1053_vm13 = vweird.f32 %v1927_v10 }
  0x84   : > { %v1429_v8 = vpop.eup %1428  ;;  %v2043_v39 = vsel %vm1949_vm5, %v1941_v21, %v966_v60  ;;  %v1035_v45 = vsub.f32 1.0, %v1034_v35  ;;  %vm1039_vm15 = vweird.f32 %v1427_v22  ;;  %v1059_v50 = vand.u32 2147483648, %v1927_v10 }
  0x85   : > { %v2055_v32 = vsel %vm1960_vm8, %v985_v0, %v981_v31  ;;  %v1011_v16 = vsel %vm2030_vm4, %v1423_v20, %v1007_v14  ;;  %v1022_v21 = vadd.f32 %v1425_v42, %v1021_v7  ;;  %v1049_v15 = vmul.f32 %v1429_v8, %v1927_v10  ;;  %vm2077_vm8 = vmor %vm1038_vm3, %vm1039_vm15 }
  0x86   : > { %v2062_v19 = vsel %vm1967_vm10, %v1000_v27, %v996_v12  ;;  %v1036_v4 = vmul.f32 %v1427_v22, %v1035_v45  ;;  %vm2064_vm5 = vcmp.eq.f32.partialorder %v1057_v46, 8.507059e+37  ;;  %1430 = vrcp.f32 %v1929_v11 }
  0x87   : > { %v2071_v0 = vsel %vm1973_vm12, %v1015_v1, %v1011_v16  ;;  %v1026_v51 = vsel %vm2048_vm6, %v1425_v42, %v1022_v21  ;;  %v1050_v27 = vsub.f32 1.0, %v1049_v15  ;;  %vm1054_vm9 = vweird.f32 %v1429_v8 }
  0x88   : > { %v2083_v20 = vsel %vm1981_vm14, %v1030_v26, %v1026_v51  ;;  %v1037_v47 = vadd.f32 %v1427_v22, %v1036_v4  ;;  %v1060_v60 = vor.u32 1.1754944e-38, %v1059_v50  ;;  %v1078_v1 = vmul.f32 1.0614054, %v2043_v39  ;;  %vm2093_vm10 = vmor %vm1053_vm13, %vm1054_vm9 }
  0x89   : > { %v1051_v25 = vmul.f32 %v1429_v8, %v1050_v27  ;;  %v1072_v61 = vand.u32 2147483647, %v1929_v11  ;;  %v1079_v42 = vmul.f32 1.0614054, %v2055_v32  ;;  %v1080_v58 = vmul.f32 1.0614054, %v2062_v19 }
  0x8a   : > { %v1041_v28 = vsel %vm2077_vm8, %v1427_v22, %v1037_v47  ;;  %v1074_v26 = vand.u32 2147483648, %v1929_v11  ;;  %v1081_v38 = vmul.f32 1.0614054, %v2071_v0  ;;  %v1082_v31 = vmul.f32 1.0614054, %v2083_v20 }
  0x8b   : > { %v2102_v30 = vsel %vm2016_vm11, %v1045_v36, %v1041_v28  ;;  %v1052_v35 = vadd.f32 %v1429_v8, %v1051_v25  ;;  %v1086_v46 = vadd.f32 -1.4531521, %v1078_v1  ;;  %v1087_v12 = vadd.f32 -1.4531521, %v1079_v42 }
  0x8c   : > { %v1431_v22 = vpop.eup %1430  ;;  %vm1068_vm12 = vweird.f32 %v1929_v11  ;;  %v1083_v10 = vmul.f32 1.0614054, %v2102_v30  ;;  %v1088_v14 = vadd.f32 -1.4531521, %v1080_v58  ;;  %v1089_v7 = vadd.f32 -1.4531521, %v1081_v38 }
  0x8d   : > { %v1056_v43 = vsel %vm2093_vm10, %v1429_v8, %v1052_v35  ;;  %v1064_v45 = vmul.f32 %v1431_v22, %v1929_v11  ;;  %vm1069_vm14 = vweird.f32 %v1431_v22  ;;  %v1090_v50 = vadd.f32 -1.4531521, %v1082_v31 }
  0x8e   : > { %v2111_v34 = vsel %vm2064_vm5, %v1060_v60, %v1056_v43  ;;  %v1091_v36 = vadd.f32 -1.4531521, %v1083_v10  ;;  %v1094_v16 = vmul.f32 %v1086_v46, %v2043_v39  ;;  %v1095_v21 = vmul.f32 %v1087_v12, %v2055_v32  ;;  %vm1070_vm0 = vmor %vm1068_vm12, %vm1069_vm14 }
  0x8f   : > { %v1065_v15 = vsub.f32 1.0, %v1064_v45  ;;  %v1084_v4 = vmul.f32 1.0614054, %v2111_v34  ;;  %v1096_v51 = vmul.f32 %v1088_v14, %v2062_v19  ;;  %v1097_v8 = vmul.f32 %v1089_v7, %v2071_v0 }
  0x90   : > { %v1098_v62 = vmul.f32 %v1090_v50, %v2083_v20  ;;  %v1099_v27 = vmul.f32 %v1091_v36, %v2102_v30  ;;  %v1102_v47 = vadd.f32 1.4214138, %v1094_v16  ;;  %v1103_v1 = vadd.f32 1.4214138, %v1095_v21 }
  0x91   : > { %v1066_v56 = vmul.f32 %v1431_v22, %v1065_v15  ;;  %v1092_v60 = vadd.f32 -1.4531521, %v1084_v4  ;;  %v1104_v25 = vadd.f32 1.4214138, %v1096_v51  ;;  %v1075_v42 = vor.u32 1.1754944e-38, %v1074_v26 }
  0x92   : > { %vm1073_vm1 = vcmp.eq.f32.partialorder %v1072_v61, 8.507059e+37  ;;  %v1105_v28 = vadd.f32 1.4214138, %v1097_v8  ;;  %v1106_v40 = vadd.f32 1.4214138, %v1098_v62  ;;  %v1110_v35 = vmul.f32 %v1102_v47, %v2043_v39 }
  0x93   : > { %v1067_v58 = vadd.f32 %v1431_v22, %v1066_v56  ;;  %v1100_v38 = vmul.f32 %v1092_v60, %v2111_v34  ;;  %v1107_v31 = vadd.f32 1.4214138, %v1099_v27  ;;  %v1111_v12 = vmul.f32 %v1103_v1, %v2055_v32 }
  0x94   : > { %v1112_v10 = vmul.f32 %v1104_v25, %v2062_v19  ;;  %v2128_v14 = vmul.f32 0.5, %v1843_v55  ;;  %v2131_v11 = vmul.f32 0.5, %v1845_v57  ;;  %v2136_v61 = vmul.f32 0.5, %v1847_v2 }
  0x95   : > { %v1071_v46 = vsel %vm1070_vm0, %v1431_v22, %v1067_v58  ;;  %v1113_v43 = vmul.f32 %v1105_v28, %v2071_v0  ;;  %v1114_v22 = vmul.f32 %v1106_v40, %v2083_v20  ;;  %v2142_v45 = vmul.f32 0.5, %v1849_v29 }
  0x96   : > { %v2133_v26 = vsel %vm1073_vm1, %v1075_v42, %v1071_v46  ;;  %v1108_v50 = vadd.f32 1.4214138, %v1100_v38  ;;  %v1115_v55 = vmul.f32 %v1107_v31, %v2102_v30  ;;  %v1118_v36 = vadd.f32 -0.28449672, %v1110_v35 }
  0x97   : > { %v1085_v7 = vmul.f32 1.0614054, %v2133_v26  ;;  %v1119_v16 = vadd.f32 -0.28449672, %v1111_v12  ;;  %v1120_v21 = vadd.f32 -0.28449672, %v1112_v10 }
  0x98   : > { %v2146_v15 = vmul.f32 0.5, %v1851_v33  ;;  %v2149_v2 = vmul.f32 0.5, %v1853_v44  ;;  %v2152_v4 = vmul.f32 0.5, %v1855_v13  ;;  %v2155_v51 = vmul.f32 0.5, %v1857_v63 }
  0x99   : > { %v1093_v57 = vadd.f32 -1.4531521, %v1085_v7  ;;  %v1121_v8 = vadd.f32 -0.28449672, %v1113_v43  ;;  %v1122_v62 = vadd.f32 -0.28449672, %v1114_v22  ;;  %v1116_v27 = vmul.f32 %v1108_v50, %v2111_v34 }
  0x9a   : > { %v1123_v47 = vadd.f32 -0.28449672, %v1115_v55  ;;  %v1126_v56 = vmul.f32 %v1118_v36, %v2043_v39  ;;  %v1150_v33 = vsub.f32 0.0, %v1884_v59  ;;  %v1127_v44 = vmul.f32 %v1119_v16, %v2055_v32 }
  0x9b   : > { %v1101_v29 = vmul.f32 %v1093_v57, %v2133_v26  ;;  %v1128_v13 = vmul.f32 %v1120_v21, %v2062_v19  ;;  %v1151_v1 = vsub.f32 0.0, %v1887_v53  ;;  %vm918_vm2 = vcmp.ge.f32.partialorder %v1860_v37, 0.0 }
  0x9c   : > { %v1152_v63 = vsub.f32 0.0, %v1890_v54  ;;  %v1153_v25 = vsub.f32 0.0, %v1893_v24  ;;  %v1154_v42 = vsub.f32 0.0, %v1896_v5  ;;  %v1155_v58 = vsub.f32 0.0, %v1899_v9 }
  0x9d   : > { %v1109_v60 = vadd.f32 1.4214138, %v1101_v29  ;;  %vm919_vm7 = vcmp.ge.f32.partialorder %v1863_v48, 0.0  ;;  %v1129_v40 = vmul.f32 %v1121_v8, %v2071_v0  ;;  %v1156_v38 = vsub.f32 0.0, %v1902_v41 }
  0x9e   : > { %v1157_v31 = vsub.f32 0.0, %v1905_v3  ;;  %vm920_vm3 = vcmp.ge.f32.partialorder %v1866_v23, 0.0  ;;  %v1158_v35 = vmul.f32 %v1150_v33, %v1884_v59  ;;  %v1159_v46 = vmul.f32 %v1151_v1, %v1887_v53 }
  0x9f   : > { %v1117_v28 = vmul.f32 %v1109_v60, %v2133_v26  ;;  %v1160_v12 = vmul.f32 %v1152_v63, %v1890_v54  ;;  %v1161_v10 = vmul.f32 %v1153_v25, %v1893_v24  ;;  %vm921_vm11 = vcmp.ge.f32.partialorder %v1869_v17, 0.0 }
  0xa0   : > { %vm922_vm4 = vcmp.ge.f32.partialorder %v1872_v52, 0.0  ;;  %v1124_v7 = vadd.f32 -0.28449672, %v1116_v27  ;;  %v1162_v22 = vmul.f32 %v1154_v42, %v1896_v5  ;;  %v1163_v50 = vmul.f32 %v1155_v58, %v1899_v9 }
  0xa1   : > { %v1125_v43 = vadd.f32 -0.28449672, %v1117_v28  ;;  %vm923_vm13 = vcmp.ge.f32.partialorder %v1875_v49, 0.0  ;;  %v1164_v59 = vmul.f32 %v1156_v38, %v1902_v41  ;;  %v1166_v55 = vmul.f32 1.442695, %v1158_v35 }
  0xa2   : > { %v1168_v53 = vmul.f32 1.442695, %v1159_v46  ;;  %v1170_v36 = vmul.f32 1.442695, %v1160_v12  ;;  %vm924_vm6 = vcmp.ge.f32.partialorder %v1878_v6, 0.0  ;;  %v1130_v54 = vmul.f32 %v1122_v62, %v2083_v20 }
  0xa3   : > { %v1134_v24 = vadd.f32 0.2548296, %v1126_v56  ;;  %v1165_v57 = vmul.f32 %v1157_v31, %v1905_v3  ;;  %v1172_v16 = vmul.f32 1.442695, %v1161_v10  ;;  %v1131_v21 = vmul.f32 %v1123_v47, %v2102_v30 }
  0xa4   : > { %v1135_v5 = vadd.f32 0.2548296, %v1127_v44  ;;  %1432 = vpow2.f32 %v1166_v55  ;;  %v1174_v9 = vmul.f32 1.442695, %v1162_v22  ;;  %v1132_v29 = vmul.f32 %v1124_v7, %v2111_v34 }
  0xa5   : > { %v1136_v8 = vadd.f32 0.2548296, %v1128_v13  ;;  %1434 = vpow2.f32 %v1168_v53  ;;  %v1176_v41 = vmul.f32 1.442695, %v1163_v50  ;;  %v1133_v27 = vmul.f32 %v1125_v43, %v2133_v26 }
  0xa6   : > { %v1137_v33 = vadd.f32 0.2548296, %v1129_v40  ;;  %1436 = vpow2.f32 %v1170_v36  ;;  %v1178_v60 = vmul.f32 1.442695, %v1164_v59  ;;  %v1138_v62 = vadd.f32 0.2548296, %v1130_v54 }
  0xa7   : > { %v1142_v56 = vmul.f32 %v1134_v24, %v2043_v39  ;;  %1438 = vpow2.f32 %v1172_v16  ;;  %v1180_v3 = vmul.f32 1.442695, %v1165_v57  ;;  %vm925_vm15 = vcmp.ge.f32.partialorder %v1881_v18, 0.0 }
  0xa8   : > { %v1139_v47 = vadd.f32 0.2548296, %v1131_v21  ;;  %v1143_v44 = vmul.f32 %v1135_v5, %v2055_v32  ;;  %1440 = vpow2.f32 %v1174_v9  ;;  %v1472_v1 = vmov -1.0  }
  0xa9   : > { %v926_v13 = vsel %vm918_vm2, 1.0, %v1472_v1  ;;  %v1140_v63 = vadd.f32 0.2548296, %v1132_v29  ;;  %v1144_v25 = vmul.f32 %v1136_v8, %v2062_v19  ;;  %1442 = vpow2.f32 %v1176_v41 }
  0xaa   : > { %v1433_v42 = vpop.eup %1432  ;;  %v927_v39 = vsel %vm919_vm7, 1.0, %v1472_v1  ;;  %v1141_v58 = vadd.f32 0.2548296, %v1133_v27  ;;  %v1145_v28 = vmul.f32 %v1137_v33, %v2071_v0  ;;  %1444 = vpow2.f32 %v1178_v60 }
  0xab   : > { %v1435_v40 = vpop.eup %1434  ;;  %v928_v32 = vsel %vm920_vm3, 1.0, %v1472_v1  ;;  %v1146_v38 = vmul.f32 %v1138_v62, %v2083_v20  ;;  %1446 = vpow2.f32 %v1180_v3  ;;  %v1182_v37 = vmul.f32 %v1433_v42, %v1142_v56 }
  0xac   : > { %v1437_v31 = vpop.eup %1436  ;;  %v929_v19 = vsel %vm921_vm11, 1.0, %v1472_v1  ;;  %v930_v48 = vsel %vm922_vm4, 1.0, %v1472_v1  ;;  %v1147_v35 = vmul.f32 %v1139_v47, %v2102_v30  ;;  %v1183_v46 = vmul.f32 %v1435_v40, %v1143_v44 }
  0xad   : > { %v1439_v0 = vpop.eup %1438  ;;  %v931_v12 = vsel %vm923_vm13, 1.0, %v1472_v1  ;;  %v1148_v23 = vmul.f32 %v1140_v63, %v2111_v34  ;;  %v1184_v10 = vmul.f32 %v1437_v31, %v1144_v25  ;;  %v1190_v20 = vsub.f32 1.0, %v1182_v37 }
  0xae   : > { %v1441_v7 = vpop.eup %1440  ;;  %v932_v17 = vsel %vm924_vm6, 1.0, %v1472_v1  ;;  %v1149_v43 = vmul.f32 %v1141_v58, %v2133_v26  ;;  %v1185_v52 = vmul.f32 %v1439_v0, %v1145_v28  ;;  %v1191_v22 = vsub.f32 1.0, %v1183_v46 }
  0xaf   : > { %v1443_v50 = vpop.eup %1442  ;;  %v933_v30 = vsel %vm925_vm15, 1.0, %v1472_v1  ;;  %v1186_v59 = vmul.f32 %v1441_v7, %v1146_v38  ;;  %v1192_v49 = vsub.f32 1.0, %v1184_v10  ;;  %v1198_v55 = vmul.f32 %v1190_v20, %v926_v13 }
  0xb0   : > { %v1445_v53 = vpop.eup %1444  ;;  %v1187_v34 = vmul.f32 %v1443_v50, %v1147_v35  ;;  %v1193_v36 = vsub.f32 1.0, %v1185_v52  ;;  %v1199_v54 = vmul.f32 %v1191_v22, %v927_v39  ;;  %vm1230_vm5 = vcmask 60416  }
  0xb1   : > { %v1447_v24 = vpop.eup %1446  ;;  %v1188_v6 = vmul.f32 %v1445_v53, %v1148_v23  ;;  %v1194_v57 = vsub.f32 1.0, %v1186_v59  ;;  %v1200_v16 = vmul.f32 %v1192_v49, %v928_v32  ;;  %v1206_v26 = vadd.f32 1.0, %v1198_v55 }
  0xb2   : > { %v1189_v21 = vmul.f32 %v1447_v24, %v1149_v43  ;;  %v1195_v5 = vsub.f32 1.0, %v1187_v34  ;;  %v1201_v9 = vmul.f32 %v1193_v36, %v929_v19  ;;  %v1207_v29 = vadd.f32 1.0, %v1199_v54 }
  0xb3   : > { %v1196_v18 = vsub.f32 1.0, %v1188_v6  ;;  %v1202_v8 = vmul.f32 %v1194_v57, %v930_v48  ;;  %v1208_v41 = vadd.f32 1.0, %v1200_v16  ;;  %v1214_v27 = vmul.f32 %v1206_v26, %v2128_v14 }
  0xb4   : > { %v1197_v33 = vsub.f32 1.0, %v1189_v21  ;;  %v1203_v60 = vmul.f32 %v1195_v5, %v931_v12  ;;  %v1209_v62 = vadd.f32 1.0, %v1201_v9  ;;  %v1215_v56 = vmul.f32 %v1207_v29, %v2131_v11 }
  0xb5   : > { %v1204_v3 = vmul.f32 %v1196_v18, %v932_v17  ;;  %v1210_v47 = vadd.f32 1.0, %v1202_v8  ;;  %v1216_v44 = vmul.f32 %v1208_v41, %v2136_v61  ;;  %v1222_v1 = vpack.c.bf16 %v1214_v27, %v1214_v27 }
  0xb6   : > { %v1205_v13 = vmul.f32 %v1197_v33, %v933_v30  ;;  %v1211_v14 = vadd.f32 1.0, %v1203_v60  ;;  %v1217_v63 = vmul.f32 %v1209_v62, %v2142_v45  ;;  %v1223_v25 = vpack.c.bf16 %v1215_v56, %v1215_v56 }
  0xb7   : > { %v1212_v42 = vadd.f32 1.0, %v1204_v3  ;;  %v1218_v39 = vmul.f32 %v1210_v47, %v2146_v15  ;;  %v1224_v58 = vpack.c.bf16 %v1216_v44, %v1216_v44  ;;  %1231 = vst.msk [vmem:[%s2221_s14] sm:$0xf] %vm1230_vm5, %v1222_v1 }
  0xb8   : > { %v1213_v11 = vadd.f32 1.0, %v1205_v13  ;;  %v1219_v61 = vmul.f32 %v1211_v14, %v2149_v2  ;;  %v1225_v28 = vpack.c.bf16 %v1217_v63, %v1217_v63  ;;  %1232 = vst.msk [vmem:[%s2221_s14 + $0x4] sm:$0xf] %vm1230_vm5, %v1223_v25 }
  0xb9   : > { %v1220_v40 = vmul.f32 %v1212_v42, %v2152_v4  ;;  %v1226_v45 = vpack.c.bf16 %v1218_v39, %v1218_v39  ;;  %1233 = vst.msk [vmem:[%s2221_s14 + $0x8] sm:$0xf] %vm1230_vm5, %v1224_v58 }
  0xba   : > { %v1221_v32 = vmul.f32 %v1213_v11, %v2155_v51  ;;  %v1227_v15 = vpack.c.bf16 %v1219_v61, %v1219_v61  ;;  %1234 = vst.msk [vmem:[%s2221_s14 + $0xc] sm:$0xf] %vm1230_vm5, %v1225_v28 }
  0xbb   : > { %v1228_v38 = vpack.c.bf16 %v1220_v40, %v1220_v40  ;;  %1235 = vst.msk [vmem:[%s2221_s14 + $0x10] sm:$0xf] %vm1230_vm5, %v1226_v45 }
  0xbc   : > { %v1229_v37 = vpack.c.bf16 %v1221_v32, %v1221_v32  ;;  %1236 = vst.msk [vmem:[%s2221_s14 + $0x14] sm:$0xf] %vm1230_vm5, %v1227_v15 }
  0xbd   : > { %1237 = vst.msk [vmem:[%s2221_s14 + $0x18] sm:$0xf] %vm1230_vm5, %v1228_v38 }
  0xbe   : > { %1238 = vst.msk [vmem:[%s2221_s14 + $0x1c] sm:$0xf] %vm1230_vm5, %v1229_v37 }
  0xbf PF: > { %s14_s17 = sadd.s32 1, %s1470_s17   ;;  %s2288_s15 = smov %s1466_s16 }
  0xc0   : > { %p11_p5 = scmp.ge.s32.totalorder %s14_s17, 4   ;;  %s2289_s16 = smov %s2291_s18 }
  0xc2   :  { %13 = sbr.rel (!%p11_p5) target bundleno = 2 (0x2), region = 72 }

// kernel: cross_msab_forward.17
= control target key start
LH: loop header
LB: loop body
LE: loop exit
PB: predicated region body
PF: predicated region fallthrough
CT: control target
= control target key end

     0   :  { %s1268_s18 = smov 0   ;;  %s1270_s19 = smov 0   ;;  %s1703_s0 = inlined_call_operand.vmem [shape: bf16[2,10,10,8], index: 0, kind: input, shape index: {}, may-alias: {0,1,2}]   ;;  %s1704_s1 = inlined_call_operand.vmem [shape: bf16[2,10,10,8], index: 1, kind: input, shape index: {}, may-alias: {0,1,2}]   ;;  %s1705_s2 = inlined_call_operand.vmem [shape: bf16[2,10,10,8], index: 2, kind: input, shape index: {}, may-alias: {0,1,2}]   ;;  %s1706_s3 = inlined_call_operand.vmem [shape: f32[3,3,8], index: 3, kind: input, shape index: {}]   ;;  %s1707_s4 = inlined_call_operand.vmem [shape: bf16[2,8,8,8], index: 4, kind: input, shape index: {}]   ;;  %s1708_s5 = inlined_call_operand.vmem [shape: f32[2,8,8,8], index: 5, kind: output, shape index: {}]  }
   0x1   :  { %s1272_s20 = smov 0  }
   0x2 LB: > { %s27_s21 = sadd.s32 1, %s1232_s19  ;;  %p1152_p0 = scmp.ge.s32.totalorder %s1236_s20, 1  ;;  %s1236_s20 = sphi %s1272_s20, %s15_s20   ;;  %s1232_s19 = sphi %s1270_s19, %s1710_s19   ;;  %s1228_s18 = sphi %s1268_s18, %s1709_s18  }
   0x3   : > { %p29_p1 = scmp.ge.s32.totalorder %s27_s21, 2  ;;  %p288_p2 = scmp.lt.s32.totalorder %s1236_s20, 3 }
   0x5   : > { %s1712_s21 = smov (%p29_p1, %s27_s21), 0  ;;  %p289_p3 = pnand %p1152_p0, %p288_p2 }
   0x6   : > { %p368_p4 = scmp.lt.s32.totalorder (!%p289_p3), %s1228_s18, 1 }
   0x7   : > { %292 = sbr.rel (%p289_p3) target bundleno = 120 (0x78), region = 40 }
   0xc   : > { %v471_v0 = vld [vmem:[%s1706_s3] sm:$0x7]  ;;  %s1714_s18 = smov (!%p368_p4, %s1228_s18), 1  ;;  %v472_v1 = vld [vmem:[%s1706_s3 + $0x4] sm:$0x7]  ;;  %vm524_vm0 = vcmask 1046528  }
   0xd   : > { %v473_v2 = vld [vmem:[%s1706_s3 + $0x8] sm:$0x7]  ;;  %s1298_s28 = smul.u32 80, %s1714_s18  ;;  %s1166_s29 = sshll.u32 %s1714_s18, 5  ;;  %v1301_v3 = vperm.slane %v471_v0, 0  ;;  %v1303_v4 = vperm.slane %v471_v0, 1 }
   0xe   : > { %s1308_s7 = scalar_lea.vmem %s1707_s4, %s1166_s29  ;;  %v1310_v5 = vperm.slane %v471_v0, 2  ;;  %vm598_vm1 = vcmask 1045504   ;;  %v1312_v6 = vperm.slane %v472_v1, 0  ;;  %v1314_v7 = vperm.slane %v472_v1, 1  ;;  %s1167_s11 = sshll.u32 %s1714_s18, 6 }
   0xf   : > { %s1320_s10 = scalar_lea.vmem %s1703_s0, %s1298_s28  ;;  %v1322_v8 = vperm.slane %v472_v1, 2  ;;  %v1324_v9 = vperm.slane %v473_v2, 0  ;;  %v1326_v10 = vperm.slane %v473_v2, 1  ;;  %v1328_v11 = vperm.slane %v473_v2, 2  ;;  %v1331_v12 = vld [vmem:[%s1308_s7] sm:$0xff]   ;;  %s1417_s14 = scalar_lea.vmem %s1708_s5, %s1167_s11 }
  0x10   : > { %v431_v13 = vld [vmem:[%s1320_s10] sm:$0xf]  ;;  %v432_v14 = vld [vmem:[%s1320_s10 + $0x4] sm:$0x1]  ;;  %v433_v15 = vld [vmem:[%s1320_s10 + $0x8] sm:$0xf]  ;;  %v1170_v21 = vunpack.c.l.bf16 %v1331_v12 }
  0x11   : > { %v434_v16 = vld [vmem:[%s1320_s10 + $0xc] sm:$0x1]  ;;  %v435_v17 = vld [vmem:[%s1320_s10 + $0x10] sm:$0xf]  ;;  %v436_v18 = vld [vmem:[%s1320_s10 + $0x14] sm:$0x1]  ;;  %v451_v19 = vunpack.c.l.bf16 %v431_v13  ;;  %v452_v20 = vunpack.c.l.bf16 %v432_v14  ;;  %v453_v22 = vunpack.c.l.bf16 %v433_v15 }
  0x12   : > { %v454_v23 = vunpack.c.l.bf16 %v434_v16  ;;  %v1340_v24 = vunpack.c.l.bf16 %v435_v17  ;;  %v1342_v25 = vunpack.c.l.bf16 %v436_v18  ;;  %v437_v46 = vld [vmem:[%s1320_s10 + $0x18] sm:$0xf]  ;;  %v438_v47 = vld [vmem:[%s1320_s10 + $0x1c] sm:$0x1]  ;;  %vm989_vm2 = vcmask 64512   ;;  %s1163_s15 = sadd.s32 64, %s1298_s28 }
  0x13   : > { %v475_v26 = vmul.f32 %v1301_v3, %v451_v19  ;;  %v492_v27 = vmul.f32 %v1303_v4, %v451_v19  ;;  %v493_v28 = vmul.f32 %v1303_v4, %v452_v20  ;;  %v566_v29 = vmul.f32 %v1310_v5, %v451_v19  ;;  %s393_s18 = scalar_lea.vmem %s1704_s1, %s1163_s15  ;;  %s1165_s22 = sadd.s32 72, %s1298_s28 }
  0x14   : > { %v567_v30 = vmul.f32 %v1310_v5, %v452_v20  ;;  %v640_v31 = vmul.f32 %v1312_v6, %v453_v22  ;;  %v657_v32 = vmul.f32 %v1314_v7, %v453_v22  ;;  %v658_v33 = vmul.f32 %v1314_v7, %v454_v23  ;;  %s407_s25 = scalar_lea.vmem %s1705_s2, %s1165_s22 }
  0x15   : > { %v525_v34 = vrot.slane %v492_v27, 1  ;;  %v526_v35 = vrot.slane %v493_v28, 1  ;;  %v599_v36 = vrot.slane %v566_v29, 2  ;;  %v730_v37 = vmul.f32 %v1322_v8, %v453_v22 }
  0x16   : > { %v600_v38 = vrot.slane %v567_v30, 2  ;;  %v689_v39 = vrot.slane %v657_v32, 1  ;;  %v690_v40 = vrot.slane %v658_v33, 1  ;;  %v731_v41 = vmul.f32 %v1322_v8, %v454_v23 }
  0x17   : > { %v527_v42 = vsel %vm524_vm0, %v525_v34, %v526_v35  ;;  %v762_v43 = vrot.slane %v730_v37, 2  ;;  %v803_v44 = vmul.f32 %v1324_v9, %v1340_v24  ;;  %v820_v45 = vmul.f32 %v1326_v10, %v1340_v24 }
  0x18   : > { %v557_v48 = vadd.f32 %v527_v42, %v475_v26  ;;  %v601_v49 = vsel %vm598_vm1, %v599_v36, %v600_v38  ;;  %v691_v50 = vsel %vm524_vm0, %v689_v39, %v690_v40  ;;  %v763_v51 = vrot.slane %v731_v41, 2  ;;  %v439_v41 = vld [vmem:[%s1320_s10 + $0x20] sm:$0xf] }
  0x19   : > { %v821_v52 = vmul.f32 %v1326_v10, %v1342_v25  ;;  %v852_v53 = vrot.slane %v820_v45, 1  ;;  %v893_v54 = vmul.f32 %v1328_v11, %v1340_v24  ;;  %v894_v55 = vmul.f32 %v1328_v11, %v1342_v25 }
  0x1a   : > { %v631_v56 = vadd.f32 %v601_v49, %v557_v48  ;;  %v764_v57 = vsel %vm598_vm1, %v762_v43, %v763_v51  ;;  %v1370_v58 = vunpack.c.l.bf16 %v437_v46  ;;  %v1372_v59 = vunpack.c.l.bf16 %v438_v47  ;;  %v440_v47 = vld [vmem:[%s1320_s10 + $0x24] sm:$0x1] }
  0x1b   : > { %v853_v60 = vrot.slane %v821_v52, 1  ;;  %v925_v61 = vrot.slane %v893_v54, 2  ;;  %v926_v62 = vrot.slane %v894_v55, 2  ;;  %v476_v63 = vmul.f32 %v1301_v3, %v453_v22 }
  0x1c   : > { %v648_v0 = vadd.f32 %v640_v31, %v631_v56  ;;  %v494_v1 = vmul.f32 %v1303_v4, %v453_v22  ;;  %v495_v2 = vmul.f32 %v1303_v4, %v454_v23  ;;  %v568_v13 = vmul.f32 %v1310_v5, %v453_v22 }
  0x1d   : > { %v854_v14 = vsel %vm524_vm0, %v852_v53, %v853_v60  ;;  %v927_v15 = vsel %vm598_vm1, %v925_v61, %v926_v62  ;;  %v569_v16 = vmul.f32 %v1310_v5, %v454_v23  ;;  %v641_v17 = vmul.f32 %v1312_v6, %v1340_v24 }
  0x1e   : > { %v721_v18 = vadd.f32 %v691_v50, %v648_v0  ;;  %v528_v19 = vrot.slane %v494_v1, 1  ;;  %v529_v20 = vrot.slane %v495_v2, 1  ;;  %v602_v26 = vrot.slane %v568_v13, 2 }
  0x1f   : > { %v603_v27 = vrot.slane %v569_v16, 2  ;;  %v659_v28 = vmul.f32 %v1314_v7, %v1340_v24  ;;  %v660_v22 = vmul.f32 %v1314_v7, %v1342_v25  ;;  %v732_v29 = vmul.f32 %v1322_v8, %v1340_v24 }
  0x20   : > { %v794_v23 = vadd.f32 %v764_v57, %v721_v18  ;;  %v530_v30 = vsel %vm524_vm0, %v528_v19, %v529_v20  ;;  %v733_v31 = vmul.f32 %v1322_v8, %v1342_v25  ;;  %v804_v32 = vmul.f32 %v1324_v9, %v1370_v58 }
  0x21   : > { %v558_v33 = vadd.f32 %v530_v30, %v476_v63  ;;  %v604_v34 = vsel %vm598_vm1, %v602_v26, %v603_v27  ;;  %v692_v35 = vrot.slane %v659_v28, 1  ;;  %v693_v36 = vrot.slane %v660_v22, 1 }
  0x22   : > { %v811_v37 = vadd.f32 %v803_v44, %v794_v23  ;;  %v765_v38 = vrot.slane %v732_v29, 2  ;;  %v766_v39 = vrot.slane %v733_v31, 2  ;;  %v822_v40 = vmul.f32 %v1326_v10, %v1370_v58 }
  0x23   : > { %v632_v42 = vadd.f32 %v604_v34, %v558_v33  ;;  %v694_v43 = vsel %vm524_vm0, %v692_v35, %v693_v36  ;;  %v823_v45 = vmul.f32 %v1326_v10, %v1372_v59  ;;  %v895_v46 = vmul.f32 %v1328_v11, %v1370_v58 }
  0x24   : > { %v884_v48 = vadd.f32 %v854_v14, %v811_v37  ;;  %v767_v44 = vsel %vm598_vm1, %v765_v38, %v766_v39  ;;  %v855_v49 = vrot.slane %v822_v40, 1  ;;  %v896_v50 = vmul.f32 %v1328_v11, %v1372_v59  ;;  %v1451_v38 = vld [vmem:[%s1308_s7 + $0x8] sm:$0xff]  }
  0x25   : > { %v649_v51 = vadd.f32 %v641_v17, %v632_v42  ;;  %v856_v52 = vrot.slane %v823_v45, 1  ;;  %v928_v53 = vrot.slane %v895_v46, 2  ;;  %v1408_v54 = vunpack.c.l.bf16 %v439_v41  ;;  %v441_v42 = vld [vmem:[%s1320_s10 + $0x28] sm:$0xf] }
  0x26   : > { %v957_v55 = vadd.f32 %v927_v15, %v884_v48  ;;  %v929_v56 = vrot.slane %v896_v50, 2  ;;  %v1410_v57 = vunpack.c.l.bf16 %v440_v47  ;;  %v477_v60 = vmul.f32 %v1301_v3, %v1340_v24  ;;  %v442_v48 = vld [vmem:[%s1320_s10 + $0x2c] sm:$0x1] }
  0x27   : > { %v722_v61 = vadd.f32 %v694_v43, %v649_v51  ;;  %v857_v62 = vsel %vm524_vm0, %v855_v49, %v856_v52  ;;  %v496_v63 = vmul.f32 %v1303_v4, %v1340_v24  ;;  %v497_v0 = vmul.f32 %v1303_v4, %v1342_v25 }
  0x28   : > { %v981_v1 = vadd.f32 %v1170_v21, %v957_v55  ;;  %v930_v2 = vsel %vm598_vm1, %v928_v53, %v929_v56  ;;  %v570_v13 = vmul.f32 %v1310_v5, %v1340_v24  ;;  %v571_v14 = vmul.f32 %v1310_v5, %v1342_v25 }
  0x29   : > { %v795_v15 = vadd.f32 %v767_v44, %v722_v61  ;;  %v531_v16 = vrot.slane %v496_v63, 1  ;;  %v532_v17 = vrot.slane %v497_v0, 1  ;;  %v642_v18 = vmul.f32 %v1312_v6, %v1370_v58 }
  0x2a   : > { %990 = vst.msk [vmem:[%s1417_s14] sm:$0xff] %vm989_vm2, %v981_v1  ;;  %v605_v19 = vrot.slane %v570_v13, 2  ;;  %v606_v20 = vrot.slane %v571_v14, 2  ;;  %v661_v21 = vmul.f32 %v1314_v7, %v1370_v58  ;;  %v662_v26 = vmul.f32 %v1314_v7, %v1372_v59 }
  0x2b   : > { %v812_v24 = vadd.f32 %v804_v32, %v795_v15  ;;  %v533_v25 = vsel %vm524_vm0, %v531_v16, %v532_v17  ;;  %v734_v27 = vmul.f32 %v1322_v8, %v1370_v58  ;;  %v735_v28 = vmul.f32 %v1322_v8, %v1372_v59 }
  0x2c   : > { %v559_v22 = vadd.f32 %v533_v25, %v477_v60  ;;  %v607_v29 = vsel %vm598_vm1, %v605_v19, %v606_v20  ;;  %v695_v23 = vrot.slane %v661_v21, 1  ;;  %v696_v30 = vrot.slane %v662_v26, 1 }
  0x2d   : > { %v885_v31 = vadd.f32 %v857_v62, %v812_v24  ;;  %v1171_v33 = vunpack.c.h.bf16 %v1331_v12  ;;  %v768_v34 = vrot.slane %v734_v27, 2  ;;  %v769_v32 = vrot.slane %v735_v28, 2 }
  0x2e   : > { %v633_v35 = vadd.f32 %v607_v29, %v559_v22  ;;  %v824_v36 = vmul.f32 %v1326_v10, %v1408_v54  ;;  %v825_v37 = vmul.f32 %v1326_v10, %v1410_v57  ;;  %v697_v40 = vsel %vm524_vm0, %v695_v23, %v696_v30 }
  0x2f   : > { %v958_v39 = vadd.f32 %v930_v2, %v885_v31  ;;  %v897_v41 = vmul.f32 %v1328_v11, %v1408_v54  ;;  %v898_v12 = vmul.f32 %v1328_v11, %v1410_v57  ;;  %v805_v45 = vmul.f32 %v1324_v9, %v1408_v54 }
  0x30   : > { %v650_v43 = vadd.f32 %v642_v18, %v633_v35  ;;  %v858_v46 = vrot.slane %v824_v36, 1  ;;  %v859_v47 = vrot.slane %v825_v37, 1  ;;  %v770_v49 = vsel %vm598_vm1, %v768_v34, %v769_v32  ;;  %v443_v36 = vld [vmem:[%s1320_s10 + $0x30] sm:$0xf]  ;;  %v444_v37 = vld [vmem:[%s1320_s10 + $0x34] sm:$0x1] }
  0x31   : > { %v982_v44 = vadd.f32 %v1171_v33, %v958_v39  ;;  %v931_v50 = vrot.slane %v897_v41, 2  ;;  %v1174_v51 = vunpack.c.l.bf16 %v1451_v38  ;;  %v932_v55 = vrot.slane %v898_v12, 2 }
  0x32   : > { %v723_v52 = vadd.f32 %v697_v40, %v650_v43  ;;  %v860_v53 = vsel %vm524_vm0, %v858_v46, %v859_v47  ;;  %v1465_v56 = vunpack.c.l.bf16 %v441_v42  ;;  %v1469_v60 = vunpack.c.l.bf16 %v442_v48 }
  0x33   : > { %991 = vst.msk [vmem:[%s1417_s14 + $0x8] sm:$0xff] %vm989_vm2, %v982_v44  ;;  %v498_v61 = vmul.f32 %v1303_v4, %v1370_v58  ;;  %v499_v62 = vmul.f32 %v1303_v4, %v1372_v59  ;;  %v572_v63 = vmul.f32 %v1310_v5, %v1370_v58  ;;  %v478_v1 = vmul.f32 %v1301_v3, %v1370_v58 }
  0x34   : > { %v796_v0 = vadd.f32 %v770_v49, %v723_v52  ;;  %v573_v2 = vmul.f32 %v1310_v5, %v1372_v59  ;;  %v663_v13 = vmul.f32 %v1314_v7, %v1408_v54  ;;  %v664_v17 = vmul.f32 %v1314_v7, %v1410_v57 }
  0x35   : > { %v534_v14 = vrot.slane %v498_v61, 1  ;;  %v535_v15 = vrot.slane %v499_v62, 1  ;;  %v608_v16 = vrot.slane %v572_v63, 2  ;;  %v933_v19 = vsel %vm598_vm1, %v931_v50, %v932_v55 }
  0x36   : > { %v813_v18 = vadd.f32 %v805_v45, %v796_v0  ;;  %v609_v20 = vrot.slane %v573_v2, 2  ;;  %v736_v21 = vmul.f32 %v1322_v8, %v1408_v54  ;;  %v698_v59 = vrot.slane %v663_v13, 1 }
  0x37   : > { %v536_v58 = vsel %vm524_vm0, %v534_v14, %v535_v15  ;;  %v699_v26 = vrot.slane %v664_v17, 1  ;;  %v737_v24 = vmul.f32 %v1322_v8, %v1410_v57  ;;  %v643_v22 = vmul.f32 %v1312_v6, %v1408_v54 }
  0x38   : > { %v886_v25 = vadd.f32 %v860_v53, %v813_v18  ;;  %v560_v27 = vadd.f32 %v536_v58, %v478_v1  ;;  %v610_v28 = vsel %vm598_vm1, %v608_v16, %v609_v20  ;;  %v771_v29 = vrot.slane %v736_v21, 2 }
  0x39   : > { %v772_v23 = vrot.slane %v737_v24, 2  ;;  %v826_v30 = vmul.f32 %v1326_v10, %v1465_v56  ;;  %v827_v31 = vmul.f32 %v1326_v10, %v1469_v60  ;;  %v899_v32 = vmul.f32 %v1328_v11, %v1465_v56 }
  0x3a   : > { %v959_v33 = vadd.f32 %v933_v19, %v886_v25  ;;  %v634_v34 = vadd.f32 %v610_v28, %v560_v27  ;;  %v900_v35 = vmul.f32 %v1328_v11, %v1469_v60  ;;  %v700_v39 = vsel %vm524_vm0, %v698_v59, %v699_v26  ;;  %v1542_v28 = vld [vmem:[%s1308_s7 + $0x10] sm:$0xff]  }
  0x3b   : > { %v806_v40 = vmul.f32 %v1324_v9, %v1465_v56  ;;  %v861_v41 = vrot.slane %v826_v30, 1  ;;  %v862_v12 = vrot.slane %v827_v31, 1  ;;  %v934_v45 = vrot.slane %v899_v32, 2  ;;  %v445_v31 = vld [vmem:[%s1320_s10 + $0x38] sm:$0xf] }
  0x3c   : > { %v983_v42 = vadd.f32 %v1174_v51, %v959_v33  ;;  %v651_v43 = vadd.f32 %v643_v22, %v634_v34  ;;  %v935_v46 = vrot.slane %v900_v35, 2  ;;  %v773_v47 = vsel %vm598_vm1, %v771_v29, %v772_v23  ;;  %v446_v35 = vld [vmem:[%s1320_s10 + $0x3c] sm:$0x1] }
  0x3d   : > { %v863_v48 = vsel %vm524_vm0, %v861_v41, %v862_v12  ;;  %v1509_v44 = vunpack.c.l.bf16 %v443_v36  ;;  %v1511_v49 = vunpack.c.l.bf16 %v444_v37  ;;  %v479_v52 = vmul.f32 %v1301_v3, %v1408_v54 }
  0x3e   : > { %992 = vst.msk [vmem:[%s1417_s14 + $0x10] sm:$0xff] %vm989_vm2, %v983_v42  ;;  %v724_v50 = vadd.f32 %v700_v39, %v651_v43  ;;  %v500_v51 = vmul.f32 %v1303_v4, %v1408_v54  ;;  %v501_v53 = vmul.f32 %v1303_v4, %v1410_v57  ;;  %v936_v55 = vsel %vm598_vm1, %v934_v45, %v935_v46 }
  0x3f   : > { %v574_v61 = vmul.f32 %v1310_v5, %v1408_v54  ;;  %v575_v62 = vmul.f32 %v1310_v5, %v1410_v57  ;;  %v665_v63 = vmul.f32 %v1314_v7, %v1465_v56  ;;  %v666_v13 = vmul.f32 %v1314_v7, %v1469_v60 }
  0x40   : > { %v797_v0 = vadd.f32 %v773_v47, %v724_v50  ;;  %v537_v1 = vrot.slane %v500_v51, 1  ;;  %v538_v2 = vrot.slane %v501_v53, 1  ;;  %v738_v17 = vmul.f32 %v1322_v8, %v1465_v56 }
  0x41   : > { %v611_v14 = vrot.slane %v574_v61, 2  ;;  %v612_v15 = vrot.slane %v575_v62, 2  ;;  %v701_v16 = vrot.slane %v665_v63, 1  ;;  %v702_v57 = vrot.slane %v666_v13, 1 }
  0x42   : > { %v814_v54 = vadd.f32 %v806_v40, %v797_v0  ;;  %v539_v18 = vsel %vm524_vm0, %v537_v1, %v538_v2  ;;  %v739_v19 = vmul.f32 %v1322_v8, %v1469_v60  ;;  %v644_v58 = vmul.f32 %v1312_v6, %v1465_v56 }
  0x43   : > { %v561_v20 = vadd.f32 %v539_v18, %v479_v52  ;;  %v613_v21 = vsel %vm598_vm1, %v611_v14, %v612_v15  ;;  %v774_v59 = vrot.slane %v738_v17, 2  ;;  %v1175_v24 = vunpack.c.h.bf16 %v1451_v38 }
  0x44   : > { %v887_v26 = vadd.f32 %v863_v48, %v814_v54  ;;  %v775_v25 = vrot.slane %v739_v19, 2  ;;  %v828_v27 = vmul.f32 %v1326_v10, %v1509_v44  ;;  %v829_v29 = vmul.f32 %v1326_v10, %v1511_v49 }
  0x45   : > { %v635_v22 = vadd.f32 %v613_v21, %v561_v20  ;;  %v901_v23 = vmul.f32 %v1328_v11, %v1509_v44  ;;  %v902_v30 = vmul.f32 %v1328_v11, %v1511_v49  ;;  %v703_v38 = vsel %vm524_vm0, %v701_v16, %v702_v57 }
  0x46   : > { %v960_v33 = vadd.f32 %v936_v55, %v887_v26  ;;  %v807_v34 = vmul.f32 %v1324_v9, %v1509_v44  ;;  %v864_v32 = vrot.slane %v828_v27, 1  ;;  %v776_v37 = vsel %vm598_vm1, %v774_v59, %v775_v25 }
  0x47   : > { %v652_v36 = vadd.f32 %v644_v58, %v635_v22  ;;  %v865_v39 = vrot.slane %v829_v29, 1  ;;  %v1178_v40 = vunpack.c.l.bf16 %v1542_v28  ;;  %v937_v12 = vrot.slane %v901_v23, 2  ;;  %v447_v23 = vld [vmem:[%s393_s18] sm:$0xf] }
  0x48   : > { %v984_v41 = vadd.f32 %v1175_v24, %v960_v33  ;;  %v938_v42 = vrot.slane %v902_v30, 2  ;;  %v1557_v43 = vunpack.c.l.bf16 %v445_v31  ;;  %v1559_v46 = vunpack.c.l.bf16 %v446_v35  ;;  %v448_v30 = vld [vmem:[%s393_s18 + $0x4] sm:$0x1] }
  0x49   : > { %v725_v45 = vadd.f32 %v703_v38, %v652_v36  ;;  %v480_v47 = vmul.f32 %v1301_v3, %v1465_v56  ;;  %v502_v48 = vmul.f32 %v1303_v4, %v1465_v56  ;;  %v866_v50 = vsel %vm524_vm0, %v864_v32, %v865_v39 }
  0x4a   : > { %993 = vst.msk [vmem:[%s1417_s14 + $0x18] sm:$0xff] %vm989_vm2, %v984_v41  ;;  %v503_v52 = vmul.f32 %v1303_v4, %v1469_v60  ;;  %v576_v51 = vmul.f32 %v1310_v5, %v1465_v56  ;;  %v577_v53 = vmul.f32 %v1310_v5, %v1469_v60  ;;  %v667_v62 = vmul.f32 %v1314_v7, %v1509_v44 }
  0x4b   : > { %v798_v55 = vadd.f32 %v776_v37, %v725_v45  ;;  %v540_v61 = vrot.slane %v502_v48, 1  ;;  %v668_v63 = vmul.f32 %v1314_v7, %v1511_v49  ;;  %v740_v13 = vmul.f32 %v1322_v8, %v1509_v44 }
  0x4c   : > { %v541_v0 = vrot.slane %v503_v52, 1  ;;  %v614_v1 = vrot.slane %v576_v51, 2  ;;  %v615_v2 = vrot.slane %v577_v53, 2  ;;  %v704_v56 = vrot.slane %v667_v62, 1 }
  0x4d   : > { %v815_v14 = vadd.f32 %v807_v34, %v798_v55  ;;  %v705_v15 = vrot.slane %v668_v63, 1  ;;  %v741_v60 = vmul.f32 %v1322_v8, %v1511_v49  ;;  %v939_v16 = vsel %vm598_vm1, %v937_v12, %v938_v42 }
  0x4e   : > { %v542_v17 = vsel %vm524_vm0, %v540_v61, %v541_v0  ;;  %v616_v54 = vsel %vm598_vm1, %v614_v1, %v615_v2  ;;  %v777_v18 = vrot.slane %v740_v13, 2  ;;  %v645_v20 = vmul.f32 %v1312_v6, %v1509_v44 }
  0x4f   : > { %v888_v57 = vadd.f32 %v866_v50, %v815_v14  ;;  %v562_v19 = vadd.f32 %v542_v17, %v480_v47  ;;  %v778_v21 = vrot.slane %v741_v60, 2  ;;  %v830_v58 = vmul.f32 %v1326_v10, %v1557_v43 }
  0x50   : > { %v831_v59 = vmul.f32 %v1326_v10, %v1559_v46  ;;  %v903_v26 = vmul.f32 %v1328_v11, %v1557_v43  ;;  %v904_v24 = vmul.f32 %v1328_v11, %v1559_v46  ;;  %v706_v22 = vsel %vm524_vm0, %v704_v56, %v705_v15 }
  0x51   : > { %v961_v25 = vadd.f32 %v939_v16, %v888_v57  ;;  %v636_v27 = vadd.f32 %v616_v54, %v562_v19  ;;  %v808_v29 = vmul.f32 %v1324_v9, %v1557_v43  ;;  %v779_v31 = vsel %vm598_vm1, %v777_v18, %v778_v21  ;;  %v1645_v19 = vld [vmem:[%s1308_s7 + $0x18] sm:$0xff]  }
  0x52   : > { %v867_v33 = vrot.slane %v830_v58, 1  ;;  %v868_v38 = vrot.slane %v831_v59, 1  ;;  %v1179_v34 = vunpack.c.h.bf16 %v1542_v28  ;;  %v940_v36 = vrot.slane %v903_v26, 2  ;;  %v449_v26 = vld [vmem:[%s407_s25] sm:$0xf] }
  0x53   : > { %v985_v32 = vadd.f32 %v1178_v40, %v961_v25  ;;  %v653_v35 = vadd.f32 %v645_v20, %v636_v27  ;;  %v941_v37 = vrot.slane %v904_v24, 2  ;;  %v1605_v41 = vunpack.c.l.bf16 %v447_v23  ;;  %v450_v24 = vld [vmem:[%s407_s25 + $0x4] sm:$0x1] }
  0x54   : > { %v869_v39 = vsel %vm524_vm0, %v867_v33, %v868_v38  ;;  %v1607_v12 = vunpack.c.l.bf16 %v448_v30  ;;  %v504_v42 = vmul.f32 %v1303_v4, %v1509_v44  ;;  %v505_v28 = vmul.f32 %v1303_v4, %v1511_v49 }
  0x55   : > { %994 = vst.msk [vmem:[%s1417_s14 + $0x20] sm:$0xff] %vm989_vm2, %v985_v32  ;;  %v726_v45 = vadd.f32 %v706_v22, %v653_v35  ;;  %v578_v40 = vmul.f32 %v1310_v5, %v1509_v44  ;;  %v579_v47 = vmul.f32 %v1310_v5, %v1511_v49  ;;  %v481_v48 = vmul.f32 %v1301_v3, %v1509_v44 }
  0x56   : > { %v543_v50 = vrot.slane %v504_v42, 1  ;;  %v669_v52 = vmul.f32 %v1314_v7, %v1557_v43  ;;  %v670_v51 = vmul.f32 %v1314_v7, %v1559_v46  ;;  %v544_v55 = vrot.slane %v505_v28, 1 }
  0x57   : > { %v799_v53 = vadd.f32 %v779_v31, %v726_v45  ;;  %v617_v61 = vrot.slane %v578_v40, 2  ;;  %v618_v62 = vrot.slane %v579_v47, 2  ;;  %v742_v49 = vmul.f32 %v1322_v8, %v1557_v43 }
  0x58   : > { %v707_v63 = vrot.slane %v669_v52, 1  ;;  %v708_v0 = vrot.slane %v670_v51, 1  ;;  %v743_v44 = vmul.f32 %v1322_v8, %v1559_v46  ;;  %v942_v2 = vsel %vm598_vm1, %v940_v36, %v941_v37 }
  0x59   : > { %v816_v1 = vadd.f32 %v808_v29, %v799_v53  ;;  %v545_v13 = vsel %vm524_vm0, %v543_v50, %v544_v55  ;;  %v619_v14 = vsel %vm598_vm1, %v617_v61, %v618_v62  ;;  %v646_v15 = vmul.f32 %v1312_v6, %v1557_v43 }
  0x5a   : > { %v563_v56 = vadd.f32 %v545_v13, %v481_v48  ;;  %v780_v60 = vrot.slane %v742_v49, 2  ;;  %v781_v16 = vrot.slane %v743_v44, 2  ;;  %v832_v54 = vmul.f32 %v1326_v10, %v1605_v41 }
  0x5b   : > { %v889_v17 = vadd.f32 %v869_v39, %v816_v1  ;;  %v833_v18 = vmul.f32 %v1326_v10, %v1607_v12  ;;  %v905_v57 = vmul.f32 %v1328_v11, %v1605_v41  ;;  %v709_v21 = vsel %vm524_vm0, %v707_v63, %v708_v0 }
  0x5c   : > { %v637_v20 = vadd.f32 %v619_v14, %v563_v56  ;;  %v809_v58 = vmul.f32 %v1324_v9, %v1605_v41  ;;  %v906_v59 = vmul.f32 %v1328_v11, %v1607_v12  ;;  %v782_v27 = vsel %vm598_vm1, %v780_v60, %v781_v16 }
  0x5d   : > { %v962_v25 = vadd.f32 %v942_v2, %v889_v17  ;;  %v870_v22 = vrot.slane %v832_v54, 1  ;;  %v871_v29 = vrot.slane %v833_v18, 1  ;;  %v943_v30 = vrot.slane %v905_v57, 2 }
  0x5e   : > { %v654_v23 = vadd.f32 %v646_v15, %v637_v20  ;;  %v944_v31 = vrot.slane %v906_v59, 2  ;;  %v1182_v33 = vunpack.c.l.bf16 %v1645_v19  ;;  %v469_v32 = vunpack.c.l.bf16 %v449_v26 }
  0x5f   : > { %v986_v38 = vadd.f32 %v1179_v34, %v962_v25  ;;  %v470_v35 = vunpack.c.l.bf16 %v450_v24  ;;  %v506_v36 = vmul.f32 %v1303_v4, %v1557_v43  ;;  %v872_v39 = vsel %vm524_vm0, %v870_v22, %v871_v29 }
  0x60   : > { %v727_v37 = vadd.f32 %v709_v21, %v654_v23  ;;  %v507_v42 = vmul.f32 %v1303_v4, %v1559_v46  ;;  %v580_v45 = vmul.f32 %v1310_v5, %v1557_v43  ;;  %v482_v28 = vmul.f32 %v1301_v3, %v1557_v43 }
  0x61   : > { %995 = vst.msk [vmem:[%s1417_s14 + $0x28] sm:$0xff] %vm989_vm2, %v986_v38  ;;  %v546_v34 = vrot.slane %v506_v36, 1  ;;  %v581_v40 = vmul.f32 %v1310_v5, %v1559_v46  ;;  %v671_v47 = vmul.f32 %v1314_v7, %v1605_v41  ;;  %v672_v4 = vmul.f32 %v1314_v7, %v1607_v12 }
  0x62   : > { %v800_v48 = vadd.f32 %v782_v27, %v727_v37  ;;  %v547_v50 = vrot.slane %v507_v42, 1  ;;  %v620_v52 = vrot.slane %v580_v45, 2  ;;  %v945_v51 = vsel %vm598_vm1, %v943_v30, %v944_v31 }
  0x63   : > { %v621_v53 = vrot.slane %v581_v40, 2  ;;  %v744_v55 = vmul.f32 %v1322_v8, %v1605_v41  ;;  %v745_v3 = vmul.f32 %v1322_v8, %v1607_v12  ;;  %v710_v46 = vrot.slane %v671_v47, 1 }
  0x64   : > { %v817_v43 = vadd.f32 %v809_v58, %v800_v48  ;;  %v548_v5 = vsel %vm524_vm0, %v546_v34, %v547_v50  ;;  %v711_v61 = vrot.slane %v672_v4, 1  ;;  %v647_v7 = vmul.f32 %v1312_v6, %v1605_v41 }
  0x65   : > { %v564_v62 = vadd.f32 %v548_v5, %v482_v28  ;;  %v622_v63 = vsel %vm598_vm1, %v620_v52, %v621_v53  ;;  %v783_v0 = vrot.slane %v744_v55, 2  ;;  %v784_v44 = vrot.slane %v745_v3, 2 }
  0x66   : > { %v890_v49 = vadd.f32 %v872_v39, %v817_v43  ;;  %v834_v1 = vmul.f32 %v1326_v10, %v469_v32  ;;  %v835_v2 = vmul.f32 %v1326_v10, %v470_v35  ;;  %v712_v13 = vsel %vm524_vm0, %v710_v46, %v711_v61 }
  0x67   : > { %v638_v8 = vadd.f32 %v622_v63, %v564_v62  ;;  %v907_v14 = vmul.f32 %v1328_v11, %v469_v32  ;;  %v908_v56 = vmul.f32 %v1328_v11, %v470_v35  ;;  %v785_v6 = vsel %vm598_vm1, %v783_v0, %v784_v44 }
  0x68   : > { %v963_v12 = vadd.f32 %v945_v51, %v890_v49  ;;  %v873_v41 = vrot.slane %v834_v1, 1  ;;  %v874_v16 = vrot.slane %v835_v2, 1  ;;  %v810_v54 = vmul.f32 %v1324_v9, %v469_v32 }
  0x69   : > { %v655_v15 = vadd.f32 %v647_v7, %v638_v8  ;;  %v946_v10 = vrot.slane %v907_v14, 2  ;;  %v947_v18 = vrot.slane %v908_v56, 2  ;;  %v1183_v59 = vunpack.c.h.bf16 %v1645_v19 }
  0x6a   : > { %v987_v60 = vadd.f32 %v1182_v33, %v963_v12  ;;  %v875_v20 = vsel %vm524_vm0, %v873_v41, %v874_v16 }
  0x6b   : > { %v728_v17 = vadd.f32 %v712_v13, %v655_v15  ;;  %v948_v11 = vsel %vm598_vm1, %v946_v10, %v947_v18 }
  0x6c   : > { %996 = vst.msk [vmem:[%s1417_s14 + $0x30] sm:$0xff] %vm989_vm2, %v987_v60 }
  0x6d   : > { %v801_v57 = vadd.f32 %v785_v6, %v728_v17 }
  0x6f   : > { %v818_v21 = vadd.f32 %v810_v54, %v801_v57 }
  0x71   : > { %v891_v58 = vadd.f32 %v875_v20, %v818_v21 }
  0x73   : > { %v964_v26 = vadd.f32 %v948_v11, %v891_v58 }
  0x75   : > { %v988_v24 = vadd.f32 %v1183_v59, %v964_v26 }
  0x77   : > { %997 = vst.msk [vmem:[%s1417_s14 + $0x38] sm:$0xff] %vm989_vm2, %v988_v24 }
  0x78 PF: > { %s15_s20 = sadd.s32 1, %s1236_s20   ;;  %s1709_s18 = smov %s1232_s19 }
  0x79   : > { %p12_p5 = scmp.ge.s32.totalorder %s15_s20, 4   ;;  %s1710_s19 = smov %s1712_s21 }
  0x7b   :  { %14 = sbr.rel (!%p12_p5) target bundleno = 2 (0x2), region = 79 }

// kernel: cross_msab_forward.18
= control target key start
LH: loop header
LB: loop body
LE: loop exit
PB: predicated region body
PF: predicated region fallthrough
CT: control target
= control target key end

     0   :  { %vm34_vm0 = vcmask 64512   ;;  %v1311_v32 = vmov 8.0   ;;  %vm468_vm2 = vcmask 1043456   ;;  %s2428_s0 = inlined_call_operand.vmem [shape: f32[128,8], index: 0, kind: input, shape index: {}]   ;;  %s2429_s2 = inlined_call_operand.vmem [shape: f32[1,8], index: 2, kind: input, shape index: {}]   ;;  %s2430_s3 = inlined_call_operand.vmem [shape: f32[1,8], index: 3, kind: input, shape index: {}]   ;;  %s2431_s1 = inlined_call_operand.vmem [shape: f32[8,32], index: 1, kind: input, shape index: {}]   ;;  %s2432_s4 = inlined_call_operand.vmem [shape: bf16[128,32], index: 4, kind: output, shape index: {}]  }
   0x1   :  { %v30_v0 = vld [vmem:[%s2428_s0 + $0x60] sm:$0xff]  ;;  %v1356_v6 = vld [vmem:[%s2428_s0 + $0x68] sm:$0xff]  ;;  %v1387_v14 = vld [vmem:[%s2428_s0 + $0x50] sm:$0xff]  ;;  %1213 = vrcp.f32 %v1311_v32 }
   0x2   :  { %v26_v1 = vld [vmem:[%s2428_s0 + $0x40] sm:$0xff]  ;;  %v71_v3 = vsel %vm34_vm0, %v30_v0, 0.0  ;;  %v1361_v7 = vld [vmem:[%s2428_s0 + $0x48] sm:$0xff]  ;;  %v74_v9 = vsel %vm34_vm0, %v1356_v6, 0.0  ;;  %v65_v17 = vsel %vm34_vm0, %v1387_v14, 0.0  ;;  %v1398_v18 = vld [vmem:[%s2428_s0 + $0x58] sm:$0xff] }
   0x3   :  { %v1347_v2 = vld [vmem:[%s2428_s0] sm:$0xff]  ;;  %v59_v4 = vsel %vm34_vm0, %v26_v1, 0.0  ;;  %72 = vadd.xlane.f32.xlu1 %v71_v3  ;;  %v1366_v8 = vld [vmem:[%s2428_s0 + $0x8] sm:$0xff]  ;;  %v62_v10 = vsel %vm34_vm0, %v1361_v7, 0.0  ;;  %v1403_v19 = vld [vmem:[%s2428_s0 + $0x70] sm:$0xff]  ;;  %v68_v21 = vsel %vm34_vm0, %v1398_v18, 0.0 }
   0x4   :  { %v35_v5 = vsel %vm34_vm0, %v1347_v2, 0.0  ;;  %60 = vadd.xlane.f32.xlu0 %v59_v4  ;;  %v38_v11 = vsel %vm34_vm0, %v1366_v8, 0.0  ;;  %v1377_v12 = vld [vmem:[%s2428_s0 + $0x20] sm:$0xff]  ;;  %v1382_v13 = vld [vmem:[%s2428_s0 + $0x28] sm:$0xff]  ;;  %v1408_v20 = vld [vmem:[%s2428_s0 + $0x78] sm:$0xff]  ;;  %v77_v22 = vsel %vm34_vm0, %v1403_v19, 0.0 }
   0x5   :  { %36 = vadd.xlane.f32.xlu2 %v35_v5  ;;  %v47_v15 = vsel %vm34_vm0, %v1377_v12, 0.0  ;;  %v50_v16 = vsel %vm34_vm0, %v1382_v13, 0.0  ;;  %v80_v23 = vsel %vm34_vm0, %v1408_v20, 0.0  ;;  %v1419_v24 = vld [vmem:[%s2428_s0 + $0x10] sm:$0xff]  ;;  %v1424_v25 = vld [vmem:[%s2428_s0 + $0x18] sm:$0xff] }
   0x6   :  { %v1429_v26 = vld [vmem:[%s2428_s0 + $0x30] sm:$0xff]  ;;  %v41_v27 = vsel %vm34_vm0, %v1419_v24, 0.0  ;;  %v44_v28 = vsel %vm34_vm0, %v1424_v25, 0.0  ;;  %v1440_v30 = vld [vmem:[%s2428_s0 + $0x38] sm:$0xff] }
   0x7   :  { %v53_v29 = vsel %vm34_vm0, %v1429_v26, 0.0  ;;  %v56_v31 = vsel %vm34_vm0, %v1440_v30, 0.0  ;;  %v1214_v33 = vpop.eup %1213 }
   0x8   :  { %v84_v34 = vmul.f32 8.0, %v1214_v33  ;;  %vm88_vm1 = vweird.f32 %v1214_v33 }
   0xa   :  { %v85_v35 = vsub.f32 1.0, %v84_v34 }
   0xb   :  { %75 = vadd.xlane.f32.xlu1 %v74_v9 }
   0xc   :  { %63 = vadd.xlane.f32.xlu0 %v62_v10  ;;  %v86_v36 = vmul.f32 %v1214_v33, %v85_v35 }
   0xd   :  { %39 = vadd.xlane.f32.xlu2 %v38_v11 }
   0xe   :  { %v87_v37 = vadd.f32 %v1214_v33, %v86_v36 }
  0x10   :  { %v1444_v38 = vsel %vm88_vm1, %v1214_v33, %v87_v37 }
  0x13   :  { %51 = vadd.xlane.f32.xlu1 %v50_v16 }
  0x14   :  { %48 = vadd.xlane.f32.xlu0 %v47_v15 }
  0x15   :  { %66 = vadd.xlane.f32.xlu2 %v65_v17 }
  0x1b   :  { %78 = vadd.xlane.f32.xlu1 %v77_v22 }
  0x1c   :  { %69 = vadd.xlane.f32.xlu0 %v68_v21 }
  0x1d   :  { %81 = vadd.xlane.f32.xlu2 %v80_v23 }
  0x23   :  { %45 = vadd.xlane.f32.xlu1 %v44_v28 }
  0x24   :  { %42 = vadd.xlane.f32.xlu0 %v41_v27 }
  0x25   :  { %54 = vadd.xlane.f32.xlu2 %v53_v29 }
  0x2c   :  { %57 = vadd.xlane.f32.xlu0 %v56_v31 }
  0x76   :  { %v73_v39 = vpop.xlane.xlu1 %72 }
  0x77   :  { %v61_v40 = vpop.xlane.xlu0 %60  ;;  %v102_v41 = vmul.f32 %v1444_v38, %v73_v39 }
  0x78   :  { %v98_v42 = vmul.f32 %v1444_v38, %v61_v40  ;;  %v37_v43 = vpop.xlane.xlu2 %36 }
  0x79   :  { %v1448_v44 = vsub.f32 %v30_v0, %v102_v41  ;;  %v90_v56 = vmul.f32 %v1444_v38, %v37_v43 }
  0x7a   :  { %v1450_v45 = vsub.f32 %v26_v1, %v98_v42 }
  0x7b   :  { %v134_v47 = vmul.f32 %v1448_v44, %v1448_v44  ;;  %v1478_v63 = vsub.f32 %v1347_v2, %v90_v56 }
  0x7c   :  { %v130_v46 = vmul.f32 %v1450_v45, %v1450_v45 }
  0x7d   :  { %v174_v49 = vsel %vm34_vm0, %v134_v47, 0.0  ;;  %v122_v10 = vmul.f32 %v1478_v63, %v1478_v63 }
  0x7e   :  { %v162_v48 = vsel %vm34_vm0, %v130_v46, 0.0  ;;  %v76_v50 = vpop.xlane.xlu1 %75  ;;  %175 = vadd.xlane.f32.xlu0 %v174_v49 }
  0x7f   :  { %v64_v51 = vpop.xlane.xlu0 %63  ;;  %163 = vadd.xlane.f32.xlu1 %v162_v48  ;;  %v103_v52 = vmul.f32 %v1444_v38, %v76_v50 }
  0x80   :  { %v99_v53 = vmul.f32 %v1444_v38, %v64_v51  ;;  %v40_v54 = vpop.xlane.xlu2 %39 }
  0x81   :  { %v91_v55 = vmul.f32 %v1444_v38, %v40_v54  ;;  %v1463_v57 = vsub.f32 %v1356_v6, %v103_v52 }
  0x82   :  { %v1466_v58 = vsub.f32 %v1361_v7, %v99_v53 }
  0x83   :  { %v1469_v59 = vsub.f32 %v1366_v8, %v91_v55  ;;  %v135_v60 = vmul.f32 %v1463_v57, %v1463_v57 }
  0x84   :  { %v131_v61 = vmul.f32 %v1466_v58, %v1466_v58 }
  0x85   :  { %v123_v62 = vmul.f32 %v1469_v59, %v1469_v59  ;;  %v177_v0 = vsel %vm34_vm0, %v135_v60, 0.0 }
  0x86   :  { %v165_v1 = vsel %vm34_vm0, %v131_v61, 0.0  ;;  %v52_v5 = vpop.xlane.xlu1 %51 }
  0x87   :  { %v49_v3 = vpop.xlane.xlu0 %48  ;;  %178 = vadd.xlane.f32.xlu1 %v177_v0  ;;  %166 = vadd.xlane.f32.xlu2 %v165_v1  ;;  %v141_v4 = vsel %vm34_vm0, %v123_v62, 0.0  ;;  %v95_v8 = vmul.f32 %v1444_v38, %v52_v5 }
  0x88   :  { %v94_v6 = vmul.f32 %v1444_v38, %v49_v3  ;;  %142 = vadd.xlane.f32.xlu0 %v141_v4  ;;  %v67_v7 = vpop.xlane.xlu2 %66 }
  0x89   :  { %v100_v9 = vmul.f32 %v1444_v38, %v67_v7  ;;  %v1495_v15 = vsub.f32 %v1382_v13, %v95_v8  ;;  %v442_v7 = vld [vmem:[%s2431_s1] sm:$0xff] }
  0x8a   :  { %v1487_v2 = vsub.f32 %v1377_v12, %v94_v6  ;;  %v138_v12 = vsel %vm34_vm0, %v122_v10, 0.0 }
  0x8b   :  { %v1492_v11 = vsub.f32 %v1387_v14, %v100_v9  ;;  %v127_v29 = vmul.f32 %v1495_v15, %v1495_v15 }
  0x8c   :  { %v126_v16 = vmul.f32 %v1487_v2, %v1487_v2 }
  0x8d   :  { %v132_v17 = vmul.f32 %v1492_v11, %v1492_v11  ;;  %v153_v36 = vsel %vm34_vm0, %v127_v29, 0.0 }
  0x8e   :  { %v150_v21 = vsel %vm34_vm0, %v126_v16, 0.0  ;;  %v79_v14 = vpop.xlane.xlu1 %78  ;;  %v443_v16 = vpack.c.bf16 %v442_v7, %v442_v7 }
  0x8f   :  { %v70_v22 = vpop.xlane.xlu0 %69  ;;  %151 = vadd.xlane.f32.xlu1 %v150_v21  ;;  %139 = vadd.xlane.f32.xlu2 %v138_v12  ;;  %v168_v23 = vsel %vm34_vm0, %v132_v17, 0.0  ;;  %v104_v28 = vmul.f32 %v1444_v38, %v79_v14 }
  0x90   :  { %v101_v27 = vmul.f32 %v1444_v38, %v70_v22  ;;  %169 = vadd.xlane.f32.xlu0 %v168_v23  ;;  %v82_v13 = vpop.xlane.xlu2 %81  ;;  %v470_v23 = vsel %vm468_vm2, %v443_v16, 0 }
  0x91   :  { %v105_v31 = vmul.f32 %v1444_v38, %v82_v13  ;;  %v1516_v34 = vsub.f32 %v1403_v19, %v104_v28  ;;  %1207 = vmatpush.bf16.msra.mxu2 %v470_v23  ;;  %1208 = vmatpush.bf16.msra.mxu3 %v470_v23 }
  0x92   :  { %v1510_v32 = vsub.f32 %v1398_v18, %v101_v27  ;;  %479 = vmatpush.bf16.msra.mxu0 %v470_v23  ;;  %1206 = vmatpush.bf16.msra.mxu1 %v470_v23 }
  0x93   :  { %v1513_v33 = vsub.f32 %v1408_v20, %v105_v31  ;;  %v136_v43 = vmul.f32 %v1516_v34, %v1516_v34 }
  0x94   :  { %v133_v35 = vmul.f32 %v1510_v32, %v1510_v32 }
  0x95   :  { %v137_v37 = vmul.f32 %v1513_v33, %v1513_v33  ;;  %v180_v51 = vsel %vm34_vm0, %v136_v43, 0.0 }
  0x96   :  { %v171_v39 = vsel %vm34_vm0, %v133_v35, 0.0  ;;  %v46_v20 = vpop.xlane.xlu1 %45 }
  0x97   :  { %172 = vadd.xlane.f32.xlu1 %v171_v39  ;;  %v43_v40 = vpop.xlane.xlu0 %42  ;;  %154 = vadd.xlane.f32.xlu2 %v153_v36  ;;  %v183_v18 = vsel %vm34_vm0, %v137_v37, 0.0  ;;  %v93_v42 = vmul.f32 %v1444_v38, %v46_v20 }
  0x98   :  { %v92_v41 = vmul.f32 %v1444_v38, %v43_v40  ;;  %184 = vadd.xlane.f32.xlu0 %v183_v18  ;;  %v55_v19 = vpop.xlane.xlu2 %54 }
  0x99   :  { %v96_v46 = vmul.f32 %v1444_v38, %v55_v19  ;;  %v1537_v49 = vsub.f32 %v1424_v25, %v93_v42 }
  0x9a   :  { %v1531_v47 = vsub.f32 %v1419_v24, %v92_v41 }
  0x9b   :  { %v1534_v48 = vsub.f32 %v1429_v26, %v96_v46  ;;  %v125_v25 = vmul.f32 %v1537_v49, %v1537_v49 }
  0x9c   :  { %v124_v50 = vmul.f32 %v1531_v47, %v1531_v47 }
  0x9d   :  { %v128_v52 = vmul.f32 %v1534_v48, %v1534_v48  ;;  %v147_v60 = vsel %vm34_vm0, %v125_v25, 0.0 }
  0x9e   :  { %v144_v53 = vsel %vm34_vm0, %v124_v50, 0.0 }
  0x9f   :  { %145 = vadd.xlane.f32.xlu1 %v144_v53  ;;  %v58_v54 = vpop.xlane.xlu0 %57  ;;  %181 = vadd.xlane.f32.xlu2 %v180_v51  ;;  %v156_v24 = vsel %vm34_vm0, %v128_v52, 0.0 }
  0xa0   :  { %v97_v26 = vmul.f32 %v1444_v38, %v58_v54  ;;  %157 = vadd.xlane.f32.xlu0 %v156_v24 }
  0xa2   :  { %v1550_v55 = vsub.f32 %v1440_v30, %v97_v26 }
  0xa4   :  { %v129_v56 = vmul.f32 %v1550_v55, %v1550_v55 }
  0xa6   :  { %v159_v61 = vsel %vm34_vm0, %v129_v56, 0.0 }
  0xa7   :  { %160 = vadd.xlane.f32.xlu1 %v159_v61  ;;  %148 = vadd.xlane.f32.xlu2 %v147_v60 }
  0xf1   :  { %v176_v0 = vpop.xlane.xlu0 %175 }
  0xf2   :  { %v164_v62 = vpop.xlane.xlu1 %163  ;;  %v198_v3 = vmul.f32 %v176_v0, %v1444_v38 }
  0xf3   :  { %v194_v1 = vmul.f32 %v164_v62, %v1444_v38 }
  0xf4   :  { %v214_v5 = vadd.f32 1e-05, %v198_v3 }
  0xf5   :  { %v210_v4 = vadd.f32 1e-05, %v194_v1 }
  0xf6   :  { %vm344_vm7 = vweird.f32 %v214_v5 }
  0xf7   :  { %1215 = vrsqrt.f32 %v210_v4  ;;  %vm304_vm5 = vweird.f32 %v210_v4 }
  0xf8   :  { %1217 = vrsqrt.f32 %v214_v5 }
  0xfa   :  { %v179_v30 = vpop.xlane.xlu1 %178  ;;  %v167_v6 = vpop.xlane.xlu2 %166 }
  0xfb   :  { %v199_v8 = vmul.f32 %v179_v30, %v1444_v38  ;;  %v143_v9 = vpop.xlane.xlu0 %142  ;;  %v195_v10 = vmul.f32 %v167_v6, %v1444_v38 }
  0xfc   :  { %v187_v17 = vmul.f32 %v143_v9, %v1444_v38 }
  0xfd   :  { %v1564_v21 = vpop.eup %1215  ;;  %v1566_v12 = vadd.f32 1e-05, %v199_v8  ;;  %v1568_v22 = vadd.f32 1e-05, %v195_v10 }
  0xfe   :  { %v1570_v14 = vpop.eup %1217  ;;  %v299_v27 = vmul.f32 %v1564_v21, %v210_v4  ;;  %v1573_v13 = vadd.f32 1e-05, %v187_v17  ;;  %vm305_vm3 = vweird.f32 %v1564_v21 }
  0xff   :  { %v339_v28 = vmul.f32 %v1570_v14, %v214_v5  ;;  %1219 = vrsqrt.f32 %v1566_v12  ;;  %vm345_vm4 = vweird.f32 %v1570_v14  ;;  %vm1607_vm6 = vmor %vm304_vm5, %vm305_vm3  ;;  %vm354_vm9 = vweird.f32 %v1566_v12 }
 0x100   :  { %v300_v29 = vmul.f32 %v1564_v21, %v299_v27  ;;  %1221 = vrsqrt.f32 %v1573_v13  ;;  %vm1614_vm8 = vmor %vm344_vm7, %vm345_vm4  ;;  %vm234_vm10 = vweird.f32 %v1573_v13  ;;  %vm314_vm12 = vweird.f32 %v1568_v22 }
 0x101   :  { %v340_v31 = vmul.f32 %v1570_v14, %v339_v28  ;;  %1223 = vrsqrt.f32 %v1568_v22 }
 0x102   :  { %v301_v35 = vmul.f32 0.5, %v300_v29  ;;  %v152_v36 = vpop.xlane.xlu1 %151  ;;  %v140_v37 = vpop.xlane.xlu2 %139 }
 0x103   :  { %v341_v39 = vmul.f32 0.5, %v340_v31  ;;  %v190_v40 = vmul.f32 %v152_v36, %v1444_v38  ;;  %v170_v18 = vpop.xlane.xlu0 %169  ;;  %v186_v20 = vmul.f32 %v140_v37, %v1444_v38 }
 0x104   :  { %v302_v41 = vsub.f32 1.5, %v301_v35  ;;  %v196_v19 = vmul.f32 %v170_v18, %v1444_v38  ;;  %v1643_v35 = vld [vmem:[%s2429_s2] ss:$0 sm:$0xff] }
 0x105   :  { %v1584_v42 = vpop.eup %1219  ;;  %v342_v43 = vsub.f32 1.5, %v341_v39  ;;  %v1587_v46 = vadd.f32 1e-05, %v190_v40  ;;  %v1596_v53 = vadd.f32 1e-05, %v186_v20 }
 0x106   :  { %v1589_v50 = vpop.eup %1221  ;;  %v349_v51 = vmul.f32 %v1584_v42, %v1566_v12  ;;  %v1594_v52 = vadd.f32 1e-05, %v196_v19  ;;  %v303_v24 = vmul.f32 %v1564_v21, %v302_v41  ;;  %vm355_vm13 = vweird.f32 %v1584_v42 }
 0x107   :  { %v1224_v54 = vpop.eup %1223  ;;  %v343_v26 = vmul.f32 %v1570_v14, %v342_v43  ;;  %v229_v25 = vmul.f32 %v1589_v50, %v1573_v13  ;;  %1225 = vrsqrt.f32 %v1587_v46  ;;  %vm235_vm15 = vweird.f32 %v1589_v50  ;;  %vm1677_vm3 = vmor %vm354_vm9, %vm355_vm13 }
 0x108   :  { %v350_v56 = vmul.f32 %v1584_v42, %v349_v51  ;;  %v309_v60 = vmul.f32 %v1224_v54, %v1568_v22  ;;  %1227 = vrsqrt.f32 %v1594_v52  ;;  %v307_v6 = vsel %vm1607_vm6, %v1564_v21, %v303_v24  ;;  %vm1699_vm6 = vmor %vm234_vm10, %vm235_vm15 }
 0x109   :  { %v230_v62 = vmul.f32 %v1589_v50, %v229_v25  ;;  %v347_v5 = vsel %vm1614_vm8, %v1570_v14, %v343_v26  ;;  %1229 = vrsqrt.f32 %v1596_v53  ;;  %vm315_vm11 = vweird.f32 %v1224_v54 }
 0x10a   :  { %v351_v1 = vmul.f32 0.5, %v350_v56  ;;  %v310_v3 = vmul.f32 %v1224_v54, %v309_v60  ;;  %v173_v4 = vpop.xlane.xlu1 %172  ;;  %v155_v30 = vpop.xlane.xlu2 %154  ;;  %v386_v28 = vmul.f32 %v307_v6, %v1450_v45  ;;  %v390_v29 = vmul.f32 %v347_v5, %v1448_v44  ;;  %vm316_vm14 = vmor %vm314_vm12, %vm315_vm11 }
 0x10b   :  { %v185_v7 = vpop.xlane.xlu0 %184  ;;  %v231_v8 = vmul.f32 0.5, %v230_v62  ;;  %v197_v10 = vmul.f32 %v173_v4, %v1444_v38  ;;  %v191_v21 = vmul.f32 %v155_v30, %v1444_v38  ;;  %vm264_vm1 = vweird.f32 %v1587_v46 }
 0x10c   :  { %v311_v9 = vmul.f32 0.5, %v310_v3  ;;  %v201_v16 = vmul.f32 %v185_v7, %v1444_v38  ;;  %v352_v23 = vsub.f32 1.5, %v351_v1  ;;  %vm324_vm2 = vweird.f32 %v1594_v52 }
 0x10d   :  { %v1628_v17 = vpop.eup %1225  ;;  %v1638_v31 = vadd.f32 1e-05, %v197_v10  ;;  %v232_v37 = vsub.f32 1.5, %v231_v8  ;;  %v1657_v20 = vadd.f32 1e-05, %v191_v21  ;;  %v406_v56 = vmul.f32 %v1643_v35, %v386_v28 }
 0x10e   :  { %v312_v27 = vsub.f32 1.5, %v311_v9  ;;  %v259_v14 = vmul.f32 %v1628_v17, %v1587_v46  ;;  %v1645_v36 = vpop.eup %1227  ;;  %v1648_v18 = vadd.f32 1e-05, %v201_v16  ;;  %v353_v44 = vmul.f32 %v1584_v42, %v352_v23 }
 0x10f   :  { %v1650_v45 = vpop.eup %1229  ;;  %v319_v22 = vmul.f32 %v1645_v36, %v1594_v52  ;;  %1231 = vrsqrt.f32 %v1638_v31  ;;  %v1682_v60 = vmul.f32 %v1589_v50, %v232_v37  ;;  %vm224_vm4 = vweird.f32 %v1596_v53 }
 0x110   :  { %v313_v39 = vmul.f32 %v1224_v54, %v312_v27  ;;  %v260_v40 = vmul.f32 %v1628_v17, %v259_v14  ;;  %v219_v43 = vmul.f32 %v1650_v45, %v1596_v53  ;;  %1233 = vrsqrt.f32 %v1648_v18 }
 0x111   :  { %v320_v24 = vmul.f32 %v1645_v36, %v319_v22  ;;  %v410_v0 = vmul.f32 %v1643_v35, %v390_v29  ;;  %v357_v12 = vsel %vm1677_vm3, %v1584_v42, %v353_v44  ;;  %1235 = vrsqrt.f32 %v1657_v20 }
 0x112   :  { %v317_v41 = vsel %vm316_vm14, %v1224_v54, %v313_v39  ;;  %v261_v19 = vmul.f32 0.5, %v260_v40  ;;  %v146_v26 = vpop.xlane.xlu1 %145  ;;  %v1671_v54 = vld [vmem:[%s2430_s3] ss:$0 sm:$0xff]  ;;  %v220_v61 = vmul.f32 %v1650_v45, %v219_v43  ;;  %v182_v62 = vpop.xlane.xlu2 %181  ;;  %vm265_vm5 = vweird.f32 %v1628_v17 }
 0x113   :  { %v387_v51 = vmul.f32 %v317_v41, %v1466_v58  ;;  %v158_v25 = vpop.xlane.xlu0 %157  ;;  %v321_v3 = vmul.f32 0.5, %v320_v24  ;;  %v188_v30 = vmul.f32 %v146_v26, %v1444_v38  ;;  %v200_v7 = vmul.f32 %v182_v62, %v1444_v38  ;;  %vm1741_vm10 = vmor %vm264_vm1, %vm265_vm5 }
 0x114   :  { %v262_v1 = vsub.f32 1.5, %v261_v19  ;;  %v221_v4 = vmul.f32 0.5, %v220_v61  ;;  %v192_v6 = vmul.f32 %v158_v25, %v1444_v38  ;;  %v426_v9 = vadd.f32 %v1671_v54, %v406_v56 }
 0x115   :  { %v322_v42 = vsub.f32 1.5, %v321_v3  ;;  %v407_v8 = vmul.f32 %v1643_v35, %v387_v51  ;;  %v391_v10 = vmul.f32 %v357_v12, %v1463_v57  ;;  %v237_v16 = vsel %vm1699_vm6, %v1589_v50, %v1682_v60  ;;  %v1713_v21 = vpop.eup %1231 }
 0x116   :  { %v222_v23 = vsub.f32 1.5, %v221_v4  ;;  %v1711_v13 = vadd.f32 1e-05, %v188_v30  ;;  %v1716_v27 = vmul.f32 %v1628_v17, %v262_v1  ;;  %vm325_vm7 = vweird.f32 %v1645_v36  ;;  %v1722_v57 = vpop.eup %1233 }
 0x117   :  { %vm225_vm8 = vweird.f32 %v1650_v45  ;;  %v1720_v14 = vadd.f32 1e-05, %v192_v6  ;;  %v329_v29 = vmul.f32 %v1713_v21, %v1638_v31  ;;  %v1728_v37 = vadd.f32 1e-05, %v200_v7  ;;  %v1730_v39 = vpop.eup %1235  ;;  %vm1770_vm15 = vmor %vm324_vm2, %vm325_vm7 }
 0x118   :  { %v223_v28 = vmul.f32 %v1650_v45, %v222_v23  ;;  %1237 = vrsqrt.f32 %v1711_v13  ;;  %v323_v40 = vmul.f32 %v1645_v36, %v322_v42  ;;  %vm334_vm9 = vweird.f32 %v1638_v31  ;;  %vm1759_vm13 = vmor %vm224_vm4, %vm225_vm8 }
 0x119   :  { %v369_v44 = vmul.f32 %v1722_v57, %v1648_v18  ;;  %v427_v22 = vadd.f32 %v1671_v54, %v407_v8  ;;  %v330_v19 = vmul.f32 %v1713_v21, %v329_v29  ;;  %vm374_vm11 = vweird.f32 %v1648_v18 }
 0x11a   :  { %v269_v43 = vmul.f32 %v1730_v39, %v1657_v20  ;;  %vm274_vm12 = vweird.f32 %v1657_v20  ;;  %v411_v51 = vmul.f32 %v1643_v35, %v391_v10  ;;  %v267_v46 = vsel %vm1741_vm10, %v1628_v17, %v1716_v27  ;;  %v161_v25 = vpop.xlane.xlu1 %160  ;;  %v149_v61 = vpop.xlane.xlu2 %148 }
 0x11b   :  { %vm335_vm14 = vweird.f32 %v1713_v21  ;;  %v370_v26 = vmul.f32 %v1722_v57, %v369_v44  ;;  %1239 = vrsqrt.f32 %v1720_v14  ;;  %v227_v53 = vsel %vm1759_vm13, %v1650_v45, %v223_v28 }
 0x11c   :  { %v331_v56 = vmul.f32 0.5, %v330_v19  ;;  %v270_v58 = vmul.f32 %v1730_v39, %v269_v43  ;;  %1241 = vrsqrt.f32 %v1728_v37  ;;  %v327_v62 = vsel %vm1770_vm15, %v1645_v36, %v323_v40  ;;  %vm1800_vm2 = vmor %vm334_vm9, %vm335_vm14 }
 0x11d   :  { %v371_v12 = vmul.f32 0.5, %v370_v26  ;;  %v438_v52 = vpack.c.bf16 %v427_v22, %v426_v9  ;;  %v430_v1 = vadd.f32 %v1671_v54, %v410_v0  ;;  %v431_v45 = vadd.f32 %v1671_v54, %v411_v51 }
 0x11e   :  { %v1783_v3 = vpop.eup %1237  ;;  %v332_v4 = vsub.f32 1.5, %v331_v56  ;;  %v271_v30 = vmul.f32 0.5, %v270_v58  ;;  %v193_v6 = vmul.f32 %v161_v25, %v1444_v38  ;;  %v378_v42 = vmul.f32 %v227_v53, %v1478_v63 }
 0x11f   :  { %v372_v7 = vsub.f32 1.5, %v371_v12  ;;  %v239_v8 = vmul.f32 %v1783_v3, %v1711_v13  ;;  %1202 = vmatmul.msk.bf16.vlgmr.msra.gmra.mxu2 %vm34_vm0, %v438_v52  ;;  %v189_v36 = vmul.f32 %v149_v61, %v1444_v38  ;;  %vm275_vm1 = vweird.f32 %v1730_v39 }
 0x120   :  { %v333_v0 = vmul.f32 %v1713_v21, %v332_v4  ;;  %v272_v9 = vsub.f32 1.5, %v271_v30  ;;  %v440_v10 = vpack.c.bf16 %v431_v45, %v430_v1  ;;  %vm375_vm3 = vweird.f32 %v1722_v57  ;;  %vm276_vm4 = vmor %vm274_vm12, %vm275_vm1 }
 0x121   :  { %v1794_v23 = vpop.eup %1239  ;;  %v373_v27 = vmul.f32 %v1722_v57, %v372_v7  ;;  %v240_v38 = vmul.f32 %v1783_v3, %v239_v8  ;;  %v1807_v28 = vadd.f32 1e-05, %v193_v6  ;;  %v1816_v22 = vadd.f32 1e-05, %v189_v36  ;;  %vm1839_vm5 = vmor %vm374_vm11, %vm375_vm3 }
 0x122   :  { %v1242_v29 = vpop.eup %1241  ;;  %v337_v40 = vsel %vm1800_vm2, %v1713_v21, %v333_v0  ;;  %v273_v44 = vmul.f32 %v1730_v39, %v272_v9  ;;  %v279_v31 = vmul.f32 %v1794_v23, %v1720_v14  ;;  %1204 = vmatmul.msk.bf16.vlgmr.msra.gmra.mxu3 %vm34_vm0, %v440_v10  ;;  %v379_v41 = vmul.f32 %v237_v16, %v1469_v59 }
 0x123   :  { %v382_v19 = vmul.f32 %v267_v46, %v1487_v2  ;;  %v359_v21 = vmul.f32 %v1242_v29, %v1728_v37  ;;  %v398_v43 = vmul.f32 %v1643_v35, %v378_v42  ;;  %v388_v51 = vmul.f32 %v327_v62, %v1492_v11 }
 0x124   :  { %v389_v24 = vmul.f32 %v337_v40, %v1510_v32  ;;  %v277_v5 = vsel %vm276_vm4, %v1730_v39, %v273_v44  ;;  %v280_v50 = vmul.f32 %v1794_v23, %v279_v31  ;;  %v241_v20 = vmul.f32 0.5, %v240_v38 }
 0x125   :  { %v383_v2 = vmul.f32 %v277_v5, %v1495_v15  ;;  %v360_v60 = vmul.f32 %v1242_v29, %v359_v21  ;;  %1243 = vrsqrt.f32 %v1807_v28  ;;  %v377_v11 = vsel %vm1839_vm5, %v1722_v57, %v373_v27 }
 0x126   :  { %v281_v32 = vmul.f32 0.5, %v280_v50  ;;  %vm284_vm6 = vweird.f32 %v1720_v14  ;;  %1245 = vrsqrt.f32 %v1816_v22  ;;  %vm365_vm7 = vweird.f32 %v1242_v29 }
 0x127   :  { %v361_v18 = vmul.f32 0.5, %v360_v60  ;;  %v399_v16 = vmul.f32 %v1643_v35, %v379_v41  ;;  %v418_v39 = vadd.f32 %v1671_v54, %v398_v43  ;;  %v402_v46 = vmul.f32 %v1643_v35, %v382_v19 }
 0x128   :  { %v282_v15 = vsub.f32 1.5, %v281_v32  ;;  %v403_v26 = vmul.f32 %v1643_v35, %v383_v2  ;;  %v408_v25 = vmul.f32 %v1643_v35, %v388_v51  ;;  %v242_v17 = vsub.f32 1.5, %v241_v20 }
 0x129   :  { %v362_v57 = vsub.f32 1.5, %v361_v18  ;;  %v419_v53 = vadd.f32 %v1671_v54, %v399_v16  ;;  %v409_v56 = vmul.f32 %v1643_v35, %v389_v24  ;;  %v393_v58 = vmul.f32 %v377_v11, %v1513_v33 }
 0x12a   :  { %vm364_vm8 = vweird.f32 %v1728_v37  ;;  %v422_v61 = vadd.f32 %v1671_v54, %v402_v46  ;;  %v423_v62 = vadd.f32 %v1671_v54, %v403_v26  ;;  %vm285_vm9 = vweird.f32 %v1794_v23 }
 0x12b   :  { %v1244_v12 = vpop.eup %1243  ;;  %v363_v52 = vmul.f32 %v1242_v29, %v362_v57  ;;  %v434_v1 = vpack.c.bf16 %v419_v53, %v418_v39  ;;  %v429_v4 = vadd.f32 %v1671_v54, %v409_v56  ;;  %v283_v45 = vmul.f32 %v1794_v23, %v282_v15  ;;  %vm366_vm10 = vmor %vm364_vm8, %vm365_vm7 }
 0x12c   :  { %v1246_v30 = vpop.eup %1245  ;;  %v289_v33 = vmul.f32 %v1244_v12, %v1807_v28  ;;  %v436_v6 = vpack.c.bf16 %v423_v62, %v422_v61  ;;  %v428_v37 = vadd.f32 %v1671_v54, %v408_v25  ;;  %v243_v42 = vmul.f32 %v1783_v3, %v242_v17  ;;  %vm286_vm13 = vmor %vm284_vm6, %vm285_vm9 }
 0x12d   :  { %vm245_vm11 = vweird.f32 %v1783_v3  ;;  %v367_v7 = vsel %vm366_vm10, %v1242_v29, %v363_v52  ;;  %v249_v8 = vmul.f32 %v1246_v30, %v1816_v22  ;;  %1198 = vmatmul.msk.bf16.vlgmr.msra.gmra.mxu0 %vm34_vm0, %v434_v1  ;;  %v413_v10 = vmul.f32 %v1643_v35, %v393_v58 }
 0x12e   :  { %v392_v36 = vmul.f32 %v367_v7, %v1516_v34  ;;  %v290_v0 = vmul.f32 %v1244_v12, %v289_v33  ;;  %1200 = vmatmul.msk.bf16.vlgmr.msra.gmra.mxu1 %vm34_vm0, %v436_v6  ;;  %v439_v9 = vpack.c.bf16 %v429_v4, %v428_v37  ;;  %vm244_vm12 = vweird.f32 %v1711_v13 }
 0x12f   :  { %v250_v63 = vmul.f32 %v1246_v30, %v249_v8  ;;  %vm246_vm14 = vmor %vm244_vm12, %vm245_vm11  ;;  %v287_v27 = vsel %vm286_vm13, %v1794_v23, %v283_v45  ;;  %vm295_vm15 = vweird.f32 %v1244_v12  ;;  %v433_v31 = vadd.f32 %v1671_v54, %v413_v10 }
 0x130   :  { %v291_v38 = vmul.f32 0.5, %v290_v0  ;;  %1203 = vmatmul.msk.bf16.gmra.mxu2 %vm34_vm0, %v439_v9  ;;  %v412_v34 = vmul.f32 %v1643_v35, %v392_v36  ;;  %v247_v29 = vsel %vm246_vm14, %v1783_v3, %v243_v42  ;;  %v384_v14 = vmul.f32 %v287_v27, %v1534_v48 }
 0x131   :  { %v251_v40 = vmul.f32 0.5, %v250_v63  ;;  %vm255_vm1 = vweird.f32 %v1246_v30  ;;  %v380_v23 = vmul.f32 %v247_v29, %v1531_v47  ;;  %vm294_vm2 = vweird.f32 %v1807_v28 }
 0x132   :  { %v292_v44 = vsub.f32 1.5, %v291_v38  ;;  %v432_v13 = vadd.f32 %v1671_v54, %v412_v34  ;;  %vm296_vm3 = vmor %vm294_vm2, %vm295_vm15  ;;  %vm254_vm4 = vweird.f32 %v1816_v22  ;;  %v404_v48 = vmul.f32 %v1643_v35, %v384_v14 }
 0x133   :  { %v252_v41 = vsub.f32 1.5, %v251_v40  ;;  %vm256_vm5 = vmor %vm254_vm4, %vm255_vm1  ;;  %v400_v47 = vmul.f32 %v1643_v35, %v380_v23  ;;  %v1312_v1 = vmov -1.0  }
 0x134   :  { %v293_v19 = vmul.f32 %v1244_v12, %v292_v44  ;;  %v441_v21 = vpack.c.bf16 %v433_v31, %v432_v13  ;;  %v424_v59 = vadd.f32 %v1671_v54, %v404_v48 }
 0x135   :  { %v253_v43 = vmul.f32 %v1246_v30, %v252_v41  ;;  %v420_v2 = vadd.f32 %v1671_v54, %v400_v47 }
 0x136   :  { %v297_v3 = vsel %vm296_vm3, %v1244_v12, %v293_v19  ;;  %1205 = vmatmul.msk.bf16.gmra.mxu3 %vm34_vm0, %v441_v21 }
 0x137   :  { %v385_v51 = vmul.f32 %v297_v3, %v1550_v55  ;;  %v257_v24 = vsel %vm256_vm5, %v1246_v30, %v253_v43 }
 0x138   :  { %v381_v5 = vmul.f32 %v257_v24, %v1537_v49 }
 0x139   :  { %v405_v28 = vmul.f32 %v1643_v35, %v385_v51 }
 0x13a   :  { %v401_v50 = vmul.f32 %v1643_v35, %v381_v5 }
 0x13b   :  { %v425_v22 = vadd.f32 %v1671_v54, %v405_v28 }
 0x13c   :  { %v421_v20 = vadd.f32 %v1671_v54, %v401_v50 }
 0x13d   :  { %v437_v55 = vpack.c.bf16 %v425_v22, %v424_v59 }
 0x13e   :  { %v435_v60 = vpack.c.bf16 %v421_v20, %v420_v2 }
 0x13f   :  { %1201 = vmatmul.msk.bf16.gmra.mxu1 %vm34_vm0, %v437_v55 }
 0x140   :  { %1199 = vmatmul.msk.bf16.gmra.mxu0 %vm34_vm0, %v435_v60 }
 0x1a2   :  { %v501_v49 = vpop.f32.mrf.mxu2 }
 0x1a3   :  { %v545_v11 = vmul.f32 0.70710677, %v501_v49  ;;  %v1905_v52 = vmul.f32 0.5, %v501_v49 }
 0x1a5   :  { %v593_v32 = vand.u32 2147483647, %v545_v11  ;;  %v511_v18 = vpop.f32.mrf.mxu3  ;;  %vm561_vm6 = vcmp.ge.f32.partialorder %v545_v11, 0.0 }
 0x1a6   :  { %v549_v16 = vmul.f32 0.70710677, %v511_v18  ;;  %v1908_v4 = vsel %vm561_vm6, 1.0, %v1312_v1  ;;  %v1910_v6 = vmul.f32 0.5, %v511_v18 }
 0x1a7   :  { %v609_v35 = vmul.f32 0.3275911, %v593_v32  ;;  %v1025_v25 = vsub.f32 0.0, %v593_v32 }
 0x1a8   :  { %v597_v39 = vand.u32 2147483647, %v549_v16  ;;  %vm565_vm7 = vcmp.ge.f32.partialorder %v549_v16, 0.0 }
 0x1a9   :  { %v625_v15 = vadd.f32 1.0, %v609_v35  ;;  %v1041_v53 = vmul.f32 %v1025_v25, %v593_v32  ;;  %v1913_v37 = vsel %vm565_vm7, 1.0, %v1312_v1 }
 0x1aa   :  { %v613_v46 = vmul.f32 0.3275911, %v597_v39  ;;  %v481_v26 = vpop.f32.mrf.mxu0  ;;  %v503_v57 = vpop.f32.mrf.mxu2  ;;  %v1029_v56 = vsub.f32 0.0, %v597_v39 }
 0x1ab   :  { %1247 = vrcp.f32 %v625_v15  ;;  %v537_v54 = vmul.f32 0.70710677, %v481_v26  ;;  %v762_v61 = vand.u32 2147483647, %v625_v15  ;;  %v546_v62 = vmul.f32 0.70710677, %v503_v57 }
 0x1ac   :  { %v1902_v17 = vadd.f32 1.0, %v613_v46  ;;  %v764_v30 = vand.u32 2147483648, %v625_v15  ;;  %vm758_vm0 = vweird.f32 %v625_v15  ;;  %v1065_v7 = vmul.f32 1.442695, %v1041_v53 }
 0x1ad   :  { %v585_v58 = vand.u32 2147483647, %v537_v54  ;;  %v1915_v42 = vand.u32 2147483647, %v546_v62  ;;  %v1045_v8 = vmul.f32 %v1029_v56, %v597_v39  ;;  %vm1919_vm8 = vcmp.eq.f32.partialorder %v762_v61, 8.507059e+37  ;;  %v1932_v31 = vpop.f32.mrf.mxu3 }
 0x1ae   :  { %1249 = vrcp.f32 %v1902_v17  ;;  %v1923_v10 = vmul.f32 0.5, %v481_v26  ;;  %v765_v38 = vor.u32 1.1754944e-38, %v764_v30  ;;  %v822_v34 = vand.u32 2147483647, %v1902_v17 }
 0x1af   :  { %v601_v45 = vmul.f32 0.3275911, %v585_v58  ;;  %v610_v63 = vmul.f32 0.3275911, %v1915_v42  ;;  %v824_v29 = vand.u32 2147483648, %v1902_v17  ;;  %v1930_v13 = vmul.f32 0.5, %v503_v57 }
 0x1b0   :  { %vm818_vm10 = vweird.f32 %v1902_v17  ;;  %v1073_v14 = vmul.f32 1.442695, %v1045_v8  ;;  %vm553_vm11 = vcmp.ge.f32.partialorder %v537_v54, 0.0  ;;  %v1017_v21 = vsub.f32 0.0, %v585_v58 }
 0x1b1   :  { %v1248_v12 = vpop.eup %1247  ;;  %v1917_v36 = vadd.f32 1.0, %v601_v45  ;;  %v1935_v41 = vadd.f32 1.0, %v610_v63  ;;  %vm1938_vm13 = vcmp.eq.f32.partialorder %v822_v34, 8.507059e+37  ;;  %v825_v3 = vor.u32 1.1754944e-38, %v824_v29 }
 0x1b2   :  { %v754_v33 = vmul.f32 %v1248_v12, %v625_v15  ;;  %vm759_vm9 = vweird.f32 %v1248_v12  ;;  %v1944_v51 = vmul.f32 0.70710677, %v1932_v31  ;;  %vm562_vm15 = vcmp.ge.f32.partialorder %v546_v62, 0.0  ;;  %v1978_v53 = vpop.f32.mrf.mxu0 }
 0x1b3   :  { %1251 = vrcp.f32 %v1917_v36  ;;  %vm760_vm12 = vmor %vm758_vm0, %vm759_vm9  ;;  %v1951_v28 = vsel %vm553_vm11, 1.0, %v1312_v1  ;;  %v642_v50 = vand.u32 2147483647, %v1917_v36  ;;  %v1033_v20 = vmul.f32 %v1017_v21, %v585_v58 }
 0x1b4   :  { %v755_v0 = vsub.f32 1.0, %v754_v33  ;;  %v1250_v27 = vpop.eup %1249  ;;  %1253 = vpow2.f32 %v1065_v7  ;;  %v644_v60 = vand.u32 2147483648, %v1917_v36  ;;  %v1962_v49 = vsel %vm562_vm15, 1.0, %v1312_v1 }
 0x1b5   :  { %v814_v44 = vmul.f32 %v1250_v27, %v1902_v17  ;;  %1255 = vrcp.f32 %v1935_v41  ;;  %vm819_vm14 = vweird.f32 %v1250_v27  ;;  %v1026_v11 = vsub.f32 0.0, %v1915_v42 }
 0x1b6   :  { %v756_v40 = vmul.f32 %v1248_v12, %v755_v0  ;;  %1257 = vpow2.f32 %v1073_v14  ;;  %vm820_vm1 = vmor %vm818_vm10, %vm819_vm14  ;;  %v598_v32 = vand.u32 2147483647, %v1944_v51  ;;  %vm638_vm2 = vweird.f32 %v1917_v36 }
 0x1b7   :  { %v815_v19 = vsub.f32 1.0, %v814_v44  ;;  %vm1971_vm4 = vcmp.eq.f32.partialorder %v642_v50, 8.507059e+37  ;;  %v645_v58 = vor.u32 1.1754944e-38, %v644_v60  ;;  %v777_v61 = vand.u32 2147483647, %v1935_v41 }
 0x1b8   :  { %v757_v23 = vadd.f32 %v1248_v12, %v756_v40  ;;  %v614_v26 = vmul.f32 0.3275911, %v598_v32  ;;  %v1042_v62 = vmul.f32 %v1026_v11, %v1915_v42  ;;  %v779_v8 = vand.u32 2147483648, %v1935_v41 }
 0x1b9   :  { %v816_v48 = vmul.f32 %v1250_v27, %v815_v19  ;;  %v1252_v5 = vpop.eup %1251  ;;  %v1992_v0 = vmul.f32 0.70710677, %v1978_v53  ;;  %vm773_vm7 = vweird.f32 %v1935_v41  ;;  %v1030_v21 = vsub.f32 0.0, %v598_v32 }
 0x1ba   :  { %v761_v24 = vsel %vm760_vm12, %v1248_v12, %v757_v23  ;;  %v634_v2 = vmul.f32 %v1252_v5, %v1917_v36  ;;  %v1956_v55 = vpop.eup %1253  ;;  %vm639_vm3 = vweird.f32 %v1252_v5  ;;  %v1984_v12 = vadd.f32 1.0, %v614_v26  ;;  %v2002_v23 = vpop.f32.mrf.mxu1 }
 0x1bb   :  { %v1948_v47 = vsel %vm1919_vm8, %v765_v38, %v761_v24  ;;  %v817_v22 = vadd.f32 %v1250_v27, %v816_v48  ;;  %v1256_v39 = vpop.eup %1255  ;;  %vm640_vm5 = vmor %vm638_vm2, %vm639_vm3  ;;  %v1049_v36 = vmul.f32 1.442695, %v1033_v20  ;;  %v1067_v34 = vmul.f32 1.442695, %v1042_v62 }
 0x1bc   :  { %v881_v59 = vmul.f32 1.0614054, %v1948_v47  ;;  %v635_v35 = vsub.f32 1.0, %v634_v2  ;;  %v769_v57 = vmul.f32 %v1256_v39, %v1935_v41  ;;  %v1980_v56 = vpop.eup %1257  ;;  %vm774_vm6 = vweird.f32 %v1256_v39 }
 0x1bd   :  { %v821_v16 = vsel %vm820_vm1, %v1250_v27, %v817_v22  ;;  %1259 = vrcp.f32 %v1984_v12  ;;  %vm775_vm0 = vmor %vm773_vm7, %vm774_vm6  ;;  %vm778_vm8 = vcmp.eq.f32.partialorder %v777_v61, 8.507059e+37  ;;  %v780_v19 = vor.u32 1.1754944e-38, %v779_v8 }
 0x1be   :  { %v897_v18 = vadd.f32 -1.4531521, %v881_v59  ;;  %v1969_v15 = vsel %vm1938_vm13, %v825_v3, %v821_v16  ;;  %v636_v54 = vmul.f32 %v1252_v5, %v635_v35  ;;  %v770_v7 = vsub.f32 1.0, %v769_v57 }
 0x1bf   :  { %v885_v17 = vmul.f32 1.0614054, %v1969_v15  ;;  %v2006_v43 = vand.u32 2147483647, %v1992_v0  ;;  %1261 = vpow2.f32 %v1049_v36  ;;  %v2014_v22 = vmul.f32 0.70710677, %v2002_v23 }
 0x1c0   :  { %v913_v25 = vmul.f32 %v897_v18, %v1948_v47  ;;  %v637_v33 = vadd.f32 %v1252_v5, %v636_v54  ;;  %v771_v27 = vmul.f32 %v1256_v39, %v770_v7  ;;  %1263 = vpow2.f32 %v1067_v34 }
 0x1c1   :  { %v901_v45 = vadd.f32 -1.4531521, %v885_v17  ;;  %v602_v59 = vmul.f32 0.3275911, %v2006_v43  ;;  %v1046_v16 = vmul.f32 %v1030_v21, %v598_v32  ;;  %v837_v54 = vand.u32 2147483647, %v1984_v12 }
 0x1c2   :  { %v929_v30 = vadd.f32 1.4214138, %v913_v25  ;;  %v641_v63 = vsel %vm640_vm5, %v1252_v5, %v637_v33  ;;  %v772_v14 = vadd.f32 %v1256_v39, %v771_v27  ;;  %v2026_v57 = vand.u32 2147483647, %v2014_v22 }
 0x1c3   :  { %v917_v9 = vmul.f32 %v901_v45, %v1969_v15  ;;  %v1998_v38 = vsel %vm1971_vm4, %v645_v58, %v641_v63  ;;  %v1260_v5 = vpop.eup %1259  ;;  %v2019_v35 = vadd.f32 1.0, %v602_v59  ;;  %v839_v45 = vand.u32 2147483648, %v1984_v12 }
 0x1c4   :  { %v945_v42 = vmul.f32 %v929_v30, %v1948_v47  ;;  %v873_v44 = vmul.f32 1.0614054, %v1998_v38  ;;  %v776_v48 = vsel %vm775_vm0, %v1256_v39, %v772_v14  ;;  %v829_v18 = vmul.f32 %v1260_v5, %v1984_v12 }
 0x1c5   :  { %v933_v40 = vadd.f32 1.4214138, %v917_v9  ;;  %v2010_v50 = vsel %vm778_vm8, %v780_v19, %v776_v48  ;;  %1265 = vrcp.f32 %v2019_v35  ;;  %vm834_vm9 = vweird.f32 %v1260_v5 }
 0x1c6   :  { %v961_v29 = vadd.f32 -0.28449672, %v945_v42  ;;  %v889_v24 = vadd.f32 -1.4531521, %v873_v44  ;;  %v882_v11 = vmul.f32 1.0614054, %v2010_v50  ;;  %vm833_vm10 = vweird.f32 %v1984_v12 }
 0x1c7   :  { %v949_v41 = vmul.f32 %v933_v40, %v1969_v15  ;;  %v830_v17 = vsub.f32 1.0, %v829_v18  ;;  %v1075_v33 = vmul.f32 1.442695, %v1046_v16  ;;  %vm2034_vm11 = vcmp.eq.f32.partialorder %v837_v54, 8.507059e+37  ;;  %vm835_vm12 = vmor %vm833_vm10, %vm834_vm9 }
 0x1c8   :  { %v977_v3 = vmul.f32 %v961_v29, %v1948_v47  ;;  %v905_v60 = vmul.f32 %v889_v24, %v1998_v38  ;;  %v898_v25 = vadd.f32 -1.4531521, %v882_v11  ;;  %v605_v36 = vmul.f32 0.3275911, %v2026_v57 }
 0x1c9   :  { %v965_v20 = vadd.f32 -0.28449672, %v949_v41  ;;  %v831_v30 = vmul.f32 %v1260_v5, %v830_v17  ;;  %v840_v19 = vor.u32 1.1754944e-38, %v839_v45  ;;  %1267 = vpow2.f32 %v1075_v33 }
 0x1ca   :  { %v993_v2 = vadd.f32 0.2548296, %v977_v3  ;;  %v921_v26 = vadd.f32 1.4214138, %v905_v60  ;;  %v914_v62 = vmul.f32 %v898_v25, %v2010_v50  ;;  %v2044_v12 = vadd.f32 1.0, %v605_v36 }
 0x1cb   :  { %v981_v46 = vmul.f32 %v965_v20, %v1969_v15  ;;  %v832_v27 = vadd.f32 %v1260_v5, %v831_v30  ;;  %vm1177_vm13 = vcmask 257024   ;;  %v657_v11 = vand.u32 2147483647, %v2019_v35 }
 0x1cc   :  { %v1009_v39 = vmul.f32 %v993_v2, %v1948_v47  ;;  %v937_v32 = vmul.f32 %v921_v26, %v1998_v38  ;;  %v1262_v47 = vpop.eup %1261  ;;  %v930_v9 = vadd.f32 1.4214138, %v914_v62  ;;  %1269 = vrcp.f32 %v2044_v12 }
 0x1cd   :  { %v997_v61 = vadd.f32 0.2548296, %v981_v46  ;;  %v1264_v63 = vpop.eup %1263  ;;  %v836_v14 = vsel %vm835_vm12, %v1260_v5, %v832_v27  ;;  %v659_v18 = vand.u32 2147483648, %v2019_v35  ;;  %vm653_vm15 = vweird.f32 %v2019_v35 }
 0x1ce   :  { %v1089_v58 = vmul.f32 %v1956_v55, %v1009_v39  ;;  %v953_v42 = vadd.f32 -0.28449672, %v937_v32  ;;  %v1266_v44 = vpop.eup %1265  ;;  %vm658_vm1 = vcmp.eq.f32.partialorder %v657_v11, 8.507059e+37  ;;  %vm698_vm4 = vweird.f32 %v2044_v12 }
 0x1cf   :  { %v1013_v8 = vmul.f32 %v997_v61, %v1969_v15  ;;  %v946_v15 = vmul.f32 %v930_v9, %v2010_v50  ;;  %v2059_v25 = vpop.eup %1267  ;;  %vm654_vm14 = vweird.f32 %v1266_v44  ;;  %v2069_v61 = vpop.f32.mrf.mxu2  ;;  %v660_v30 = vor.u32 1.1754944e-38, %v659_v18 }
 0x1d0   :  { %v1105_v7 = vsub.f32 1.0, %v1089_v58  ;;  %v969_v40 = vmul.f32 %v953_v42, %v1998_v38  ;;  %vm655_vm2 = vmor %vm653_vm15, %vm654_vm14  ;;  %v2077_v42 = vmul.f32 0.70710677, %v2069_v61  ;;  %vm566_vm7 = vcmp.ge.f32.partialorder %v1944_v51, 0.0 }
 0x1d1   :  { %v1093_v29 = vmul.f32 %v1980_v56, %v1013_v8  ;;  %v962_v24 = vadd.f32 -0.28449672, %v946_v15  ;;  %v649_v56 = vmul.f32 %v1266_v44, %v2019_v35  ;;  %v1021_v35 = vsub.f32 0.0, %v2026_v57 }
 0x1d2   :  { %v1121_v34 = vmul.f32 %v1105_v7, %v1908_v4  ;;  %v985_v41 = vadd.f32 0.2548296, %v969_v40  ;;  %v2048_v4 = vsel %vm2034_vm11, %v840_v19, %v836_v14  ;;  %v1270_v32 = vpop.eup %1269  ;;  %vm554_vm0 = vcmp.ge.f32.partialorder %v1992_v0, 0.0 }
 0x1d3   :  { %v1109_v3 = vsub.f32 1.0, %v1093_v29  ;;  %v978_v2 = vmul.f32 %v962_v24, %v2010_v50  ;;  %v886_v20 = vmul.f32 1.0614054, %v2048_v4  ;;  %v650_v60 = vsub.f32 1.0, %v649_v56 }
 0x1d4   :  { %v1137_v21 = vadd.f32 1.0, %v1121_v34  ;;  %v1001_v59 = vmul.f32 %v985_v41, %v1998_v38  ;;  %v702_v34 = vand.u32 2147483647, %v2044_v12  ;;  %v704_v29 = vand.u32 2147483648, %v2044_v12 }
 0x1d5   :  { %v1125_v5 = vmul.f32 %v1109_v3, %v1913_v37  ;;  %v994_v26 = vadd.f32 0.2548296, %v978_v2  ;;  %v651_v17 = vmul.f32 %v1266_v44, %v650_v60  ;;  %v1018_v37 = vsub.f32 0.0, %v2006_v43 }
 0x1d6   :  { %v1153_v48 = vmul.f32 %v1137_v21, %v1905_v52  ;;  %v1081_v46 = vmul.f32 %v1262_v47, %v1001_v59  ;;  %v902_v52 = vadd.f32 -1.4531521, %v886_v20  ;;  %vm699_vm3 = vweird.f32 %v1270_v32  ;;  %v2099_v59 = vpop.f32.mrf.mxu1 }
 0x1d7   :  { %v1141_v39 = vadd.f32 1.0, %v1125_v5  ;;  %v1010_v58 = vmul.f32 %v994_v26, %v2010_v50  ;;  %v652_v47 = vadd.f32 %v1266_v44, %v651_v17  ;;  %v1034_v21 = vmul.f32 %v1018_v37, %v2006_v43  ;;  %vm700_vm5 = vmor %vm698_vm4, %vm699_vm3 }
 0x1d8   :  { %v1169_v16 = vpack.c.bf16 %v1153_v48, %v1153_v48  ;;  %v1097_v54 = vsub.f32 1.0, %v1081_v46  ;;  %v918_v62 = vmul.f32 %v902_v52, %v2048_v4  ;;  %v2093_v3 = vand.u32 2147483647, %v2077_v42 }
 0x1d9   :  { %v1157_v38 = vmul.f32 %v1141_v39, %v1910_v6  ;;  %v1090_v7 = vmul.f32 %v1264_v63, %v1010_v58  ;;  %v694_v6 = vmul.f32 %v1270_v32, %v2044_v12  ;;  %v656_v50 = vsel %vm655_vm2, %v1266_v44, %v652_v47 }
 0x1da   :  { %1186 = vst.msk [vmem:[%s2432_s4 + $0x20] sm:$0xf] %vm1177_vm13, %v1169_v16  ;;  %v1113_v33 = vmul.f32 %v1097_v54, %v1951_v28  ;;  %v934_v8 = vadd.f32 1.4214138, %v918_v62  ;;  %v2083_v28 = vsel %vm658_vm1, %v660_v30, %v656_v50  ;;  %v611_v5 = vmul.f32 0.3275911, %v2093_v3 }
 0x1db   :  { %v1173_v45 = vpack.c.bf16 %v1157_v38, %v1157_v38  ;;  %v1106_v27 = vsub.f32 1.0, %v1090_v7  ;;  %v695_v63 = vsub.f32 1.0, %v694_v6  ;;  %v874_v36 = vmul.f32 1.0614054, %v2083_v28 }
 0x1dc   :  { %v1129_v9 = vadd.f32 1.0, %v1113_v33  ;;  %v950_v55 = vmul.f32 %v934_v8, %v2048_v4  ;;  %vm703_vm6 = vcmp.eq.f32.partialorder %v702_v34, 8.507059e+37  ;;  %v2108_v11 = vadd.f32 1.0, %v611_v5  ;;  %v2132_v33 = vpop.f32.mrf.mxu2 }
 0x1dd   :  { %1190 = vst.msk [vmem:[%s2432_s4 + $0x30] sm:$0xf] %vm1177_vm13, %v1173_v45  ;;  %v1122_v15 = vmul.f32 %v1106_v27, %v1962_v49  ;;  %v696_v44 = vmul.f32 %v1270_v32, %v695_v63  ;;  %v890_v19 = vadd.f32 -1.4531521, %v874_v36  ;;  %v705_v49 = vor.u32 1.1754944e-38, %v704_v29 }
 0x1de   :  { %v1145_v40 = vmul.f32 %v1129_v9, %v1923_v10  ;;  %v966_v14 = vadd.f32 -0.28449672, %v950_v55  ;;  %v1051_v16 = vmul.f32 1.442695, %v1034_v21  ;;  %v2112_v46 = vmul.f32 0.70710677, %v2099_v59 }
 0x1df   :  { %v1138_v24 = vadd.f32 1.0, %v1122_v15  ;;  %v697_v56 = vadd.f32 %v1270_v32, %v696_v44  ;;  %v906_v10 = vmul.f32 %v890_v19, %v2083_v28  ;;  %1271 = vrcp.f32 %v2108_v11 }
 0x1e0   :  { %v1161_v41 = vpack.c.bf16 %v1145_v40, %v1145_v40  ;;  %v982_v48 = vmul.f32 %v966_v14, %v2048_v4  ;;  %1273 = vpow2.f32 %v1051_v16  ;;  %v2126_v54 = vand.u32 2147483647, %v2112_v46 }
 0x1e1   :  { %v1154_v43 = vmul.f32 %v1138_v24, %v1930_v13  ;;  %v701_v2 = vsel %vm700_vm5, %v1270_v32, %v697_v56  ;;  %v922_v20 = vadd.f32 1.4214138, %v906_v10  ;;  %v1037_v13 = vmul.f32 %v1021_v35, %v2026_v57  ;;  %v2139_v35 = vpop.f32.mrf.mxu3 }
 0x1e2   :  { %1178 = vst.msk [vmem:[%s2432_s4] sm:$0xf] %vm1177_vm13, %v1161_v41  ;;  %v998_v12 = vadd.f32 0.2548296, %v982_v48  ;;  %v2106_v60 = vsel %vm703_vm6, %v705_v49, %v701_v2  ;;  %v582_v62 = vsel %vm566_vm7, 1.0, %v1312_v1  ;;  %v534_v7 = vmul.f32 0.5, %v1932_v31 }
 0x1e3   :  { %v1170_v18 = vpack.c.bf16 %v1154_v43, %v1154_v43  ;;  %v877_v39 = vmul.f32 1.0614054, %v2106_v60  ;;  %v938_v52 = vmul.f32 %v922_v20, %v2083_v28  ;;  %v1057_v32 = vmul.f32 1.442695, %v1037_v13 }
 0x1e4   :  { %v1014_v26 = vmul.f32 %v998_v12, %v2048_v4  ;;  %v606_v51 = vmul.f32 0.3275911, %v2126_v54  ;;  %v570_v0 = vsel %vm554_vm0, 1.0, %v1312_v1  ;;  %v2145_v31 = vmul.f32 0.70710677, %v2132_v33 }
 0x1e5   :  { %1187 = vst.msk [vmem:[%s2432_s4 + $0x24] sm:$0xf] %vm1177_vm13, %v1170_v18  ;;  %v893_v17 = vadd.f32 -1.4531521, %v877_v39  ;;  %v954_v38 = vadd.f32 -0.28449672, %v938_v52  ;;  %v1272_v30 = vpop.eup %1271  ;;  %1275 = vpow2.f32 %v1057_v32  ;;  %vm788_vm10 = vweird.f32 %v2108_v11 }
 0x1e6   :  { %v1094_v37 = vmul.f32 %v2059_v25, %v1014_v26  ;;  %v784_v8 = vmul.f32 %v1272_v30, %v2108_v11  ;;  %v2137_v50 = vadd.f32 1.0, %v606_v51  ;;  %v1274_v63 = vpop.eup %1273  ;;  %v794_v40 = vand.u32 2147483648, %v2108_v11 }
 0x1e7   :  { %v909_v4 = vmul.f32 %v893_v17, %v2106_v60  ;;  %v970_v58 = vmul.f32 %v954_v38, %v2083_v28  ;;  %v2149_v15 = vmul.f32 0.70710677, %v2139_v35  ;;  %vm789_vm8 = vweird.f32 %v1272_v30 }
 0x1e8   :  { %v1110_v57 = vsub.f32 1.0, %v1094_v37  ;;  %v785_v36 = vsub.f32 1.0, %v784_v8  ;;  %1277 = vrcp.f32 %v2137_v50  ;;  %vm557_vm9 = vcmp.ge.f32.partialorder %v2014_v22, 0.0  ;;  %vm790_vm11 = vmor %vm788_vm10, %vm789_vm8 }
 0x1e9   :  { %v925_v47 = vadd.f32 1.4214138, %v909_v4  ;;  %v986_v45 = vadd.f32 0.2548296, %v970_v58  ;;  %v1027_v41 = vsub.f32 0.0, %v2093_v3  ;;  %v522_v49 = vmul.f32 0.5, %v1978_v53 }
 0x1ea   :  { %v1126_v25 = vmul.f32 %v1110_v57, %v582_v62  ;;  %v786_v14 = vmul.f32 %v1272_v30, %v785_v36  ;;  %v2157_v48 = vand.u32 2147483647, %v2145_v31  ;;  %v795_v43 = vor.u32 1.1754944e-38, %v794_v40 }
 0x1eb   :  { %v941_v6 = vmul.f32 %v925_v47, %v2106_v60  ;;  %v1002_v27 = vmul.f32 %v986_v45, %v2083_v28  ;;  %v792_v28 = vand.u32 2147483647, %v2108_v11  ;;  %v1276_v10 = vpop.eup %1275  ;;  %v2165_v2 = vand.u32 2147483647, %v2149_v15 }
 0x1ec   :  { %v1142_v9 = vadd.f32 1.0, %v1126_v25  ;;  %v787_v56 = vadd.f32 %v1272_v30, %v786_v14  ;;  %v612_v18 = vmul.f32 0.3275911, %v2157_v48  ;;  %v573_v39 = vsel %vm557_vm9, 1.0, %v1312_v1 }
 0x1ed   :  { %v957_v55 = vadd.f32 -0.28449672, %v941_v6  ;;  %v1082_v29 = vmul.f32 %v1274_v63, %v1002_v27  ;;  %vm793_vm12 = vcmp.eq.f32.partialorder %v792_v28, 8.507059e+37  ;;  %v1043_v17 = vmul.f32 %v1027_v41, %v2093_v3  ;;  %v2211_v41 = vpop.f32.mrf.mxu1 }
 0x1ee   :  { %v1158_v34 = vmul.f32 %v1142_v9, %v534_v7  ;;  %v1278_v12 = vpop.eup %1277  ;;  %v791_v11 = vsel %vm790_vm11, %v1272_v30, %v787_v56  ;;  %v2177_v37 = vadd.f32 1.0, %v612_v18  ;;  %v1022_v4 = vsub.f32 0.0, %v2126_v54 }
 0x1ef   :  { %v973_v44 = vmul.f32 %v957_v55, %v2106_v60  ;;  %v1098_v21 = vsub.f32 1.0, %v1082_v29  ;;  %v2172_v26 = vsel %vm793_vm12, %v795_v43, %v791_v11  ;;  %v709_v53 = vmul.f32 %v1278_v12, %v2137_v50 }
 0x1f0   :  { %v1174_v19 = vpack.c.bf16 %v1158_v34, %v1158_v34  ;;  %v883_v13 = vmul.f32 1.0614054, %v2172_v26  ;;  %v615_v57 = vmul.f32 0.3275911, %v2165_v2  ;;  %v719_v32 = vand.u32 2147483648, %v2137_v50 }
 0x1f1   :  { %v989_v24 = vadd.f32 0.2548296, %v973_v44  ;;  %v1114_v5 = vmul.f32 %v1098_v21, %v570_v0  ;;  %v710_v38 = vsub.f32 1.0, %v709_v53  ;;  %1279 = vrcp.f32 %v2177_v37 }
 0x1f2   :  { %1191 = vst.msk [vmem:[%s2432_s4 + $0x34] sm:$0xf] %vm1177_vm13, %v1174_v19  ;;  %v899_v22 = vadd.f32 -1.4531521, %v883_v13  ;;  %vm714_vm14 = vweird.f32 %v1278_v12  ;;  %v717_v51 = vand.u32 2147483647, %v2137_v50  ;;  %vm713_vm1 = vweird.f32 %v2137_v50  ;;  %v2200_v50 = vpop.f32.mrf.mxu0 }
 0x1f3   :  { %v1005_v20 = vmul.f32 %v989_v24, %v2106_v60  ;;  %v1130_v16 = vadd.f32 1.0, %v1114_v5  ;;  %v711_v47 = vmul.f32 %v1278_v12, %v710_v38  ;;  %v2185_v25 = vadd.f32 1.0, %v615_v57  ;;  %vm715_vm2 = vmor %vm713_vm1, %vm714_vm14 }
 0x1f4   :  { %v915_v30 = vmul.f32 %v899_v22, %v2172_v26  ;;  %v525_v45 = vmul.f32 0.5, %v2002_v23  ;;  %vm563_vm15 = vcmp.ge.f32.partialorder %v2077_v42, 0.0  ;;  %v1069_v9 = vmul.f32 1.442695, %v1043_v17 }
 0x1f5   :  { %v1085_v52 = vmul.f32 %v1276_v10, %v1005_v20  ;;  %v1146_v60 = vmul.f32 %v1130_v16, %v522_v49  ;;  %v712_v7 = vadd.f32 %v1278_v12, %v711_v47  ;;  %v720_v0 = vor.u32 1.1754944e-38, %v719_v32 }
 0x1f6   :  { %v931_v8 = vadd.f32 1.4214138, %v915_v30  ;;  %vm718_vm3 = vcmp.eq.f32.partialorder %v717_v51, 8.507059e+37  ;;  %v1038_v63 = vmul.f32 %v1022_v4, %v2126_v54  ;;  %1281 = vrcp.f32 %v2185_v25 }
 0x1f7   :  { %v1101_v58 = vsub.f32 1.0, %v1085_v52  ;;  %v1162_v62 = vpack.c.bf16 %v1146_v60, %v1146_v60  ;;  %v716_v27 = vsel %vm715_vm2, %v1278_v12, %v712_v7  ;;  %v1280_v55 = vpop.eup %1279  ;;  %v1028_v29 = vsub.f32 0.0, %v2157_v48 }
 0x1f8   :  { %v947_v23 = vmul.f32 %v931_v8, %v2172_v26  ;;  %v2197_v34 = vsel %vm718_vm3, %v720_v0, %v716_v27  ;;  %v2203_v40 = vmul.f32 0.5, %v2069_v61  ;;  %v579_v44 = vsel %vm563_vm15, 1.0, %v1312_v1 }
 0x1f9   :  { %v1117_v3 = vmul.f32 %v1101_v58, %v573_v39  ;;  %1179 = vst.msk [vmem:[%s2432_s4 + $0x4] sm:$0xf] %vm1177_vm13, %v1162_v62  ;;  %v878_v54 = vmul.f32 1.0614054, %v2197_v34  ;;  %v799_v14 = vmul.f32 %v1280_v55, %v2177_v37  ;;  %1283 = vpow2.f32 %v1069_v9 }
 0x1fa   :  { %v963_v19 = vadd.f32 -0.28449672, %v947_v23  ;;  %v807_v21 = vand.u32 2147483647, %v2177_v37  ;;  %v809_v61 = vand.u32 2147483648, %v2177_v37  ;;  %vm804_vm4 = vweird.f32 %v1280_v55 }
 0x1fb   :  { %v1133_v6 = vadd.f32 1.0, %v1117_v3  ;;  %v894_v24 = vadd.f32 -1.4531521, %v878_v54  ;;  %v800_v56 = vsub.f32 1.0, %v799_v14  ;;  %v2215_v10 = vmul.f32 0.70710677, %v2200_v50 }
 0x1fc   :  { %v979_v42 = vmul.f32 %v963_v19, %v2172_v26  ;;  %v1059_v49 = vmul.f32 1.442695, %v1038_v63  ;;  %v1044_v5 = vmul.f32 %v1028_v29, %v2157_v48  ;;  %v1282_v43 = vpop.eup %1281  ;;  %v2228_v18 = vmul.f32 0.70710677, %v2211_v41 }
 0x1fd   :  { %v1149_v36 = vmul.f32 %v1133_v6, %v525_v45  ;;  %v910_v12 = vmul.f32 %v894_v24, %v2197_v34  ;;  %v801_v20 = vmul.f32 %v1280_v55, %v800_v56  ;;  %v2225_v11 = vand.u32 2147483647, %v2215_v10 }
 0x1fe   :  { %v995_v16 = vadd.f32 0.2548296, %v979_v42  ;;  %vm558_vm5 = vcmp.ge.f32.partialorder %v2112_v46, 0.0  ;;  %vm803_vm6 = vweird.f32 %v2177_v37  ;;  %vm2232_vm7 = vcmp.eq.f32.partialorder %v807_v21, 8.507059e+37 }
 0x1ff   :  { %v1165_v28 = vpack.c.bf16 %v1149_v36, %v1149_v36  ;;  %v844_v48 = vmul.f32 %v1282_v43, %v2185_v25  ;;  %v926_v53 = vadd.f32 1.4214138, %v910_v12  ;;  %v802_v52 = vadd.f32 %v1280_v55, %v801_v20  ;;  %v1284_v60 = vpop.eup %1283  ;;  %vm805_vm0 = vmor %vm803_vm6, %vm804_vm4 }
 0x200   :  { %v810_v13 = vor.u32 1.1754944e-38, %v809_v61  ;;  %v603_v17 = vmul.f32 0.3275911, %v2225_v11  ;;  %v1011_v38 = vmul.f32 %v995_v16, %v2172_v26  ;;  %v852_v57 = vand.u32 2147483647, %v2185_v25 }
 0x201   :  { %1182 = vst.msk [vmem:[%s2432_s4 + $0x10] sm:$0xf] %vm1177_vm13, %v1165_v28  ;;  %v845_v4 = vsub.f32 1.0, %v844_v48  ;;  %v854_v37 = vand.u32 2147483648, %v2185_v25  ;;  %v942_v58 = vmul.f32 %v926_v53, %v2197_v34  ;;  %v806_v22 = vsel %vm805_vm0, %v1280_v55, %v802_v52 }
 0x202   :  { %v2243_v32 = vadd.f32 1.0, %v603_v17  ;;  %v2246_v62 = vand.u32 2147483647, %v2228_v18  ;;  %v1091_v47 = vmul.f32 %v1284_v60, %v1011_v38  ;;  %v2250_v51 = vsel %vm2232_vm7, %v810_v13, %v806_v22 }
 0x203   :  { %v846_v26 = vmul.f32 %v1282_v43, %v845_v4  ;;  %vm849_vm8 = vweird.f32 %v1282_v43  ;;  %v958_v3 = vadd.f32 -0.28449672, %v942_v58  ;;  %v884_v30 = vmul.f32 1.0614054, %v2250_v51 }
 0x204   :  { %v1031_v45 = vsub.f32 0.0, %v2165_v2  ;;  %1285 = vrcp.f32 %v2243_v32  ;;  %v1107_v7 = vsub.f32 1.0, %v1091_v47  ;;  %vm848_vm9 = vweird.f32 %v2185_v25 }
 0x205   :  { %1287 = vpow2.f32 %v1059_v49  ;;  %v847_v6 = vadd.f32 %v1282_v43, %v846_v26  ;;  %v974_v8 = vmul.f32 %v958_v3, %v2197_v34  ;;  %v900_v9 = vadd.f32 -1.4531521, %v884_v30  ;;  %vm850_vm10 = vmor %vm848_vm9, %vm849_vm8  ;;  %v2273_v49 = vpop.f32.mrf.mxu3 }
 0x206   :  { %v855_v0 = vor.u32 1.1754944e-38, %v854_v37  ;;  %v607_v27 = vmul.f32 0.3275911, %v2246_v62  ;;  %v1123_v63 = vmul.f32 %v1107_v7, %v579_v44  ;;  %v1071_v55 = vmul.f32 1.442695, %v1044_v5 }
 0x207   :  { %v851_v36 = vsel %vm850_vm10, %v1282_v43, %v847_v6  ;;  %vm853_vm11 = vcmp.eq.f32.partialorder %v852_v57, 8.507059e+37  ;;  %v990_v23 = vadd.f32 0.2548296, %v974_v8  ;;  %v916_v29 = vmul.f32 %v900_v9, %v2250_v51 }
 0x208   :  { %v2259_v54 = vsel %vm853_vm11, %v855_v0, %v851_v36  ;;  %v1047_v14 = vmul.f32 %v1031_v45, %v2165_v2  ;;  %v1139_v28 = vadd.f32 1.0, %v1123_v63  ;;  %v526_v25 = vmul.f32 0.5, %v2099_v59 }
 0x209   :  { %v887_v19 = vmul.f32 1.0614054, %v2259_v54  ;;  %v2264_v21 = vadd.f32 1.0, %v607_v27  ;;  %v574_v44 = vsel %vm558_vm5, 1.0, %v1312_v1  ;;  %v1006_v56 = vmul.f32 %v990_v23, %v2197_v34 }
 0x20a   :  { %v1286_v24 = vpop.eup %1285  ;;  %v2271_v61 = vmul.f32 0.5, %v2132_v33  ;;  %v932_v42 = vadd.f32 1.4214138, %v916_v29  ;;  %v1155_v59 = vmul.f32 %v1139_v28, %v2203_v40  ;;  %1289 = vpow2.f32 %v1071_v55 }
 0x20b   :  { %v1288_v2 = vpop.eup %1287  ;;  %v903_v5 = vadd.f32 -1.4531521, %v887_v19  ;;  %v664_v43 = vmul.f32 %v1286_v24, %v2243_v32  ;;  %v1077_v46 = vmul.f32 1.442695, %v1047_v14  ;;  %1291 = vrcp.f32 %v2264_v21 }
 0x20c   :  { %v1086_v12 = vmul.f32 %v1288_v2, %v1006_v56  ;;  %v948_v20 = vmul.f32 %v932_v42, %v2250_v51  ;;  %v1171_v34 = vpack.c.bf16 %v1155_v59, %v1155_v59  ;;  %v2281_v39 = vmul.f32 0.70710677, %v2273_v49 }
 0x20d   :  { %v919_v33 = vmul.f32 %v903_v5, %v2259_v54  ;;  %v665_v16 = vsub.f32 1.0, %v664_v43  ;;  %v674_v40 = vand.u32 2147483648, %v2243_v32  ;;  %v1019_v52 = vsub.f32 0.0, %v2225_v11 }
 0x20e   :  { %v1102_v48 = vsub.f32 1.0, %v1086_v12  ;;  %v964_v53 = vadd.f32 -0.28449672, %v948_v20  ;;  %1188 = vst.msk [vmem:[%s2432_s4 + $0x28] sm:$0xf] %vm1177_vm13, %v1171_v34  ;;  %vm669_vm12 = vweird.f32 %v1286_v24  ;;  %vm564_vm14 = vcmp.ge.f32.partialorder %v2145_v31, 0.0 }
 0x20f   :  { %v935_v13 = vadd.f32 1.4214138, %v919_v33  ;;  %v666_v17 = vmul.f32 %v1286_v24, %v665_v16  ;;  %v672_v60 = vand.u32 2147483647, %v2243_v32  ;;  %1293 = vpow2.f32 %v1077_v46 }
 0x210   :  { %v1118_v38 = vmul.f32 %v1102_v48, %v574_v44  ;;  %v980_v4 = vmul.f32 %v964_v53, %v2250_v51  ;;  %v1290_v57 = vpop.eup %1289  ;;  %vm668_vm15 = vweird.f32 %v2243_v32  ;;  %v2295_v22 = vand.u32 2147483647, %v2281_v39 }
 0x211   :  { %v951_v37 = vmul.f32 %v935_v13, %v2259_v54  ;;  %v667_v58 = vadd.f32 %v1286_v24, %v666_v17  ;;  %v1292_v47 = vpop.eup %1291  ;;  %vm670_vm1 = vmor %vm668_vm15, %vm669_vm12  ;;  %v675_v30 = vor.u32 1.1754944e-38, %v674_v40  ;;  %v1035_v45 = vmul.f32 %v1019_v52, %v2225_v11  ;;  %v2306_v11 = vpop.f32.mrf.mxu0 }
 0x212   :  { %v1134_v26 = vadd.f32 1.0, %v1118_v38  ;;  %v996_v3 = vadd.f32 0.2548296, %v980_v4  ;;  %vm673_vm2 = vcmp.eq.f32.partialorder %v672_v60, 8.507059e+37  ;;  %v724_v8 = vmul.f32 %v1292_v47, %v2264_v21 }
 0x213   :  { %v967_v7 = vadd.f32 -0.28449672, %v951_v37  ;;  %v671_v6 = vsel %vm670_vm1, %v1286_v24, %v667_v58  ;;  %v616_v32 = vmul.f32 0.3275911, %v2295_v22  ;;  %v732_v23 = vand.u32 2147483647, %v2264_v21 }
 0x214   :  { %v1150_v9 = vmul.f32 %v1134_v26, %v526_v25  ;;  %v1012_v0 = vmul.f32 %v996_v3, %v2250_v51  ;;  %v2300_v27 = vsel %vm673_vm2, %v675_v30, %v671_v6  ;;  %v725_v36 = vsub.f32 1.0, %v724_v8 }
 0x215   :  { %v983_v63 = vmul.f32 %v967_v7, %v2259_v54  ;;  %v875_v55 = vmul.f32 1.0614054, %v2300_v27  ;;  %v1294_v29 = vpop.eup %1293  ;;  %v734_v25 = vand.u32 2147483648, %v2264_v21  ;;  %v2309_v19 = vadd.f32 1.0, %v616_v32 }
 0x216   :  { %v1166_v14 = vpack.c.bf16 %v1150_v9, %v1150_v9  ;;  %v1092_v28 = vmul.f32 %v1290_v57, %v1012_v0  ;;  %v726_v44 = vmul.f32 %v1292_v47, %v725_v36  ;;  %vm729_vm3 = vweird.f32 %v1292_v47 }
 0x217   :  { %v999_v51 = vadd.f32 0.2548296, %v983_v63  ;;  %v891_v24 = vadd.f32 -1.4531521, %v875_v55  ;;  %v580_v56 = vsel %vm564_vm14, 1.0, %v1312_v1  ;;  %1295 = vrcp.f32 %v2309_v19 }
 0x218   :  { %1183 = vst.msk [vmem:[%s2432_s4 + $0x14] sm:$0xf] %vm1177_vm13, %v1166_v14  ;;  %v1108_v42 = vsub.f32 1.0, %v1092_v28  ;;  %v2320_v2 = vmul.f32 0.70710677, %v2306_v11  ;;  %v727_v43 = vadd.f32 %v1292_v47, %v726_v44  ;;  %vm728_vm4 = vweird.f32 %v2264_v21 }
 0x219   :  { %v1015_v59 = vmul.f32 %v999_v51, %v2259_v54  ;;  %v907_v5 = vmul.f32 %v891_v24, %v2300_v27  ;;  %vm567_vm5 = vcmp.ge.f32.partialorder %v2149_v15, 0.0  ;;  %v1053_v20 = vmul.f32 1.442695, %v1035_v45  ;;  %vm730_vm6 = vmor %vm728_vm4, %vm729_vm3 }
 0x21a   :  { %v1124_v12 = vmul.f32 %v1108_v42, %v580_v56  ;;  %v735_v31 = vor.u32 1.1754944e-38, %v734_v25  ;;  %v731_v33 = vsel %vm730_vm6, %v1292_v47, %v727_v43  ;;  %vm733_vm7 = vcmp.eq.f32.partialorder %v732_v23, 8.507059e+37  ;;  %v2341_v47 = vpop.f32.mrf.mxu1 }
 0x21b   :  { %v1095_v46 = vmul.f32 %v1294_v29, %v1015_v59  ;;  %v923_v34 = vadd.f32 1.4214138, %v907_v5  ;;  %v1023_v54 = vsub.f32 0.0, %v2246_v62  ;;  %v2330_v53 = vand.u32 2147483647, %v2320_v2 }
 0x21c   :  { %v1140_v16 = vadd.f32 1.0, %v1124_v12  ;;  %v2326_v48 = vsel %vm733_vm7, %v735_v31, %v731_v33  ;;  %v535_v21 = vmul.f32 0.5, %v2139_v35  ;;  %v583_v38 = vsel %vm567_vm5, 1.0, %v1312_v1 }
 0x21d   :  { %v1111_v40 = vsub.f32 1.0, %v1095_v46  ;;  %v939_v52 = vmul.f32 %v923_v34, %v2300_v27  ;;  %v879_v13 = vmul.f32 1.0614054, %v2326_v48  ;;  %v1296_v17 = vpop.eup %1295  ;;  %1297 = vpow2.f32 %v1053_v20 }
 0x21e   :  { %v1156_v60 = vmul.f32 %v1140_v16, %v2271_v61  ;;  %v604_v4 = vmul.f32 0.3275911, %v2330_v53  ;;  %v859_v35 = vmul.f32 %v1296_v17, %v2309_v19  ;;  %v1039_v3 = vmul.f32 %v1023_v54, %v2246_v62 }
 0x21f   :  { %v1127_v57 = vmul.f32 %v1111_v40, %v583_v38  ;;  %v955_v37 = vadd.f32 -0.28449672, %v939_v52  ;;  %v895_v58 = vadd.f32 -1.4531521, %v879_v13  ;;  %v867_v30 = vand.u32 2147483647, %v2309_v19 }
 0x220   :  { %v1172_v26 = vpack.c.bf16 %v1156_v60, %v1156_v60  ;;  %v2345_v61 = vadd.f32 1.0, %v604_v4  ;;  %v860_v6 = vsub.f32 1.0, %v859_v35  ;;  %vm864_vm0 = vweird.f32 %v1296_v17 }
 0x221   :  { %v1143_v45 = vadd.f32 1.0, %v1127_v57  ;;  %v971_v15 = vmul.f32 %v955_v37, %v2300_v27  ;;  %v911_v7 = vmul.f32 %v895_v58, %v2326_v48  ;;  %v869_v8 = vand.u32 2147483648, %v2309_v19 }
 0x222   :  { %1189 = vst.msk [vmem:[%s2432_s4 + $0x2c] sm:$0xf] %vm1177_vm13, %v1172_v26  ;;  %1299 = vrcp.f32 %v2345_v61  ;;  %v2356_v62 = vmul.f32 0.70710677, %v2341_v47  ;;  %v861_v63 = vmul.f32 %v1296_v17, %v860_v6  ;;  %v1061_v36 = vmul.f32 1.442695, %v1039_v3 }
 0x223   :  { %v1159_v9 = vmul.f32 %v1143_v45, %v535_v21  ;;  %v987_v0 = vadd.f32 0.2548296, %v971_v15  ;;  %v927_v32 = vadd.f32 1.4214138, %v911_v7  ;;  %v1298_v55 = vpop.eup %1297  ;;  %vm863_vm8 = vweird.f32 %v2309_v19 }
 0x224   :  { %v862_v28 = vadd.f32 %v1296_v17, %v861_v63  ;;  %vm555_vm9 = vcmp.ge.f32.partialorder %v2215_v10, 0.0  ;;  %vm865_vm10 = vmor %vm863_vm8, %vm864_vm0  ;;  %v870_v25 = vor.u32 1.1754944e-38, %v869_v8  ;;  %v1032_v51 = vsub.f32 0.0, %v2295_v22 }
 0x225   :  { %v1175_v23 = vpack.c.bf16 %v1159_v9, %v1159_v9  ;;  %v1003_v29 = vmul.f32 %v987_v0, %v2300_v27  ;;  %v943_v14 = vmul.f32 %v927_v32, %v2326_v48  ;;  %v2365_v24 = vand.u32 2147483647, %v2356_v62 }
 0x226   :  { %v866_v44 = vsel %vm865_vm10, %v1296_v17, %v862_v28  ;;  %vm868_vm11 = vcmp.eq.f32.partialorder %v867_v30, 8.507059e+37  ;;  %1301 = vpow2.f32 %v1061_v36  ;;  %v523_v31 = vmul.f32 0.5, %v2200_v50 }
 0x227   :  { %1192 = vst.msk [vmem:[%s2432_s4 + $0x38] sm:$0xf] %vm1177_vm13, %v1175_v23  ;;  %v1083_v19 = vmul.f32 %v1298_v55, %v1003_v29  ;;  %v959_v27 = vadd.f32 -0.28449672, %v943_v14  ;;  %v871_v42 = vsel %vm868_vm11, %v870_v25, %v866_v44  ;;  %v608_v59 = vmul.f32 0.3275911, %v2365_v24 }
 0x228   :  { %v1300_v56 = vpop.eup %1299  ;;  %v888_v12 = vmul.f32 1.0614054, %v871_v42  ;;  %v571_v46 = vsel %vm555_vm9, 1.0, %v1312_v1  ;;  %v1048_v34 = vmul.f32 %v1032_v51, %v2295_v22  ;;  %v687_v52 = vand.u32 2147483647, %v2345_v61 }
 0x229   :  { %v1099_v5 = vsub.f32 1.0, %v1083_v19  ;;  %v975_v43 = vmul.f32 %v959_v27, %v2326_v48  ;;  %v679_v20 = vmul.f32 %v1300_v56, %v2345_v61  ;;  %v2379_v33 = vadd.f32 1.0, %v608_v59 }
 0x22a   :  { %v904_v21 = vadd.f32 -1.4531521, %v888_v12  ;;  %vm684_vm12 = vweird.f32 %v1300_v56  ;;  %v689_v13 = vand.u32 2147483648, %v2345_v61  ;;  %vm559_vm14 = vcmp.ge.f32.partialorder %v2228_v18, 0.0 }
 0x22b   :  { %v1115_v16 = vmul.f32 %v1099_v5, %v571_v46  ;;  %v991_v54 = vadd.f32 0.2548296, %v975_v43  ;;  %v680_v40 = vsub.f32 1.0, %v679_v20  ;;  %1303 = vrcp.f32 %v2379_v33 }
 0x22c   :  { %v920_v10 = vmul.f32 %v904_v21, %v871_v42  ;;  %v1302_v38 = vpop.eup %1301  ;;  %vm683_vm15 = vweird.f32 %v2345_v61  ;;  %v1079_v58 = vmul.f32 1.442695, %v1048_v34  ;;  %vm688_vm2 = vcmp.eq.f32.partialorder %v687_v52, 8.507059e+37 }
 0x22d   :  { %v1131_v50 = vadd.f32 1.0, %v1115_v16  ;;  %v1007_v17 = vmul.f32 %v991_v54, %v2326_v48  ;;  %v681_v60 = vmul.f32 %v1300_v56, %v680_v40  ;;  %vm685_vm1 = vmor %vm683_vm15, %vm684_vm12  ;;  %v690_v35 = vor.u32 1.1754944e-38, %v689_v13 }
 0x22e   :  { %v936_v57 = vadd.f32 1.4214138, %v920_v10  ;;  %v575_v15 = vsel %vm559_vm14, 1.0, %v1312_v1  ;;  %v1020_v18 = vsub.f32 0.0, %v2330_v53  ;;  %v527_v0 = vmul.f32 0.5, %v2211_v41 }
 0x22f   :  { %v1147_v22 = vmul.f32 %v1131_v50, %v523_v31  ;;  %v1087_v4 = vmul.f32 %v1302_v38, %v1007_v17  ;;  %v682_v37 = vadd.f32 %v1300_v56, %v681_v60  ;;  %1305 = vpow2.f32 %v1079_v58 }
 0x230   :  { %v952_v30 = vmul.f32 %v936_v57, %v871_v42  ;;  %v1036_v23 = vmul.f32 %v1020_v18, %v2330_v53  ;;  %v747_v29 = vand.u32 2147483647, %v2379_v33  ;;  %v749_v14 = vand.u32 2147483648, %v2379_v33 }
 0x231   :  { %v1163_v26 = vpack.c.bf16 %v1147_v22, %v1147_v22  ;;  %v1103_v3 = vsub.f32 1.0, %v1087_v4  ;;  %v686_v48 = vsel %vm685_vm1, %v1300_v56, %v682_v37  ;;  %v1304_v45 = vpop.eup %1303  ;;  %vm743_vm4 = vweird.f32 %v2379_v33 }
 0x232   :  { %v691_v7 = vsel %vm688_vm2, %v690_v35, %v686_v48  ;;  %v968_v6 = vadd.f32 -0.28449672, %v952_v30  ;;  %v739_v9 = vmul.f32 %v1304_v45, %v2379_v33  ;;  %vm744_vm3 = vweird.f32 %v1304_v45 }
 0x233   :  { %1180 = vst.msk [vmem:[%s2432_s4 + $0x8] sm:$0xf] %vm1177_vm13, %v1163_v26  ;;  %v1119_v61 = vmul.f32 %v1103_v3, %v575_v15  ;;  %v876_v8 = vmul.f32 1.0614054, %v691_v7  ;;  %vm568_vm5 = vcmp.ge.f32.partialorder %v2281_v39, 0.0  ;;  %vm745_vm6 = vmor %vm743_vm4, %vm744_vm3  ;;  %v750_v53 = vor.u32 1.1754944e-38, %v749_v14 }
 0x234   :  { %v984_v63 = vmul.f32 %v968_v6, %v871_v42  ;;  %v740_v36 = vsub.f32 1.0, %v739_v9  ;;  %v1055_v5 = vmul.f32 1.442695, %v1036_v23  ;;  %vm748_vm7 = vcmp.eq.f32.partialorder %v747_v29, 8.507059e+37 }
 0x235   :  { %v1135_v32 = vadd.f32 1.0, %v1119_v61  ;;  %v892_v55 = vadd.f32 -1.4531521, %v876_v8  ;;  %v1306_v59 = vpop.eup %1305  ;;  %v584_v39 = vsel %vm568_vm5, 1.0, %v1312_v1  ;;  %v536_v52 = vmul.f32 0.5, %v2273_v49 }
 0x236   :  { %v1000_v25 = vadd.f32 0.2548296, %v984_v63  ;;  %v741_v19 = vmul.f32 %v1304_v45, %v740_v36  ;;  %1307 = vpow2.f32 %v1055_v5  ;;  %vm556_vm0 = vcmp.ge.f32.partialorder %v2320_v2, 0.0 }
 0x237   :  { %v1151_v28 = vmul.f32 %v1135_v32, %v527_v0  ;;  %v908_v51 = vmul.f32 %v892_v55, %v691_v7  ;;  %v572_v35 = vsel %vm556_vm0, 1.0, %v1312_v1  ;;  %v524_v30 = vmul.f32 0.5, %v2306_v11 }
 0x238   :  { %v1016_v41 = vmul.f32 %v1000_v25, %v871_v42  ;;  %v742_v56 = vadd.f32 %v1304_v45, %v741_v19  ;;  %v1024_v42 = vsub.f32 0.0, %v2365_v24  ;;  %vm560_vm8 = vcmp.ge.f32.partialorder %v2356_v62, 0.0 }
 0x239   :  { %v1167_v27 = vpack.c.bf16 %v1151_v28, %v1151_v28  ;;  %v924_v44 = vadd.f32 1.4214138, %v908_v51  ;;  %v576_v8 = vsel %vm560_vm8, 1.0, %v1312_v1  ;;  %v528_v11 = vmul.f32 0.5, %v2341_v47 }
 0x23a   :  { %v1096_v43 = vmul.f32 %v1306_v59, %v1016_v41  ;;  %v746_v20 = vsel %vm745_vm6, %v1304_v45, %v742_v56  ;;  %v1040_v40 = vmul.f32 %v1024_v42, %v2365_v24 }
 0x23b   :  { %1184 = vst.msk [vmem:[%s2432_s4 + $0x18] sm:$0xf] %vm1177_vm13, %v1167_v27  ;;  %v940_v12 = vmul.f32 %v924_v44, %v691_v7  ;;  %v751_v31 = vsel %vm748_vm7, %v750_v53, %v746_v20 }
 0x23c   :  { %v1112_v46 = vsub.f32 1.0, %v1096_v43  ;;  %v880_v33 = vmul.f32 1.0614054, %v751_v31  ;;  %v1308_v22 = vpop.eup %1307  ;;  %v1063_v4 = vmul.f32 1.442695, %v1040_v40 }
 0x23d   :  { %v956_v34 = vadd.f32 -0.28449672, %v940_v12 }
 0x23e   :  { %v1128_v16 = vmul.f32 %v1112_v46, %v584_v39  ;;  %v896_v21 = vadd.f32 -1.4531521, %v880_v33  ;;  %1309 = vpow2.f32 %v1063_v4 }
 0x23f   :  { %v972_v54 = vmul.f32 %v956_v34, %v691_v7 }
 0x240   :  { %v1144_v13 = vadd.f32 1.0, %v1128_v16  ;;  %v912_v17 = vmul.f32 %v896_v21, %v751_v31 }
 0x241   :  { %v988_v50 = vadd.f32 0.2548296, %v972_v54 }
 0x242   :  { %v1160_v10 = vmul.f32 %v1144_v13, %v536_v52  ;;  %v928_v38 = vadd.f32 1.4214138, %v912_v17 }
 0x243   :  { %v1004_v60 = vmul.f32 %v988_v50, %v691_v7 }
 0x244   :  { %v1176_v57 = vpack.c.bf16 %v1160_v10, %v1160_v10  ;;  %v944_v58 = vmul.f32 %v928_v38, %v751_v31  ;;  %v1310_v7 = vpop.eup %1309 }
 0x245   :  { %v1084_v37 = vmul.f32 %v1308_v22, %v1004_v60 }
 0x246   :  { %1193 = vst.msk [vmem:[%s2432_s4 + $0x3c] sm:$0xf] %vm1177_vm13, %v1176_v57  ;;  %v960_v49 = vadd.f32 -0.28449672, %v944_v58 }
 0x247   :  { %v1100_v24 = vsub.f32 1.0, %v1084_v37 }
 0x248   :  { %v976_v3 = vmul.f32 %v960_v49, %v751_v31 }
 0x249   :  { %v1116_v26 = vmul.f32 %v1100_v24, %v572_v35 }
 0x24a   :  { %v992_v45 = vadd.f32 0.2548296, %v976_v3 }
 0x24b   :  { %v1132_v48 = vadd.f32 1.0, %v1116_v26 }
 0x24c   :  { %v1008_v2 = vmul.f32 %v992_v45, %v751_v31 }
 0x24d   :  { %v1148_v15 = vmul.f32 %v1132_v48, %v524_v30 }
 0x24e   :  { %v1088_v61 = vmul.f32 %v1310_v7, %v1008_v2 }
 0x24f   :  { %v1164_v18 = vpack.c.bf16 %v1148_v15, %v1148_v15 }
 0x250   :  { %v1104_v6 = vsub.f32 1.0, %v1088_v61 }
 0x251   :  { %1181 = vst.msk [vmem:[%s2432_s4 + $0xc] sm:$0xf] %vm1177_vm13, %v1164_v18 }
 0x252   :  { %v1120_v9 = vmul.f32 %v1104_v6, %v576_v8 }
 0x254   :  { %v1136_v0 = vadd.f32 1.0, %v1120_v9 }
 0x256   :  { %v1152_v32 = vmul.f32 %v1136_v0, %v528_v11 }
 0x258   :  { %v1168_v63 = vpack.c.bf16 %v1152_v32, %v1152_v32 }
 0x25a   :  { %1185 = vst.msk [vmem:[%s2432_s4 + $0x1c] sm:$0xf] %vm1177_vm13, %v1168_v63 }

// kernel: cross_msab_forward.19
= control target key start
LH: loop header
LB: loop body
LE: loop exit
PB: predicated region body
PF: predicated region fallthrough
CT: control target
= control target key end

     0   :  { %s1498_s15 = smov 0   ;;  %s1500_s16 = smov 0   ;;  %s2255_s0 = inlined_call_operand.vmem [shape: bf16[2,10,10,32], index: 0, kind: input, shape index: {}, may-alias: {0,1,2}]   ;;  %s2256_s1 = inlined_call_operand.vmem [shape: bf16[2,10,10,32], index: 1, kind: input, shape index: {}, may-alias: {0,1,2}]   ;;  %s2257_s2 = inlined_call_operand.vmem [shape: bf16[2,10,10,32], index: 2, kind: input, shape index: {}, may-alias: {0,1,2}]   ;;  %s2258_s3 = inlined_call_operand.vmem [shape: f32[3,3,32], index: 3, kind: input, shape index: {}]   ;;  %s2259_s4 = inlined_call_operand.vmem [shape: bf16[2,8,8,32], index: 4, kind: output, shape index: {}]  }
   0x1   :  { %s1502_s17 = smov 0  }
   0x2 LB: > { %s26_s18 = sadd.s32 1, %s1466_s16  ;;  %p1375_p0 = scmp.ge.s32.totalorder %s1470_s17, 1  ;;  %s1470_s17 = sphi %s1502_s17, %s14_s17   ;;  %s1466_s16 = sphi %s1500_s16, %s2289_s16   ;;  %s1462_s15 = sphi %s1498_s15, %s2288_s15  }
   0x3   : > { %p28_p1 = scmp.ge.s32.totalorder %s26_s18, 2  ;;  %p246_p2 = scmp.lt.s32.totalorder %s1470_s17, 3 }
   0x5   : > { %s2291_s18 = smov (%p28_p1, %s26_s18), 0  ;;  %p247_p3 = pnand %p1375_p0, %p246_p2 }
   0x6   : > { %p315_p4 = scmp.lt.s32.totalorder (!%p247_p3), %s1462_s15, 1 }
   0x7   : > { %250 = sbr.rel (%p247_p3) target bundleno = 191 (0xbf), region = 36 }
   0xc   : > { %s2293_s15 = smov (!%p315_p4, %s1462_s15), 1  ;;  %v408_v0 = vld [vmem:[%s2258_s3] sm:$0x7]  ;;  %v1527_v1 = vld [vmem:[%s2258_s3 + $0x4] sm:$0x7]  ;;  %vm461_vm0 = vcmask 1046528  }
   0xd   : > { %s1522_s21 = smul.u32 80, %s2293_s15  ;;  %v1534_v2 = vperm.slane %v408_v0, 0  ;;  %v428_v3 = vperm.slane %v408_v0, 1  ;;  %v1536_v4 = vperm.slane %v408_v0, 2  ;;  %v1541_v7 = vperm.slane %v1527_v1, 0  ;;  %s1387_s11 = sshll.u32 %s2293_s15, 5 }
   0xe   : > { %v1544_v8 = vperm.slane %v1527_v1, 1  ;;  %vm535_vm1 = vcmask 1045504   ;;  %s2221_s14 = scalar_lea.vmem %s2259_s4, %s1387_s11 }
   0xf   : > { %s323_s26 = scalar_lea.vmem %s2255_s0, %s1522_s21  ;;  %s1384_s27 = sadd.s32 64, %s1522_s21 }
  0x10   : > { %v368_v5 = vld [vmem:[%s323_s26] sm:$0xf]  ;;  %v1538_v6 = vld [vmem:[%s323_s26 + $0x4] sm:$0x1]  ;;  %v370_v9 = vld [vmem:[%s323_s26 + $0x8] sm:$0xf]  ;;  %s1549_s30 = scalar_lea.vmem %s2256_s1, %s1384_s27 }
  0x11   : > { %v371_v10 = vld [vmem:[%s323_s26 + $0xc] sm:$0x1]  ;;  %v372_v11 = vld [vmem:[%s323_s26 + $0x10] sm:$0xf]  ;;  %v373_v12 = vld [vmem:[%s323_s26 + $0x14] sm:$0x1]  ;;  %v1551_v18 = vunpack.c.l.bf16 %v368_v5  ;;  %v389_v19 = vunpack.c.l.bf16 %v1538_v6  ;;  %v1554_v23 = vunpack.c.l.bf16 %v370_v9 }
  0x12   : > { %v374_v13 = vld [vmem:[%s323_s26 + $0x18] sm:$0xf]  ;;  %v375_v14 = vld [vmem:[%s323_s26 + $0x1c] sm:$0x1]  ;;  %v376_v15 = vld [vmem:[%s323_s26 + $0x20] sm:$0xf]  ;;  %v1556_v24 = vunpack.c.l.bf16 %v371_v10  ;;  %v1558_v25 = vunpack.c.l.bf16 %v372_v11  ;;  %v1560_v26 = vunpack.c.l.bf16 %v373_v12 }
  0x13   : > { %v377_v16 = vld [vmem:[%s323_s26 + $0x24] sm:$0x1]  ;;  %v378_v17 = vld [vmem:[%s323_s26 + $0x28] sm:$0xf]  ;;  %v379_v20 = vld [vmem:[%s323_s26 + $0x2c] sm:$0x1]  ;;  %v1563_v30 = vunpack.c.l.bf16 %v374_v13  ;;  %v1565_v31 = vunpack.c.l.bf16 %v375_v14  ;;  %v1567_v32 = vunpack.c.l.bf16 %v376_v15  ;;  %v412_v33 = vmul.f32 %v1534_v2, %v1551_v18 }
  0x14   : > { %v380_v21 = vld [vmem:[%s323_s26 + $0x30] sm:$0xf]  ;;  %v381_v22 = vld [vmem:[%s323_s26 + $0x34] sm:$0x1]  ;;  %v382_v27 = vld [vmem:[%s323_s26 + $0x38] sm:$0xf]  ;;  %v1571_v34 = vunpack.c.l.bf16 %v377_v16  ;;  %v1573_v35 = vunpack.c.l.bf16 %v378_v17  ;;  %v1575_v36 = vunpack.c.l.bf16 %v379_v20  ;;  %v413_v37 = vmul.f32 %v1534_v2, %v1554_v23 }
  0x15   : > { %v383_v28 = vld [vmem:[%s323_s26 + $0x3c] sm:$0x1]  ;;  %v384_v29 = vld [vmem:[%s1549_s30] sm:$0xf]  ;;  %v1579_v38 = vunpack.c.l.bf16 %v380_v21  ;;  %v1581_v39 = vunpack.c.l.bf16 %v381_v22  ;;  %v1583_v40 = vunpack.c.l.bf16 %v382_v27  ;;  %v414_v41 = vmul.f32 %v1534_v2, %v1558_v25  ;;  %s1386_s5 = sadd.s32 72, %s1522_s21 }
  0x16   : > { %v1587_v42 = vunpack.c.l.bf16 %v383_v28  ;;  %v1589_v43 = vunpack.c.l.bf16 %v384_v29  ;;  %v415_v44 = vmul.f32 %v1534_v2, %v1563_v30  ;;  %v429_v45 = vmul.f32 %v428_v3, %v1551_v18  ;;  %s1716_s8 = scalar_lea.vmem %s2257_s2, %s1386_s5 }
  0x17   : > { %v430_v46 = vmul.f32 %v428_v3, %v389_v19  ;;  %v431_v47 = vmul.f32 %v428_v3, %v1554_v23  ;;  %v432_v48 = vmul.f32 %v428_v3, %v1556_v24  ;;  %v433_v49 = vmul.f32 %v428_v3, %v1558_v25 }
  0x18   : > { %v434_v50 = vmul.f32 %v428_v3, %v1560_v26  ;;  %v435_v51 = vmul.f32 %v428_v3, %v1563_v30  ;;  %v436_v52 = vmul.f32 %v428_v3, %v1565_v31  ;;  %v437_v53 = vmul.f32 %v428_v3, %v1567_v32 }
  0x19   : > { %v438_v54 = vmul.f32 %v428_v3, %v1571_v34  ;;  %v439_v55 = vmul.f32 %v428_v3, %v1573_v35  ;;  %v440_v56 = vmul.f32 %v428_v3, %v1575_v36  ;;  %v441_v57 = vmul.f32 %v428_v3, %v1579_v38 }
  0x1a   : > { %v442_v58 = vmul.f32 %v428_v3, %v1581_v39  ;;  %v443_v59 = vmul.f32 %v428_v3, %v1583_v40  ;;  %v444_v60 = vmul.f32 %v428_v3, %v1587_v42  ;;  %v462_v61 = vrot.slane %v429_v45, 1 }
  0x1b   : > { %v463_v62 = vrot.slane %v430_v46, 1  ;;  %v465_v63 = vrot.slane %v431_v47, 1  ;;  %v466_v0 = vrot.slane %v432_v48, 1  ;;  %v468_v5 = vrot.slane %v433_v49, 1 }
  0x1c   : > { %v469_v9 = vrot.slane %v434_v50, 1  ;;  %v471_v10 = vrot.slane %v435_v51, 1  ;;  %v472_v11 = vrot.slane %v436_v52, 1  ;;  %v474_v12 = vrot.slane %v437_v53, 1 }
  0x1d   : > { %v416_v13 = vmul.f32 %v1534_v2, %v1567_v32  ;;  %v464_v14 = vsel %vm461_vm0, %v462_v61, %v463_v62  ;;  %v475_v15 = vrot.slane %v438_v54, 1  ;;  %v477_v16 = vrot.slane %v439_v55, 1 }
  0x1e   : > { %v467_v17 = vsel %vm461_vm0, %v465_v63, %v466_v0  ;;  %v470_v3 = vsel %vm461_vm0, %v468_v5, %v469_v9  ;;  %v478_v20 = vrot.slane %v440_v56, 1  ;;  %v480_v21 = vrot.slane %v441_v57, 1 }
  0x1f   : > { %v473_v22 = vsel %vm461_vm0, %v471_v10, %v472_v11  ;;  %v481_v27 = vrot.slane %v442_v58, 1  ;;  %v483_v28 = vrot.slane %v443_v59, 1  ;;  %v484_v29 = vrot.slane %v444_v60, 1 }
  0x20   : > { %v417_v45 = vmul.f32 %v1534_v2, %v1573_v35  ;;  %v418_v46 = vmul.f32 %v1534_v2, %v1579_v38  ;;  %v419_v47 = vmul.f32 %v1534_v2, %v1583_v40  ;;  %v476_v48 = vsel %vm461_vm0, %v474_v12, %v475_v15 }
  0x21   : > { %v479_v49 = vsel %vm461_vm0, %v477_v16, %v478_v20  ;;  %v494_v50 = vadd.f32 %v464_v14, %v412_v33  ;;  %v495_v51 = vadd.f32 %v467_v17, %v413_v37  ;;  %v496_v52 = vadd.f32 %v470_v3, %v414_v41 }
  0x22   : > { %v482_v53 = vsel %vm461_vm0, %v480_v21, %v481_v27  ;;  %v485_v54 = vsel %vm461_vm0, %v483_v28, %v484_v29  ;;  %v497_v55 = vadd.f32 %v473_v22, %v415_v44  ;;  %v503_v56 = vmul.f32 %v1536_v4, %v1551_v18  ;;  %v385_v22 = vld [vmem:[%s1549_s30 + $0x4] sm:$0x1] }
  0x23   : > { %v504_v57 = vmul.f32 %v1536_v4, %v389_v19  ;;  %v505_v2 = vmul.f32 %v1536_v4, %v1554_v23  ;;  %v506_v33 = vmul.f32 %v1536_v4, %v1556_v24  ;;  %v507_v37 = vmul.f32 %v1536_v4, %v1558_v25 }
  0x24   : > { %v508_v41 = vmul.f32 %v1536_v4, %v1560_v26  ;;  %v509_v44 = vmul.f32 %v1536_v4, %v1563_v30  ;;  %v510_v6 = vmul.f32 %v1536_v4, %v1565_v31  ;;  %v511_v18 = vmul.f32 %v1536_v4, %v1567_v32 }
  0x25   : > { %v512_v19 = vmul.f32 %v1536_v4, %v1571_v34  ;;  %v513_v58 = vmul.f32 %v1536_v4, %v1573_v35  ;;  %v514_v59 = vmul.f32 %v1536_v4, %v1575_v36  ;;  %v515_v60 = vmul.f32 %v1536_v4, %v1579_v38 }
  0x26   : > { %v516_v61 = vmul.f32 %v1536_v4, %v1581_v39  ;;  %v517_v62 = vmul.f32 %v1536_v4, %v1583_v40  ;;  %v518_v63 = vmul.f32 %v1536_v4, %v1587_v42  ;;  %v536_v0 = vrot.slane %v503_v56, 2 }
  0x27   : > { %v537_v5 = vrot.slane %v504_v57, 2  ;;  %v539_v9 = vrot.slane %v505_v2, 2  ;;  %v540_v10 = vrot.slane %v506_v33, 2  ;;  %v542_v11 = vrot.slane %v507_v37, 2 }
  0x28   : > { %v543_v12 = vrot.slane %v508_v41, 2  ;;  %v545_v14 = vrot.slane %v509_v44, 2  ;;  %v546_v15 = vrot.slane %v510_v6, 2  ;;  %v548_v16 = vrot.slane %v511_v18, 2 }
  0x29   : > { %v498_v17 = vadd.f32 %v476_v48, %v416_v13  ;;  %v499_v3 = vadd.f32 %v479_v49, %v417_v45  ;;  %v549_v20 = vrot.slane %v512_v19, 2  ;;  %v551_v21 = vrot.slane %v513_v58, 2 }
  0x2a   : > { %v538_v27 = vsel %vm535_vm1, %v536_v0, %v537_v5  ;;  %v541_v28 = vsel %vm535_vm1, %v539_v9, %v540_v10  ;;  %v552_v29 = vrot.slane %v514_v59, 2  ;;  %v554_v4 = vrot.slane %v515_v60, 2 }
  0x2b   : > { %v544_v56 = vsel %vm535_vm1, %v542_v11, %v543_v12  ;;  %v555_v57 = vrot.slane %v516_v61, 2  ;;  %v557_v2 = vrot.slane %v517_v62, 2  ;;  %v558_v33 = vrot.slane %v518_v63, 2 }
  0x2c   : > { %v500_v37 = vadd.f32 %v482_v53, %v418_v46  ;;  %v501_v41 = vadd.f32 %v485_v54, %v419_v47  ;;  %v547_v44 = vsel %vm535_vm1, %v545_v14, %v546_v15  ;;  %v550_v13 = vsel %vm535_vm1, %v548_v16, %v549_v20 }
  0x2d   : > { %v1665_v45 = vunpack.c.l.bf16 %v385_v22  ;;  %v553_v48 = vsel %vm535_vm1, %v551_v21, %v552_v29  ;;  %v556_v49 = vsel %vm535_vm1, %v554_v4, %v555_v57  ;;  %v559_v6 = vsel %vm535_vm1, %v557_v2, %v558_v33 }
  0x2e   : > { %v568_v18 = vadd.f32 %v538_v27, %v494_v50  ;;  %v569_v19 = vadd.f32 %v541_v28, %v495_v51  ;;  %v570_v58 = vadd.f32 %v544_v56, %v496_v52  ;;  %v577_v59 = vmul.f32 %v1541_v7, %v1554_v23 }
  0x2f   : > { %v571_v46 = vadd.f32 %v547_v44, %v497_v55  ;;  %v572_v47 = vadd.f32 %v550_v13, %v498_v17  ;;  %v578_v53 = vmul.f32 %v1541_v7, %v1558_v25  ;;  %v579_v54 = vmul.f32 %v1541_v7, %v1563_v30 }
  0x30   : > { %v573_v60 = vadd.f32 %v553_v48, %v499_v3  ;;  %v574_v61 = vadd.f32 %v556_v49, %v500_v37  ;;  %v575_v62 = vadd.f32 %v559_v6, %v501_v41  ;;  %v580_v50 = vmul.f32 %v1541_v7, %v1567_v32  ;;  %v386_v49 = vld [vmem:[%s1716_s8] sm:$0xf] }
  0x31   : > { %v581_v51 = vmul.f32 %v1541_v7, %v1573_v35  ;;  %v582_v52 = vmul.f32 %v1541_v7, %v1579_v38  ;;  %v583_v55 = vmul.f32 %v1541_v7, %v1583_v40  ;;  %v584_v63 = vmul.f32 %v1541_v7, %v1589_v43 }
  0x32   : > { %v585_v0 = vadd.f32 %v577_v59, %v568_v18  ;;  %v586_v5 = vadd.f32 %v578_v53, %v569_v19  ;;  %v587_v9 = vadd.f32 %v579_v54, %v570_v58  ;;  %v594_v10 = vmul.f32 %v1544_v8, %v1554_v23 }
  0x33   : > { %v595_v11 = vmul.f32 %v1544_v8, %v1556_v24  ;;  %v596_v12 = vmul.f32 %v1544_v8, %v1558_v25  ;;  %v597_v14 = vmul.f32 %v1544_v8, %v1560_v26  ;;  %v598_v15 = vmul.f32 %v1544_v8, %v1563_v30 }
  0x34   : > { %v599_v7 = vmul.f32 %v1544_v8, %v1565_v31  ;;  %v600_v16 = vmul.f32 %v1544_v8, %v1567_v32  ;;  %v601_v17 = vmul.f32 %v1544_v8, %v1571_v34  ;;  %v602_v3 = vmul.f32 %v1544_v8, %v1573_v35 }
  0x35   : > { %v603_v20 = vmul.f32 %v1544_v8, %v1575_v36  ;;  %v604_v21 = vmul.f32 %v1544_v8, %v1579_v38  ;;  %v605_v22 = vmul.f32 %v1544_v8, %v1581_v39  ;;  %v606_v27 = vmul.f32 %v1544_v8, %v1583_v40 }
  0x36   : > { %v607_v28 = vmul.f32 %v1544_v8, %v1587_v42  ;;  %v608_v29 = vmul.f32 %v1544_v8, %v1589_v43  ;;  %v609_v4 = vmul.f32 %v1544_v8, %v1665_v45  ;;  %v626_v56 = vrot.slane %v594_v10, 1 }
  0x37   : > { %v627_v57 = vrot.slane %v595_v11, 1  ;;  %v629_v2 = vrot.slane %v596_v12, 1  ;;  %v630_v33 = vrot.slane %v597_v14, 1  ;;  %v632_v37 = vrot.slane %v598_v15, 1 }
  0x38   : > { %v633_v41 = vrot.slane %v599_v7, 1  ;;  %v635_v44 = vrot.slane %v600_v16, 1  ;;  %v636_v13 = vrot.slane %v601_v17, 1  ;;  %v638_v48 = vrot.slane %v602_v3, 1 }
  0x39   : > { %v588_v6 = vadd.f32 %v580_v50, %v571_v46  ;;  %v589_v18 = vadd.f32 %v581_v51, %v572_v47  ;;  %v639_v19 = vrot.slane %v603_v20, 1  ;;  %v641_v58 = vrot.slane %v604_v21, 1 }
  0x3a   : > { %v628_v59 = vsel %vm461_vm0, %v626_v56, %v627_v57  ;;  %v631_v53 = vsel %vm461_vm0, %v629_v2, %v630_v33  ;;  %v634_v8 = vsel %vm461_vm0, %v632_v37, %v633_v41  ;;  %v642_v54 = vrot.slane %v605_v22, 1  ;;  %v410_v33 = vld [vmem:[%s2258_s3 + $0x8] sm:$0x7] }
  0x3b   : > { %v644_v10 = vrot.slane %v606_v27, 1  ;;  %v645_v11 = vrot.slane %v607_v28, 1  ;;  %v647_v12 = vrot.slane %v608_v29, 1  ;;  %v648_v14 = vrot.slane %v609_v4, 1 }
  0x3c   : > { %v1728_v15 = vunpack.c.l.bf16 %v386_v49  ;;  %v637_v7 = vsel %vm461_vm0, %v635_v44, %v636_v13  ;;  %v640_v46 = vsel %vm461_vm0, %v638_v48, %v639_v19  ;;  %v590_v47 = vadd.f32 %v582_v52, %v573_v60 }
  0x3d   : > { %v591_v50 = vadd.f32 %v583_v55, %v574_v61  ;;  %v592_v51 = vadd.f32 %v584_v63, %v575_v62  ;;  %v643_v16 = vsel %vm461_vm0, %v641_v58, %v642_v54  ;;  %v658_v17 = vadd.f32 %v628_v59, %v585_v0 }
  0x3e   : > { %v659_v3 = vadd.f32 %v631_v53, %v586_v5  ;;  %v660_v20 = vadd.f32 %v634_v8, %v587_v9  ;;  %v666_v21 = vperm.slane %v1527_v1, 2  ;;  %v646_v22 = vsel %vm461_vm0, %v644_v10, %v645_v11  ;;  %v1756_v8 = vld [vmem:[%s1716_s8 + $0x4] sm:$0x1] }
  0x3f   : > { %v649_v27 = vsel %vm461_vm0, %v647_v12, %v648_v14  ;;  %v661_v28 = vadd.f32 %v637_v7, %v588_v6  ;;  %v662_v29 = vadd.f32 %v640_v46, %v589_v18  ;;  %v663_v19 = vadd.f32 %v643_v16, %v590_v47 }
  0x40   : > { %v667_v4 = vmul.f32 %v666_v21, %v1554_v23  ;;  %v668_v56 = vmul.f32 %v666_v21, %v1556_v24  ;;  %v669_v60 = vmul.f32 %v666_v21, %v1558_v25  ;;  %v670_v61 = vmul.f32 %v666_v21, %v1560_v26 }
  0x41   : > { %v671_v62 = vmul.f32 %v666_v21, %v1563_v30  ;;  %v672_v52 = vmul.f32 %v666_v21, %v1565_v31  ;;  %v673_v1 = vmul.f32 %v666_v21, %v1567_v32  ;;  %v674_v55 = vmul.f32 %v666_v21, %v1571_v34 }
  0x42   : > { %v675_v63 = vmul.f32 %v666_v21, %v1573_v35  ;;  %v676_v0 = vmul.f32 %v666_v21, %v1575_v36  ;;  %v677_v23 = vmul.f32 %v666_v21, %v1579_v38  ;;  %v678_v24 = vmul.f32 %v666_v21, %v1581_v39 }
  0x43   : > { %v679_v5 = vmul.f32 %v666_v21, %v1583_v40  ;;  %v680_v9 = vmul.f32 %v666_v21, %v1587_v42  ;;  %v681_v57 = vmul.f32 %v666_v21, %v1589_v43  ;;  %v682_v2 = vmul.f32 %v666_v21, %v1665_v45 }
  0x44   : > { %v699_v37 = vrot.slane %v667_v4, 2  ;;  %v700_v41 = vrot.slane %v668_v56, 2  ;;  %v702_v44 = vrot.slane %v669_v60, 2  ;;  %v703_v13 = vrot.slane %v670_v61, 2 }
  0x45   : > { %v705_v48 = vrot.slane %v671_v62, 2  ;;  %v706_v49 = vrot.slane %v672_v52, 2  ;;  %v708_v6 = vrot.slane %v673_v1, 2  ;;  %v709_v18 = vrot.slane %v674_v55, 2 }
  0x46   : > { %v664_v58 = vadd.f32 %v646_v22, %v591_v50  ;;  %v711_v59 = vrot.slane %v675_v63, 2  ;;  %v712_v53 = vrot.slane %v676_v0, 2  ;;  %v665_v54 = vadd.f32 %v649_v27, %v592_v51 }
  0x47   : > { %v714_v10 = vrot.slane %v677_v23, 2  ;;  %v715_v11 = vrot.slane %v678_v24, 2  ;;  %v739_v12 = vperm.slane %v410_v33, 0  ;;  %v701_v14 = vsel %vm535_vm1, %v699_v37, %v700_v41 }
  0x48   : > { %v717_v7 = vrot.slane %v679_v5, 2  ;;  %v718_v46 = vrot.slane %v680_v9, 2  ;;  %v720_v21 = vrot.slane %v681_v57, 2  ;;  %v704_v4 = vsel %vm535_vm1, %v702_v44, %v703_v13 }
  0x49   : > { %v707_v56 = vsel %vm535_vm1, %v705_v48, %v706_v49  ;;  %v710_v47 = vsel %vm535_vm1, %v708_v6, %v709_v18  ;;  %v721_v50 = vrot.slane %v682_v2, 2  ;;  %v407_v16 = vunpack.c.l.bf16 %v1756_v8 }
  0x4a   : > { %v713_v22 = vsel %vm535_vm1, %v711_v59, %v712_v53  ;;  %v716_v51 = vsel %vm535_vm1, %v714_v10, %v715_v11  ;;  %v719_v27 = vsel %vm535_vm1, %v717_v7, %v718_v46  ;;  %v731_v61 = vadd.f32 %v701_v14, %v658_v17 }
  0x4b   : > { %v722_v60 = vsel %vm535_vm1, %v720_v21, %v721_v50  ;;  %v740_v62 = vmul.f32 %v739_v12, %v1558_v25  ;;  %v756_v52 = vperm.slane %v410_v33, 1  ;;  %v732_v1 = vadd.f32 %v704_v4, %v659_v3 }
  0x4c   : > { %v733_v55 = vadd.f32 %v707_v56, %v660_v20  ;;  %v734_v63 = vadd.f32 %v710_v47, %v661_v28  ;;  %v1768_v0 = vperm.slane %v410_v33, 2  ;;  %v735_v23 = vadd.f32 %v713_v22, %v662_v29 }
  0x4d   : > { %v736_v24 = vadd.f32 %v716_v51, %v663_v19  ;;  %v737_v5 = vadd.f32 %v719_v27, %v664_v58  ;;  %v738_v9 = vadd.f32 %v722_v60, %v665_v54  ;;  %v741_v57 = vmul.f32 %v739_v12, %v1563_v30 }
  0x4e   : > { %v742_v2 = vmul.f32 %v739_v12, %v1567_v32  ;;  %v743_v37 = vmul.f32 %v739_v12, %v1573_v35  ;;  %v744_v17 = vmul.f32 %v739_v12, %v1579_v38  ;;  %v745_v41 = vmul.f32 %v739_v12, %v1583_v40 }
  0x4f   : > { %v746_v3 = vmul.f32 %v739_v12, %v1589_v43  ;;  %v747_v20 = vmul.f32 %v739_v12, %v1728_v15  ;;  %v748_v28 = vadd.f32 %v740_v62, %v731_v61  ;;  %v757_v29 = vmul.f32 %v756_v52, %v1558_v25 }
  0x50   : > { %v758_v33 = vmul.f32 %v756_v52, %v1560_v26  ;;  %v759_v44 = vmul.f32 %v756_v52, %v1563_v30  ;;  %v760_v13 = vmul.f32 %v756_v52, %v1565_v31  ;;  %v761_v48 = vmul.f32 %v756_v52, %v1567_v32 }
  0x51   : > { %v762_v49 = vmul.f32 %v756_v52, %v1571_v34  ;;  %v763_v6 = vmul.f32 %v756_v52, %v1573_v35  ;;  %v764_v18 = vmul.f32 %v756_v52, %v1575_v36  ;;  %v749_v19 = vadd.f32 %v741_v57, %v732_v1 }
  0x52   : > { %v750_v58 = vadd.f32 %v742_v2, %v733_v55  ;;  %v765_v59 = vmul.f32 %v756_v52, %v1579_v38  ;;  %v766_v53 = vmul.f32 %v756_v52, %v1581_v39  ;;  %v767_v54 = vmul.f32 %v756_v52, %v1583_v40 }
  0x53   : > { %v768_v10 = vmul.f32 %v756_v52, %v1587_v42  ;;  %v769_v11 = vmul.f32 %v756_v52, %v1589_v43  ;;  %v770_v12 = vmul.f32 %v756_v52, %v1665_v45  ;;  %v789_v14 = vrot.slane %v757_v29, 1 }
  0x54   : > { %v790_v7 = vrot.slane %v758_v33, 1  ;;  %v792_v46 = vrot.slane %v759_v44, 1  ;;  %v793_v21 = vrot.slane %v760_v13, 1  ;;  %v795_v4 = vrot.slane %v761_v48, 1 }
  0x55   : > { %v796_v56 = vrot.slane %v762_v49, 1  ;;  %v798_v47 = vrot.slane %v763_v6, 1  ;;  %v799_v50 = vrot.slane %v764_v18, 1  ;;  %v751_v22 = vadd.f32 %v743_v37, %v734_v63 }
  0x56   : > { %v771_v51 = vmul.f32 %v756_v52, %v1728_v15  ;;  %v801_v27 = vrot.slane %v765_v59, 1  ;;  %v802_v60 = vrot.slane %v766_v53, 1  ;;  %v752_v61 = vadd.f32 %v744_v17, %v735_v23 }
  0x57   : > { %v772_v62 = vmul.f32 %v756_v52, %v407_v16  ;;  %v804_v1 = vrot.slane %v767_v54, 1  ;;  %v805_v55 = vrot.slane %v768_v10, 1  ;;  %v791_v57 = vsel %vm461_vm0, %v789_v14, %v790_v7 }
  0x58   : > { %v794_v2 = vsel %vm461_vm0, %v792_v46, %v793_v21  ;;  %v807_v29 = vrot.slane %v769_v11, 1  ;;  %v808_v33 = vrot.slane %v770_v12, 1  ;;  %v753_v44 = vadd.f32 %v745_v41, %v736_v24 }
  0x59   : > { %v754_v13 = vadd.f32 %v746_v3, %v737_v5  ;;  %v797_v63 = vsel %vm461_vm0, %v795_v4, %v796_v56  ;;  %v800_v37 = vsel %vm461_vm0, %v798_v47, %v799_v50  ;;  %v755_v48 = vadd.f32 %v747_v20, %v738_v9 }
  0x5a   : > { %v803_v23 = vsel %vm461_vm0, %v801_v27, %v802_v60  ;;  %v806_v17 = vsel %vm461_vm0, %v804_v1, %v805_v55  ;;  %v810_v52 = vrot.slane %v771_v51, 1  ;;  %v809_v49 = vsel %vm461_vm0, %v807_v29, %v808_v33 }
  0x5b   : > { %v811_v6 = vrot.slane %v772_v62, 1  ;;  %v821_v18 = vadd.f32 %v791_v57, %v748_v28  ;;  %v822_v59 = vadd.f32 %v794_v2, %v749_v19  ;;  %v823_v53 = vadd.f32 %v797_v63, %v750_v58 }
  0x5c   : > { %v824_v54 = vadd.f32 %v800_v37, %v751_v22  ;;  %v830_v24 = vmul.f32 %v1768_v0, %v1558_v25  ;;  %v831_v5 = vmul.f32 %v1768_v0, %v1560_v26  ;;  %v832_v9 = vmul.f32 %v1768_v0, %v1563_v30 }
  0x5d   : > { %v833_v41 = vmul.f32 %v1768_v0, %v1565_v31  ;;  %v834_v3 = vmul.f32 %v1768_v0, %v1567_v32  ;;  %v835_v20 = vmul.f32 %v1768_v0, %v1571_v34  ;;  %v836_v28 = vmul.f32 %v1768_v0, %v1573_v35 }
  0x5e   : > { %v837_v25 = vmul.f32 %v1768_v0, %v1575_v36  ;;  %v838_v26 = vmul.f32 %v1768_v0, %v1579_v38  ;;  %v839_v30 = vmul.f32 %v1768_v0, %v1581_v39  ;;  %v840_v31 = vmul.f32 %v1768_v0, %v1583_v40 }
  0x5f   : > { %v841_v32 = vmul.f32 %v1768_v0, %v1587_v42  ;;  %v842_v34 = vmul.f32 %v1768_v0, %v1589_v43  ;;  %v843_v35 = vmul.f32 %v1768_v0, %v1665_v45  ;;  %v844_v36 = vmul.f32 %v1768_v0, %v1728_v15 }
  0x60   : > { %v845_v38 = vmul.f32 %v1768_v0, %v407_v16  ;;  %v862_v39 = vrot.slane %v830_v24, 2  ;;  %v863_v19 = vrot.slane %v831_v5, 2  ;;  %v865_v58 = vrot.slane %v832_v9, 2 }
  0x61   : > { %v866_v40 = vrot.slane %v833_v41, 2  ;;  %v868_v10 = vrot.slane %v834_v3, 2  ;;  %v869_v11 = vrot.slane %v835_v20, 2  ;;  %v871_v42 = vrot.slane %v836_v28, 2 }
  0x62   : > { %v872_v12 = vrot.slane %v837_v25, 2  ;;  %v874_v14 = vrot.slane %v838_v26, 2  ;;  %v875_v43 = vrot.slane %v839_v30, 2  ;;  %v812_v7 = vsel %vm461_vm0, %v810_v52, %v811_v6 }
  0x63   : > { %v825_v45 = vadd.f32 %v803_v23, %v752_v61  ;;  %v877_v46 = vrot.slane %v840_v31, 2  ;;  %v878_v21 = vrot.slane %v841_v32, 2  ;;  %v826_v15 = vadd.f32 %v806_v17, %v753_v44 }
  0x64   : > { %v880_v4 = vrot.slane %v842_v34, 2  ;;  %v881_v8 = vrot.slane %v843_v35, 2  ;;  %v883_v56 = vrot.slane %v844_v36, 2  ;;  %v827_v16 = vadd.f32 %v809_v49, %v754_v13 }
  0x65   : > { %v864_v0 = vsel %vm535_vm1, %v862_v39, %v863_v19  ;;  %v867_v47 = vsel %vm535_vm1, %v865_v58, %v866_v40  ;;  %v884_v50 = vrot.slane %v845_v38, 2  ;;  %v828_v22 = vadd.f32 %v812_v7, %v755_v48 }
  0x66   : > { %v870_v51 = vsel %vm535_vm1, %v868_v10, %v869_v11  ;;  %v873_v27 = vsel %vm535_vm1, %v871_v42, %v872_v12  ;;  %v876_v60 = vsel %vm535_vm1, %v874_v14, %v875_v43  ;;  %v879_v61 = vsel %vm535_vm1, %v877_v46, %v878_v21 }
  0x67   : > { %v882_v62 = vsel %vm535_vm1, %v880_v4, %v881_v8  ;;  %v885_v1 = vsel %vm535_vm1, %v883_v56, %v884_v50  ;;  %v1843_v55 = vadd.f32 %v864_v0, %v821_v18  ;;  %v1845_v57 = vadd.f32 %v867_v47, %v822_v59 }
  0x68   : > { %v1847_v2 = vadd.f32 %v870_v51, %v823_v53  ;;  %v1849_v29 = vadd.f32 %v873_v27, %v824_v54  ;;  %v1851_v33 = vadd.f32 %v876_v60, %v825_v45  ;;  %v1853_v44 = vadd.f32 %v879_v61, %v826_v15 }
  0x69   : > { %v1855_v13 = vadd.f32 %v882_v62, %v827_v16  ;;  %v1857_v63 = vadd.f32 %v885_v1, %v828_v22  ;;  %v1860_v37 = vmul.f32 0.70710677, %v1843_v55  ;;  %v1863_v48 = vmul.f32 0.70710677, %v1845_v57 }
  0x6a   : > { %v1866_v23 = vmul.f32 0.70710677, %v1847_v2  ;;  %v1869_v17 = vmul.f32 0.70710677, %v1849_v29  ;;  %v1872_v52 = vmul.f32 0.70710677, %v1851_v33 }
  0x6b   : > { %v1875_v49 = vmul.f32 0.70710677, %v1853_v44  ;;  %v1878_v6 = vmul.f32 0.70710677, %v1855_v13  ;;  %v1881_v18 = vmul.f32 0.70710677, %v1857_v63 }
  0x6c   : > { %v1884_v59 = vand.u32 2147483647, %v1860_v37  ;;  %v1887_v53 = vand.u32 2147483647, %v1863_v48  ;;  %v1890_v54 = vand.u32 2147483647, %v1866_v23 }
  0x6d   : > { %v1893_v24 = vand.u32 2147483647, %v1869_v17  ;;  %v1896_v5 = vand.u32 2147483647, %v1872_v52  ;;  %v1899_v9 = vand.u32 2147483647, %v1875_v49 }
  0x6e   : > { %v1902_v41 = vand.u32 2147483647, %v1878_v6  ;;  %v1905_v3 = vand.u32 2147483647, %v1881_v18  ;;  %v942_v20 = vmul.f32 0.3275911, %v1884_v59 }
  0x6f   : > { %v943_v28 = vmul.f32 0.3275911, %v1887_v53  ;;  %v944_v25 = vmul.f32 0.3275911, %v1890_v54  ;;  %v945_v26 = vmul.f32 0.3275911, %v1893_v24 }
  0x70   : > { %v946_v30 = vmul.f32 0.3275911, %v1896_v5  ;;  %v947_v31 = vmul.f32 0.3275911, %v1899_v9  ;;  %v950_v32 = vadd.f32 1.0, %v942_v20 }
  0x71   : > { %v1913_v34 = vadd.f32 1.0, %v943_v28  ;;  %v948_v35 = vmul.f32 0.3275911, %v1902_v41  ;;  %v949_v36 = vmul.f32 0.3275911, %v1905_v3  ;;  %v1917_v38 = vadd.f32 1.0, %v944_v25 }
  0x72   : > { %v1919_v39 = vadd.f32 1.0, %v945_v26  ;;  %1416 = vrcp.f32 %v950_v32  ;;  %v1922_v19 = vadd.f32 1.0, %v946_v30  ;;  %v1924_v58 = vadd.f32 1.0, %v947_v31 }
  0x73   : > { %1418 = vrcp.f32 %v1913_v34  ;;  %v969_v40 = vand.u32 2147483648, %v950_v32  ;;  %v1927_v10 = vadd.f32 1.0, %v948_v35  ;;  %v1929_v11 = vadd.f32 1.0, %v949_v36 }
  0x74   : > { %1420 = vrcp.f32 %v1917_v38  ;;  %v967_v42 = vand.u32 2147483647, %v950_v32  ;;  %v984_v12 = vand.u32 2147483648, %v1913_v34  ;;  %vm963_vm2 = vweird.f32 %v950_v32 }
  0x75   : > { %v982_v14 = vand.u32 2147483647, %v1913_v34  ;;  %v999_v43 = vand.u32 2147483648, %v1917_v38  ;;  %1422 = vrcp.f32 %v1919_v39  ;;  %vm978_vm3 = vweird.f32 %v1913_v34 }
  0x76   : > { %vm993_vm4 = vweird.f32 %v1917_v38  ;;  %v997_v7 = vand.u32 2147483647, %v1917_v38  ;;  %v1014_v45 = vand.u32 2147483648, %v1919_v39  ;;  %v1941_v21 = vor.u32 1.1754944e-38, %v969_v40 }
  0x77   : > { %v1012_v15 = vand.u32 2147483647, %v1919_v39  ;;  %1424 = vrcp.f32 %v1922_v19  ;;  %v1029_v4 = vand.u32 2147483648, %v1922_v19  ;;  %vm1949_vm5 = vcmp.eq.f32.partialorder %v967_v42, 8.507059e+37 }
  0x78   : > { %v1939_v46 = vpop.eup %1416  ;;  %v985_v0 = vor.u32 1.1754944e-38, %v984_v12  ;;  %vm1008_vm6 = vweird.f32 %v1919_v39  ;;  %v1027_v47 = vand.u32 2147483647, %v1922_v19  ;;  %vm1960_vm8 = vcmp.eq.f32.partialorder %v982_v14, 8.507059e+37 }
  0x79   : > { %v1946_v8 = vpop.eup %1418  ;;  %v959_v56 = vmul.f32 %v1939_v46, %v950_v32  ;;  %vm964_vm7 = vweird.f32 %v1939_v46  ;;  %v1000_v27 = vor.u32 1.1754944e-38, %v999_v43  ;;  %vm1023_vm9 = vweird.f32 %v1922_v19 }
  0x7a   : > { %v1955_v50 = vpop.eup %1420  ;;  %v974_v22 = vmul.f32 %v1946_v8, %v1913_v34  ;;  %vm1967_vm10 = vcmp.eq.f32.partialorder %v997_v7, 8.507059e+37  ;;  %v1015_v1 = vor.u32 1.1754944e-38, %v1014_v45  ;;  %1426 = vrcp.f32 %v1924_v58  ;;  %vm1988_vm15 = vmor %vm963_vm2, %vm964_vm7 }
  0x7b   : > { %v960_v60 = vsub.f32 1.0, %v959_v56  ;;  %v989_v61 = vmul.f32 %v1955_v50, %v1917_v38  ;;  %v1423_v20 = vpop.eup %1422  ;;  %vm979_vm11 = vweird.f32 %v1946_v8  ;;  %vm1973_vm12 = vcmp.eq.f32.partialorder %v1012_v15, 8.507059e+37 }
  0x7c   : > { %v975_v28 = vsub.f32 1.0, %v974_v22  ;;  %v1030_v26 = vor.u32 1.1754944e-38, %v1029_v4  ;;  %v1042_v30 = vand.u32 2147483647, %v1924_v58  ;;  %vm994_vm13 = vweird.f32 %v1955_v50  ;;  %vm2000_vm1 = vmor %vm978_vm3, %vm979_vm11 }
  0x7d   : > { %v961_v31 = vmul.f32 %v1939_v46, %v960_v60  ;;  %v990_v35 = vsub.f32 1.0, %v989_v61  ;;  %v1004_v36 = vmul.f32 %v1423_v20, %v1919_v39  ;;  %vm1981_vm14 = vcmp.eq.f32.partialorder %v1027_v47, 8.507059e+37  ;;  %v1425_v42 = vpop.eup %1424  ;;  %vm2011_vm2 = vmor %vm993_vm4, %vm994_vm13 }
  0x7e   : > { %v976_v14 = vmul.f32 %v1946_v8, %v975_v28  ;;  %vm1009_vm0 = vweird.f32 %v1423_v20  ;;  %v1044_v43 = vand.u32 2147483648, %v1924_v58  ;;  %1428 = vrcp.f32 %v1927_v10 }
  0x7f   : > { %v962_v7 = vadd.f32 %v1939_v46, %v961_v31  ;;  %v991_v32 = vmul.f32 %v1955_v50, %v990_v35  ;;  %v1005_v15 = vsub.f32 1.0, %v1004_v36  ;;  %v1019_v4 = vmul.f32 %v1425_v42, %v1922_v19  ;;  %vm2030_vm4 = vmor %vm1008_vm6, %vm1009_vm0 }
  0x80   : > { %v977_v56 = vadd.f32 %v1946_v8, %v976_v14  ;;  %vm1024_vm7 = vweird.f32 %v1425_v42  ;;  %vm1038_vm3 = vweird.f32 %v1924_v58  ;;  %vm2016_vm11 = vcmp.eq.f32.partialorder %v1042_v30, 8.507059e+37  ;;  %v1427_v22 = vpop.eup %1426 }
  0x81   : > { %v966_v60 = vsel %vm1988_vm15, %v1939_v46, %v962_v7  ;;  %v992_v61 = vadd.f32 %v1955_v50, %v991_v32  ;;  %v1006_v28 = vmul.f32 %v1423_v20, %v1005_v15  ;;  %v1020_v38 = vsub.f32 1.0, %v1019_v4  ;;  %vm2048_vm6 = vmor %vm1023_vm9, %vm1024_vm7 }
  0x82   : > { %v981_v31 = vsel %vm2000_vm1, %v1946_v8, %v977_v56  ;;  %v1034_v35 = vmul.f32 %v1427_v22, %v1924_v58  ;;  %v1045_v36 = vor.u32 1.1754944e-38, %v1044_v43  ;;  %v1057_v46 = vand.u32 2147483647, %v1927_v10 }
  0x83   : > { %v996_v12 = vsel %vm2011_vm2, %v1955_v50, %v992_v61  ;;  %v1007_v14 = vadd.f32 %v1423_v20, %v1006_v28  ;;  %v1021_v7 = vmul.f32 %v1425_v42, %v1020_v38  ;;  %vm1053_vm13 = vweird.f32 %v1927_v10 }
  0x84   : > { %v1429_v8 = vpop.eup %1428  ;;  %v2043_v39 = vsel %vm1949_vm5, %v1941_v21, %v966_v60  ;;  %v1035_v45 = vsub.f32 1.0, %v1034_v35  ;;  %vm1039_vm15 = vweird.f32 %v1427_v22  ;;  %v1059_v50 = vand.u32 2147483648, %v1927_v10 }
  0x85   : > { %v2055_v32 = vsel %vm1960_vm8, %v985_v0, %v981_v31  ;;  %v1011_v16 = vsel %vm2030_vm4, %v1423_v20, %v1007_v14  ;;  %v1022_v21 = vadd.f32 %v1425_v42, %v1021_v7  ;;  %v1049_v15 = vmul.f32 %v1429_v8, %v1927_v10  ;;  %vm2077_vm8 = vmor %vm1038_vm3, %vm1039_vm15 }
  0x86   : > { %v2062_v19 = vsel %vm1967_vm10, %v1000_v27, %v996_v12  ;;  %v1036_v4 = vmul.f32 %v1427_v22, %v1035_v45  ;;  %vm2064_vm5 = vcmp.eq.f32.partialorder %v1057_v46, 8.507059e+37  ;;  %1430 = vrcp.f32 %v1929_v11 }
  0x87   : > { %v2071_v0 = vsel %vm1973_vm12, %v1015_v1, %v1011_v16  ;;  %v1026_v51 = vsel %vm2048_vm6, %v1425_v42, %v1022_v21  ;;  %v1050_v27 = vsub.f32 1.0, %v1049_v15  ;;  %vm1054_vm9 = vweird.f32 %v1429_v8 }
  0x88   : > { %v2083_v20 = vsel %vm1981_vm14, %v1030_v26, %v1026_v51  ;;  %v1037_v47 = vadd.f32 %v1427_v22, %v1036_v4  ;;  %v1060_v60 = vor.u32 1.1754944e-38, %v1059_v50  ;;  %v1078_v1 = vmul.f32 1.0614054, %v2043_v39  ;;  %vm2093_vm10 = vmor %vm1053_vm13, %vm1054_vm9 }
  0x89   : > { %v1051_v25 = vmul.f32 %v1429_v8, %v1050_v27  ;;  %v1072_v61 = vand.u32 2147483647, %v1929_v11  ;;  %v1079_v42 = vmul.f32 1.0614054, %v2055_v32  ;;  %v1080_v58 = vmul.f32 1.0614054, %v2062_v19 }
  0x8a   : > { %v1041_v28 = vsel %vm2077_vm8, %v1427_v22, %v1037_v47  ;;  %v1074_v26 = vand.u32 2147483648, %v1929_v11  ;;  %v1081_v38 = vmul.f32 1.0614054, %v2071_v0  ;;  %v1082_v31 = vmul.f32 1.0614054, %v2083_v20 }
  0x8b   : > { %v2102_v30 = vsel %vm2016_vm11, %v1045_v36, %v1041_v28  ;;  %v1052_v35 = vadd.f32 %v1429_v8, %v1051_v25  ;;  %v1086_v46 = vadd.f32 -1.4531521, %v1078_v1  ;;  %v1087_v12 = vadd.f32 -1.4531521, %v1079_v42 }
  0x8c   : > { %v1431_v22 = vpop.eup %1430  ;;  %vm1068_vm12 = vweird.f32 %v1929_v11  ;;  %v1083_v10 = vmul.f32 1.0614054, %v2102_v30  ;;  %v1088_v14 = vadd.f32 -1.4531521, %v1080_v58  ;;  %v1089_v7 = vadd.f32 -1.4531521, %v1081_v38 }
  0x8d   : > { %v1056_v43 = vsel %vm2093_vm10, %v1429_v8, %v1052_v35  ;;  %v1064_v45 = vmul.f32 %v1431_v22, %v1929_v11  ;;  %vm1069_vm14 = vweird.f32 %v1431_v22  ;;  %v1090_v50 = vadd.f32 -1.4531521, %v1082_v31 }
  0x8e   : > { %v2111_v34 = vsel %vm2064_vm5, %v1060_v60, %v1056_v43  ;;  %v1091_v36 = vadd.f32 -1.4531521, %v1083_v10  ;;  %v1094_v16 = vmul.f32 %v1086_v46, %v2043_v39  ;;  %v1095_v21 = vmul.f32 %v1087_v12, %v2055_v32  ;;  %vm1070_vm0 = vmor %vm1068_vm12, %vm1069_vm14 }
  0x8f   : > { %v1065_v15 = vsub.f32 1.0, %v1064_v45  ;;  %v1084_v4 = vmul.f32 1.0614054, %v2111_v34  ;;  %v1096_v51 = vmul.f32 %v1088_v14, %v2062_v19  ;;  %v1097_v8 = vmul.f32 %v1089_v7, %v2071_v0 }
  0x90   : > { %v1098_v62 = vmul.f32 %v1090_v50, %v2083_v20  ;;  %v1099_v27 = vmul.f32 %v1091_v36, %v2102_v30  ;;  %v1102_v47 = vadd.f32 1.4214138, %v1094_v16  ;;  %v1103_v1 = vadd.f32 1.4214138, %v1095_v21 }
  0x91   : > { %v1066_v56 = vmul.f32 %v1431_v22, %v1065_v15  ;;  %v1092_v60 = vadd.f32 -1.4531521, %v1084_v4  ;;  %v1104_v25 = vadd.f32 1.4214138, %v1096_v51  ;;  %v1075_v42 = vor.u32 1.1754944e-38, %v1074_v26 }
  0x92   : > { %vm1073_vm1 = vcmp.eq.f32.partialorder %v1072_v61, 8.507059e+37  ;;  %v1105_v28 = vadd.f32 1.4214138, %v1097_v8  ;;  %v1106_v40 = vadd.f32 1.4214138, %v1098_v62  ;;  %v1110_v35 = vmul.f32 %v1102_v47, %v2043_v39 }
  0x93   : > { %v1067_v58 = vadd.f32 %v1431_v22, %v1066_v56  ;;  %v1100_v38 = vmul.f32 %v1092_v60, %v2111_v34  ;;  %v1107_v31 = vadd.f32 1.4214138, %v1099_v27  ;;  %v1111_v12 = vmul.f32 %v1103_v1, %v2055_v32 }
  0x94   : > { %v1112_v10 = vmul.f32 %v1104_v25, %v2062_v19  ;;  %v2128_v14 = vmul.f32 0.5, %v1843_v55  ;;  %v2131_v11 = vmul.f32 0.5, %v1845_v57  ;;  %v2136_v61 = vmul.f32 0.5, %v1847_v2 }
  0x95   : > { %v1071_v46 = vsel %vm1070_vm0, %v1431_v22, %v1067_v58  ;;  %v1113_v43 = vmul.f32 %v1105_v28, %v2071_v0  ;;  %v1114_v22 = vmul.f32 %v1106_v40, %v2083_v20  ;;  %v2142_v45 = vmul.f32 0.5, %v1849_v29 }
  0x96   : > { %v2133_v26 = vsel %vm1073_vm1, %v1075_v42, %v1071_v46  ;;  %v1108_v50 = vadd.f32 1.4214138, %v1100_v38  ;;  %v1115_v55 = vmul.f32 %v1107_v31, %v2102_v30  ;;  %v1118_v36 = vadd.f32 -0.28449672, %v1110_v35 }
  0x97   : > { %v1085_v7 = vmul.f32 1.0614054, %v2133_v26  ;;  %v1119_v16 = vadd.f32 -0.28449672, %v1111_v12  ;;  %v1120_v21 = vadd.f32 -0.28449672, %v1112_v10 }
  0x98   : > { %v2146_v15 = vmul.f32 0.5, %v1851_v33  ;;  %v2149_v2 = vmul.f32 0.5, %v1853_v44  ;;  %v2152_v4 = vmul.f32 0.5, %v1855_v13  ;;  %v2155_v51 = vmul.f32 0.5, %v1857_v63 }
  0x99   : > { %v1093_v57 = vadd.f32 -1.4531521, %v1085_v7  ;;  %v1121_v8 = vadd.f32 -0.28449672, %v1113_v43  ;;  %v1122_v62 = vadd.f32 -0.28449672, %v1114_v22  ;;  %v1116_v27 = vmul.f32 %v1108_v50, %v2111_v34 }
  0x9a   : > { %v1123_v47 = vadd.f32 -0.28449672, %v1115_v55  ;;  %v1126_v56 = vmul.f32 %v1118_v36, %v2043_v39  ;;  %v1150_v33 = vsub.f32 0.0, %v1884_v59  ;;  %v1127_v44 = vmul.f32 %v1119_v16, %v2055_v32 }
  0x9b   : > { %v1101_v29 = vmul.f32 %v1093_v57, %v2133_v26  ;;  %v1128_v13 = vmul.f32 %v1120_v21, %v2062_v19  ;;  %v1151_v1 = vsub.f32 0.0, %v1887_v53  ;;  %vm918_vm2 = vcmp.ge.f32.partialorder %v1860_v37, 0.0 }
  0x9c   : > { %v1152_v63 = vsub.f32 0.0, %v1890_v54  ;;  %v1153_v25 = vsub.f32 0.0, %v1893_v24  ;;  %v1154_v42 = vsub.f32 0.0, %v1896_v5  ;;  %v1155_v58 = vsub.f32 0.0, %v1899_v9 }
  0x9d   : > { %v1109_v60 = vadd.f32 1.4214138, %v1101_v29  ;;  %vm919_vm7 = vcmp.ge.f32.partialorder %v1863_v48, 0.0  ;;  %v1129_v40 = vmul.f32 %v1121_v8, %v2071_v0  ;;  %v1156_v38 = vsub.f32 0.0, %v1902_v41 }
  0x9e   : > { %v1157_v31 = vsub.f32 0.0, %v1905_v3  ;;  %vm920_vm3 = vcmp.ge.f32.partialorder %v1866_v23, 0.0  ;;  %v1158_v35 = vmul.f32 %v1150_v33, %v1884_v59  ;;  %v1159_v46 = vmul.f32 %v1151_v1, %v1887_v53 }
  0x9f   : > { %v1117_v28 = vmul.f32 %v1109_v60, %v2133_v26  ;;  %v1160_v12 = vmul.f32 %v1152_v63, %v1890_v54  ;;  %v1161_v10 = vmul.f32 %v1153_v25, %v1893_v24  ;;  %vm921_vm11 = vcmp.ge.f32.partialorder %v1869_v17, 0.0 }
  0xa0   : > { %vm922_vm4 = vcmp.ge.f32.partialorder %v1872_v52, 0.0  ;;  %v1124_v7 = vadd.f32 -0.28449672, %v1116_v27  ;;  %v1162_v22 = vmul.f32 %v1154_v42, %v1896_v5  ;;  %v1163_v50 = vmul.f32 %v1155_v58, %v1899_v9 }
  0xa1   : > { %v1125_v43 = vadd.f32 -0.28449672, %v1117_v28  ;;  %vm923_vm13 = vcmp.ge.f32.partialorder %v1875_v49, 0.0  ;;  %v1164_v59 = vmul.f32 %v1156_v38, %v1902_v41  ;;  %v1166_v55 = vmul.f32 1.442695, %v1158_v35 }
  0xa2   : > { %v1168_v53 = vmul.f32 1.442695, %v1159_v46  ;;  %v1170_v36 = vmul.f32 1.442695, %v1160_v12  ;;  %vm924_vm6 = vcmp.ge.f32.partialorder %v1878_v6, 0.0  ;;  %v1130_v54 = vmul.f32 %v1122_v62, %v2083_v20 }
  0xa3   : > { %v1134_v24 = vadd.f32 0.2548296, %v1126_v56  ;;  %v1165_v57 = vmul.f32 %v1157_v31, %v1905_v3  ;;  %v1172_v16 = vmul.f32 1.442695, %v1161_v10  ;;  %v1131_v21 = vmul.f32 %v1123_v47, %v2102_v30 }
  0xa4   : > { %v1135_v5 = vadd.f32 0.2548296, %v1127_v44  ;;  %1432 = vpow2.f32 %v1166_v55  ;;  %v1174_v9 = vmul.f32 1.442695, %v1162_v22  ;;  %v1132_v29 = vmul.f32 %v1124_v7, %v2111_v34 }
  0xa5   : > { %v1136_v8 = vadd.f32 0.2548296, %v1128_v13  ;;  %1434 = vpow2.f32 %v1168_v53  ;;  %v1176_v41 = vmul.f32 1.442695, %v1163_v50  ;;  %v1133_v27 = vmul.f32 %v1125_v43, %v2133_v26 }
  0xa6   : > { %v1137_v33 = vadd.f32 0.2548296, %v1129_v40  ;;  %1436 = vpow2.f32 %v1170_v36  ;;  %v1178_v60 = vmul.f32 1.442695, %v1164_v59  ;;  %v1138_v62 = vadd.f32 0.2548296, %v1130_v54 }
  0xa7   : > { %v1142_v56 = vmul.f32 %v1134_v24, %v2043_v39  ;;  %1438 = vpow2.f32 %v1172_v16  ;;  %v1180_v3 = vmul.f32 1.442695, %v1165_v57  ;;  %vm925_vm15 = vcmp.ge.f32.partialorder %v1881_v18, 0.0 }
  0xa8   : > { %v1139_v47 = vadd.f32 0.2548296, %v1131_v21  ;;  %v1143_v44 = vmul.f32 %v1135_v5, %v2055_v32  ;;  %1440 = vpow2.f32 %v1174_v9  ;;  %v1472_v1 = vmov -1.0  }
  0xa9   : > { %v926_v13 = vsel %vm918_vm2, 1.0, %v1472_v1  ;;  %v1140_v63 = vadd.f32 0.2548296, %v1132_v29  ;;  %v1144_v25 = vmul.f32 %v1136_v8, %v2062_v19  ;;  %1442 = vpow2.f32 %v1176_v41 }
  0xaa   : > { %v1433_v42 = vpop.eup %1432  ;;  %v927_v39 = vsel %vm919_vm7, 1.0, %v1472_v1  ;;  %v1141_v58 = vadd.f32 0.2548296, %v1133_v27  ;;  %v1145_v28 = vmul.f32 %v1137_v33, %v2071_v0  ;;  %1444 = vpow2.f32 %v1178_v60 }
  0xab   : > { %v1435_v40 = vpop.eup %1434  ;;  %v928_v32 = vsel %vm920_vm3, 1.0, %v1472_v1  ;;  %v1146_v38 = vmul.f32 %v1138_v62, %v2083_v20  ;;  %1446 = vpow2.f32 %v1180_v3  ;;  %v1182_v37 = vmul.f32 %v1433_v42, %v1142_v56 }
  0xac   : > { %v1437_v31 = vpop.eup %1436  ;;  %v929_v19 = vsel %vm921_vm11, 1.0, %v1472_v1  ;;  %v930_v48 = vsel %vm922_vm4, 1.0, %v1472_v1  ;;  %v1147_v35 = vmul.f32 %v1139_v47, %v2102_v30  ;;  %v1183_v46 = vmul.f32 %v1435_v40, %v1143_v44 }
  0xad   : > { %v1439_v0 = vpop.eup %1438  ;;  %v931_v12 = vsel %vm923_vm13, 1.0, %v1472_v1  ;;  %v1148_v23 = vmul.f32 %v1140_v63, %v2111_v34  ;;  %v1184_v10 = vmul.f32 %v1437_v31, %v1144_v25  ;;  %v1190_v20 = vsub.f32 1.0, %v1182_v37 }
  0xae   : > { %v1441_v7 = vpop.eup %1440  ;;  %v932_v17 = vsel %vm924_vm6, 1.0, %v1472_v1  ;;  %v1149_v43 = vmul.f32 %v1141_v58, %v2133_v26  ;;  %v1185_v52 = vmul.f32 %v1439_v0, %v1145_v28  ;;  %v1191_v22 = vsub.f32 1.0, %v1183_v46 }
  0xaf   : > { %v1443_v50 = vpop.eup %1442  ;;  %v933_v30 = vsel %vm925_vm15, 1.0, %v1472_v1  ;;  %v1186_v59 = vmul.f32 %v1441_v7, %v1146_v38  ;;  %v1192_v49 = vsub.f32 1.0, %v1184_v10  ;;  %v1198_v55 = vmul.f32 %v1190_v20, %v926_v13 }
  0xb0   : > { %v1445_v53 = vpop.eup %1444  ;;  %v1187_v34 = vmul.f32 %v1443_v50, %v1147_v35  ;;  %v1193_v36 = vsub.f32 1.0, %v1185_v52  ;;  %v1199_v54 = vmul.f32 %v1191_v22, %v927_v39  ;;  %vm1230_vm5 = vcmask 257024  }
  0xb1   : > { %v1447_v24 = vpop.eup %1446  ;;  %v1188_v6 = vmul.f32 %v1445_v53, %v1148_v23  ;;  %v1194_v57 = vsub.f32 1.0, %v1186_v59  ;;  %v1200_v16 = vmul.f32 %v1192_v49, %v928_v32  ;;  %v1206_v26 = vadd.f32 1.0, %v1198_v55 }
  0xb2   : > { %v1189_v21 = vmul.f32 %v1447_v24, %v1149_v43  ;;  %v1195_v5 = vsub.f32 1.0, %v1187_v34  ;;  %v1201_v9 = vmul.f32 %v1193_v36, %v929_v19  ;;  %v1207_v29 = vadd.f32 1.0, %v1199_v54 }
  0xb3   : > { %v1196_v18 = vsub.f32 1.0, %v1188_v6  ;;  %v1202_v8 = vmul.f32 %v1194_v57, %v930_v48  ;;  %v1208_v41 = vadd.f32 1.0, %v1200_v16  ;;  %v1214_v27 = vmul.f32 %v1206_v26, %v2128_v14 }
  0xb4   : > { %v1197_v33 = vsub.f32 1.0, %v1189_v21  ;;  %v1203_v60 = vmul.f32 %v1195_v5, %v931_v12  ;;  %v1209_v62 = vadd.f32 1.0, %v1201_v9  ;;  %v1215_v56 = vmul.f32 %v1207_v29, %v2131_v11 }
  0xb5   : > { %v1204_v3 = vmul.f32 %v1196_v18, %v932_v17  ;;  %v1210_v47 = vadd.f32 1.0, %v1202_v8  ;;  %v1216_v44 = vmul.f32 %v1208_v41, %v2136_v61  ;;  %v1222_v1 = vpack.c.bf16 %v1214_v27, %v1214_v27 }
  0xb6   : > { %v1205_v13 = vmul.f32 %v1197_v33, %v933_v30  ;;  %v1211_v14 = vadd.f32 1.0, %v1203_v60  ;;  %v1217_v63 = vmul.f32 %v1209_v62, %v2142_v45  ;;  %v1223_v25 = vpack.c.bf16 %v1215_v56, %v1215_v56 }
  0xb7   : > { %v1212_v42 = vadd.f32 1.0, %v1204_v3  ;;  %v1218_v39 = vmul.f32 %v1210_v47, %v2146_v15  ;;  %v1224_v58 = vpack.c.bf16 %v1216_v44, %v1216_v44  ;;  %1231 = vst.msk [vmem:[%s2221_s14] sm:$0xf] %vm1230_vm5, %v1222_v1 }
  0xb8   : > { %v1213_v11 = vadd.f32 1.0, %v1205_v13  ;;  %v1219_v61 = vmul.f32 %v1211_v14, %v2149_v2  ;;  %v1225_v28 = vpack.c.bf16 %v1217_v63, %v1217_v63  ;;  %1232 = vst.msk [vmem:[%s2221_s14 + $0x4] sm:$0xf] %vm1230_vm5, %v1223_v25 }
  0xb9   : > { %v1220_v40 = vmul.f32 %v1212_v42, %v2152_v4  ;;  %v1226_v45 = vpack.c.bf16 %v1218_v39, %v1218_v39  ;;  %1233 = vst.msk [vmem:[%s2221_s14 + $0x8] sm:$0xf] %vm1230_vm5, %v1224_v58 }
  0xba   : > { %v1221_v32 = vmul.f32 %v1213_v11, %v2155_v51  ;;  %v1227_v15 = vpack.c.bf16 %v1219_v61, %v1219_v61  ;;  %1234 = vst.msk [vmem:[%s2221_s14 + $0xc] sm:$0xf] %vm1230_vm5, %v1225_v28 }
  0xbb   : > { %v1228_v38 = vpack.c.bf16 %v1220_v40, %v1220_v40  ;;  %1235 = vst.msk [vmem:[%s2221_s14 + $0x10] sm:$0xf] %vm1230_vm5, %v1226_v45 }
  0xbc   : > { %v1229_v37 = vpack.c.bf16 %v1221_v32, %v1221_v32  ;;  %1236 = vst.msk [vmem:[%s2221_s14 + $0x14] sm:$0xf] %vm1230_vm5, %v1227_v15 }
  0xbd   : > { %1237 = vst.msk [vmem:[%s2221_s14 + $0x18] sm:$0xf] %vm1230_vm5, %v1228_v38 }
  0xbe   : > { %1238 = vst.msk [vmem:[%s2221_s14 + $0x1c] sm:$0xf] %vm1230_vm5, %v1229_v37 }
  0xbf PF: > { %s14_s17 = sadd.s32 1, %s1470_s17   ;;  %s2288_s15 = smov %s1466_s16 }
  0xc0   : > { %p11_p5 = scmp.ge.s32.totalorder %s14_s17, 4   ;;  %s2289_s16 = smov %s2291_s18 }
  0xc2   :  { %13 = sbr.rel (!%p11_p5) target bundleno = 2 (0x2), region = 72 }

// kernel: cross_msab_forward.20
= control target key start
LH: loop header
LB: loop body
LE: loop exit
PB: predicated region body
PF: predicated region fallthrough
CT: control target
= control target key end

     0   :  { %vm93_vm0 = vcmask 261120   ;;  %vm167_vm1 = vcmask 64512   ;;  %s418_s1 = inlined_call_operand.vmem [shape: f32[32,8], index: 1, kind: input, shape index: {}]   ;;  %s419_s0 = inlined_call_operand.vmem [shape: bf16[128,32], index: 0, kind: input, shape index: {}]   ;;  %s420_s2 = inlined_call_operand.vmem [shape: f32[128,8], index: 2, kind: input, shape index: {}]   ;;  %s421_s3 = inlined_call_operand.vmem [shape: f32[128,8], index: 3, kind: output, shape index: {}]  }
   0x1   :  { %v33_v0 = vld [vmem:[%s418_s1 + $0x10] sm:$0xff]  ;;  %v34_v1 = vld [vmem:[%s418_s1 + $0x18] sm:$0xff]  ;;  %v31_v2 = vld [vmem:[%s418_s1] sm:$0xff] }
   0x2   :  { %v36_v3 = vpack.c.bf16 %v34_v1, %v33_v0  ;;  %v32_v4 = vld [vmem:[%s418_s1 + $0x8] sm:$0xff]  ;;  %v228_v6 = vld [vmem:[%s419_s0] sm:$0xff]  ;;  %v230_v7 = vld [vmem:[%s419_s0 + $0x10] sm:$0xff] }
   0x3   :  { %v35_v5 = vpack.c.bf16 %v32_v4, %v31_v2  ;;  %v232_v8 = vld [vmem:[%s419_s0 + $0x20] sm:$0xff]  ;;  %v234_v9 = vld [vmem:[%s419_s0 + $0x30] sm:$0xff]  ;;  %v229_v10 = vld [vmem:[%s419_s0 + $0x8] sm:$0xff] }
   0x4   :  { %124 = vmatpush.bf16.msra.mxu0 %v36_v3  ;;  %236 = vmatpush.bf16.msra.mxu1 %v36_v3  ;;  %v231_v11 = vld [vmem:[%s419_s0 + $0x18] sm:$0xff]  ;;  %v233_v12 = vld [vmem:[%s419_s0 + $0x28] sm:$0xff]  ;;  %v37_v14 = vld [vmem:[%s420_s2] sm:$0xff] }
   0x5   :  { %237 = vmatpush.bf16.msra.mxu2 %v36_v3  ;;  %238 = vmatpush.bf16.msra.mxu3 %v36_v3  ;;  %v235_v13 = vld [vmem:[%s419_s0 + $0x38] sm:$0xff]  ;;  %v41_v15 = vld [vmem:[%s420_s2 + $0x20] sm:$0xff]  ;;  %v38_v22 = vld [vmem:[%s420_s2 + $0x8] sm:$0xff] }
   0x6   :  { %v45_v20 = vld [vmem:[%s420_s2 + $0x40] sm:$0xff]  ;;  %v42_v23 = vld [vmem:[%s420_s2 + $0x28] sm:$0xff]  ;;  %v39_v34 = vld [vmem:[%s420_s2 + $0x10] sm:$0xff] }
   0x7   :  { %v49_v21 = vld [vmem:[%s420_s2 + $0x60] sm:$0xff]  ;;  %v46_v32 = vld [vmem:[%s420_s2 + $0x48] sm:$0xff]  ;;  %v43_v35 = vld [vmem:[%s420_s2 + $0x30] sm:$0xff] }
   0x8   :  { %125 = vmatpush.bf16.msra.mxu0 %v35_v5  ;;  %239 = vmatpush.bf16.msra.mxu1 %v35_v5  ;;  %v50_v33 = vld [vmem:[%s420_s2 + $0x68] sm:$0xff]  ;;  %v47_v44 = vld [vmem:[%s420_s2 + $0x50] sm:$0xff]  ;;  %v40_v46 = vld [vmem:[%s420_s2 + $0x18] sm:$0xff] }
   0x9   :  { %240 = vmatpush.bf16.msra.mxu2 %v35_v5  ;;  %241 = vmatpush.bf16.msra.mxu3 %v35_v5  ;;  %v51_v45 = vld [vmem:[%s420_s2 + $0x70] sm:$0xff]  ;;  %v44_v47 = vld [vmem:[%s420_s2 + $0x38] sm:$0xff] }
   0xa   :  { %v48_v56 = vld [vmem:[%s420_s2 + $0x58] sm:$0xff] }
   0xb   :  { %220 = vmatmul.msk.bf16.vlgmr.msra.gmra.mxu0 %vm93_vm0, %v228_v6  ;;  %222 = vmatmul.msk.bf16.vlgmr.msra.gmra.mxu1 %vm93_vm0, %v230_v7  ;;  %v52_v57 = vld [vmem:[%s420_s2 + $0x78] sm:$0xff] }
   0xc   :  { %224 = vmatmul.msk.bf16.vlgmr.msra.gmra.mxu2 %vm93_vm0, %v232_v8  ;;  %226 = vmatmul.msk.bf16.vlgmr.msra.gmra.mxu3 %vm93_vm0, %v234_v9 }
  0x1b   :  { %221 = vmatmul.msk.bf16.gmra.mxu0 %vm93_vm0, %v229_v10  ;;  %223 = vmatmul.msk.bf16.gmra.mxu1 %vm93_vm0, %v231_v11 }
  0x1c   :  { %225 = vmatmul.msk.bf16.gmra.mxu2 %vm93_vm0, %v233_v12  ;;  %227 = vmatmul.msk.bf16.gmra.mxu3 %vm93_vm0, %v235_v13 }
  0x88   :  { %v127_v16 = vpop.f32.mrf.mxu0  ;;  %v137_v17 = vpop.f32.mrf.mxu1 }
  0x89   :  { %v128_v18 = vadd.f32 %v127_v16, %v37_v14  ;;  %v138_v19 = vadd.f32 %v137_v17, %v41_v15 }
  0x8b   :  { %168 = vst.msk [vmem:[%s421_s3] sm:$0xff] %vm167_vm1, %v128_v18 }
  0x8c   :  { %172 = vst.msk [vmem:[%s421_s3 + $0x20] sm:$0xff] %vm167_vm1, %v138_v19 }
  0x8f   :  { %v147_v24 = vpop.f32.mrf.mxu2  ;;  %v157_v25 = vpop.f32.mrf.mxu3 }
  0x90   :  { %v148_v26 = vadd.f32 %v147_v24, %v45_v20  ;;  %v158_v27 = vadd.f32 %v157_v25, %v49_v21  ;;  %v129_v28 = vpop.f32.mrf.mxu0  ;;  %v139_v29 = vpop.f32.mrf.mxu1 }
  0x91   :  { %v130_v30 = vadd.f32 %v129_v28, %v38_v22  ;;  %v140_v31 = vadd.f32 %v139_v29, %v42_v23 }
  0x92   :  { %176 = vst.msk [vmem:[%s421_s3 + $0x40] sm:$0xff] %vm167_vm1, %v148_v26 }
  0x93   :  { %180 = vst.msk [vmem:[%s421_s3 + $0x60] sm:$0xff] %vm167_vm1, %v158_v27 }
  0x94   :  { %169 = vst.msk [vmem:[%s421_s3 + $0x8] sm:$0xff] %vm167_vm1, %v130_v30 }
  0x95   :  { %173 = vst.msk [vmem:[%s421_s3 + $0x28] sm:$0xff] %vm167_vm1, %v140_v31 }
  0x97   :  { %v149_v36 = vpop.f32.mrf.mxu2  ;;  %v159_v37 = vpop.f32.mrf.mxu3 }
  0x98   :  { %v150_v38 = vadd.f32 %v149_v36, %v46_v32  ;;  %v160_v39 = vadd.f32 %v159_v37, %v50_v33  ;;  %v132_v40 = vpop.f32.mrf.mxu0  ;;  %v142_v41 = vpop.f32.mrf.mxu1 }
  0x99   :  { %v133_v42 = vadd.f32 %v132_v40, %v39_v34  ;;  %v143_v43 = vadd.f32 %v142_v41, %v43_v35 }
  0x9a   :  { %177 = vst.msk [vmem:[%s421_s3 + $0x48] sm:$0xff] %vm167_vm1, %v150_v38 }
  0x9b   :  { %181 = vst.msk [vmem:[%s421_s3 + $0x68] sm:$0xff] %vm167_vm1, %v160_v39 }
  0x9c   :  { %170 = vst.msk [vmem:[%s421_s3 + $0x10] sm:$0xff] %vm167_vm1, %v133_v42 }
  0x9d   :  { %174 = vst.msk [vmem:[%s421_s3 + $0x30] sm:$0xff] %vm167_vm1, %v143_v43 }
  0x9f   :  { %v152_v48 = vpop.f32.mrf.mxu2  ;;  %v162_v49 = vpop.f32.mrf.mxu3 }
  0xa0   :  { %v153_v50 = vadd.f32 %v152_v48, %v47_v44  ;;  %v163_v51 = vadd.f32 %v162_v49, %v51_v45  ;;  %v134_v52 = vpop.f32.mrf.mxu0  ;;  %v144_v53 = vpop.f32.mrf.mxu1 }
  0xa1   :  { %v135_v54 = vadd.f32 %v134_v52, %v40_v46  ;;  %v145_v55 = vadd.f32 %v144_v53, %v44_v47 }
  0xa2   :  { %178 = vst.msk [vmem:[%s421_s3 + $0x50] sm:$0xff] %vm167_vm1, %v153_v50 }
  0xa3   :  { %182 = vst.msk [vmem:[%s421_s3 + $0x70] sm:$0xff] %vm167_vm1, %v163_v51 }
  0xa4   :  { %171 = vst.msk [vmem:[%s421_s3 + $0x18] sm:$0xff] %vm167_vm1, %v135_v54 }
  0xa5   :  { %175 = vst.msk [vmem:[%s421_s3 + $0x38] sm:$0xff] %vm167_vm1, %v145_v55 }
  0xa7   :  { %v154_v58 = vpop.f32.mrf.mxu2  ;;  %v164_v59 = vpop.f32.mrf.mxu3 }
  0xa8   :  { %v155_v60 = vadd.f32 %v154_v58, %v48_v56  ;;  %v165_v61 = vadd.f32 %v164_v59, %v52_v57 }
  0xaa   :  { %179 = vst.msk [vmem:[%s421_s3 + $0x58] sm:$0xff] %vm167_vm1, %v155_v60 }
  0xab   :  { %183 = vst.msk [vmem:[%s421_s3 + $0x78] sm:$0xff] %vm167_vm1, %v165_v61 }

</bundles_post_ra>
